<compile_context>
chip_gen: v7x
topology: tpu7x:2x2x1
jax: 0.10.0
libtpu: 0.0.40
codegen_flags: <defaults>
</compile_context>

<pallas_src>
import math
import functools

import jax
import jax.numpy as jnp
from jax.experimental import pallas as pl
from jax.experimental.pallas import tpu as pltpu

CONFIG = dict(
    VOCAB_SIZES=dict(
        turn=2,
        white_kingside_castling_rights=2,
        white_queenside_castling_rights=2,
        black_kingside_castling_rights=2,
        black_queenside_castling_rights=2,
        board_positions=13,
        moves=64,
    ),
    D_MODEL=32,
    N_HEADS=2,
    D_QUERIES=16,
    D_VALUES=16,
    D_INNER=64,
    N_LAYERS=2,
    DROPOUT=0.0,  # inference: dropout is identity
)
SEQ_LEN = 1 + 4 + 64   # turn + 4 castling rights + 64 squares = 69 real positions
SEQ_PAD = 72           # padded to a multiple of 8 sublanes -> free (B,S,D)<->(B*S,D) reshape
MOVES_PAD = 128        # lane-dense output block; sliced back to 64 in the wrapper
B_TILE = 128           # boards per grid step (VMEM-safe on v5e/v6e/v7x)


def _layer_norm(x, g, b, eps=1e-5):
    mu = jnp.mean(x, axis=-1, keepdims=True)
    var = jnp.mean(jnp.square(x - mu), axis=-1, keepdims=True)
    return (x - mu) * jax.lax.rsqrt(var + eps) * g + b


def encoder_kernel(emb_ref, pos_ref, ln_ref,
                   wqkv_ref, bqkv_ref, wo_ref, bo_ref,
                   w1_ref, b1_ref, w2_ref, b2_ref,
                   lnf_ref, wfc_ref, bfc_ref,
                   out_ref, *, n_layers, n_heads, d_queries, d_values,
                   d_model, seq_len):
    B, S, D = emb_ref.shape          # (B_TILE, SEQ_PAD, D)
    BS = B * S
    hq = n_heads * d_queries
    hv = n_heads * d_values
    scale = math.sqrt(d_model)
    inv_sqrt_dq = 1.0 / math.sqrt(d_queries)

    # residual stream, f32: (B, S, D)
    x = emb_ref[...].astype(jnp.float32) * scale + pos_ref[...]

    # additive mask for padded key positions (columns >= seq_len); hoisted out of the loop
    col = jax.lax.broadcasted_iota(jnp.int32, (1, 1, S), 2)
    key_mask = jnp.where(col >= seq_len, -1e9, 0.0).astype(jnp.float32)

    for l in range(n_layers):
        lnl = ln_ref[l]                                   # (4, D): ln1_g, ln1_b, ln2_g, ln2_b

        # ---- multi-head self-attention (pre-LN, residual) ----
        h = _layer_norm(x, lnl[0:1, :], lnl[1:2, :])
        h2 = h.reshape(BS, D).astype(jnp.bfloat16)        # wide M for the MXU
        qkv = (jnp.dot(h2, wqkv_ref[l], preferred_element_type=jnp.float32)
               + bqkv_ref[l])                             # (BS, 2*hq+hv) f32
        qkv3 = qkv.reshape(B, S, 2 * hq + hv)

        ctx_heads = []
        for hd in range(n_heads):
            qh = qkv3[:, :, hd * d_queries:(hd + 1) * d_queries]
            kh = qkv3[:, :, hq + hd * d_queries: hq + (hd + 1) * d_queries]
            vh = qkv3[:, :, 2 * hq + hd * d_values: 2 * hq + (hd + 1) * d_values]
            s = jnp.einsum('bqd,bkd->bqk',
                           qh.astype(jnp.bfloat16), kh.astype(jnp.bfloat16),
                           preferred_element_type=jnp.float32)
            s = s * inv_sqrt_dq + key_mask
            s = s - jnp.max(s, axis=-1, keepdims=True)
            p = jnp.exp(s)
            p = p * pl.reciprocal(jnp.sum(p, axis=-1, keepdims=True), approx=True)
            ctx = jnp.einsum('bqk,bkd->bqd',
                             p.astype(jnp.bfloat16), vh.astype(jnp.bfloat16),
                             preferred_element_type=jnp.float32)
            ctx_heads.append(ctx)
        # concat-then-Wo (single matmul) == per-head Wo-slice accumulation
        ctx_full = jnp.concatenate(ctx_heads, axis=-1)     # (B, S, hv)
        ctx2 = ctx_full.reshape(BS, hv).astype(jnp.bfloat16)
        attn = (jnp.dot(ctx2, wo_ref[l], preferred_element_type=jnp.float32)
                + bo_ref[l])                               # (BS, D)
        x = x + attn.reshape(B, S, D)

        # ---- position-wise FFN (pre-LN, residual) ----
        h = _layer_norm(x, lnl[2:3, :], lnl[3:4, :])
        h2 = h.reshape(BS, D).astype(jnp.bfloat16)
        f = jnp.maximum(
            jnp.dot(h2, w1_ref[l], preferred_element_type=jnp.float32) + b1_ref[l],
            0.0)
        y = (jnp.dot(f.astype(jnp.bfloat16), w2_ref[l],
                     preferred_element_type=jnp.float32) + b2_ref[l])
        x = x + y.reshape(B, S, D)

    # final LayerNorm + output head on position 0 only (LayerNorm is per-row,
    # so slicing position 0 first is equivalent and cheaper).
    lnf = lnf_ref[...]
    x0 = _layer_norm(x[:, 0, :], lnf[0:1, :], lnf[1:2, :])            # (B, D)
    logits = (jnp.dot(x0.astype(jnp.bfloat16), wfc_ref[...],
                      preferred_element_type=jnp.float32) + bfc_ref[...])
    out_ref[...] = logits                                             # (B, MOVES_PAD)


def init_params(key):
    vs = CONFIG['VOCAB_SIZES']
    D, L, H = CONFIG['D_MODEL'], CONFIG['N_LAYERS'], CONFIG['N_HEADS']
    dq, dv, di = CONFIG['D_QUERIES'], CONFIG['D_VALUES'], CONFIG['D_INNER']
    n_moves = vs['moves']
    std = D ** -0.5
    keys = iter(jax.random.split(key, 16))

    def emb(k, n):
        return std * jax.random.normal(k, (n, D), jnp.float32)

    def xavier(k, shape, fan_in, fan_out):
        bound = math.sqrt(6.0 / (fan_in + fan_out))
        return jax.random.uniform(k, shape, jnp.float32, -bound, bound)

    hq, hv = H * dq, H * dv
    # separate xavier inits per projection (matches PyTorch), then fuse Q/K/V
    wq = xavier(next(keys), (L, D, hq), D, hq)
    wk = xavier(next(keys), (L, D, hq), D, hq)
    wv = xavier(next(keys), (L, D, hv), D, hv)

    return dict(
        # embedding tables: normal(0, d_model^-0.5), as in init_weights()
        turn_emb=emb(next(keys), vs['turn']),
        wkc_emb=emb(next(keys), vs['white_kingside_castling_rights']),
        wqc_emb=emb(next(keys), vs['white_queenside_castling_rights']),
        bkc_emb=emb(next(keys), vs['black_kingside_castling_rights']),
        bqc_emb=emb(next(keys), vs['black_queenside_castling_rights']),
        board_emb=emb(next(keys), vs['board_positions']),
        pos_emb=emb(next(keys), SEQ_LEN),
        # packed per-layer parameters (leading N_LAYERS axis)
        ln_attn_ffn=jnp.concatenate([                   # (L, 4, D): ln1_g, ln1_b, ln2_g, ln2_b
            jnp.ones((L, 1, D), jnp.float32), jnp.zeros((L, 1, D), jnp.float32),
            jnp.ones((L, 1, D), jnp.float32), jnp.zeros((L, 1, D), jnp.float32)], axis=1),
        wqkv=jnp.concatenate([wq, wk, wv], axis=-1),    # (L, D, 2*hq+hv)
        bqkv=jnp.zeros((L, 1, 2 * hq + hv), jnp.float32),
        wo=xavier(next(keys), (L, hv, D), hv, D),
        bo=jnp.zeros((L, 1, D), jnp.float32),
        w1=xavier(next(keys), (L, D, di), D, di),
        b1=jnp.zeros((L, 1, di), jnp.float32),
        w2=xavier(next(keys), (L, di, D), di, D),
        b2=jnp.zeros((L, 1, D), jnp.float32),
        # final LayerNorm + output head
        lnf=jnp.concatenate([jnp.ones((1, D), jnp.float32),
                             jnp.zeros((1, D), jnp.float32)], axis=0),   # (2, D)
        wfc=xavier(next(keys), (D, n_moves), D, n_moves),
        bfc=jnp.zeros((1, n_moves), jnp.float32),
    )


def chess_transformer_encoder(params, batch, b_tile=B_TILE):
    D = CONFIG['D_MODEL']
    L, H = CONFIG['N_LAYERS'], CONFIG['N_HEADS']
    dq, dv = CONFIG['D_QUERIES'], CONFIG['D_VALUES']
    n_moves = CONFIG['VOCAB_SIZES']['moves']
    S, SP = SEQ_LEN, SEQ_PAD

    # Embedding-table gathers are glue (plain JAX); the transformer runs in-kernel.
    emb = jnp.concatenate([
        params['turn_emb'][batch['turns']],                              # (N, 1, D)
        params['wkc_emb'][batch['white_kingside_castling_rights']],      # (N, 1, D)
        params['wqc_emb'][batch['white_queenside_castling_rights']],     # (N, 1, D)
        params['bkc_emb'][batch['black_kingside_castling_rights']],      # (N, 1, D)
        params['bqc_emb'][batch['black_queenside_castling_rights']],     # (N, 1, D)
        params['board_emb'][batch['board_positions']],                   # (N, 64, D)
    ], axis=1).astype(jnp.float32)                                       # (N, 69, D)
    N = emb.shape[0]

    bt = min(b_tile, N)
    n_pad = ((N + bt - 1) // bt) * bt
    n_tiles = n_pad // bt

    # pad seq -> SEQ_PAD and batch -> multiple of bt; activations bf16 (halves DMA bytes)
    emb_p = jnp.pad(emb, ((0, n_pad - N), (0, SP - S), (0, 0))).astype(jnp.bfloat16)
    pos_p = jnp.pad(params['pos_emb'], ((0, SP - S), (0, 0)))            # f32

    # matmul weights -> bf16 (f32 accumulation in-kernel); biases / LN params stay f32
    wfc_p = jnp.pad(params['wfc'], ((0, 0), (0, MOVES_PAD - n_moves))).astype(jnp.bfloat16)
    bfc_p = jnp.pad(params['bfc'], ((0, 0), (0, MOVES_PAD - n_moves)))
    weights = [
        params['ln_attn_ffn'],
        params['wqkv'].astype(jnp.bfloat16), params['bqkv'],
        params['wo'].astype(jnp.bfloat16), params['bo'],
        params['w1'].astype(jnp.bfloat16), params['b1'],
        params['w2'].astype(jnp.bfloat16), params['b2'],
        params['lnf'], wfc_p, bfc_p,
    ]

    def resident(arr):
        return pl.BlockSpec(arr.shape, lambda i, _z=(0,) * arr.ndim: _z)

    in_specs = ([pl.BlockSpec((bt, SP, D), lambda i: (i, 0, 0)),   # per-tile board slab
                 resident(pos_p)]
                + [resident(w) for w in weights])

    kernel = functools.partial(
        encoder_kernel, n_layers=L, n_heads=H, d_queries=dq, d_values=dv,
        d_model=D, seq_len=S)

    out = pl.pallas_call(
        kernel,
        out_shape=jax.ShapeDtypeStruct((n_pad, MOVES_PAD), jnp.float32),
        grid=(n_tiles,),
        in_specs=in_specs,
        out_specs=pl.BlockSpec((bt, MOVES_PAD), lambda i: (i, 0)),
        compiler_params=pltpu.CompilerParams(
            dimension_semantics=("parallel",)),      # shards batch tiles across v7x's 2 TCs
    )(emb_p, pos_p, *weights)

    # strip batch/lane padding and restore (N, 1, moves)
    return out[:N, :n_moves].reshape(N, 1, n_moves)


if __name__ == "__main__":
    key = jax.random.PRNGKey(0)
    pkey, dkey = jax.random.split(key)
    params = init_params(pkey)

    N = 2
    ks = jax.random.split(dkey, 6)
    batch = dict(
        turns=jax.random.randint(ks[0], (N, 1), 0, 2),
        white_kingside_castling_rights=jax.random.randint(ks[1], (N, 1), 0, 2),
        white_queenside_castling_rights=jax.random.randint(ks[2], (N, 1), 0, 2),
        black_kingside_castling_rights=jax.random.randint(ks[3], (N, 1), 0, 2),
        black_queenside_castling_rights=jax.random.randint(ks[4], (N, 1), 0, 2),
        board_positions=jax.random.randint(
            ks[5], (N, 64), 0, CONFIG['VOCAB_SIZES']['board_positions']),
    )

    out = chess_transformer_encoder(params, batch)
    out = jax.block_until_ready(out)
    assert out.shape == (N, 1, CONFIG['VOCAB_SIZES']['moves'])
    assert bool(jnp.all(jnp.isfinite(out)))
    print("KERNEL_OK")
</pallas_src>

<mosaic_0001>
module attributes {stable_mosaic.version = 11 : i64} {
  func.func @encoder_kernel(%arg0: i32, %arg1: memref<2x72x32xbf16, #tpu.memory_space<vmem>>, %arg2: memref<72x32xf32, #tpu.memory_space<vmem>>, %arg3: memref<2x4x32xf32, #tpu.memory_space<vmem>>, %arg4: memref<2x32x96xbf16, #tpu.memory_space<vmem>>, %arg5: memref<2x1x96xf32, #tpu.memory_space<vmem>>, %arg6: memref<2x32x32xbf16, #tpu.memory_space<vmem>>, %arg7: memref<2x1x32xf32, #tpu.memory_space<vmem>>, %arg8: memref<2x32x64xbf16, #tpu.memory_space<vmem>>, %arg9: memref<2x1x64xf32, #tpu.memory_space<vmem>>, %arg10: memref<2x64x32xbf16, #tpu.memory_space<vmem>>, %arg11: memref<2x1x32xf32, #tpu.memory_space<vmem>>, %arg12: memref<2x32xf32, #tpu.memory_space<vmem>>, %arg13: memref<32x128xbf16, #tpu.memory_space<vmem>>, %arg14: memref<1x128xf32, #tpu.memory_space<vmem>>, %arg15: memref<2x128xf32, #tpu.memory_space<vmem>>) attributes {dimension_semantics = [#tpu.dimension_semantics<parallel>], iteration_bounds = array<i64: 1>, scalar_prefetch = 0 : i64, scratch_operands = 0 : i64, tpu.core_type = #tpu.core_type<tc>, window_params = [{transform_indices = @transform_0, window_bounds = array<i64: 2, 72, 32>}, {pipeline_mode = #tpu.pipeline_mode<synchronous>, transform_indices = @transform_1, window_bounds = array<i64: 72, 32>}, {pipeline_mode = #tpu.pipeline_mode<synchronous>, transform_indices = @transform_2, window_bounds = array<i64: 2, 4, 32>}, {pipeline_mode = #tpu.pipeline_mode<synchronous>, transform_indices = @transform_3, window_bounds = array<i64: 2, 32, 96>}, {pipeline_mode = #tpu.pipeline_mode<synchronous>, transform_indices = @transform_4, window_bounds = array<i64: 2, 1, 96>}, {pipeline_mode = #tpu.pipeline_mode<synchronous>, transform_indices = @transform_5, window_bounds = array<i64: 2, 32, 32>}, {pipeline_mode = #tpu.pipeline_mode<synchronous>, transform_indices = @transform_6, window_bounds = array<i64: 2, 1, 32>}, {pipeline_mode = #tpu.pipeline_mode<synchronous>, transform_indices = @transform_7, window_bounds = array<i64: 2, 32, 64>}, {pipeline_mode = #tpu.pipeline_mode<synchronous>, transform_indices = @transform_8, window_bounds = array<i64: 2, 1, 64>}, {pipeline_mode = #tpu.pipeline_mode<synchronous>, transform_indices = @transform_9, window_bounds = array<i64: 2, 64, 32>}, {pipeline_mode = #tpu.pipeline_mode<synchronous>, transform_indices = @transform_10, window_bounds = array<i64: 2, 1, 32>}, {pipeline_mode = #tpu.pipeline_mode<synchronous>, transform_indices = @transform_11, window_bounds = array<i64: 2, 32>}, {pipeline_mode = #tpu.pipeline_mode<synchronous>, transform_indices = @transform_12, window_bounds = array<i64: 32, 128>}, {pipeline_mode = #tpu.pipeline_mode<synchronous>, transform_indices = @transform_13, window_bounds = array<i64: 1, 128>}, {transform_indices = @transform_14, window_bounds = array<i64: 2, 128>}]} {
    %c0 = arith.constant 0 : index
    %c0_0 = arith.constant 0 : index
    %c0_1 = arith.constant 0 : index
    %0 = vector.load %arg1[%c0, %c0_0, %c0_1] : memref<2x72x32xbf16, #tpu.memory_space<vmem>>, vector<2x72x32xbf16>
    %1 = arith.extf %0 : vector<2x72x32xbf16> to vector<2x72x32xf32>
    %cst = arith.constant 5.65685415 : f32
    %2 = vector.broadcast %cst : f32 to vector<2x72x32xf32>
    %3 = arith.mulf %1, %2 : vector<2x72x32xf32>
    %c0_2 = arith.constant 0 : index
    %c0_3 = arith.constant 0 : index
    %4 = vector.load %arg2[%c0_2, %c0_3] : memref<72x32xf32, #tpu.memory_space<vmem>>, vector<72x32xf32>
    %5 = vector.shape_cast %4 : vector<72x32xf32> to vector<1x72x32xf32>
    %6 = vector.broadcast %5 : vector<1x72x32xf32> to vector<2x72x32xf32>
    %7 = arith.addf %3, %6 : vector<2x72x32xf32>
    %8 = tpu.iota {dimensions = array<i32: 2>} : vector<1x1x72xi32>
    %c69_i32 = arith.constant 69 : i32
    %9 = vector.broadcast %c69_i32 : i32 to vector<1x1x72xi32>
    %10 = arith.cmpi sge, %8, %9 : vector<1x1x72xi32>
    %cst_4 = arith.constant -1.000000e+09 : f32
    %cst_5 = arith.constant 0.000000e+00 : f32
    %11 = vector.broadcast %cst_4 : f32 to vector<1x1x72xf32>
    %12 = vector.broadcast %cst_5 : f32 to vector<1x1x72xf32>
    %13 = arith.select %10, %11, %12 : vector<1x1x72xi1>, vector<1x1x72xf32>
    %c0_6 = arith.constant 0 : index
    %c0_7 = arith.constant 0 : index
    %c0_8 = arith.constant 0 : index
    %14 = vector.load %arg3[%c0_6, %c0_7, %c0_8] : memref<2x4x32xf32, #tpu.memory_space<vmem>>, vector<1x4x32xf32>
    %15 = vector.shape_cast %14 : vector<1x4x32xf32> to vector<4x32xf32>
    %16 = vector.extract_strided_slice %15 {offsets = [0, 0], sizes = [1, 32], strides = [1, 1]} : vector<4x32xf32> to vector<1x32xf32>
    %17 = vector.extract_strided_slice %15 {offsets = [1, 0], sizes = [1, 32], strides = [1, 1]} : vector<4x32xf32> to vector<1x32xf32>
    %cst_9 = arith.constant dense<0.000000e+00> : vector<2x72xf32>
    %18 = vector.multi_reduction <add>, %7, %cst_9 [2] : vector<2x72x32xf32> to vector<2x72xf32>
    %19 = vector.shape_cast %18 : vector<2x72xf32> to vector<2x72x1xf32>
    %cst_10 = arith.constant 3.200000e+01 : f32
    %20 = vector.broadcast %cst_10 : f32 to vector<2x72x1xf32>
    %21 = arith.divf %19, %20 : vector<2x72x1xf32>
    %22 = vector.broadcast %21 : vector<2x72x1xf32> to vector<2x72x32xf32>
    %23 = arith.subf %7, %22 : vector<2x72x32xf32>
    %24 = arith.mulf %23, %23 : vector<2x72x32xf32>
    %cst_11 = arith.constant dense<0.000000e+00> : vector<2x72xf32>
    %25 = vector.multi_reduction <add>, %24, %cst_11 [2] : vector<2x72x32xf32> to vector<2x72xf32>
    %26 = vector.shape_cast %25 : vector<2x72xf32> to vector<2x72x1xf32>
    %cst_12 = arith.constant 3.200000e+01 : f32
    %27 = vector.broadcast %cst_12 : f32 to vector<2x72x1xf32>
    %28 = arith.divf %26, %27 : vector<2x72x1xf32>
    %29 = vector.broadcast %21 : vector<2x72x1xf32> to vector<2x72x32xf32>
    %30 = arith.subf %7, %29 : vector<2x72x32xf32>
    %cst_13 = arith.constant 9.99999974E-6 : f32
    %31 = vector.broadcast %cst_13 : f32 to vector<2x72x1xf32>
    %32 = arith.addf %28, %31 : vector<2x72x1xf32>
    %33 = math.rsqrt %32 : vector<2x72x1xf32>
    %34 = vector.broadcast %33 : vector<2x72x1xf32> to vector<2x72x32xf32>
    %35 = arith.mulf %30, %34 : vector<2x72x32xf32>
    %36 = vector.shape_cast %16 : vector<1x32xf32> to vector<1x1x32xf32>
    %37 = vector.broadcast %36 : vector<1x1x32xf32> to vector<2x72x32xf32>
    %38 = arith.mulf %35, %37 : vector<2x72x32xf32>
    %39 = vector.shape_cast %17 : vector<1x32xf32> to vector<1x1x32xf32>
    %40 = vector.broadcast %39 : vector<1x1x32xf32> to vector<2x72x32xf32>
    %41 = arith.addf %38, %40 : vector<2x72x32xf32>
    %42 = vector.shape_cast %41 : vector<2x72x32xf32> to vector<144x32xf32>
    %43 = arith.truncf %42 : vector<144x32xf32> to vector<144x32xbf16>
    %c0_14 = arith.constant 0 : index
    %c0_15 = arith.constant 0 : index
    %c0_16 = arith.constant 0 : index
    %44 = vector.load %arg4[%c0_14, %c0_15, %c0_16] : memref<2x32x96xbf16, #tpu.memory_space<vmem>>, vector<1x32x96xbf16>
    %45 = vector.shape_cast %44 : vector<1x32x96xbf16> to vector<32x96xbf16>
    %cst_17 = arith.constant dense<0.000000e+00> : vector<144x96xf32>
    %46 = tpu.matmul %43, %45, %cst_17 {dimension_numbers = #tpu.dot_dimension_numbers<[1], [0], [0], [1], [0, 0, 1, 1], [], []>} : vector<144x32xbf16>, vector<32x96xbf16>, vector<144x96xf32> -> vector<144x96xf32>
    %c0_18 = arith.constant 0 : index
    %c0_19 = arith.constant 0 : index
    %c0_20 = arith.constant 0 : index
    %47 = vector.load %arg5[%c0_18, %c0_19, %c0_20] : memref<2x1x96xf32, #tpu.memory_space<vmem>>, vector<1x1x96xf32>
    %48 = vector.shape_cast %47 : vector<1x1x96xf32> to vector<1x96xf32>
    %49 = vector.broadcast %48 : vector<1x96xf32> to vector<144x96xf32>
    %50 = arith.addf %46, %49 : vector<144x96xf32>
    %51 = vector.shape_cast %50 : vector<144x96xf32> to vector<2x72x96xf32>
    %52 = vector.extract_strided_slice %51 {offsets = [0, 0, 0], sizes = [2, 72, 16], strides = [1, 1, 1]} : vector<2x72x96xf32> to vector<2x72x16xf32>
    %53 = vector.extract_strided_slice %51 {offsets = [0, 0, 32], sizes = [2, 72, 16], strides = [1, 1, 1]} : vector<2x72x96xf32> to vector<2x72x16xf32>
    %54 = vector.extract_strided_slice %51 {offsets = [0, 0, 64], sizes = [2, 72, 16], strides = [1, 1, 1]} : vector<2x72x96xf32> to vector<2x72x16xf32>
    %55 = arith.truncf %52 : vector<2x72x16xf32> to vector<2x72x16xbf16>
    %56 = arith.truncf %53 : vector<2x72x16xf32> to vector<2x72x16xbf16>
    "tpu.trace_start"() <{level = 10 : i32, message = "bqd,bkd->bqk"}> : () -> ()
    %cst_21 = arith.constant dense<0.000000e+00> : vector<2x72x72xf32>
    %57 = tpu.matmul %55, %56, %cst_21 {dimension_numbers = #tpu.dot_dimension_numbers<[2], [2], [1], [1], [0, 0, 0, 1, 1, 1], [0], [0]>} : vector<2x72x16xbf16>, vector<2x72x16xbf16>, vector<2x72x72xf32> -> vector<2x72x72xf32>
    "tpu.trace_stop"() : () -> ()
    %cst_22 = arith.constant 2.500000e-01 : f32
    %58 = vector.broadcast %cst_22 : f32 to vector<2x72x72xf32>
    %59 = arith.mulf %57, %58 : vector<2x72x72xf32>
    %60 = vector.broadcast %13 : vector<1x1x72xf32> to vector<2x72x72xf32>
    %61 = arith.addf %59, %60 : vector<2x72x72xf32>
    %cst_23 = arith.constant dense<0xFF800000> : vector<2x72xf32>
    %62 = vector.multi_reduction <maximumf>, %61, %cst_23 [2] : vector<2x72x72xf32> to vector<2x72xf32>
    %63 = vector.shape_cast %62 : vector<2x72xf32> to vector<2x72x1xf32>
    %64 = vector.broadcast %63 : vector<2x72x1xf32> to vector<2x72x72xf32>
    %65 = arith.subf %61, %64 : vector<2x72x72xf32>
    %66 = math.exp %65 : vector<2x72x72xf32>
    %cst_24 = arith.constant dense<0.000000e+00> : vector<2x72xf32>
    %67 = vector.multi_reduction <add>, %66, %cst_24 [2] : vector<2x72x72xf32> to vector<2x72xf32>
    %68 = vector.shape_cast %67 : vector<2x72xf32> to vector<2x72x1xf32>
    %69 = tpu.reciprocal %68 {approx = true} : vector<2x72x1xf32> -> vector<2x72x1xf32>
    %70 = vector.broadcast %69 : vector<2x72x1xf32> to vector<2x72x72xf32>
    %71 = arith.mulf %66, %70 : vector<2x72x72xf32>
    %72 = arith.truncf %71 : vector<2x72x72xf32> to vector<2x72x72xbf16>
    %73 = arith.truncf %54 : vector<2x72x16xf32> to vector<2x72x16xbf16>
    "tpu.trace_start"() <{level = 10 : i32, message = "bqk,bkd->bqd"}> : () -> ()
    %cst_25 = arith.constant dense<0.000000e+00> : vector<2x72x16xf32>
    %74 = tpu.matmul %72, %73, %cst_25 {dimension_numbers = #tpu.dot_dimension_numbers<[2], [1], [1], [2], [0, 0, 0, 1, 1, 2], [0], [0]>} : vector<2x72x72xbf16>, vector<2x72x16xbf16>, vector<2x72x16xf32> -> vector<2x72x16xf32>
    "tpu.trace_stop"() : () -> ()
    %75 = vector.extract_strided_slice %51 {offsets = [0, 0, 16], sizes = [2, 72, 16], strides = [1, 1, 1]} : vector<2x72x96xf32> to vector<2x72x16xf32>
    %76 = vector.extract_strided_slice %51 {offsets = [0, 0, 48], sizes = [2, 72, 16], strides = [1, 1, 1]} : vector<2x72x96xf32> to vector<2x72x16xf32>
    %77 = vector.extract_strided_slice %51 {offsets = [0, 0, 80], sizes = [2, 72, 16], strides = [1, 1, 1]} : vector<2x72x96xf32> to vector<2x72x16xf32>
    %78 = arith.truncf %75 : vector<2x72x16xf32> to vector<2x72x16xbf16>
    %79 = arith.truncf %76 : vector<2x72x16xf32> to vector<2x72x16xbf16>
    "tpu.trace_start"() <{level = 10 : i32, message = "bqd,bkd->bqk"}> : () -> ()
    %cst_26 = arith.constant dense<0.000000e+00> : vector<2x72x72xf32>
    %80 = tpu.matmul %78, %79, %cst_26 {dimension_numbers = #tpu.dot_dimension_numbers<[2], [2], [1], [1], [0, 0, 0, 1, 1, 1], [0], [0]>} : vector<2x72x16xbf16>, vector<2x72x16xbf16>, vector<2x72x72xf32> -> vector<2x72x72xf32>
    "tpu.trace_stop"() : () -> ()
    %cst_27 = arith.constant 2.500000e-01 : f32
    %81 = vector.broadcast %cst_27 : f32 to vector<2x72x72xf32>
    %82 = arith.mulf %80, %81 : vector<2x72x72xf32>
    %83 = vector.broadcast %13 : vector<1x1x72xf32> to vector<2x72x72xf32>
    %84 = arith.addf %82, %83 : vector<2x72x72xf32>
    %cst_28 = arith.constant dense<0xFF800000> : vector<2x72xf32>
    %85 = vector.multi_reduction <maximumf>, %84, %cst_28 [2] : vector<2x72x72xf32> to vector<2x72xf32>
    %86 = vector.shape_cast %85 : vector<2x72xf32> to vector<2x72x1xf32>
    %87 = vector.broadcast %86 : vector<2x72x1xf32> to vector<2x72x72xf32>
    %88 = arith.subf %84, %87 : vector<2x72x72xf32>
    %89 = math.exp %88 : vector<2x72x72xf32>
    %cst_29 = arith.constant dense<0.000000e+00> : vector<2x72xf32>
    %90 = vector.multi_reduction <add>, %89, %cst_29 [2] : vector<2x72x72xf32> to vector<2x72xf32>
    %91 = vector.shape_cast %90 : vector<2x72xf32> to vector<2x72x1xf32>
    %92 = tpu.reciprocal %91 {approx = true} : vector<2x72x1xf32> -> vector<2x72x1xf32>
    %93 = vector.broadcast %92 : vector<2x72x1xf32> to vector<2x72x72xf32>
    %94 = arith.mulf %89, %93 : vector<2x72x72xf32>
    %95 = arith.truncf %94 : vector<2x72x72xf32> to vector<2x72x72xbf16>
    %96 = arith.truncf %77 : vector<2x72x16xf32> to vector<2x72x16xbf16>
    "tpu.trace_start"() <{level = 10 : i32, message = "bqk,bkd->bqd"}> : () -> ()
    %cst_30 = arith.constant dense<0.000000e+00> : vector<2x72x16xf32>
    %97 = tpu.matmul %95, %96, %cst_30 {dimension_numbers = #tpu.dot_dimension_numbers<[2], [1], [1], [2], [0, 0, 0, 1, 1, 2], [0], [0]>} : vector<2x72x72xbf16>, vector<2x72x16xbf16>, vector<2x72x16xf32> -> vector<2x72x16xf32>
    "tpu.trace_stop"() : () -> ()
    %98 = tpu.concatenate %74, %97 in 2 : vector<2x72x16xf32>, vector<2x72x16xf32> -> vector<2x72x32xf32>
    %99 = vector.shape_cast %98 : vector<2x72x32xf32> to vector<144x32xf32>
    %100 = arith.truncf %99 : vector<144x32xf32> to vector<144x32xbf16>
    %c0_31 = arith.constant 0 : index
    %c0_32 = arith.constant 0 : index
    %c0_33 = arith.constant 0 : index
    %101 = vector.load %arg6[%c0_31, %c0_32, %c0_33] : memref<2x32x32xbf16, #tpu.memory_space<vmem>>, vector<1x32x32xbf16>
    %102 = vector.shape_cast %101 : vector<1x32x32xbf16> to vector<32x32xbf16>
    %cst_34 = arith.constant dense<0.000000e+00> : vector<144x32xf32>
    %103 = tpu.matmul %100, %102, %cst_34 {dimension_numbers = #tpu.dot_dimension_numbers<[1], [0], [0], [1], [0, 0, 1, 1], [], []>} : vector<144x32xbf16>, vector<32x32xbf16>, vector<144x32xf32> -> vector<144x32xf32>
    %c0_35 = arith.constant 0 : index
    %c0_36 = arith.constant 0 : index
    %c0_37 = arith.constant 0 : index
    %104 = vector.load %arg7[%c0_35, %c0_36, %c0_37] : memref<2x1x32xf32, #tpu.memory_space<vmem>>, vector<1x1x32xf32>
    %105 = vector.shape_cast %104 : vector<1x1x32xf32> to vector<1x32xf32>
    %106 = vector.broadcast %105 : vector<1x32xf32> to vector<144x32xf32>
    %107 = arith.addf %103, %106 : vector<144x32xf32>
    %108 = vector.shape_cast %107 : vector<144x32xf32> to vector<2x72x32xf32>
    %109 = arith.addf %7, %108 : vector<2x72x32xf32>
    %110 = vector.extract_strided_slice %15 {offsets = [2, 0], sizes = [1, 32], strides = [1, 1]} : vector<4x32xf32> to vector<1x32xf32>
    %111 = vector.extract_strided_slice %15 {offsets = [3, 0], sizes = [1, 32], strides = [1, 1]} : vector<4x32xf32> to vector<1x32xf32>
    %cst_38 = arith.constant dense<0.000000e+00> : vector<2x72xf32>
    %112 = vector.multi_reduction <add>, %109, %cst_38 [2] : vector<2x72x32xf32> to vector<2x72xf32>
    %113 = vector.shape_cast %112 : vector<2x72xf32> to vector<2x72x1xf32>
    %cst_39 = arith.constant 3.200000e+01 : f32
    %114 = vector.broadcast %cst_39 : f32 to vector<2x72x1xf32>
    %115 = arith.divf %113, %114 : vector<2x72x1xf32>
    %116 = vector.broadcast %115 : vector<2x72x1xf32> to vector<2x72x32xf32>
    %117 = arith.subf %109, %116 : vector<2x72x32xf32>
    %118 = arith.mulf %117, %117 : vector<2x72x32xf32>
    %cst_40 = arith.constant dense<0.000000e+00> : vector<2x72xf32>
    %119 = vector.multi_reduction <add>, %118, %cst_40 [2] : vector<2x72x32xf32> to vector<2x72xf32>
    %120 = vector.shape_cast %119 : vector<2x72xf32> to vector<2x72x1xf32>
    %cst_41 = arith.constant 3.200000e+01 : f32
    %121 = vector.broadcast %cst_41 : f32 to vector<2x72x1xf32>
    %122 = arith.divf %120, %121 : vector<2x72x1xf32>
    %123 = vector.broadcast %115 : vector<2x72x1xf32> to vector<2x72x32xf32>
    %124 = arith.subf %109, %123 : vector<2x72x32xf32>
    %cst_42 = arith.constant 9.99999974E-6 : f32
    %125 = vector.broadcast %cst_42 : f32 to vector<2x72x1xf32>
    %126 = arith.addf %122, %125 : vector<2x72x1xf32>
    %127 = math.rsqrt %126 : vector<2x72x1xf32>
    %128 = vector.broadcast %127 : vector<2x72x1xf32> to vector<2x72x32xf32>
    %129 = arith.mulf %124, %128 : vector<2x72x32xf32>
    %130 = vector.shape_cast %110 : vector<1x32xf32> to vector<1x1x32xf32>
    %131 = vector.broadcast %130 : vector<1x1x32xf32> to vector<2x72x32xf32>
    %132 = arith.mulf %129, %131 : vector<2x72x32xf32>
    %133 = vector.shape_cast %111 : vector<1x32xf32> to vector<1x1x32xf32>
    %134 = vector.broadcast %133 : vector<1x1x32xf32> to vector<2x72x32xf32>
    %135 = arith.addf %132, %134 : vector<2x72x32xf32>
    %136 = vector.shape_cast %135 : vector<2x72x32xf32> to vector<144x32xf32>
    %137 = arith.truncf %136 : vector<144x32xf32> to vector<144x32xbf16>
    %c0_43 = arith.constant 0 : index
    %c0_44 = arith.constant 0 : index
    %c0_45 = arith.constant 0 : index
    %138 = vector.load %arg8[%c0_43, %c0_44, %c0_45] : memref<2x32x64xbf16, #tpu.memory_space<vmem>>, vector<1x32x64xbf16>
    %139 = vector.shape_cast %138 : vector<1x32x64xbf16> to vector<32x64xbf16>
    %cst_46 = arith.constant dense<0.000000e+00> : vector<144x64xf32>
    %140 = tpu.matmul %137, %139, %cst_46 {dimension_numbers = #tpu.dot_dimension_numbers<[1], [0], [0], [1], [0, 0, 1, 1], [], []>} : vector<144x32xbf16>, vector<32x64xbf16>, vector<144x64xf32> -> vector<144x64xf32>
    %c0_47 = arith.constant 0 : index
    %c0_48 = arith.constant 0 : index
    %c0_49 = arith.constant 0 : index
    %141 = vector.load %arg9[%c0_47, %c0_48, %c0_49] : memref<2x1x64xf32, #tpu.memory_space<vmem>>, vector<1x1x64xf32>
    %142 = vector.shape_cast %141 : vector<1x1x64xf32> to vector<1x64xf32>
    %143 = vector.broadcast %142 : vector<1x64xf32> to vector<144x64xf32>
    %144 = arith.addf %140, %143 : vector<144x64xf32>
    %cst_50 = arith.constant 0.000000e+00 : f32
    %145 = vector.broadcast %cst_50 : f32 to vector<144x64xf32>
    %146 = arith.maximumf %144, %145 : vector<144x64xf32>
    %147 = arith.truncf %146 : vector<144x64xf32> to vector<144x64xbf16>
    %c0_51 = arith.constant 0 : index
    %c0_52 = arith.constant 0 : index
    %c0_53 = arith.constant 0 : index
    %148 = vector.load %arg10[%c0_51, %c0_52, %c0_53] : memref<2x64x32xbf16, #tpu.memory_space<vmem>>, vector<1x64x32xbf16>
    %149 = vector.shape_cast %148 : vector<1x64x32xbf16> to vector<64x32xbf16>
    %cst_54 = arith.constant dense<0.000000e+00> : vector<144x32xf32>
    %150 = tpu.matmul %147, %149, %cst_54 {dimension_numbers = #tpu.dot_dimension_numbers<[1], [0], [0], [1], [0, 0, 1, 1], [], []>} : vector<144x64xbf16>, vector<64x32xbf16>, vector<144x32xf32> -> vector<144x32xf32>
    %c0_55 = arith.constant 0 : index
    %c0_56 = arith.constant 0 : index
    %c0_57 = arith.constant 0 : index
    %151 = vector.load %arg11[%c0_55, %c0_56, %c0_57] : memref<2x1x32xf32, #tpu.memory_space<vmem>>, vector<1x1x32xf32>
    %152 = vector.shape_cast %151 : vector<1x1x32xf32> to vector<1x32xf32>
    %153 = vector.broadcast %152 : vector<1x32xf32> to vector<144x32xf32>
    %154 = arith.addf %150, %153 : vector<144x32xf32>
    %155 = vector.shape_cast %154 : vector<144x32xf32> to vector<2x72x32xf32>
    %156 = arith.addf %109, %155 : vector<2x72x32xf32>
    %c1 = arith.constant 1 : index
    %c0_58 = arith.constant 0 : index
    %c0_59 = arith.constant 0 : index
    %157 = vector.load %arg3[%c1, %c0_58, %c0_59] : memref<2x4x32xf32, #tpu.memory_space<vmem>>, vector<1x4x32xf32>
    %158 = vector.shape_cast %157 : vector<1x4x32xf32> to vector<4x32xf32>
    %159 = vector.extract_strided_slice %158 {offsets = [0, 0], sizes = [1, 32], strides = [1, 1]} : vector<4x32xf32> to vector<1x32xf32>
    %160 = vector.extract_strided_slice %158 {offsets = [1, 0], sizes = [1, 32], strides = [1, 1]} : vector<4x32xf32> to vector<1x32xf32>
    %cst_60 = arith.constant dense<0.000000e+00> : vector<2x72xf32>
    %161 = vector.multi_reduction <add>, %156, %cst_60 [2] : vector<2x72x32xf32> to vector<2x72xf32>
    %162 = vector.shape_cast %161 : vector<2x72xf32> to vector<2x72x1xf32>
    %cst_61 = arith.constant 3.200000e+01 : f32
    %163 = vector.broadcast %cst_61 : f32 to vector<2x72x1xf32>
    %164 = arith.divf %162, %163 : vector<2x72x1xf32>
    %165 = vector.broadcast %164 : vector<2x72x1xf32> to vector<2x72x32xf32>
    %166 = arith.subf %156, %165 : vector<2x72x32xf32>
    %167 = arith.mulf %166, %166 : vector<2x72x32xf32>
    %cst_62 = arith.constant dense<0.000000e+00> : vector<2x72xf32>
    %168 = vector.multi_reduction <add>, %167, %cst_62 [2] : vector<2x72x32xf32> to vector<2x72xf32>
    %169 = vector.shape_cast %168 : vector<2x72xf32> to vector<2x72x1xf32>
    %cst_63 = arith.constant 3.200000e+01 : f32
    %170 = vector.broadcast %cst_63 : f32 to vector<2x72x1xf32>
    %171 = arith.divf %169, %170 : vector<2x72x1xf32>
    %172 = vector.broadcast %164 : vector<2x72x1xf32> to vector<2x72x32xf32>
    %173 = arith.subf %156, %172 : vector<2x72x32xf32>
    %cst_64 = arith.constant 9.99999974E-6 : f32
    %174 = vector.broadcast %cst_64 : f32 to vector<2x72x1xf32>
    %175 = arith.addf %171, %174 : vector<2x72x1xf32>
    %176 = math.rsqrt %175 : vector<2x72x1xf32>
    %177 = vector.broadcast %176 : vector<2x72x1xf32> to vector<2x72x32xf32>
    %178 = arith.mulf %173, %177 : vector<2x72x32xf32>
    %179 = vector.shape_cast %159 : vector<1x32xf32> to vector<1x1x32xf32>
    %180 = vector.broadcast %179 : vector<1x1x32xf32> to vector<2x72x32xf32>
    %181 = arith.mulf %178, %180 : vector<2x72x32xf32>
    %182 = vector.shape_cast %160 : vector<1x32xf32> to vector<1x1x32xf32>
    %183 = vector.broadcast %182 : vector<1x1x32xf32> to vector<2x72x32xf32>
    %184 = arith.addf %181, %183 : vector<2x72x32xf32>
    %185 = vector.shape_cast %184 : vector<2x72x32xf32> to vector<144x32xf32>
    %186 = arith.truncf %185 : vector<144x32xf32> to vector<144x32xbf16>
    %c1_65 = arith.constant 1 : index
    %c0_66 = arith.constant 0 : index
    %c0_67 = arith.constant 0 : index
    %187 = vector.load %arg4[%c1_65, %c0_66, %c0_67] : memref<2x32x96xbf16, #tpu.memory_space<vmem>>, vector<1x32x96xbf16>
    %188 = vector.shape_cast %187 : vector<1x32x96xbf16> to vector<32x96xbf16>
    %cst_68 = arith.constant dense<0.000000e+00> : vector<144x96xf32>
    %189 = tpu.matmul %186, %188, %cst_68 {dimension_numbers = #tpu.dot_dimension_numbers<[1], [0], [0], [1], [0, 0, 1, 1], [], []>} : vector<144x32xbf16>, vector<32x96xbf16>, vector<144x96xf32> -> vector<144x96xf32>
    %c1_69 = arith.constant 1 : index
    %c0_70 = arith.constant 0 : index
    %c0_71 = arith.constant 0 : index
    %190 = vector.load %arg5[%c1_69, %c0_70, %c0_71] : memref<2x1x96xf32, #tpu.memory_space<vmem>>, vector<1x1x96xf32>
    %191 = vector.shape_cast %190 : vector<1x1x96xf32> to vector<1x96xf32>
    %192 = vector.broadcast %191 : vector<1x96xf32> to vector<144x96xf32>
    %193 = arith.addf %189, %192 : vector<144x96xf32>
    %194 = vector.shape_cast %193 : vector<144x96xf32> to vector<2x72x96xf32>
    %195 = vector.extract_strided_slice %194 {offsets = [0, 0, 0], sizes = [2, 72, 16], strides = [1, 1, 1]} : vector<2x72x96xf32> to vector<2x72x16xf32>
    %196 = vector.extract_strided_slice %194 {offsets = [0, 0, 32], sizes = [2, 72, 16], strides = [1, 1, 1]} : vector<2x72x96xf32> to vector<2x72x16xf32>
    %197 = vector.extract_strided_slice %194 {offsets = [0, 0, 64], sizes = [2, 72, 16], strides = [1, 1, 1]} : vector<2x72x96xf32> to vector<2x72x16xf32>
    %198 = arith.truncf %195 : vector<2x72x16xf32> to vector<2x72x16xbf16>
    %199 = arith.truncf %196 : vector<2x72x16xf32> to vector<2x72x16xbf16>
    "tpu.trace_start"() <{level = 10 : i32, message = "bqd,bkd->bqk"}> : () -> ()
    %cst_72 = arith.constant dense<0.000000e+00> : vector<2x72x72xf32>
    %200 = tpu.matmul %198, %199, %cst_72 {dimension_numbers = #tpu.dot_dimension_numbers<[2], [2], [1], [1], [0, 0, 0, 1, 1, 1], [0], [0]>} : vector<2x72x16xbf16>, vector<2x72x16xbf16>, vector<2x72x72xf32> -> vector<2x72x72xf32>
    "tpu.trace_stop"() : () -> ()
    %cst_73 = arith.constant 2.500000e-01 : f32
    %201 = vector.broadcast %cst_73 : f32 to vector<2x72x72xf32>
    %202 = arith.mulf %200, %201 : vector<2x72x72xf32>
    %203 = vector.broadcast %13 : vector<1x1x72xf32> to vector<2x72x72xf32>
    %204 = arith.addf %202, %203 : vector<2x72x72xf32>
    %cst_74 = arith.constant dense<0xFF800000> : vector<2x72xf32>
    %205 = vector.multi_reduction <maximumf>, %204, %cst_74 [2] : vector<2x72x72xf32> to vector<2x72xf32>
    %206 = vector.shape_cast %205 : vector<2x72xf32> to vector<2x72x1xf32>
    %207 = vector.broadcast %206 : vector<2x72x1xf32> to vector<2x72x72xf32>
    %208 = arith.subf %204, %207 : vector<2x72x72xf32>
    %209 = math.exp %208 : vector<2x72x72xf32>
    %cst_75 = arith.constant dense<0.000000e+00> : vector<2x72xf32>
    %210 = vector.multi_reduction <add>, %209, %cst_75 [2] : vector<2x72x72xf32> to vector<2x72xf32>
    %211 = vector.shape_cast %210 : vector<2x72xf32> to vector<2x72x1xf32>
    %212 = tpu.reciprocal %211 {approx = true} : vector<2x72x1xf32> -> vector<2x72x1xf32>
    %213 = vector.broadcast %212 : vector<2x72x1xf32> to vector<2x72x72xf32>
    %214 = arith.mulf %209, %213 : vector<2x72x72xf32>
    %215 = arith.truncf %214 : vector<2x72x72xf32> to vector<2x72x72xbf16>
    %216 = arith.truncf %197 : vector<2x72x16xf32> to vector<2x72x16xbf16>
    "tpu.trace_start"() <{level = 10 : i32, message = "bqk,bkd->bqd"}> : () -> ()
    %cst_76 = arith.constant dense<0.000000e+00> : vector<2x72x16xf32>
    %217 = tpu.matmul %215, %216, %cst_76 {dimension_numbers = #tpu.dot_dimension_numbers<[2], [1], [1], [2], [0, 0, 0, 1, 1, 2], [0], [0]>} : vector<2x72x72xbf16>, vector<2x72x16xbf16>, vector<2x72x16xf32> -> vector<2x72x16xf32>
    "tpu.trace_stop"() : () -> ()
    %218 = vector.extract_strided_slice %194 {offsets = [0, 0, 16], sizes = [2, 72, 16], strides = [1, 1, 1]} : vector<2x72x96xf32> to vector<2x72x16xf32>
    %219 = vector.extract_strided_slice %194 {offsets = [0, 0, 48], sizes = [2, 72, 16], strides = [1, 1, 1]} : vector<2x72x96xf32> to vector<2x72x16xf32>
    %220 = vector.extract_strided_slice %194 {offsets = [0, 0, 80], sizes = [2, 72, 16], strides = [1, 1, 1]} : vector<2x72x96xf32> to vector<2x72x16xf32>
    %221 = arith.truncf %218 : vector<2x72x16xf32> to vector<2x72x16xbf16>
    %222 = arith.truncf %219 : vector<2x72x16xf32> to vector<2x72x16xbf16>
    "tpu.trace_start"() <{level = 10 : i32, message = "bqd,bkd->bqk"}> : () -> ()
    %cst_77 = arith.constant dense<0.000000e+00> : vector<2x72x72xf32>
    %223 = tpu.matmul %221, %222, %cst_77 {dimension_numbers = #tpu.dot_dimension_numbers<[2], [2], [1], [1], [0, 0, 0, 1, 1, 1], [0], [0]>} : vector<2x72x16xbf16>, vector<2x72x16xbf16>, vector<2x72x72xf32> -> vector<2x72x72xf32>
    "tpu.trace_stop"() : () -> ()
    %cst_78 = arith.constant 2.500000e-01 : f32
    %224 = vector.broadcast %cst_78 : f32 to vector<2x72x72xf32>
    %225 = arith.mulf %223, %224 : vector<2x72x72xf32>
    %226 = vector.broadcast %13 : vector<1x1x72xf32> to vector<2x72x72xf32>
    %227 = arith.addf %225, %226 : vector<2x72x72xf32>
    %cst_79 = arith.constant dense<0xFF800000> : vector<2x72xf32>
    %228 = vector.multi_reduction <maximumf>, %227, %cst_79 [2] : vector<2x72x72xf32> to vector<2x72xf32>
    %229 = vector.shape_cast %228 : vector<2x72xf32> to vector<2x72x1xf32>
    %230 = vector.broadcast %229 : vector<2x72x1xf32> to vector<2x72x72xf32>
    %231 = arith.subf %227, %230 : vector<2x72x72xf32>
    %232 = math.exp %231 : vector<2x72x72xf32>
    %cst_80 = arith.constant dense<0.000000e+00> : vector<2x72xf32>
    %233 = vector.multi_reduction <add>, %232, %cst_80 [2] : vector<2x72x72xf32> to vector<2x72xf32>
    %234 = vector.shape_cast %233 : vector<2x72xf32> to vector<2x72x1xf32>
    %235 = tpu.reciprocal %234 {approx = true} : vector<2x72x1xf32> -> vector<2x72x1xf32>
    %236 = vector.broadcast %235 : vector<2x72x1xf32> to vector<2x72x72xf32>
    %237 = arith.mulf %232, %236 : vector<2x72x72xf32>
    %238 = arith.truncf %237 : vector<2x72x72xf32> to vector<2x72x72xbf16>
    %239 = arith.truncf %220 : vector<2x72x16xf32> to vector<2x72x16xbf16>
    "tpu.trace_start"() <{level = 10 : i32, message = "bqk,bkd->bqd"}> : () -> ()
    %cst_81 = arith.constant dense<0.000000e+00> : vector<2x72x16xf32>
    %240 = tpu.matmul %238, %239, %cst_81 {dimension_numbers = #tpu.dot_dimension_numbers<[2], [1], [1], [2], [0, 0, 0, 1, 1, 2], [0], [0]>} : vector<2x72x72xbf16>, vector<2x72x16xbf16>, vector<2x72x16xf32> -> vector<2x72x16xf32>
    "tpu.trace_stop"() : () -> ()
    %241 = tpu.concatenate %217, %240 in 2 : vector<2x72x16xf32>, vector<2x72x16xf32> -> vector<2x72x32xf32>
    %242 = vector.shape_cast %241 : vector<2x72x32xf32> to vector<144x32xf32>
    %243 = arith.truncf %242 : vector<144x32xf32> to vector<144x32xbf16>
    %c1_82 = arith.constant 1 : index
    %c0_83 = arith.constant 0 : index
    %c0_84 = arith.constant 0 : index
    %244 = vector.load %arg6[%c1_82, %c0_83, %c0_84] : memref<2x32x32xbf16, #tpu.memory_space<vmem>>, vector<1x32x32xbf16>
    %245 = vector.shape_cast %244 : vector<1x32x32xbf16> to vector<32x32xbf16>
    %cst_85 = arith.constant dense<0.000000e+00> : vector<144x32xf32>
    %246 = tpu.matmul %243, %245, %cst_85 {dimension_numbers = #tpu.dot_dimension_numbers<[1], [0], [0], [1], [0, 0, 1, 1], [], []>} : vector<144x32xbf16>, vector<32x32xbf16>, vector<144x32xf32> -> vector<144x32xf32>
    %c1_86 = arith.constant 1 : index
    %c0_87 = arith.constant 0 : index
    %c0_88 = arith.constant 0 : index
    %247 = vector.load %arg7[%c1_86, %c0_87, %c0_88] : memref<2x1x32xf32, #tpu.memory_space<vmem>>, vector<1x1x32xf32>
    %248 = vector.shape_cast %247 : vector<1x1x32xf32> to vector<1x32xf32>
    %249 = vector.broadcast %248 : vector<1x32xf32> to vector<144x32xf32>
    %250 = arith.addf %246, %249 : vector<144x32xf32>
    %251 = vector.shape_cast %250 : vector<144x32xf32> to vector<2x72x32xf32>
    %252 = arith.addf %156, %251 : vector<2x72x32xf32>
    %253 = vector.extract_strided_slice %158 {offsets = [2, 0], sizes = [1, 32], strides = [1, 1]} : vector<4x32xf32> to vector<1x32xf32>
    %254 = vector.extract_strided_slice %158 {offsets = [3, 0], sizes = [1, 32], strides = [1, 1]} : vector<4x32xf32> to vector<1x32xf32>
    %cst_89 = arith.constant dense<0.000000e+00> : vector<2x72xf32>
    %255 = vector.multi_reduction <add>, %252, %cst_89 [2] : vector<2x72x32xf32> to vector<2x72xf32>
    %256 = vector.shape_cast %255 : vector<2x72xf32> to vector<2x72x1xf32>
    %cst_90 = arith.constant 3.200000e+01 : f32
    %257 = vector.broadcast %cst_90 : f32 to vector<2x72x1xf32>
    %258 = arith.divf %256, %257 : vector<2x72x1xf32>
    %259 = vector.broadcast %258 : vector<2x72x1xf32> to vector<2x72x32xf32>
    %260 = arith.subf %252, %259 : vector<2x72x32xf32>
    %261 = arith.mulf %260, %260 : vector<2x72x32xf32>
    %cst_91 = arith.constant dense<0.000000e+00> : vector<2x72xf32>
    %262 = vector.multi_reduction <add>, %261, %cst_91 [2] : vector<2x72x32xf32> to vector<2x72xf32>
    %263 = vector.shape_cast %262 : vector<2x72xf32> to vector<2x72x1xf32>
    %cst_92 = arith.constant 3.200000e+01 : f32
    %264 = vector.broadcast %cst_92 : f32 to vector<2x72x1xf32>
    %265 = arith.divf %263, %264 : vector<2x72x1xf32>
    %266 = vector.broadcast %258 : vector<2x72x1xf32> to vector<2x72x32xf32>
    %267 = arith.subf %252, %266 : vector<2x72x32xf32>
    %cst_93 = arith.constant 9.99999974E-6 : f32
    %268 = vector.broadcast %cst_93 : f32 to vector<2x72x1xf32>
    %269 = arith.addf %265, %268 : vector<2x72x1xf32>
    %270 = math.rsqrt %269 : vector<2x72x1xf32>
    %271 = vector.broadcast %270 : vector<2x72x1xf32> to vector<2x72x32xf32>
    %272 = arith.mulf %267, %271 : vector<2x72x32xf32>
    %273 = vector.shape_cast %253 : vector<1x32xf32> to vector<1x1x32xf32>
    %274 = vector.broadcast %273 : vector<1x1x32xf32> to vector<2x72x32xf32>
    %275 = arith.mulf %272, %274 : vector<2x72x32xf32>
    %276 = vector.shape_cast %254 : vector<1x32xf32> to vector<1x1x32xf32>
    %277 = vector.broadcast %276 : vector<1x1x32xf32> to vector<2x72x32xf32>
    %278 = arith.addf %275, %277 : vector<2x72x32xf32>
    %279 = vector.shape_cast %278 : vector<2x72x32xf32> to vector<144x32xf32>
    %280 = arith.truncf %279 : vector<144x32xf32> to vector<144x32xbf16>
    %c1_94 = arith.constant 1 : index
    %c0_95 = arith.constant 0 : index
    %c0_96 = arith.constant 0 : index
    %281 = vector.load %arg8[%c1_94, %c0_95, %c0_96] : memref<2x32x64xbf16, #tpu.memory_space<vmem>>, vector<1x32x64xbf16>
    %282 = vector.shape_cast %281 : vector<1x32x64xbf16> to vector<32x64xbf16>
    %cst_97 = arith.constant dense<0.000000e+00> : vector<144x64xf32>
    %283 = tpu.matmul %280, %282, %cst_97 {dimension_numbers = #tpu.dot_dimension_numbers<[1], [0], [0], [1], [0, 0, 1, 1], [], []>} : vector<144x32xbf16>, vector<32x64xbf16>, vector<144x64xf32> -> vector<144x64xf32>
    %c1_98 = arith.constant 1 : index
    %c0_99 = arith.constant 0 : index
    %c0_100 = arith.constant 0 : index
    %284 = vector.load %arg9[%c1_98, %c0_99, %c0_100] : memref<2x1x64xf32, #tpu.memory_space<vmem>>, vector<1x1x64xf32>
    %285 = vector.shape_cast %284 : vector<1x1x64xf32> to vector<1x64xf32>
    %286 = vector.broadcast %285 : vector<1x64xf32> to vector<144x64xf32>
    %287 = arith.addf %283, %286 : vector<144x64xf32>
    %cst_101 = arith.constant 0.000000e+00 : f32
    %288 = vector.broadcast %cst_101 : f32 to vector<144x64xf32>
    %289 = arith.maximumf %287, %288 : vector<144x64xf32>
    %290 = arith.truncf %289 : vector<144x64xf32> to vector<144x64xbf16>
    %c1_102 = arith.constant 1 : index
    %c0_103 = arith.constant 0 : index
    %c0_104 = arith.constant 0 : index
    %291 = vector.load %arg10[%c1_102, %c0_103, %c0_104] : memref<2x64x32xbf16, #tpu.memory_space<vmem>>, vector<1x64x32xbf16>
    %292 = vector.shape_cast %291 : vector<1x64x32xbf16> to vector<64x32xbf16>
    %cst_105 = arith.constant dense<0.000000e+00> : vector<144x32xf32>
    %293 = tpu.matmul %290, %292, %cst_105 {dimension_numbers = #tpu.dot_dimension_numbers<[1], [0], [0], [1], [0, 0, 1, 1], [], []>} : vector<144x64xbf16>, vector<64x32xbf16>, vector<144x32xf32> -> vector<144x32xf32>
    %c1_106 = arith.constant 1 : index
    %c0_107 = arith.constant 0 : index
    %c0_108 = arith.constant 0 : index
    %294 = vector.load %arg11[%c1_106, %c0_107, %c0_108] : memref<2x1x32xf32, #tpu.memory_space<vmem>>, vector<1x1x32xf32>
    %295 = vector.shape_cast %294 : vector<1x1x32xf32> to vector<1x32xf32>
    %296 = vector.broadcast %295 : vector<1x32xf32> to vector<144x32xf32>
    %297 = arith.addf %293, %296 : vector<144x32xf32>
    %298 = vector.shape_cast %297 : vector<144x32xf32> to vector<2x72x32xf32>
    %299 = arith.addf %252, %298 : vector<2x72x32xf32>
    %c0_109 = arith.constant 0 : index
    %c0_110 = arith.constant 0 : index
    %300 = vector.load %arg12[%c0_109, %c0_110] : memref<2x32xf32, #tpu.memory_space<vmem>>, vector<2x32xf32>
    %301 = vector.extract_strided_slice %299 {offsets = [0, 0, 0], sizes = [2, 1, 32], strides = [1, 1, 1]} : vector<2x72x32xf32> to vector<2x1x32xf32>
    %302 = vector.shape_cast %301 : vector<2x1x32xf32> to vector<2x32xf32>
    %303 = vector.extract_strided_slice %300 {offsets = [0, 0], sizes = [1, 32], strides = [1, 1]} : vector<2x32xf32> to vector<1x32xf32>
    %304 = vector.extract_strided_slice %300 {offsets = [1, 0], sizes = [1, 32], strides = [1, 1]} : vector<2x32xf32> to vector<1x32xf32>
    %cst_111 = arith.constant dense<0.000000e+00> : vector<2xf32>
    %305 = vector.multi_reduction <add>, %302, %cst_111 [1] : vector<2x32xf32> to vector<2xf32>
    %306 = vector.shape_cast %305 : vector<2xf32> to vector<2x1xf32>
    %cst_112 = arith.constant 3.200000e+01 : f32
    %307 = vector.broadcast %cst_112 : f32 to vector<2x1xf32>
    %308 = arith.divf %306, %307 : vector<2x1xf32>
    %309 = vector.broadcast %308 : vector<2x1xf32> to vector<2x32xf32>
    %310 = arith.subf %302, %309 : vector<2x32xf32>
    %311 = arith.mulf %310, %310 : vector<2x32xf32>
    %cst_113 = arith.constant dense<0.000000e+00> : vector<2xf32>
    %312 = vector.multi_reduction <add>, %311, %cst_113 [1] : vector<2x32xf32> to vector<2xf32>
    %313 = vector.shape_cast %312 : vector<2xf32> to vector<2x1xf32>
    %cst_114 = arith.constant 3.200000e+01 : f32
    %314 = vector.broadcast %cst_114 : f32 to vector<2x1xf32>
    %315 = arith.divf %313, %314 : vector<2x1xf32>
    %316 = vector.broadcast %308 : vector<2x1xf32> to vector<2x32xf32>
    %317 = arith.subf %302, %316 : vector<2x32xf32>
    %cst_115 = arith.constant 9.99999974E-6 : f32
    %318 = vector.broadcast %cst_115 : f32 to vector<2x1xf32>
    %319 = arith.addf %315, %318 : vector<2x1xf32>
    %320 = math.rsqrt %319 : vector<2x1xf32>
    %321 = vector.broadcast %320 : vector<2x1xf32> to vector<2x32xf32>
    %322 = arith.mulf %317, %321 : vector<2x32xf32>
    %323 = vector.broadcast %303 : vector<1x32xf32> to vector<2x32xf32>
    %324 = arith.mulf %322, %323 : vector<2x32xf32>
    %325 = vector.broadcast %304 : vector<1x32xf32> to vector<2x32xf32>
    %326 = arith.addf %324, %325 : vector<2x32xf32>
    %327 = arith.truncf %326 : vector<2x32xf32> to vector<2x32xbf16>
    %c0_116 = arith.constant 0 : index
    %c0_117 = arith.constant 0 : index
    %328 = vector.load %arg13[%c0_116, %c0_117] : memref<32x128xbf16, #tpu.memory_space<vmem>>, vector<32x128xbf16>
    %cst_118 = arith.constant dense<0.000000e+00> : vector<2x128xf32>
    %329 = tpu.matmul %327, %328, %cst_118 {dimension_numbers = #tpu.dot_dimension_numbers<[1], [0], [0], [1], [0, 0, 1, 1], [], []>} : vector<2x32xbf16>, vector<32x128xbf16>, vector<2x128xf32> -> vector<2x128xf32>
    %c0_119 = arith.constant 0 : index
    %c0_120 = arith.constant 0 : index
    %330 = vector.load %arg14[%c0_119, %c0_120] : memref<1x128xf32, #tpu.memory_space<vmem>>, vector<1x128xf32>
    %331 = vector.broadcast %330 : vector<1x128xf32> to vector<2x128xf32>
    %332 = arith.addf %329, %331 : vector<2x128xf32>
    %c0_121 = arith.constant 0 : index
    %c0_122 = arith.constant 0 : index
    %333 = vector.load %arg15[%c0_121, %c0_122] : memref<2x128xf32, #tpu.memory_space<vmem>>, vector<2x128xf32>
    tpu.vector_store %arg15[%c0_121, %c0_122], %332 {strides = array<i32>} : memref<2x128xf32, #tpu.memory_space<vmem>>, vector<2x128xf32>,
    return
  }
  func.func @transform_0(%arg0: i32) -> (i32, i32, i32) {
    %c0_i32 = arith.constant 0 : i32
    %c0_i32_0 = arith.constant 0 : i32
    %c0_i32_1 = arith.constant 0 : i32
    return %arg0, %c0_i32, %c0_i32_0 : i32, i32, i32
  }
  func.func @transform_1(%arg0: i32) -> (i32, i32) {
    %c0_i32 = arith.constant 0 : i32
    %c0_i32_0 = arith.constant 0 : i32
    %c0_i32_1 = arith.constant 0 : i32
    return %c0_i32, %c0_i32_0 : i32, i32
  }
  func.func @transform_2(%arg0: i32) -> (i32, i32, i32) {
    %c0_i32 = arith.constant 0 : i32
    %c0_i32_0 = arith.constant 0 : i32
    %c0_i32_1 = arith.constant 0 : i32
    %c0_i32_2 = arith.constant 0 : i32
    return %c0_i32, %c0_i32_0, %c0_i32_1 : i32, i32, i32
  }
  func.func @transform_3(%arg0: i32) -> (i32, i32, i32) {
    %c0_i32 = arith.constant 0 : i32
    %c0_i32_0 = arith.constant 0 : i32
    %c0_i32_1 = arith.constant 0 : i32
    %c0_i32_2 = arith.constant 0 : i32
    return %c0_i32, %c0_i32_0, %c0_i32_1 : i32, i32, i32
  }
  func.func @transform_4(%arg0: i32) -> (i32, i32, i32) {
    %c0_i32 = arith.constant 0 : i32
    %c0_i32_0 = arith.constant 0 : i32
    %c0_i32_1 = arith.constant 0 : i32
    %c0_i32_2 = arith.constant 0 : i32
    return %c0_i32, %c0_i32_0, %c0_i32_1 : i32, i32, i32
  }
  func.func @transform_5(%arg0: i32) -> (i32, i32, i32) {
    %c0_i32 = arith.constant 0 : i32
    %c0_i32_0 = arith.constant 0 : i32
    %c0_i32_1 = arith.constant 0 : i32
    %c0_i32_2 = arith.constant 0 : i32
    return %c0_i32, %c0_i32_0, %c0_i32_1 : i32, i32, i32
  }
  func.func @transform_6(%arg0: i32) -> (i32, i32, i32) {
    %c0_i32 = arith.constant 0 : i32
    %c0_i32_0 = arith.constant 0 : i32
    %c0_i32_1 = arith.constant 0 : i32
    %c0_i32_2 = arith.constant 0 : i32
    return %c0_i32, %c0_i32_0, %c0_i32_1 : i32, i32, i32
  }
  func.func @transform_7(%arg0: i32) -> (i32, i32, i32) {
    %c0_i32 = arith.constant 0 : i32
    %c0_i32_0 = arith.constant 0 : i32
    %c0_i32_1 = arith.constant 0 : i32
    %c0_i32_2 = arith.constant 0 : i32
    return %c0_i32, %c0_i32_0, %c0_i32_1 : i32, i32, i32
  }
  func.func @transform_8(%arg0: i32) -> (i32, i32, i32) {
    %c0_i32 = arith.constant 0 : i32
    %c0_i32_0 = arith.constant 0 : i32
    %c0_i32_1 = arith.constant 0 : i32
    %c0_i32_2 = arith.constant 0 : i32
    return %c0_i32, %c0_i32_0, %c0_i32_1 : i32, i32, i32
  }
  func.func @transform_9(%arg0: i32) -> (i32, i32, i32) {
    %c0_i32 = arith.constant 0 : i32
    %c0_i32_0 = arith.constant 0 : i32
    %c0_i32_1 = arith.constant 0 : i32
    %c0_i32_2 = arith.constant 0 : i32
    return %c0_i32, %c0_i32_0, %c0_i32_1 : i32, i32, i32
  }
  func.func @transform_10(%arg0: i32) -> (i32, i32, i32) {
    %c0_i32 = arith.constant 0 : i32
    %c0_i32_0 = arith.constant 0 : i32
    %c0_i32_1 = arith.constant 0 : i32
    %c0_i32_2 = arith.constant 0 : i32
    return %c0_i32, %c0_i32_0, %c0_i32_1 : i32, i32, i32
  }
  func.func @transform_11(%arg0: i32) -> (i32, i32) {
    %c0_i32 = arith.constant 0 : i32
    %c0_i32_0 = arith.constant 0 : i32
    %c0_i32_1 = arith.constant 0 : i32
    return %c0_i32, %c0_i32_0 : i32, i32
  }
  func.func @transform_12(%arg0: i32) -> (i32, i32) {
    %c0_i32 = arith.constant 0 : i32
    %c0_i32_0 = arith.constant 0 : i32
    %c0_i32_1 = arith.constant 0 : i32
    return %c0_i32, %c0_i32_0 : i32, i32
  }
  func.func @transform_13(%arg0: i32) -> (i32, i32) {
    %c0_i32 = arith.constant 0 : i32
    %c0_i32_0 = arith.constant 0 : i32
    %c0_i32_1 = arith.constant 0 : i32
    return %c0_i32, %c0_i32_0 : i32, i32
  }
  func.func @transform_14(%arg0: i32) -> (i32, i32) {
    %c0_i32 = arith.constant 0 : i32
    %c0_i32_0 = arith.constant 0 : i32
    return %arg0, %c0_i32 : i32, i32
  }
}

</mosaic_0001>

<bundles_post_ra>
// kernel: tpu_custom_call.1
= control target key start
LH: loop header
LB: loop body
LE: loop exit
PB: predicated region body
PF: predicated region fallthrough
CT: control target
= control target key end

     0   :  { %vm135_vm0 = vcmask 261120   ;;  %s10992_s0 = inlined_call_operand.vmem [shape: bf16[2,72,32], index: 0, kind: input, shape index: {}]   ;;  %s10993_s1 = inlined_call_operand.vmem [shape: f32[72,32], index: 1, kind: input, shape index: {}]   ;;  %s10994_s2 = inlined_call_operand.vmem [shape: f32[2,4,32], index: 2, kind: input, shape index: {}]   ;;  %s10995_s3 = inlined_call_operand.vmem [shape: bf16[2,32,96], index: 3, kind: input, shape index: {}]   ;;  %s10996_s4 = inlined_call_operand.vmem [shape: f32[2,1,96], index: 4, kind: input, shape index: {}]   ;;  %s10997_s5 = inlined_call_operand.vmem [shape: bf16[2,32,32], index: 5, kind: input, shape index: {}]   ;;  %s10998_s6 = inlined_call_operand.vmem [shape: f32[2,1,32], index: 6, kind: input, shape index: {}]   ;;  %s10999_s7 = inlined_call_operand.vmem [shape: bf16[2,32,64], index: 7, kind: input, shape index: {}]   ;;  %s11000_s8 = inlined_call_operand.vmem [shape: f32[2,1,64], index: 8, kind: input, shape index: {}]   ;;  %s11001_s9 = inlined_call_operand.vmem [shape: bf16[2,64,32], index: 9, kind: input, shape index: {}]   ;;  %s11002_s10 = inlined_call_operand.vmem [shape: f32[2,1,32], index: 10, kind: input, shape index: {}]   ;;  %s11003_s11 = inlined_call_operand.vmem [shape: f32[2,32], index: 11, kind: input, shape index: {}]   ;;  %s11004_s12 = inlined_call_operand.vmem [shape: bf16[32,128], index: 12, kind: input, shape index: {}]   ;;  %s11005_s13 = inlined_call_operand.vmem [shape: f32[1,128], index: 13, kind: input, shape index: {}]   ;;  %s11006_s14 = inlined_call_operand.hbm [shape: f32[2,128], index: 14, kind: output, shape index: {}]  }
   0x1   :  { %v5996_v0 = vld [vmem:[%s10992_s0] sm:$0xff]   ;;  %v6031_v1 = vld [vmem:[%s10992_s0 + $0x8] sm:$0xff]   ;;  %v105_v5 = vld [vmem:[%s10993_s1 + $0x10] sm:$0xff] }
   0x2   :  { %v5997_v2 = vunpack.c.l.bf16 %v5996_v0  ;;  %v103_v3 = vld [vmem:[%s10993_s1] sm:$0xff]  ;;  %v6001_v4 = vunpack.c.l.bf16 %v6031_v1  ;;  %v5998_v6 = vunpack.c.h.bf16 %v5996_v0  ;;  %v6002_v7 = vunpack.c.h.bf16 %v6031_v1  ;;  %v104_v8 = vld [vmem:[%s10993_s1 + $0x8] sm:$0xff]  ;;  %v106_v9 = vld [vmem:[%s10993_s1 + $0x18] sm:$0xff] }
   0x3   :  { %v6032_v10 = vld [vmem:[%s10992_s0 + $0x10] sm:$0xff]   ;;  %v107_v16 = vld [vmem:[%s10993_s1 + $0x20] sm:$0xff]  ;;  %v6033_v18 = vld [vmem:[%s10992_s0 + $0x18] sm:$0xff]  }
   0x4   :  { %v85_v11 = vmul.f32 5.656854, %v5997_v2  ;;  %v87_v12 = vmul.f32 5.656854, %v6001_v4  ;;  %v86_v13 = vmul.f32 5.656854, %v5998_v6  ;;  %v6005_v14 = vunpack.c.l.bf16 %v6032_v10 }
   0x5   :  { %v88_v15 = vmul.f32 5.656854, %v6002_v7  ;;  %v6006_v17 = vunpack.c.h.bf16 %v6032_v10  ;;  %v7815_v23 = vld [vmem:[%s10993_s1 + $0x28] sm:$0xff]  ;;  %v6009_v26 = vunpack.c.l.bf16 %v6033_v18  ;;  %v6010_v27 = vunpack.c.h.bf16 %v6033_v18  ;;  %v6034_v28 = vld [vmem:[%s10992_s0 + $0x20] sm:$0xff]   ;;  %v109_v33 = vld [vmem:[%s10993_s1 + $0x30] sm:$0xff] }
   0x6   :  { %v7806_v19 = vadd.f32 %v103_v3, %v85_v11  ;;  %v7808_v20 = vadd.f32 %v105_v5, %v87_v12  ;;  %v7810_v21 = vadd.f32 %v104_v8, %v86_v13  ;;  %v89_v22 = vmul.f32 5.656854, %v6005_v14  ;;  %v6035_v29 = vld [vmem:[%s10992_s0 + $0x28] sm:$0xff]   ;;  %v7837_v34 = vld [vmem:[%s10993_s1 + $0x38] sm:$0xff]  ;;  %v6036_v39 = vld [vmem:[%s10992_s0 + $0x30] sm:$0xff]  }
   0x7   :  { %v7817_v24 = vadd.f32 %v106_v9, %v88_v15  ;;  %v90_v25 = vmul.f32 5.656854, %v6006_v17  ;;  %v91_v37 = vmul.f32 5.656854, %v6009_v26  ;;  %v92_v38 = vmul.f32 5.656854, %v6010_v27 }
   0x8   :  { %v136_v30 = vsel %vm135_vm0, %v7806_v19, 0.0  ;;  %v142_v31 = vsel %vm135_vm0, %v7808_v20, 0.0  ;;  %v7829_v32 = vadd.f32 %v107_v16, %v89_v22  ;;  %v139_v35 = vsel %vm135_vm0, %v7810_v21, 0.0  ;;  %v111_v42 = vld [vmem:[%s10993_s1 + $0x40] sm:$0xff]  ;;  %v6037_v48 = vld [vmem:[%s10992_s0 + $0x38] sm:$0xff]  }
   0x9   :  { %137 = vadd.xlane.f32.xlu0 %v136_v30  ;;  %143 = vadd.xlane.f32.xlu1 %v142_v31  ;;  %v7842_v36 = vadd.f32 %v7815_v23, %v90_v25  ;;  %v145_v40 = vsel %vm135_vm0, %v7817_v24, 0.0  ;;  %v6013_v41 = vunpack.c.l.bf16 %v6034_v28  ;;  %v6014_v43 = vunpack.c.h.bf16 %v6034_v28  ;;  %v6038_v57 = vld [vmem:[%s10992_s0 + $0x40] sm:$0xff]  }
   0xa   :  { %v6017_v44 = vunpack.c.l.bf16 %v6035_v29  ;;  %v148_v45 = vsel %vm135_vm0, %v7829_v32, 0.0  ;;  %v7854_v46 = vadd.f32 %v109_v33, %v91_v37  ;;  %v6018_v47 = vunpack.c.h.bf16 %v6035_v29 }
   0xb   :  { %v93_v49 = vmul.f32 5.656854, %v6013_v41  ;;  %v94_v50 = vmul.f32 5.656854, %v6014_v43  ;;  %v6021_v52 = vunpack.c.l.bf16 %v6036_v39  ;;  %v151_v53 = vsel %vm135_vm0, %v7842_v36, 0.0 }
   0xc   :  { %v95_v51 = vmul.f32 5.656854, %v6017_v44  ;;  %v7862_v54 = vadd.f32 %v7837_v34, %v92_v38  ;;  %v96_v55 = vmul.f32 5.656854, %v6018_v47  ;;  %v6022_v56 = vunpack.c.h.bf16 %v6036_v39 }
   0xd   :  { %140 = vadd.xlane.f32.xlu0 %v139_v35  ;;  %146 = vadd.xlane.f32.xlu1 %v145_v40  ;;  %v7867_v58 = vadd.f32 %v111_v42, %v93_v49  ;;  %v7869_v59 = vadd.f32 %v103_v3, %v94_v50  ;;  %v97_v61 = vmul.f32 5.656854, %v6021_v52  ;;  %v6025_v0 = vunpack.c.l.bf16 %v6037_v48 }
   0xe   :  { %v7871_v60 = vadd.f32 %v104_v8, %v95_v51  ;;  %v7873_v62 = vadd.f32 %v105_v5, %v96_v55  ;;  %v98_v63 = vmul.f32 5.656854, %v6022_v56  ;;  %v154_v1 = vsel %vm135_vm0, %v7854_v46, 0.0 }
   0xf   :  { %v7877_v2 = vadd.f32 %v106_v9, %v97_v61  ;;  %v6026_v4 = vunpack.c.h.bf16 %v6037_v48  ;;  %v157_v6 = vsel %vm135_vm0, %v7862_v54, 0.0  ;;  %v160_v3 = vsel %vm135_vm0, %v7867_v58, 0.0 }
  0x10   :  { %v163_v5 = vsel %vm135_vm0, %v7869_v59, 0.0  ;;  %v7885_v7 = vadd.f32 %v107_v16, %v98_v63  ;;  %v166_v8 = vsel %vm135_vm0, %v7871_v60, 0.0  ;;  %v169_v9 = vsel %vm135_vm0, %v7873_v62, 0.0 }
  0x11   :  { %11034 = vst [vmem:[#allocation5_spill] sm:$0xff] %v7877_v2  ;;  %149 = vadd.xlane.f32.xlu0 %v148_v45  ;;  %152 = vadd.xlane.f32.xlu1 %v151_v53  ;;  %v6029_v10 = vunpack.c.l.bf16 %v6038_v57  ;;  %v99_v11 = vmul.f32 5.656854, %v6025_v0  ;;  %v172_v12 = vsel %vm135_vm0, %v7877_v2, 0.0  ;;  %v100_v14 = vmul.f32 5.656854, %v6026_v4 }
  0x12   :  { %11035 = vst [vmem:[#allocation6_spill] sm:$0xff] %v7885_v7  ;;  %v175_v13 = vsel %vm135_vm0, %v7885_v7, 0.0  ;;  %v6030_v15 = vunpack.c.h.bf16 %v6038_v57 }
  0x13   :  { %v101_v16 = vmul.f32 5.656854, %v6029_v10  ;;  %v7896_v18 = vadd.f32 %v7815_v23, %v99_v11  ;;  %v7898_v22 = vadd.f32 %v109_v33, %v100_v14 }
  0x14   :  { %v102_v17 = vmul.f32 5.656854, %v6030_v15 }
  0x15   :  { %155 = vadd.xlane.f32.xlu0 %v154_v1  ;;  %158 = vadd.xlane.f32.xlu1 %v157_v6  ;;  %11036 = vst [vmem:[#allocation7_spill] sm:$0xff] %v7896_v18  ;;  %11037 = vst [vmem:[#allocation8_spill] sm:$0xff] %v7898_v22 }
  0x19   :  { %161 = vadd.xlane.f32.xlu0 %v160_v3  ;;  %164 = vadd.xlane.f32.xlu1 %v163_v5 }
  0x1d   :  { %167 = vadd.xlane.f32.xlu0 %v166_v8  ;;  %170 = vadd.xlane.f32.xlu1 %v169_v9 }
  0x1e   :  { %19 = vsyncpa [#allocation3], 0  ;;  %v178_v25 = vsel %vm135_vm0, %v7896_v18, 0.0  ;;  %v181_v26 = vsel %vm135_vm0, %v7898_v22, 0.0  ;;  %v7905_v27 = vadd.f32 %v7837_v34, %v101_v16  ;;  %v7907_v28 = vadd.f32 %v111_v42, %v102_v17  ;;  %s7697_s23 = smov 96   ;;  %s7698_s24 = smov 64  }
  0x1f   :  { %vm7696_vm1 = vmmov 0   ;;  %s7699_s25 = smov 80   ;;  %vm604_vm2 = vcmask 130048   ;;  %vm1098_vm3 = vcmask 1043456   ;;  %vm860_vm5 = vcmask 588800   ;;  %s7700_s26 = smov 112  }
  0x20   :  { %11038 = vst [vmem:[#allocation9_spill] sm:$0xff] %v7905_v27  ;;  %11039 = vst [vmem:[#allocation10_spill] sm:$0xff] %v7907_v28  ;;  %v184_v23 = vsel %vm135_vm0, %v7905_v27, 0.0  ;;  %v187_v29 = vsel %vm135_vm0, %v7907_v28, 0.0  ;;  %s7701_s27 = smov 48   ;;  %s7702_s15 = smov 16  }
  0x21   :  { %173 = vadd.xlane.f32.xlu0 %v172_v12  ;;  %176 = vadd.xlane.f32.xlu1 %v175_v13  ;;  %vm2754_vm6 = vcmask 523264   ;;  %vm5651_vm7 = vcmask 1041409   ;;  %vm5654_vm8 = vcmask 254976  }
  0x25   :  { %179 = vadd.xlane.f32.xlu0 %v178_v25  ;;  %182 = vadd.xlane.f32.xlu1 %v181_v26 }
  0x29   :  { %185 = vadd.xlane.f32.xlu0 %v184_v23  ;;  %188 = vadd.xlane.f32.xlu1 %v187_v29 }
  0x96   :  { %v138_v30 = vpop.xlane.xlu0 %137  ;;  %v144_v31 = vpop.xlane.xlu1 %143 }
  0x97   :  { %v191_v33 = vmul.f32 0.03125, %v138_v30  ;;  %v193_v35 = vmul.f32 0.03125, %v144_v31 }
  0x99   :  { %v7914_v37 = vsub.f32 %v7806_v19, %v191_v33  ;;  %v7917_v34 = vsub.f32 %v7808_v20, %v193_v35 }
  0x9a   :  { %v141_v38 = vpop.xlane.xlu0 %140  ;;  %v147_v39 = vpop.xlane.xlu1 %146 }
  0x9b   :  { %v192_v40 = vmul.f32 0.03125, %v141_v38  ;;  %v194_v41 = vmul.f32 0.03125, %v147_v39  ;;  %v227_v42 = vmul.f32 %v7914_v37, %v7914_v37  ;;  %v229_v43 = vmul.f32 %v7917_v34, %v7917_v34 }
  0x9d   :  { %v7924_v44 = vsub.f32 %v7810_v21, %v192_v40  ;;  %v7927_v45 = vsub.f32 %v7817_v24, %v194_v41  ;;  %v245_v47 = vsel %vm135_vm0, %v227_v42, 0.0  ;;  %v251_v50 = vsel %vm135_vm0, %v229_v43, 0.0 }
  0x9e   :  { %246 = vadd.xlane.f32.xlu0 %v245_v47  ;;  %v150_v48 = vpop.xlane.xlu0 %149  ;;  %v153_v49 = vpop.xlane.xlu1 %152 }
  0x9f   :  { %v195_v51 = vmul.f32 0.03125, %v150_v48  ;;  %v196_v52 = vmul.f32 0.03125, %v153_v49  ;;  %v228_v53 = vmul.f32 %v7924_v44, %v7924_v44  ;;  %v230_v55 = vmul.f32 %v7927_v45, %v7927_v45 }
  0xa1   :  { %v7936_v56 = vsub.f32 %v7829_v32, %v195_v51  ;;  %v7939_v57 = vsub.f32 %v7842_v36, %v196_v52  ;;  %v248_v61 = vsel %vm135_vm0, %v228_v53, 0.0  ;;  %v254_v1 = vsel %vm135_vm0, %v230_v55, 0.0 }
  0xa2   :  { %252 = vadd.xlane.f32.xlu0 %v251_v50  ;;  %249 = vadd.xlane.f32.xlu1 %v248_v61  ;;  %v156_v63 = vpop.xlane.xlu0 %155  ;;  %v159_v0 = vpop.xlane.xlu1 %158 }
  0xa3   :  { %v197_v4 = vmul.f32 0.03125, %v156_v63  ;;  %v198_v6 = vmul.f32 0.03125, %v159_v0  ;;  %v231_v3 = vmul.f32 %v7936_v56, %v7936_v56  ;;  %v232_v5 = vmul.f32 %v7939_v57, %v7939_v57 }
  0xa5   :  { %v7948_v8 = vsub.f32 %v7854_v46, %v197_v4  ;;  %v7951_v9 = vsub.f32 %v7862_v54, %v198_v6  ;;  %v257_v10 = vsel %vm135_vm0, %v231_v3, 0.0  ;;  %v260_v13 = vsel %vm135_vm0, %v232_v5, 0.0 }
  0xa6   :  { %255 = vadd.xlane.f32.xlu1 %v254_v1  ;;  %258 = vadd.xlane.f32.xlu0 %v257_v10  ;;  %v162_v11 = vpop.xlane.xlu0 %161  ;;  %v165_v12 = vpop.xlane.xlu1 %164 }
  0xa7   :  { %v199_v14 = vmul.f32 0.03125, %v162_v11  ;;  %v200_v15 = vmul.f32 0.03125, %v165_v12  ;;  %v233_v16 = vmul.f32 %v7948_v8, %v7948_v8  ;;  %v234_v17 = vmul.f32 %v7951_v9, %v7951_v9 }
  0xa9   :  { %v7960_v25 = vsub.f32 %v7867_v58, %v199_v14  ;;  %v7963_v26 = vsub.f32 %v7869_v59, %v200_v15  ;;  %v263_v23 = vsel %vm135_vm0, %v233_v16, 0.0  ;;  %v266_v31 = vsel %vm135_vm0, %v234_v17, 0.0 }
  0xaa   :  { %261 = vadd.xlane.f32.xlu1 %v260_v13  ;;  %264 = vadd.xlane.f32.xlu0 %v263_v23  ;;  %v168_v29 = vpop.xlane.xlu0 %167  ;;  %v171_v30 = vpop.xlane.xlu1 %170 }
  0xab   :  { %v201_v33 = vmul.f32 0.03125, %v168_v29  ;;  %v202_v35 = vmul.f32 0.03125, %v171_v30  ;;  %v235_v38 = vmul.f32 %v7960_v25, %v7960_v25  ;;  %v236_v39 = vmul.f32 %v7963_v26, %v7963_v26 }
  0xad   :  { %v7972_v40 = vsub.f32 %v7871_v60, %v201_v33  ;;  %v7975_v41 = vsub.f32 %v7873_v62, %v202_v35  ;;  %v269_v42 = vsel %vm135_vm0, %v235_v38, 0.0  ;;  %v272_v48 = vsel %vm135_vm0, %v236_v39, 0.0 }
  0xae   :  { %267 = vadd.xlane.f32.xlu1 %v266_v31  ;;  %270 = vadd.xlane.f32.xlu0 %v269_v42  ;;  %v174_v43 = vpop.xlane.xlu0 %173  ;;  %v177_v47 = vpop.xlane.xlu1 %176 }
  0xaf   :  { %v203_v49 = vmul.f32 0.03125, %v174_v43  ;;  %v204_v50 = vmul.f32 0.03125, %v177_v47  ;;  %v237_v51 = vmul.f32 %v7972_v40, %v7972_v40  ;;  %v238_v52 = vmul.f32 %v7975_v41, %v7975_v41  ;;  %v7213_v47 = vld [vmem:[%s10995_s3] sm:$0xff]  }
  0xb1   :  { %v7984_v53 = vsub.f32 %v7877_v2, %v203_v49  ;;  %v7987_v55 = vsub.f32 %v7885_v7, %v204_v50  ;;  %v275_v61 = vsel %vm135_vm0, %v237_v51, 0.0  ;;  %v278_v1 = vsel %vm135_vm0, %v238_v52, 0.0  ;;  %v7214_v49 = vld [vmem:[%s10995_s3 + $0x8] sm:$0xff]  }
  0xb2   :  { %273 = vadd.xlane.f32.xlu1 %v272_v48  ;;  %276 = vadd.xlane.f32.xlu0 %v275_v61  ;;  %v180_v63 = vpop.xlane.xlu0 %179  ;;  %v183_v0 = vpop.xlane.xlu1 %182  ;;  %v11008_v48 = vmov 0.0  }
  0xb3   :  { %v205_v4 = vmul.f32 0.03125, %v180_v63  ;;  %v206_v6 = vmul.f32 0.03125, %v183_v0  ;;  %v239_v3 = vmul.f32 %v7984_v53, %v7984_v53  ;;  %v240_v5 = vmul.f32 %v7987_v55, %v7987_v55  ;;  %6294 = vmatprep.subr.bf16.mxu0 %v11008_v48  ;;  %6334 = vmatprep.subr.bf16.mxu1 %v11008_v48 }
  0xb4   :  { %6295 = vmatpush3.bf16.msra.mxu0 %v7213_v47  ;;  %6298 = vmatprep.mubr.msk.bf16.mxu0 %vm7696_vm1, %v11008_v48  ;;  %v11007_v0 = vlaneseq }
  0xb5   :  { %v7996_v10 = vsub.f32 %v7896_v18, %v205_v4  ;;  %v7999_v11 = vsub.f32 %v7898_v22, %v206_v6  ;;  %v281_v12 = vsel %vm135_vm0, %v239_v3, 0.0  ;;  %v284_v15 = vsel %vm135_vm0, %v240_v5, 0.0  ;;  %6296 = vmatprep.subr.bf16.mxu0 %v11008_v48  ;;  %6344 = vmatprep.mubr.msk.bf16.mxu1 %vm7696_vm1, %v11008_v48 }
  0xb6   :  { %279 = vadd.xlane.f32.xlu1 %v278_v1  ;;  %282 = vadd.xlane.f32.xlu0 %v281_v12  ;;  %v186_v13 = vpop.xlane.xlu0 %185  ;;  %v189_v14 = vpop.xlane.xlu1 %188 }
  0xb7   :  { %v207_v16 = vmul.f32 0.03125, %v186_v13  ;;  %v208_v17 = vmul.f32 0.03125, %v189_v14  ;;  %v241_v23 = vmul.f32 %v7996_v10, %v7996_v10  ;;  %v242_v29 = vmul.f32 %v7999_v11, %v7999_v11 }
  0xb8   :  { %6297 = vmatpush3.bf16.msra.mxu0 %v7214_v49  ;;  %v8036_v13 = vshrl.u32 %v11007_v0, 7 }
  0xb9   :  { %v8008_v30 = vsub.f32 %v7905_v27, %v207_v16  ;;  %v8011_v31 = vsub.f32 %v7907_v28, %v208_v17  ;;  %v287_v33 = vsel %vm135_vm0, %v241_v23, 0.0  ;;  %v290_v35 = vsel %vm135_vm0, %v242_v29, 0.0  ;;  %6364 = vmatprep.subr.bf16.mxu0 %v11008_v48 }
  0xba   :  { %285 = vadd.xlane.f32.xlu1 %v284_v15  ;;  %288 = vadd.xlane.f32.xlu0 %v287_v33  ;;  %11040 = vst [vmem:[#allocation11_spill] sm:$0xff] %v8036_v13  ;;  %v8039_v29 = vsub.s32 0, %v8036_v13 }
  0xbb   :  { %v243_v38 = vmul.f32 %v8008_v30, %v8008_v30  ;;  %v244_v39 = vmul.f32 %v8011_v31, %v8011_v31 }
  0xbc   :  { %11041 = vst [vmem:[#allocation12_spill] sm:$0xff] %v8039_v29 }
  0xbd   :  { %v293_v42 = vsel %vm135_vm0, %v243_v38, 0.0  ;;  %v296_v43 = vsel %vm135_vm0, %v244_v39, 0.0 }
  0xbe   :  { %291 = vadd.xlane.f32.xlu1 %v290_v35  ;;  %294 = vadd.xlane.f32.xlu0 %v293_v42  ;;  %v134_v35 = vld [vmem:[%s10994_s2] sm:$0xf] }
  0xc2   :  { %297 = vadd.xlane.f32.xlu1 %v296_v43 }
 0x12b   :  { %v247_v50 = vpop.xlane.xlu0 %246 }
 0x12c   :  { %v299_v51 = vmul.f32 0.03125, %v247_v50  ;;  %v8046_v50 = vrot.slane %v134_v35, %v8039_v29 }
 0x12e   :  { %v317_v52 = vadd.f32 1e-05, %v299_v51  ;;  %v8049_v51 = vsub.s32 1, %v8036_v13 }
 0x12f   :  { %v250_v61 = vpop.xlane.xlu1 %249  ;;  %v253_v63 = vpop.xlane.xlu0 %252 }
 0x130   :  { %7235 = vrsqrt.f32 %v317_v52  ;;  %v300_v1 = vmul.f32 0.03125, %v250_v61  ;;  %v301_v4 = vmul.f32 0.03125, %v253_v63  ;;  %11042 = vst [vmem:[#allocation13_spill] sm:$0xff] %v8049_v51 }
 0x132   :  { %v318_v6 = vadd.f32 1e-05, %v300_v1  ;;  %v319_v3 = vadd.f32 1e-05, %v301_v4 }
 0x133   :  { %v256_v5 = vpop.xlane.xlu1 %255  ;;  %v259_v12 = vpop.xlane.xlu0 %258 }
 0x134   :  { %7237 = vrsqrt.f32 %v318_v6  ;;  %v302_v14 = vmul.f32 0.03125, %v256_v5  ;;  %v303_v16 = vmul.f32 0.03125, %v259_v12  ;;  %v8054_v5 = vrot.slane %v134_v35, %v8049_v51 }
 0x135   :  { %7239 = vrsqrt.f32 %v319_v3 }
 0x136   :  { %v320_v15 = vadd.f32 1e-05, %v302_v14  ;;  %v321_v39 = vadd.f32 1e-05, %v303_v16 }
 0x137   :  { %v262_v17 = vpop.xlane.xlu1 %261  ;;  %v265_v23 = vpop.xlane.xlu0 %264 }
 0x138   :  { %7241 = vrsqrt.f32 %v320_v15  ;;  %v304_v33 = vmul.f32 0.03125, %v262_v17  ;;  %v305_v63 = vmul.f32 0.03125, %v265_v23 }
 0x13a   :  { %v7236_v38 = vpop.eup %7235  ;;  %v322_v42 = vadd.f32 1e-05, %v304_v33  ;;  %v323_v16 = vadd.f32 1e-05, %v305_v63 }
 0x13b   :  { %v268_v43 = vpop.xlane.xlu1 %267  ;;  %v271_v47 = vpop.xlane.xlu0 %270  ;;  %v353_v49 = vmul.f32 %v7236_v38, %v7914_v37 }
 0x13c   :  { %7243 = vrsqrt.f32 %v322_v42  ;;  %v306_v52 = vmul.f32 0.03125, %v268_v43 }
 0x13d   :  { %7245 = vrsqrt.f32 %v321_v39  ;;  %v375_v3 = vmul.f32 %v8046_v50, %v353_v49 }
 0x13e   :  { %v7238_v61 = vpop.eup %7237  ;;  %v324_v12 = vadd.f32 1e-05, %v306_v52  ;;  %v307_v52 = vmul.f32 0.03125, %v271_v47 }
 0x13f   :  { %v274_v1 = vpop.xlane.xlu1 %273  ;;  %v277_v4 = vpop.xlane.xlu0 %276  ;;  %v354_v6 = vmul.f32 %v7238_v61, %v7924_v44  ;;  %v397_v38 = vadd.f32 %v8054_v5, %v375_v3 }
 0x140   :  { %v7240_v37 = vpop.eup %7239  ;;  %7247 = vrsqrt.f32 %v324_v12  ;;  %v308_v42 = vmul.f32 0.03125, %v274_v1  ;;  %v325_v1 = vadd.f32 1e-05, %v307_v52 }
 0x141   :  { %v376_v14 = vmul.f32 %v8046_v50, %v354_v6  ;;  %v355_v39 = vmul.f32 %v7240_v37, %v7917_v34  ;;  %7249 = vrsqrt.f32 %v323_v16 }
 0x142   :  { %v7242_v15 = vpop.eup %7241 }
 0x143   :  { %v280_v17 = vpop.xlane.xlu1 %279  ;;  %v283_v33 = vpop.xlane.xlu0 %282  ;;  %v398_v23 = vadd.f32 %v8054_v5, %v376_v14  ;;  %v356_v44 = vmul.f32 %v7242_v15, %v7927_v45  ;;  %v377_v6 = vmul.f32 %v8046_v50, %v355_v39  ;;  %v326_v14 = vadd.f32 1e-05, %v308_v42 }
 0x144   :  { %v310_v37 = vmul.f32 0.03125, %v280_v17  ;;  %v309_v42 = vmul.f32 0.03125, %v277_v4 }
 0x145   :  { %v415_v35 = vpack.c.bf16 %v398_v23, %v397_v38  ;;  %v378_v43 = vmul.f32 %v8046_v50, %v356_v44  ;;  %v399_v47 = vadd.f32 %v8054_v5, %v377_v6  ;;  %7251 = vrsqrt.f32 %v326_v14 }
 0x146   :  { %v7244_v49 = vpop.eup %7243  ;;  %7253 = vrsqrt.f32 %v325_v1  ;;  %v327_v6 = vadd.f32 1e-05, %v309_v42 }
 0x147   :  { %v286_v61 = vpop.xlane.xlu1 %285  ;;  %6299 = vmatmul.mubr.msk.bf16.vlgmr.msra.gmra.mrb[0].mxu0 %vm135_vm0, %v415_v35  ;;  %v289_v63 = vpop.xlane.xlu0 %288  ;;  %v400_v34 = vadd.f32 %v8054_v5, %v378_v43  ;;  %v358_v45 = vmul.f32 %v7244_v49, %v7939_v57  ;;  %v328_v43 = vadd.f32 1e-05, %v310_v37  ;;  %v311_v37 = vmul.f32 0.03125, %v283_v33 }
 0x148   :  { %v7246_v3 = vpop.eup %7245  ;;  %6302 = vmatprep.mubr.msk.bf16.mxu0 %vm7696_vm1, %v11008_v48 }
 0x149   :  { %v357_v16 = vmul.f32 %v7246_v3, %v7936_v56  ;;  %v416_v23 = vpack.c.bf16 %v400_v34, %v399_v47  ;;  %v380_v39 = vmul.f32 %v8046_v50, %v358_v45  ;;  %v312_v34 = vmul.f32 0.03125, %v286_v61 }
 0x14a   :  { %v7248_v44 = vpop.eup %7247  ;;  %v329_v61 = vadd.f32 1e-05, %v311_v37 }
 0x14b   :  { %v292_v12 = vpop.xlane.xlu1 %291  ;;  %v295_v15 = vpop.xlane.xlu0 %294  ;;  %v379_v57 = vmul.f32 %v8046_v50, %v357_v16  ;;  %v402_v56 = vadd.f32 %v8054_v5, %v380_v39  ;;  %v360_v52 = vmul.f32 %v7248_v44, %v7951_v9  ;;  %v330_v47 = vadd.f32 1e-05, %v312_v34 }
 0x14c   :  { %v315_v38 = vmul.f32 0.03125, %v295_v15  ;;  %v7250_v17 = vpop.eup %7249  ;;  %v314_v33 = vmul.f32 0.03125, %v292_v12 }
 0x14d   :  { %v401_v4 = vadd.f32 %v8054_v5, %v379_v57  ;;  %v359_v14 = vmul.f32 %v7250_v17, %v7948_v8  ;;  %v313_v17 = vmul.f32 0.03125, %v289_v63 }
 0x14e   :  { %v333_v35 = vadd.f32 1e-05, %v315_v38 }
 0x14f   :  { %v298_v0 = vpop.xlane.xlu1 %297  ;;  %6303 = vmatmul.mubr.msk.bf16.gmra.mrb[4].mxu0 %vm135_vm0, %v416_v23  ;;  %v417_v45 = vpack.c.bf16 %v402_v56, %v401_v4  ;;  %v7252_v1 = vpop.eup %7251  ;;  %v381_v15 = vmul.f32 %v8046_v50, %v359_v14 }
 0x150   :  { %v316_v49 = vmul.f32 0.03125, %v298_v0  ;;  %6306 = vmatprep.mubr.msk.bf16.mxu0 %vm7696_vm1, %v11008_v48  ;;  %7255 = vrsqrt.f32 %v333_v35  ;;  %v382_v0 = vmul.f32 %v8046_v50, %v360_v52  ;;  %v7254_v9 = vpop.eup %7253  ;;  %v362_v8 = vmul.f32 %v7252_v1, %v7963_v26 }
 0x151   :  { %7257 = vrsqrt.f32 %v328_v43  ;;  %v403_v23 = vadd.f32 %v8054_v5, %v381_v15  ;;  %v361_v39 = vmul.f32 %v7254_v9, %v7960_v25  ;;  %v332_v52 = vadd.f32 1e-05, %v314_v33 }
 0x152   :  { %v334_v3 = vadd.f32 1e-05, %v316_v49  ;;  %v404_v16 = vadd.f32 %v8054_v5, %v382_v0  ;;  %v384_v43 = vmul.f32 %v8046_v50, %v362_v8 }
 0x153   :  { %v383_v26 = vmul.f32 %v8046_v50, %v361_v39 }
 0x154   :  { %7259 = vrsqrt.f32 %v334_v3  ;;  %v418_v35 = vpack.c.bf16 %v404_v16, %v403_v23  ;;  %v406_v12 = vadd.f32 %v8054_v5, %v384_v43  ;;  %v331_v3 = vadd.f32 1e-05, %v313_v17 }
 0x155   :  { %7261 = vrsqrt.f32 %v327_v6  ;;  %v405_v4 = vadd.f32 %v8054_v5, %v383_v26 }
 0x156   :  { %7263 = vrsqrt.f32 %v330_v47 }
 0x157   :  { %6307 = vmatmul.mubr.msk.bf16.gmra.mrb[8].mxu0 %vm135_vm0, %v417_v45  ;;  %7265 = vrsqrt.f32 %v329_v61  ;;  %v419_v34 = vpack.c.bf16 %v406_v12, %v405_v4 }
 0x158   :  { %6310 = vmatprep.mubr.msk.bf16.mxu0 %vm7696_vm1, %v11008_v48  ;;  %7267 = vrsqrt.f32 %v332_v52 }
 0x159   :  { %7269 = vrsqrt.f32 %v331_v3 }
 0x15a   :  { %v7256_v38 = vpop.eup %7255 }
 0x15b   :  { %v369_v44 = vmul.f32 %v7256_v38, %v8008_v30  ;;  %v7258_v42 = vpop.eup %7257 }
 0x15c   :  { %v364_v6 = vmul.f32 %v7258_v42, %v7975_v41 }
 0x15d   :  { %v391_v49 = vmul.f32 %v8046_v50, %v369_v44 }
 0x15e   :  { %v7260_v57 = vpop.eup %7259  ;;  %v386_v45 = vmul.f32 %v8046_v50, %v364_v6 }
 0x15f   :  { %6311 = vmatmul.mubr.msk.bf16.gmra.mrb[12].mxu0 %vm135_vm0, %v418_v35  ;;  %v370_v56 = vmul.f32 %v7260_v57, %v8011_v31  ;;  %v7262_v25 = vpop.eup %7261  ;;  %v413_v30 = vadd.f32 %v8054_v5, %v391_v49 }
 0x160   :  { %6314 = vmatprep.mubr.msk.bf16.mxu0 %vm7696_vm1, %v11008_v48  ;;  %v363_v14 = vmul.f32 %v7262_v25, %v7972_v40  ;;  %v7264_v1 = vpop.eup %7263  ;;  %v408_v15 = vadd.f32 %v8054_v5, %v386_v45 }
 0x161   :  { %v392_v63 = vmul.f32 %v8046_v50, %v370_v56  ;;  %v7266_v37 = vpop.eup %7265  ;;  %v366_v40 = vmul.f32 %v7264_v1, %v7987_v55 }
 0x162   :  { %v385_v41 = vmul.f32 %v8046_v50, %v363_v14  ;;  %v365_v47 = vmul.f32 %v7266_v37, %v7984_v53  ;;  %v7268_v61 = vpop.eup %7267 }
 0x163   :  { %v414_v31 = vadd.f32 %v8054_v5, %v392_v63  ;;  %v388_v8 = vmul.f32 %v8046_v50, %v366_v40  ;;  %v7270_v23 = vpop.eup %7269  ;;  %v368_v55 = vmul.f32 %v7268_v61, %v7999_v11 }
 0x164   :  { %v407_v9 = vadd.f32 %v8054_v5, %v385_v41  ;;  %v387_v38 = vmul.f32 %v8046_v50, %v365_v47  ;;  %v367_v53 = vmul.f32 %v7270_v23, %v7996_v10  ;;  %v8137_v10 = vld [vmem:[%s10996_s4] ss:$0 sm:$0xff] }
 0x165   :  { %v423_v0 = vpack.c.bf16 %v414_v31, %v413_v30  ;;  %v410_v39 = vadd.f32 %v8054_v5, %v388_v8  ;;  %v390_v42 = vmul.f32 %v8046_v50, %v368_v55 }
 0x166   :  { %v420_v16 = vpack.c.bf16 %v408_v15, %v407_v9  ;;  %v409_v33 = vadd.f32 %v8054_v5, %v387_v38  ;;  %v389_v35 = vmul.f32 %v8046_v50, %v367_v53 }
 0x167   :  { %6315 = vmatmul.mubr.msk.bf16.gmra.mrb[16].mxu0 %vm135_vm0, %v419_v34  ;;  %v412_v43 = vadd.f32 %v8054_v5, %v390_v42 }
 0x168   :  { %6318 = vmatprep.mubr.msk.bf16.mxu0 %vm7696_vm1, %v11008_v48  ;;  %v421_v44 = vpack.c.bf16 %v410_v39, %v409_v33  ;;  %v411_v57 = vadd.f32 %v8054_v5, %v389_v35 }
 0x16a   :  { %v422_v17 = vpack.c.bf16 %v412_v43, %v411_v57 }
 0x16f   :  { %6319 = vmatmul.mubr.msk.bf16.gmra.mrb[20].mxu0 %vm135_vm0, %v420_v16 }
 0x170   :  { %6322 = vmatprep.mubr.msk.bf16.mxu0 %vm7696_vm1, %v11008_v48 }
 0x177   :  { %6323 = vmatmul.mubr.msk.bf16.gmra.mrb[24].mxu0 %vm135_vm0, %v421_v44 }
 0x178   :  { %6326 = vmatprep.mubr.msk.bf16.mxu0 %vm7696_vm1, %v11008_v48 }
 0x17f   :  { %6327 = vmatmul.mubr.msk.bf16.gmra.mrb[28].mxu0 %vm135_vm0, %v422_v17 }
 0x180   :  { %6330 = vmatprep.mubr.msk.bf16.mxu0 %vm7696_vm1, %v11008_v48 }
 0x187   :  { %6331 = vmatmul.mubr.msk.bf16.gmra.mrb[32].mxu0 %vm135_vm0, %v423_v0 }
 0x188   :  { %6374 = vmatprep.mubr.msk.bf16.mxu0 %vm7696_vm1, %v11008_v48 }
 0x21a   :  { %v508_v11 = vpop.f32.mrb[0].mxu0 }
 0x21b   :  { %v6300_v50 = vpop.f32.mrb[1].mxu0  ;;  %v509_v5 = vadd.f32 %v8137_v10, %v508_v11 }
 0x21c   :  { %v511_v49 = vpop.f32.mrb[2].mxu0 }
 0x21d   :  { %v512_v26 = vadd.f32 %v8137_v10, %v511_v49  ;;  %v6301_v56 = vpop.f32.mrb[3].mxu0 }
 0x21f   :  { %v8141_v25 = vpack.c.bf16 %v512_v26, %v509_v5 }
 0x221   :  { %594 = vrot.lane.b32.xlu0 %v8141_v25, %s7697_s23 }
 0x222   :  { %v516_v52 = vpop.f32.mrb[4].mxu0 }
 0x223   :  { %v6304_v30 = vpop.f32.mrb[5].mxu0  ;;  %v517_v6 = vadd.f32 %v8137_v10, %v516_v52 }
 0x224   :  { %v519_v12 = vpop.f32.mrb[6].mxu0 }
 0x225   :  { %v520_v63 = vadd.f32 %v8137_v10, %v519_v12  ;;  %v6305_v3 = vpop.f32.mrb[7].mxu0 }
 0x227   :  { %v8147_v4 = vpack.c.bf16 %v520_v63, %v517_v6 }
 0x229   :  { %596 = vrot.lane.b32.xlu1 %v8147_v4, %s7697_s23 }
 0x22a   :  { %v524_v14 = vpop.f32.mrb[8].mxu0 }
 0x22b   :  { %v6308_v31 = vpop.f32.mrb[9].mxu0  ;;  %v525_v45 = vadd.f32 %v8137_v10, %v524_v14 }
 0x22c   :  { %v527_v34 = vpop.f32.mrb[10].mxu0 }
 0x22d   :  { %v528_v0 = vadd.f32 %v8137_v10, %v527_v34  ;;  %v6309_v1 = vpop.f32.mrb[11].mxu0 }
 0x22f   :  { %v8153_v41 = vpack.c.bf16 %v528_v0, %v525_v45 }
 0x231   :  { %598 = vrot.lane.b32.xlu1 %v8153_v41, %s7697_s23 }
 0x232   :  { %v532_v37 = vpop.f32.mrb[12].mxu0 }
 0x233   :  { %v6312_v15 = vpop.f32.mrb[13].mxu0  ;;  %v533_v9 = vadd.f32 %v8137_v10, %v532_v37 }
 0x234   :  { %v535_v40 = vpop.f32.mrb[14].mxu0 }
 0x235   :  { %v536_v47 = vadd.f32 %v8137_v10, %v535_v40  ;;  %v6313_v16 = vpop.f32.mrb[15].mxu0 }
 0x237   :  { %v8159_v8 = vpack.c.bf16 %v536_v47, %v533_v9 }
 0x239   :  { %600 = vrot.lane.b32.xlu1 %v8159_v8, %s7697_s23 }
 0x23a   :  { %v540_v61 = vpop.f32.mrb[16].mxu0 }
 0x23b   :  { %v541_v38 = vadd.f32 %v8137_v10, %v540_v61  ;;  %v6316_v23 = vpop.f32.mrb[17].mxu0 }
 0x23c   :  { %v543_v39 = vpop.f32.mrb[18].mxu0 }
 0x23d   :  { %v8164_v55 = vpack.c.bf16 %v541_v38, %v541_v38  ;;  %v6317_v33 = vpop.f32.mrb[19].mxu0  ;;  %v544_v44 = vadd.f32 %v8137_v10, %v543_v39 }
 0x23f   :  { %602 = vrot.lane.b32.xlu0 %v8164_v55, %s7697_s23 }
 0x242   :  { %v548_v53 = vpop.f32.mrb[20].mxu0 }
 0x243   :  { %v549_v42 = vadd.f32 %v8137_v10, %v548_v53  ;;  %v6320_v35 = vpop.f32.mrb[21].mxu0 }
 0x244   :  { %v551_v43 = vpop.f32.mrb[22].mxu0 }
 0x245   :  { %v8170_v57 = vpack.c.bf16 %v549_v42, %v544_v44  ;;  %v6321_v17 = vpop.f32.mrb[23].mxu0  ;;  %v552_v50 = vadd.f32 %v8137_v10, %v551_v43 }
 0x247   :  { %712 = vrot.lane.b32.xlu1 %v8170_v57, %s7697_s23 }
 0x24a   :  { %v556_v11 = vpop.f32.mrb[24].mxu0 }
 0x24b   :  { %v557_v49 = vadd.f32 %v8137_v10, %v556_v11  ;;  %v6324_v5 = vpop.f32.mrb[25].mxu0 }
 0x24c   :  { %v559_v26 = vpop.f32.mrb[26].mxu0 }
 0x24d   :  { %v8176_v56 = vpack.c.bf16 %v557_v49, %v552_v50  ;;  %v6325_v52 = vpop.f32.mrb[27].mxu0  ;;  %v560_v12 = vadd.f32 %v8137_v10, %v559_v26 }
 0x24f   :  { %714 = vrot.lane.b32.xlu0 %v8176_v56, %s7697_s23 }
 0x252   :  { %v564_v30 = vpop.f32.mrb[28].mxu0 }
 0x253   :  { %v565_v6 = vadd.f32 %v8137_v10, %v564_v30  ;;  %v6328_v63 = vpop.f32.mrb[29].mxu0 }
 0x254   :  { %v567_v3 = vpop.f32.mrb[30].mxu0 }
 0x255   :  { %v8182_v14 = vpack.c.bf16 %v565_v6, %v560_v12  ;;  %v6329_v31 = vpop.f32.mrb[31].mxu0  ;;  %v568_v45 = vadd.f32 %v8137_v10, %v567_v3 }
 0x257   :  { %716 = vrot.lane.b32.xlu1 %v8182_v14, %s7697_s23 }
 0x25a   :  { %v572_v34 = vpop.f32.mrb[32].mxu0 }
 0x25b   :  { %v573_v0 = vadd.f32 %v8137_v10, %v572_v34  ;;  %v6332_v1 = vpop.f32.mrb[33].mxu0 }
 0x25c   :  { %v575_v37 = vpop.f32.mrb[34].mxu0 }
 0x25d   :  { %v8188_v15 = vpack.c.bf16 %v573_v0, %v568_v45  ;;  %v576_v40 = vadd.f32 %v8137_v10, %v575_v37  ;;  %v6333_v9 = vpop.f32.mrb[35].mxu0 }
 0x25e   :  { %v11043_v9 = vlaneseq }
 0x25f   :  { %v8191_v47 = vpack.c.bf16 %v576_v40, %v576_v40  ;;  %718 = vrot.lane.b32.xlu0 %v8188_v15, %s7697_s23 }
 0x261   :  { %720 = vrot.lane.b32.xlu1 %v8191_v47, %s7697_s23 }
 0x263   :  { %1069 = vrot.lane.b32.xlu0 %v8141_v25, %s7698_s24 }
 0x265   :  { %1071 = vrot.lane.b32.xlu1 %v8147_v4, %s7698_s24 }
 0x267   :  { %1073 = vrot.lane.b32.xlu0 %v8153_v41, %s7698_s24 }
 0x269   :  { %1077 = vrot.lane.b32.xlu1 %v8164_v55, %s7698_s24 }
 0x26b   :  { %1075 = vrot.lane.b32.xlu0 %v8159_v8, %s7698_s24 }
 0x26d   :  { %1290 = vrot.lane.b32.xlu1 %v8147_v4, %s7699_s25 }
 0x26f   :  { %1288 = vrot.lane.b32.xlu0 %v8141_v25, %s7699_s25 }
 0x271   :  { %1292 = vrot.lane.b32.xlu1 %v8153_v41, %s7699_s25 }
 0x273   :  { %1174 = vrot.lane.b32.xlu0 %v8170_v57, %s7698_s24 }
 0x277   :  { %1176 = vrot.lane.b32.xlu0 %v8176_v56, %s7698_s24 }
 0x27b   :  { %1178 = vrot.lane.b32.xlu0 %v8182_v14, %s7698_s24 }
 0x27f   :  { %1180 = vrot.lane.b32.xlu0 %v8188_v15, %s7698_s24 }
 0x293   :  { %v595_v10 = vpop.permute.xlu0 %594 }
 0x294   :  { %v621_v16 = vsel %vm604_vm2, %v595_v10, 0  ;;  %v131_v10 = vand.u32 127, %v11043_v9 }
 0x295   :  { %6335 = vmatpush3.bf16.xpose.msra.mxu1 %v621_v16 }
 0x296   :  { %6336 = vmatprep.subr.bf16.mxu1 %v11008_v48  ;;  %vm132_vm4 = vcmp.ge.s32.totalorder %v131_v10, 69 }
 0x297   :  { %v8295_v16 = vsel %vm132_vm4, -1e+09, %v11008_v48 }
 0x298   :  { %11044 = vst [vmem:[#allocation14_spill] sm:$0xff] %v8295_v16 }
 0x29b   :  { %v597_v61 = vpop.permute.xlu1 %596 }
 0x29c   :  { %v624_v38 = vsel %vm604_vm2, %v597_v61, 0 }
 0x29d   :  { %6337 = vmatpush3.bf16.xpose.msra.mxu1 %v624_v38 }
 0x29e   :  { %6338 = vmatprep.subr.bf16.mxu1 %v11008_v48 }
 0x2a3   :  { %v599_v23 = vpop.permute.xlu1 %598 }
 0x2a4   :  { %v627_v39 = vsel %vm604_vm2, %v599_v23, 0 }
 0x2a5   :  { %6339 = vmatpush3.bf16.xpose.msra.mxu1 %v627_v39 }
 0x2a6   :  { %6340 = vmatprep.subr.bf16.mxu1 %v11008_v48 }
 0x2ab   :  { %v601_v33 = vpop.permute.xlu1 %600 }
 0x2ac   :  { %v630_v53 = vsel %vm604_vm2, %v601_v33, 0 }
 0x2ad   :  { %6341 = vmatpush3.bf16.xpose.msra.mxu1 %v630_v53 }
 0x2ae   :  { %6342 = vmatprep.subr.bf16.mxu1 %v11008_v48 }
 0x2b1   :  { %v603_v44 = vpop.permute.xlu0 %602 }
 0x2b2   :  { %v633_v42 = vsel %vm604_vm2, %v603_v44, 0 }
 0x2b5   :  { %6343 = vmatpush3.bf16.xpose.msra.mxu1 %v633_v42 }
 0x2b6   :  { %6394 = vmatprep.subr.bf16.mxu1 %v11008_v48 }
 0x2b9   :  { %v713_v35 = vpop.permute.xlu1 %712 }
 0x2ba   :  { %v738_v43 = vsel %vm604_vm2, %v713_v35, 0 }
 0x2bb   :  { %6365 = vmatpush3.bf16.xpose.msra.mxu0 %v738_v43 }
 0x2bc   :  { %6345 = vmatmul.mubr.msk.bf16.vlgmr.msra.gmra.mrb[0].mxu1 %vm604_vm2, %v8141_v25  ;;  %6366 = vmatprep.subr.bf16.mxu0 %v11008_v48 }
 0x2bd   :  { %6348 = vmatprep.mubr.msk.bf16.mxu1 %vm7696_vm1, %v11008_v48 }
 0x2c1   :  { %v715_v17 = vpop.permute.xlu0 %714 }
 0x2c2   :  { %v741_v11 = vsel %vm604_vm2, %v715_v17, 0 }
 0x2c3   :  { %6367 = vmatpush3.bf16.xpose.msra.mxu0 %v741_v11 }
 0x2c4   :  { %6349 = vmatmul.mubr.msk.bf16.gmra.mrb[4].mxu1 %vm604_vm2, %v8147_v4  ;;  %6368 = vmatprep.subr.bf16.mxu0 %v11008_v48 }
 0x2c5   :  { %6352 = vmatprep.mubr.msk.bf16.mxu1 %vm7696_vm1, %v11008_v48 }
 0x2c9   :  { %v717_v50 = vpop.permute.xlu1 %716 }
 0x2ca   :  { %v744_v49 = vsel %vm604_vm2, %v717_v50, 0 }
 0x2cb   :  { %6369 = vmatpush3.bf16.xpose.msra.mxu0 %v744_v49 }
 0x2cc   :  { %6353 = vmatmul.mubr.msk.bf16.gmra.mrb[8].mxu1 %vm604_vm2, %v8153_v41  ;;  %6370 = vmatprep.subr.bf16.mxu0 %v11008_v48 }
 0x2cd   :  { %6356 = vmatprep.mubr.msk.bf16.mxu1 %vm7696_vm1, %v11008_v48 }
 0x2d1   :  { %v719_v5 = vpop.permute.xlu0 %718 }
 0x2d2   :  { %v747_v26 = vsel %vm604_vm2, %v719_v5, 0 }
 0x2d3   :  { %v721_v52 = vpop.permute.xlu1 %720  ;;  %6371 = vmatpush3.bf16.xpose.msra.mxu0 %v747_v26 }
 0x2d4   :  { %6357 = vmatmul.mubr.msk.bf16.gmra.mrb[12].mxu1 %vm604_vm2, %v8159_v8  ;;  %6372 = vmatprep.subr.bf16.mxu0 %v11008_v48  ;;  %v750_v63 = vsel %vm604_vm2, %v721_v52, 0 }
 0x2d5   :  { %v1070_v30 = vpop.permute.xlu0 %1069  ;;  %6360 = vmatprep.mubr.msk.bf16.mxu1 %vm7696_vm1, %v11008_v48 }
 0x2d6   :  { %6395 = vmatpush3.bf16.msra.mxu1 %v1070_v30 }
 0x2d7   :  { %6396 = vmatprep.subr.bf16.mxu1 %v11008_v48  ;;  %v1072_v12 = vpop.permute.xlu1 %1071 }
 0x2d9   :  { %v1074_v6 = vpop.permute.xlu0 %1073 }
 0x2da   :  { %6397 = vmatpush3.bf16.msra.mxu1 %v1072_v12 }
 0x2db   :  { %6373 = vmatpush3.bf16.xpose.msra.mxu0 %v750_v63  ;;  %6398 = vmatprep.subr.bf16.mxu1 %v11008_v48  ;;  %v1078_v34 = vpop.permute.xlu1 %1077 }
 0x2dc   :  { %6361 = vmatmul.mubr.msk.bf16.gmra.mrb[16].mxu1 %vm604_vm2, %v8164_v55  ;;  %6424 = vmatprep.subr.bf16.mxu0 %v11008_v48  ;;  %v1100_v45 = vsel %vm1098_vm3, %v1078_v34, 0 }
 0x2dd   :  { %v1076_v3 = vpop.permute.xlu0 %1075  ;;  %6404 = vmatprep.mubr.msk.bf16.mxu1 %vm7696_vm1, %v11008_v48 }
 0x2de   :  { %6399 = vmatpush3.bf16.msra.mxu1 %v1074_v6 }
 0x2df   :  { %6400 = vmatprep.subr.bf16.mxu1 %v11008_v48 }
 0x2e1   :  { %v8264_v31 = vpop.permute.xlu0 %1288 }
 0x2e2   :  { %6375 = vmatmul.mubr.msk.bf16.vlgmr.msra.gmra.mrb[36].mxu0 %vm604_vm2, %v8170_v57  ;;  %6401 = vmatpush3.bf16.msra.mxu1 %v1076_v3 }
 0x2e3   :  { %6402 = vmatprep.subr.bf16.mxu1 %v11008_v48  ;;  %6378 = vmatprep.mubr.msk.bf16.mxu0 %vm7696_vm1, %v11008_v48 }
 0x2e5   :  { %v1175_v0 = vpop.permute.xlu0 %1174 }
 0x2e6   :  { %6403 = vmatpush3.bf16.msra.mxu1 %v1100_v45  ;;  %6425 = vmatpush3.bf16.msra.mxu0 %v1175_v0 }
 0x2e7   :  { %6426 = vmatprep.subr.bf16.mxu0 %v11008_v48  ;;  %6454 = vmatprep.subr.bf16.mxu1 %v11008_v48 }
 0x2e9   :  { %v1177_v1 = vpop.permute.xlu0 %1176 }
 0x2ea   :  { %6379 = vmatmul.mubr.msk.bf16.gmra.mrb[40].mxu0 %vm604_vm2, %v8176_v56 }
 0x2eb   :  { %6427 = vmatpush3.bf16.msra.mxu0 %v1177_v1  ;;  %6382 = vmatprep.mubr.msk.bf16.mxu0 %vm7696_vm1, %v11008_v48 }
 0x2ec   :  { %6428 = vmatprep.subr.bf16.mxu0 %v11008_v48 }
 0x2ed   :  { %v1179_v37 = vpop.permute.xlu0 %1178 }
 0x2ef   :  { %6429 = vmatpush3.bf16.msra.mxu0 %v1179_v37 }
 0x2f0   :  { %6430 = vmatprep.subr.bf16.mxu0 %v11008_v48 }
 0x2f1   :  { %v1181_v40 = vpop.permute.xlu0 %1180 }
 0x2f2   :  { %6383 = vmatmul.mubr.msk.bf16.gmra.mrb[44].mxu0 %vm604_vm2, %v8182_v14 }
 0x2f3   :  { %6431 = vmatpush3.bf16.msra.mxu0 %v1181_v40  ;;  %6386 = vmatprep.mubr.msk.bf16.mxu0 %vm7696_vm1, %v11008_v48 }
 0x2f4   :  { %6432 = vmatprep.subr.bf16.mxu0 %v11008_v48 }
 0x2fa   :  { %6387 = vmatmul.mubr.msk.bf16.gmra.mrb[48].mxu0 %vm604_vm2, %v8188_v15 }
 0x2fb   :  { %6390 = vmatprep.mubr.msk.bf16.mxu0 %vm7696_vm1, %v11008_v48 }
 0x302   :  { %6391 = vmatmul.mubr.msk.bf16.gmra.mrb[52].mxu0 %vm604_vm2, %v8191_v47 }
 0x303   :  { %6434 = vmatprep.mubr.msk.bf16.mxu0 %vm7696_vm1, %v11008_v48 }
 0x38f   :  { %v669_v61 = vpop.f32.mrb[0].mxu1 }
 0x390   :  { %v824_v38 = vmul.f32 0.25, %v669_v61  ;;  %v6346_v23 = vpop.f32.mrb[1].mxu1 }
 0x391   :  { %v672_v39 = vpop.f32.mrb[2].mxu1 }
 0x392   :  { %v825_v33 = vmul.f32 0.25, %v672_v39  ;;  %v6347_v53 = vpop.f32.mrb[3].mxu1  ;;  %v8298_v44 = vadd.f32 %v824_v38, %v8295_v16 }
 0x394   :  { %v861_v42 = vsel %vm860_vm5, %v8298_v44, -inf  ;;  %v8303_v35 = vadd.f32 %v825_v33, %v8295_v16 }
 0x395   :  { %862 = vmax.xlane.f32.xlu0 %v861_v42 }
 0x396   :  { %v864_v43 = vsel %vm860_vm5, %v8303_v35, -inf }
 0x397   :  { %865 = vmax.xlane.f32.xlu1 %v864_v43  ;;  %v677_v17 = vpop.f32.mrb[4].mxu1 }
 0x398   :  { %v826_v11 = vmul.f32 0.25, %v677_v17  ;;  %v6350_v50 = vpop.f32.mrb[5].mxu1 }
 0x399   :  { %v680_v49 = vpop.f32.mrb[6].mxu1 }
 0x39a   :  { %v827_v5 = vmul.f32 0.25, %v680_v49  ;;  %v6351_v26 = vpop.f32.mrb[7].mxu1  ;;  %v8308_v52 = vadd.f32 %v826_v11, %v8295_v16 }
 0x39c   :  { %v867_v30 = vsel %vm860_vm5, %v8308_v52, -inf  ;;  %v8313_v12 = vadd.f32 %v827_v5, %v8295_v16 }
 0x39d   :  { %868 = vmax.xlane.f32.xlu0 %v867_v30 }
 0x39e   :  { %v870_v34 = vsel %vm860_vm5, %v8313_v12, -inf }
 0x39f   :  { %v685_v6 = vpop.f32.mrb[8].mxu1 }
 0x3a0   :  { %v828_v63 = vmul.f32 0.25, %v685_v6  ;;  %v6354_v3 = vpop.f32.mrb[9].mxu1 }
 0x3a1   :  { %871 = vmax.xlane.f32.xlu0 %v870_v34  ;;  %v688_v45 = vpop.f32.mrb[10].mxu1 }
 0x3a2   :  { %v829_v0 = vmul.f32 0.25, %v688_v45  ;;  %v6355_v1 = vpop.f32.mrb[11].mxu1  ;;  %v8318_v37 = vadd.f32 %v828_v63, %v8295_v16 }
 0x3a4   :  { %v873_v40 = vsel %vm860_vm5, %v8318_v37, -inf  ;;  %v8323_v9 = vadd.f32 %v829_v0, %v8295_v16 }
 0x3a5   :  { %874 = vmax.xlane.f32.xlu0 %v873_v40 }
 0x3a6   :  { %v876_v10 = vsel %vm860_vm5, %v8323_v9, -inf }
 0x3a7   :  { %877 = vmax.xlane.f32.xlu1 %v876_v10  ;;  %v693_v61 = vpop.f32.mrb[12].mxu1 }
 0x3a8   :  { %v830_v38 = vmul.f32 0.25, %v693_v61  ;;  %v6358_v23 = vpop.f32.mrb[13].mxu1 }
 0x3a9   :  { %v696_v39 = vpop.f32.mrb[14].mxu1 }
 0x3aa   :  { %v831_v33 = vmul.f32 0.25, %v696_v39  ;;  %v6359_v53 = vpop.f32.mrb[15].mxu1  ;;  %v8328_v42 = vadd.f32 %v830_v38, %v8295_v16 }
 0x3ac   :  { %v879_v43 = vsel %vm860_vm5, %v8328_v42, -inf  ;;  %v8333_v17 = vadd.f32 %v831_v33, %v8295_v16 }
 0x3ad   :  { %880 = vmax.xlane.f32.xlu0 %v879_v43 }
 0x3ae   :  { %v882_v11 = vsel %vm860_vm5, %v8333_v17, -inf }
 0x3af   :  { %883 = vmax.xlane.f32.xlu1 %v882_v11  ;;  %v701_v50 = vpop.f32.mrb[16].mxu1 }
 0x3b0   :  { %v832_v49 = vmul.f32 0.25, %v701_v50  ;;  %v6362_v5 = vpop.f32.mrb[17].mxu1 }
 0x3b1   :  { %v704_v26 = vpop.f32.mrb[18].mxu1 }
 0x3b2   :  { %v6363_v30 = vpop.f32.mrb[19].mxu1  ;;  %v8338_v6 = vadd.f32 %v832_v49, %v8295_v16 }
 0x3b4   :  { %v885_v63 = vsel %vm860_vm5, %v8338_v6, -inf }
 0x3b5   :  { %886 = vmax.xlane.f32.xlu0 %v885_v63  ;;  %v786_v3 = vpop.f32.mrb[36].mxu0 }
 0x3b6   :  { %v833_v34 = vmul.f32 0.25, %v786_v3  ;;  %v6376_v45 = vpop.f32.mrb[37].mxu0 }
 0x3b7   :  { %v789_v0 = vpop.f32.mrb[38].mxu0 }
 0x3b8   :  { %v834_v1 = vmul.f32 0.25, %v789_v0  ;;  %v6377_v40 = vpop.f32.mrb[39].mxu0  ;;  %v8343_v10 = vadd.f32 %v833_v34, %v8295_v16 }
 0x3ba   :  { %v888_v61 = vsel %vm860_vm5, %v8343_v10, -inf  ;;  %v8348_v38 = vadd.f32 %v834_v1, %v8295_v16 }
 0x3bb   :  { %889 = vmax.xlane.f32.xlu1 %v888_v61 }
 0x3bc   :  { %v891_v23 = vsel %vm860_vm5, %v8348_v38, -inf }
 0x3bd   :  { %892 = vmax.xlane.f32.xlu0 %v891_v23  ;;  %v794_v39 = vpop.f32.mrb[40].mxu0 }
 0x3be   :  { %v835_v33 = vmul.f32 0.25, %v794_v39  ;;  %v6380_v53 = vpop.f32.mrb[41].mxu0 }
 0x3bf   :  { %v797_v43 = vpop.f32.mrb[42].mxu0 }
 0x3c0   :  { %v836_v11 = vmul.f32 0.25, %v797_v43  ;;  %v6381_v50 = vpop.f32.mrb[43].mxu0  ;;  %v8353_v49 = vadd.f32 %v835_v33, %v8295_v16 }
 0x3c2   :  { %v894_v5 = vsel %vm860_vm5, %v8353_v49, -inf  ;;  %v8358_v26 = vadd.f32 %v836_v11, %v8295_v16 }
 0x3c3   :  { %895 = vmax.xlane.f32.xlu1 %v894_v5 }
 0x3c4   :  { %v897_v30 = vsel %vm860_vm5, %v8358_v26, -inf }
 0x3c5   :  { %898 = vmax.xlane.f32.xlu0 %v897_v30  ;;  %v802_v63 = vpop.f32.mrb[44].mxu0 }
 0x3c6   :  { %v6384_v3 = vpop.f32.mrb[45].mxu0  ;;  %v837_v43 = vmul.f32 0.25, %v802_v63 }
 0x3c7   :  { %v805_v34 = vpop.f32.mrb[46].mxu0 }
 0x3c8   :  { %v6385_v45 = vpop.f32.mrb[47].mxu0  ;;  %v838_v11 = vmul.f32 0.25, %v805_v34  ;;  %v8367_v5 = vadd.f32 %v837_v43, %v8295_v16 }
 0x3ca   :  { %v8370_v3 = vadd.f32 %v838_v11, %v8295_v16 }
 0x3cc   :  { %v903_v63 = vsel %vm860_vm5, %v8370_v3, -inf }
 0x3cd   :  { %v810_v0 = vpop.f32.mrb[48].mxu0 }
 0x3ce   :  { %v6388_v1 = vpop.f32.mrb[49].mxu0  ;;  %v839_v50 = vmul.f32 0.25, %v810_v0 }
 0x3cf   :  { %v813_v40 = vpop.f32.mrb[50].mxu0  ;;  %v900_v1 = vsel %vm860_vm5, %v8367_v5, -inf }
 0x3d0   :  { %v6389_v61 = vpop.f32.mrb[51].mxu0  ;;  %v840_v30 = vmul.f32 0.25, %v813_v40 }
 0x3d1   :  { %v8375_v61 = vadd.f32 %v839_v50, %v8295_v16 }
 0x3d2   :  { %v8380_v34 = vadd.f32 %v840_v30, %v8295_v16 }
 0x3d3   :  { %v906_v0 = vsel %vm860_vm5, %v8375_v61, -inf }
 0x3d4   :  { %1294 = vrot.lane.b32.xlu1 %v8159_v8, %s7699_s25 }
 0x3d5   :  { %v818_v23 = vpop.f32.mrb[52].mxu0 }
 0x3d6   :  { %v6392_v39 = vpop.f32.mrb[53].mxu0  ;;  %v841_v45 = vmul.f32 0.25, %v818_v23  ;;  %v909_v23 = vsel %vm860_vm5, %v8380_v34, -inf }
 0x3d7   :  { %v821_v33 = vpop.f32.mrb[54].mxu0 }
 0x3d8   :  { %v6393_v53 = vpop.f32.mrb[55].mxu0  ;;  %v8385_v40 = vadd.f32 %v841_v45, %v8295_v16  ;;  %v8391_v33 = vpop.permute.xlu1 %1290 }
 0x3da   :  { %v912_v39 = vsel %vm860_vm5, %v8385_v40, -inf }
 0x3db   :  { %1182 = vrot.lane.b32.xlu0 %v8191_v47, %s7698_s24 }
 0x3dc   :  { %v8393_v53 = vpop.permute.xlu1 %1292 }
 0x3f8   :  { %901 = vmax.xlane.f32.xlu1 %v900_v1 }
 0x3fa   :  { %904 = vmax.xlane.f32.xlu0 %v903_v63 }
 0x3fc   :  { %907 = vmax.xlane.f32.xlu1 %v906_v0 }
 0x3fe   :  { %910 = vmax.xlane.f32.xlu0 %v909_v23 }
 0x400   :  { %913 = vmax.xlane.f32.xlu1 %v912_v39 }
 0x422   :  { %v863_v43 = vpop.xlane.xlu0 %862 }
 0x423   :  { %v915_v11 = vsub.f32 %v8298_v44, %v863_v43 }
 0x424   :  { %v866_v50 = vpop.xlane.xlu1 %865 }
 0x425   :  { %v933_v30 = vmul.f32 1.442695, %v915_v11  ;;  %v916_v45 = vsub.f32 %v8303_v35, %v866_v50 }
 0x427   :  { %7271 = vpow2.f32 %v933_v30  ;;  %v935_v1 = vmul.f32 1.442695, %v916_v45 }
 0x429   :  { %7273 = vpow2.f32 %v935_v1 }
 0x42a   :  { %v869_v63 = vpop.xlane.xlu0 %868 }
 0x42b   :  { %v917_v0 = vsub.f32 %v8308_v52, %v869_v63 }
 0x42d   :  { %v937_v23 = vmul.f32 1.442695, %v917_v0 }
 0x42e   :  { %v872_v48 = vpop.xlane.xlu0 %871 }
 0x42f   :  { %7275 = vpow2.f32 %v937_v23  ;;  %v918_v39 = vsub.f32 %v8313_v12, %v872_v48 }
 0x431   :  { %v8399_v51 = vpop.eup %7271  ;;  %v939_v29 = vmul.f32 1.442695, %v918_v39 }
 0x432   :  { %v875_v13 = vpop.xlane.xlu0 %874  ;;  %v969_v44 = vsel %vm860_vm5, %v8399_v51, 0.0 }
 0x433   :  { %v8403_v43 = vpop.eup %7273  ;;  %7277 = vpow2.f32 %v939_v29  ;;  %v919_v35 = vsub.f32 %v8318_v37, %v875_v13  ;;  %970 = vadd.xlane.f32.xlu0 %v969_v44 }
 0x434   :  { %v878_v11 = vpop.xlane.xlu1 %877  ;;  %v972_v52 = vsel %vm860_vm5, %v8403_v43, 0.0 }
 0x435   :  { %v941_v50 = vmul.f32 1.442695, %v919_v35  ;;  %v920_v48 = vsub.f32 %v8323_v9, %v878_v11  ;;  %973 = vadd.xlane.f32.xlu1 %v972_v52 }
 0x437   :  { %7279 = vpow2.f32 %v941_v50  ;;  %v943_v12 = vmul.f32 1.442695, %v920_v48 }
 0x439   :  { %v8409_v30 = vpop.eup %7275  ;;  %7281 = vpow2.f32 %v943_v12 }
 0x43a   :  { %v881_v45 = vpop.xlane.xlu0 %880  ;;  %v975_v29 = vsel %vm860_vm5, %v8409_v30, 0.0 }
 0x43b   :  { %v921_v13 = vsub.f32 %v8328_v42, %v881_v45  ;;  %976 = vadd.xlane.f32.xlu1 %v975_v29 }
 0x43c   :  { %v884_v42 = vpop.xlane.xlu1 %883 }
 0x43d   :  { %v8414_v37 = vpop.eup %7277  ;;  %v945_v1 = vmul.f32 1.442695, %v921_v13 }
 0x43e   :  { %v978_v63 = vsel %vm860_vm5, %v8414_v37, 0.0 }
 0x43f   :  { %7283 = vpow2.f32 %v945_v1  ;;  %979 = vadd.xlane.f32.xlu1 %v978_v63 }
 0x441   :  { %v8418_v9 = vpop.eup %7279 }
 0x442   :  { %v887_v0 = vpop.xlane.xlu0 %886  ;;  %v981_v23 = vsel %vm860_vm5, %v8418_v9, 0.0 }
 0x443   :  { %v8422_v39 = vpop.eup %7281  ;;  %v923_v44 = vsub.f32 %v8338_v6, %v887_v0  ;;  %982 = vadd.xlane.f32.xlu1 %v981_v23 }
 0x444   :  { %v984_v35 = vsel %vm860_vm5, %v8422_v39, 0.0 }
 0x445   :  { %v949_v11 = vmul.f32 1.442695, %v923_v44  ;;  %985 = vadd.xlane.f32.xlu0 %v984_v35 }
 0x447   :  { %7285 = vpow2.f32 %v949_v11 }
 0x448   :  { %v890_v52 = vpop.xlane.xlu1 %889 }
 0x449   :  { %v8427_v50 = vpop.eup %7283  ;;  %v924_v48 = vsub.f32 %v8343_v10, %v890_v52 }
 0x44a   :  { %v893_v12 = vpop.xlane.xlu0 %892  ;;  %v987_v45 = vsel %vm860_vm5, %v8427_v50, 0.0 }
 0x44b   :  { %v951_v29 = vmul.f32 1.442695, %v924_v48  ;;  %v925_v6 = vsub.f32 %v8348_v38, %v893_v12  ;;  %988 = vadd.xlane.f32.xlu1 %v987_v45  ;;  %v11045_v48 = vmov 0.0  }
 0x44d   :  { %7287 = vpow2.f32 %v951_v29  ;;  %v953_v13 = vmul.f32 1.442695, %v925_v6  ;;  %v922_v29 = vsub.f32 %v8333_v17, %v884_v42 }
 0x44f   :  { %7289 = vpow2.f32 %v953_v13  ;;  %v947_v13 = vmul.f32 1.442695, %v922_v29 }
 0x450   :  { %v896_v6 = vpop.xlane.xlu1 %895 }
 0x451   :  { %v8433_v1 = vpop.eup %7285 }
 0x452   :  { %v899_v63 = vpop.xlane.xlu0 %898  ;;  %v993_v0 = vsel %vm860_vm5, %v8433_v1, 0.0 }
 0x453   :  { %v927_v23 = vsub.f32 %v8358_v26, %v899_v63  ;;  %994 = vadd.xlane.f32.xlu1 %v993_v0  ;;  %v926_v63 = vsub.f32 %v8353_v49, %v896_v6 }
 0x454   :  { %v8464_v17 = vpop.permute.xlu1 %1294 }
 0x455   :  { %v957_v10 = vmul.f32 1.442695, %v927_v23  ;;  %v955_v0 = vmul.f32 1.442695, %v926_v63 }
 0x456   :  { %v1183_v44 = vpop.permute.xlu0 %1182 }
 0x457   :  { %v8438_v35 = vpop.eup %7287  ;;  %7291 = vpow2.f32 %v957_v10  ;;  %v1204_v38 = vsel %vm1098_vm3, %v1183_v44, 0 }
 0x458   :  { %6433 = vmatpush3.bf16.msra.mxu0 %v1204_v38  ;;  %v996_v11 = vsel %vm860_vm5, %v8438_v35, 0.0  ;;  %7293 = vpow2.f32 %v947_v13 }
 0x459   :  { %v8443_v52 = vpop.eup %7289  ;;  %997 = vadd.xlane.f32.xlu1 %v996_v11  ;;  %6484 = vmatprep.subr.bf16.mxu0 %v11045_v48  ;;  %7295 = vpow2.f32 %v955_v0 }
 0x45a   :  { %v999_v26 = vsel %vm860_vm5, %v8443_v52, 0.0 }
 0x45b   :  { %1296 = vrot.lane.b32.xlu0 %v8164_v55, %s7699_s25 }
 0x45d   :  { %1000 = vadd.xlane.f32.xlu1 %v999_v26 }
 0x461   :  { %v8450_v12 = vpop.eup %7291 }
 0x462   :  { %v1005_v45 = vsel %vm860_vm5, %v8450_v12, 0.0  ;;  %v8456_v23 = vpop.eup %7293 }
 0x463   :  { %1006 = vadd.xlane.f32.xlu1 %v1005_v45  ;;  %v990_v10 = vsel %vm860_vm5, %v8456_v23, 0.0  ;;  %v8460_v44 = vpop.eup %7295 }
 0x464   :  { %v1002_v38 = vsel %vm860_vm5, %v8460_v44, 0.0 }
 0x47a   :  { %991 = vadd.xlane.f32.xlu0 %v990_v10 }
 0x47e   :  { %1003 = vadd.xlane.f32.xlu0 %v1002_v38 }
 0x485   :  { %v902_v42 = vpop.xlane.xlu1 %901 }
 0x486   :  { %v928_v49 = vsub.f32 %v8367_v5, %v902_v42 }
 0x487   :  { %v905_v11 = vpop.xlane.xlu0 %904 }
 0x488   :  { %v959_v26 = vmul.f32 1.442695, %v928_v49  ;;  %v929_v45 = vsub.f32 %v8370_v3, %v905_v11 }
 0x489   :  { %v908_v29 = vpop.xlane.xlu1 %907 }
 0x48a   :  { %7297 = vpow2.f32 %v959_v26  ;;  %v961_v6 = vmul.f32 1.442695, %v929_v45  ;;  %v930_v13 = vsub.f32 %v8375_v61, %v908_v29 }
 0x48b   :  { %v911_v63 = vpop.xlane.xlu0 %910 }
 0x48c   :  { %7299 = vpow2.f32 %v961_v6  ;;  %v963_v0 = vmul.f32 1.442695, %v930_v13  ;;  %v931_v10 = vsub.f32 %v8380_v34, %v911_v63 }
 0x48d   :  { %v914_v26 = vpop.xlane.xlu1 %913 }
 0x48e   :  { %7301 = vpow2.f32 %v963_v0  ;;  %v965_v38 = vmul.f32 1.442695, %v931_v10  ;;  %v932_v45 = vsub.f32 %v8385_v40, %v914_v26 }
 0x490   :  { %7303 = vpow2.f32 %v965_v38  ;;  %v967_v29 = vmul.f32 1.442695, %v932_v45  ;;  %v1314_v45 = vsel %vm604_vm2, %v8264_v31, 0 }
 0x494   :  { %v8470_v28 = vpop.eup %7297 }
 0x495   :  { %v1008_v5 = vsel %vm860_vm5, %v8470_v28, 0.0 }
 0x496   :  { %v8474_v42 = vpop.eup %7299  ;;  %1009 = vadd.xlane.f32.xlu0 %v1008_v5 }
 0x497   :  { %v1011_v3 = vsel %vm860_vm5, %v8474_v42, 0.0 }
 0x498   :  { %v8478_v61 = vpop.eup %7301  ;;  %1012 = vadd.xlane.f32.xlu1 %v1011_v3 }
 0x499   :  { %v1014_v34 = vsel %vm860_vm5, %v8478_v61, 0.0 }
 0x49a   :  { %v8480_v49 = vpop.eup %7303 }
 0x49b   :  { %v1017_v11 = vsel %vm860_vm5, %v8480_v49, 0.0 }
 0x49c   :  { %1015 = vadd.xlane.f32.xlu1 %v1014_v34  ;;  %1018 = vadd.xlane.f32.xlu0 %v1017_v11 }
 0x4ad   :  { %1410 = vrot.lane.b32.xlu1 %v8170_v57, %s7699_s25 }
 0x4b2   :  { %1278 = vrot.lane.b32.xlu0 %v8141_v25, %s7700_s26 }
 0x4b6   :  { %1412 = vrot.lane.b32.xlu0 %v8176_v56, %s7699_s25 }
 0x4ba   :  { %1280 = vrot.lane.b32.xlu0 %v8147_v4, %s7700_s26 }
 0x4be   :  { %1414 = vrot.lane.b32.xlu0 %v8182_v14, %s7699_s25 }
 0x4c0   :  { %v971_v6 = vpop.xlane.xlu0 %970 }
 0x4c1   :  { %7305 = vrcp.f32 %v971_v6 }
 0x4c2   :  { %7307 = vpow2.f32 %v967_v29  ;;  %v974_v13 = vpop.xlane.xlu1 %973  ;;  %1282 = vrot.lane.b32.xlu0 %v8153_v41, %s7700_s26 }
 0x4c3   :  { %7309 = vrcp.f32 %v974_v13  ;;  %v1317_v13 = vsel %vm604_vm2, %v8391_v33, 0 }
 0x4c6   :  { %1416 = vrot.lane.b32.xlu0 %v8188_v15, %s7699_s25 }
 0x4c8   :  { %v977_v63 = vpop.xlane.xlu1 %976 }
 0x4c9   :  { %7311 = vrcp.f32 %v977_v63 }
 0x4ca   :  { %1284 = vrot.lane.b32.xlu0 %v8159_v8, %s7700_s26 }
 0x4cb   :  { %v7306_v40 = vpop.eup %7305 }
 0x4cc   :  { %v8503_v0 = vpop.eup %7307  ;;  %v980_v10 = vpop.xlane.xlu1 %979  ;;  %v1041_v5 = vmul.f32 %v7306_v40, %v8399_v51 }
 0x4cd   :  { %v7310_v38 = vpop.eup %7309  ;;  %7313 = vrcp.f32 %v980_v10  ;;  %v1020_v26 = vsel %vm860_vm5, %v8503_v0, 0.0 }
 0x4ce   :  { %v1042_v3 = vmul.f32 %v7310_v38, %v8403_v43  ;;  %1418 = vrot.lane.b32.xlu0 %v8191_v47, %s7699_s25  ;;  %v1320_v38 = vsel %vm604_vm2, %v8393_v53, 0  ;;  %v1323_v53 = vsel %vm604_vm2, %v8464_v17, 0 }
 0x4d0   :  { %v1059_v34 = vpack.c.bf16 %v1042_v3, %v1041_v5  ;;  %v983_v11 = vpop.xlane.xlu1 %982 }
 0x4d1   :  { %1021 = vadd.xlane.f32.xlu1 %v1020_v26  ;;  %7315 = vrcp.f32 %v983_v11 }
 0x4d2   :  { %1400 = vrot.lane.b32.xlu0 %v8170_v57, %s7700_s26  ;;  %6405 = vmatmul.mubr.msk.bf16.vlgmr.msra.gmra.mrb[20].mxu1 %vm860_vm5, %v1059_v34  ;;  %v986_v51 = vpop.xlane.xlu0 %985 }
 0x4d3   :  { %6455 = vmatpush3.bf16.xpose.msra.mxu1 %v1314_v45  ;;  %7317 = vrcp.f32 %v986_v51  ;;  %6408 = vmatprep.mubr.msk.bf16.mxu1 %vm7696_vm1, %v11045_v48  ;;  %v7312_v43 = vpop.eup %7311 }
 0x4d4   :  { %6456 = vmatprep.subr.bf16.mxu1 %v11045_v48  ;;  %v1043_v31 = vmul.f32 %v7312_v43, %v8409_v30 }
 0x4d6   :  { %1402 = vrot.lane.b32.xlu0 %v8176_v56, %s7700_s26 }
 0x4d7   :  { %v7314_v29 = vpop.eup %7313 }
 0x4d8   :  { %v1044_v6 = vmul.f32 %v7314_v29, %v8414_v37  ;;  %v989_v30 = vpop.xlane.xlu1 %988 }
 0x4da   :  { %1404 = vrot.lane.b32.xlu0 %v8182_v14, %s7700_s26  ;;  %v1060_v63 = vpack.c.bf16 %v1044_v6, %v1043_v31 }
 0x4db   :  { %6457 = vmatpush3.bf16.xpose.msra.mxu1 %v1317_v13  ;;  %v7316_v40 = vpop.eup %7315 }
 0x4dc   :  { %6409 = vmatmul.mubr.msk.bf16.gmra.mrb[24].mxu1 %vm860_vm5, %v1060_v63  ;;  %6458 = vmatprep.subr.bf16.mxu1 %v11045_v48  ;;  %v1045_v37 = vmul.f32 %v7316_v40, %v8418_v9 }
 0x4dd   :  { %v7318_v10 = vpop.eup %7317  ;;  %6412 = vmatprep.mubr.msk.bf16.mxu1 %vm7696_vm1, %v11045_v48 }
 0x4de   :  { %1406 = vrot.lane.b32.xlu0 %v8188_v15, %s7700_s26  ;;  %v1046_v33 = vmul.f32 %v7318_v10, %v8422_v39 }
 0x4e0   :  { %v995_v5 = vpop.xlane.xlu1 %994  ;;  %v1061_v3 = vpack.c.bf16 %v1046_v33, %v1045_v37 }
 0x4e2   :  { %1286 = vrot.lane.b32.xlu1 %v8164_v55, %s7700_s26  ;;  %1408 = vrot.lane.b32.xlu0 %v8191_v47, %s7700_s26 }
 0x4e3   :  { %6459 = vmatpush3.bf16.xpose.msra.mxu1 %v1320_v38 }
 0x4e4   :  { %6413 = vmatmul.mubr.msk.bf16.gmra.mrb[28].mxu1 %vm860_vm5, %v1061_v3  ;;  %6460 = vmatprep.subr.bf16.mxu1 %v11045_v48 }
 0x4e5   :  { %6416 = vmatprep.mubr.msk.bf16.mxu1 %vm7696_vm1, %v11045_v48 }
 0x4e6   :  { %v998_v9 = vpop.xlane.xlu1 %997  ;;  %1766 = vrot.lane.b32.xlu1 %v8141_v25, %s7701_s27  ;;  %1768 = vrot.lane.b32.xlu0 %v8147_v4, %s7701_s27  ;;  %v1297_v25 = vpop.permute.xlu0 %1296 }
 0x4e7   :  { %7319 = vrcp.f32 %v998_v9  ;;  %v1326_v4 = vsel %vm604_vm2, %v1297_v25, 0 }
 0x4ea   :  { %v1001_v39 = vpop.xlane.xlu1 %1000  ;;  %1770 = vrot.lane.b32.xlu1 %v8153_v41, %s7701_s27  ;;  %1772 = vrot.lane.b32.xlu0 %v8159_v8, %s7701_s27 }
 0x4eb   :  { %7321 = vrcp.f32 %v1001_v39  ;;  %6461 = vmatpush3.bf16.xpose.msra.mxu1 %v1323_v53 }
 0x4ec   :  { %6462 = vmatprep.subr.bf16.mxu1 %v11045_v48  ;;  %7323 = vrcp.f32 %v989_v30 }
 0x4ee   :  { %1774 = vrot.lane.b32.xlu1 %v8164_v55, %s7701_s27  ;;  %1870 = vrot.lane.b32.xlu0 %v8170_v57, %s7701_s27 }
 0x4f0   :  { %v1007_v55 = vpop.xlane.xlu1 %1006 }
 0x4f1   :  { %v7320_v17 = vpop.eup %7319 }
 0x4f2   :  { %v1050_v8 = vmul.f32 %v7320_v17, %v8438_v35 }
 0x4f3   :  { %6463 = vmatpush3.bf16.xpose.msra.mxu1 %v1326_v4 }
 0x4f4   :  { %6514 = vmatprep.subr.bf16.mxu1 %v11045_v48 }
 0x4f5   :  { %v7322_v41 = vpop.eup %7321 }
 0x4f6   :  { %v1051_v34 = vmul.f32 %v7322_v41, %v8443_v52  ;;  %v7324_v45 = vpop.eup %7323 }
 0x4f7   :  { %v1047_v35 = vmul.f32 %v7324_v45, %v8427_v50 }
 0x4f8   :  { %v1064_v11 = vpack.c.bf16 %v1051_v34, %v1050_v8 }
 0x4fa   :  { %6435 = vmatmul.mubr.msk.bf16.vlgmr.msra.gmra.mrb[56].mxu0 %vm860_vm5, %v1064_v11 }
 0x4fb   :  { %6438 = vmatprep.mubr.msk.bf16.mxu0 %vm7696_vm1, %v11045_v48 }
 0x507   :  { %v992_v57 = vpop.xlane.xlu0 %991 }
 0x508   :  { %7325 = vrcp.f32 %v992_v57 }
 0x509   :  { %7327 = vrcp.f32 %v1007_v55 }
 0x50a   :  { %7329 = vrcp.f32 %v995_v5 }
 0x50b   :  { %v1004_v26 = vpop.xlane.xlu0 %1003 }
 0x50c   :  { %7331 = vrcp.f32 %v1004_v26 }
 0x512   :  { %v7326_v51 = vpop.eup %7325 }
 0x513   :  { %v1048_v52 = vmul.f32 %v7326_v51, %v8456_v23  ;;  %v7328_v43 = vpop.eup %7327 }
 0x514   :  { %v7330_v29 = vpop.eup %7329  ;;  %v1053_v63 = vmul.f32 %v7328_v43, %v8450_v12 }
 0x515   :  { %v1062_v31 = vpack.c.bf16 %v1048_v52, %v1047_v35  ;;  %v1049_v10 = vmul.f32 %v7330_v29, %v8433_v1 }
 0x516   :  { %v7332_v6 = vpop.eup %7331 }
 0x517   :  { %6417 = vmatmul.mubr.msk.bf16.gmra.mrb[32].mxu1 %vm860_vm5, %v1062_v31  ;;  %v1052_v13 = vmul.f32 %v7332_v6, %v8460_v44  ;;  %v1063_v50 = vpack.c.bf16 %v1049_v10, %v1049_v10 }
 0x518   :  { %6420 = vmatprep.mubr.msk.bf16.mxu1 %vm7696_vm1, %v11045_v48 }
 0x519   :  { %v1065_v40 = vpack.c.bf16 %v1053_v63, %v1052_v13 }
 0x51b   :  { %6439 = vmatmul.mubr.msk.bf16.gmra.mrb[60].mxu0 %vm860_vm5, %v1065_v40 }
 0x51c   :  { %6442 = vmatprep.mubr.msk.bf16.mxu0 %vm7696_vm1, %v11045_v48 }
 0x51f   :  { %6421 = vmatmul.mubr.msk.bf16.gmra.mrb[36].mxu1 %vm860_vm5, %v1063_v50 }
 0x520   :  { %6464 = vmatprep.mubr.msk.bf16.mxu1 %vm7696_vm1, %v11045_v48 }
 0x523   :  { %v1010_v23 = vpop.xlane.xlu0 %1009 }
 0x524   :  { %7333 = vrcp.f32 %v1010_v23 }
 0x525   :  { %v1013_v12 = vpop.xlane.xlu1 %1012 }
 0x526   :  { %7335 = vrcp.f32 %v1013_v12 }
 0x529   :  { %v1016_v44 = vpop.xlane.xlu1 %1015  ;;  %v1019_v30 = vpop.xlane.xlu0 %1018 }
 0x52a   :  { %7337 = vrcp.f32 %v1016_v44 }
 0x52b   :  { %7339 = vrcp.f32 %v1019_v30 }
 0x52d   :  { %v1411_v1 = vpop.permute.xlu1 %1410  ;;  %v1279_v33 = vpop.permute.xlu0 %1278 }
 0x52e   :  { %v7334_v37 = vpop.eup %7333  ;;  %v1436_v38 = vsel %vm604_vm2, %v1411_v1, 0  ;;  %6465 = vmatmul.mubr.msk.bf16.vlgmr.msra.gmra.mrb[40].mxu1 %vm604_vm2, %v1279_v33 }
 0x52f   :  { %6485 = vmatpush3.bf16.xpose.msra.mxu0 %v1436_v38  ;;  %6468 = vmatprep.mubr.msk.bf16.mxu1 %vm7696_vm1, %v11045_v48  ;;  %v1054_v9 = vmul.f32 %v7334_v37, %v8470_v28 }
 0x530   :  { %v7336_v5 = vpop.eup %7335  ;;  %6486 = vmatprep.subr.bf16.mxu0 %v11045_v48 }
 0x531   :  { %v1413_v3 = vpop.permute.xlu0 %1412  ;;  %v1055_v53 = vmul.f32 %v7336_v5, %v8474_v42 }
 0x532   :  { %v1439_v41 = vsel %vm604_vm2, %v1413_v3, 0 }
 0x533   :  { %v1066_v39 = vpack.c.bf16 %v1055_v53, %v1054_v9 }
 0x534   :  { %v7338_v25 = vpop.eup %7337 }
 0x535   :  { %v7340_v4 = vpop.eup %7339  ;;  %6443 = vmatmul.mubr.msk.bf16.gmra.mrb[64].mxu0 %vm860_vm5, %v1066_v39  ;;  %v1281_v17 = vpop.permute.xlu0 %1280  ;;  %v1056_v8 = vmul.f32 %v7338_v25, %v8478_v61 }
 0x536   :  { %6469 = vmatmul.mubr.msk.bf16.gmra.mrb[44].mxu1 %vm604_vm2, %v1281_v17  ;;  %6446 = vmatprep.mubr.msk.bf16.mxu0 %vm7696_vm1, %v11045_v48  ;;  %v1057_v28 = vmul.f32 %v7340_v4, %v8480_v49 }
 0x537   :  { %6487 = vmatpush3.bf16.xpose.msra.mxu0 %v1439_v41  ;;  %6472 = vmatprep.mubr.msk.bf16.mxu1 %vm7696_vm1, %v11045_v48 }
 0x538   :  { %6488 = vmatprep.subr.bf16.mxu0 %v11045_v48  ;;  %v1067_v34 = vpack.c.bf16 %v1057_v28, %v1056_v8 }
 0x539   :  { %v1415_v42 = vpop.permute.xlu0 %1414 }
 0x53a   :  { %v1442_v55 = vsel %vm604_vm2, %v1415_v42, 0 }
 0x53d   :  { %6447 = vmatmul.mubr.msk.bf16.gmra.mrb[68].mxu0 %vm860_vm5, %v1067_v34  ;;  %v1283_v11 = vpop.permute.xlu0 %1282 }
 0x53e   :  { %6473 = vmatmul.mubr.msk.bf16.gmra.mrb[48].mxu1 %vm604_vm2, %v1283_v11  ;;  %6450 = vmatprep.mubr.msk.bf16.mxu0 %vm7696_vm1, %v11045_v48 }
 0x53f   :  { %6489 = vmatpush3.bf16.xpose.msra.mxu0 %v1442_v55  ;;  %6476 = vmatprep.mubr.msk.bf16.mxu1 %vm7696_vm1, %v11045_v48 }
 0x540   :  { %6490 = vmatprep.subr.bf16.mxu0 %v11045_v48 }
 0x541   :  { %v1417_v61 = vpop.permute.xlu0 %1416 }
 0x542   :  { %v1445_v57 = vsel %vm604_vm2, %v1417_v61, 0 }
 0x545   :  { %v1285_v49 = vpop.permute.xlu0 %1284 }
 0x546   :  { %6477 = vmatmul.mubr.msk.bf16.gmra.mrb[52].mxu1 %vm604_vm2, %v1285_v49 }
 0x547   :  { %6491 = vmatpush3.bf16.xpose.msra.mxu0 %v1445_v57  ;;  %6480 = vmatprep.mubr.msk.bf16.mxu1 %vm7696_vm1, %v11045_v48 }
 0x548   :  { %6492 = vmatprep.subr.bf16.mxu0 %v11045_v48 }
 0x549   :  { %v1419_v26 = vpop.permute.xlu0 %1418 }
 0x54a   :  { %v1448_v51 = vsel %vm604_vm2, %v1419_v26, 0 }
 0x54d   :  { %v1401_v45 = vpop.permute.xlu0 %1400 }
 0x54f   :  { %6493 = vmatpush3.bf16.xpose.msra.mxu0 %v1448_v51 }
 0x550   :  { %6544 = vmatprep.subr.bf16.mxu0 %v11045_v48 }
 0x551   :  { %v1403_v35 = vpop.permute.xlu0 %1402 }
 0x555   :  { %v1405_v52 = vpop.permute.xlu0 %1404 }
 0x559   :  { %v1407_v43 = vpop.permute.xlu0 %1406 }
 0x55d   :  { %v1409_v6 = vpop.permute.xlu0 %1408 }
 0x55e   :  { %v1022_v29 = vpop.xlane.xlu1 %1021 }
 0x55f   :  { %7341 = vrcp.f32 %v1022_v29 }
 0x561   :  { %v1769_v40 = vpop.permute.xlu0 %1768 }
 0x562   :  { %v1287_v31 = vpop.permute.xlu1 %1286 }
 0x563   :  { %6481 = vmatmul.mubr.msk.bf16.gmra.mrb[56].mxu1 %vm604_vm2, %v1287_v31 }
 0x564   :  { %6524 = vmatprep.mubr.msk.bf16.mxu1 %vm7696_vm1, %v11045_v48 }
 0x565   :  { %v1773_v12 = vpop.permute.xlu0 %1772 }
 0x566   :  { %v1767_v13 = vpop.permute.xlu1 %1766 }
 0x567   :  { %6515 = vmatpush3.bf16.msra.mxu1 %v1767_v13 }
 0x568   :  { %6516 = vmatprep.subr.bf16.mxu1 %v11045_v48 }
 0x569   :  { %v7342_v63 = vpop.eup %7341  ;;  %v1871_v30 = vpop.permute.xlu0 %1870 }
 0x56a   :  { %v1058_v10 = vmul.f32 %v7342_v63, %v8503_v0  ;;  %v1771_v23 = vpop.permute.xlu1 %1770 }
 0x56b   :  { %6517 = vmatpush3.bf16.msra.mxu1 %v1769_v40 }
 0x56c   :  { %v1068_v50 = vpack.c.bf16 %v1058_v10, %v1058_v10  ;;  %6518 = vmatprep.subr.bf16.mxu1 %v11045_v48 }
 0x56e   :  { %6451 = vmatmul.mubr.msk.bf16.gmra.mrb[72].mxu0 %vm860_vm5, %v1068_v50  ;;  %v1775_v44 = vpop.permute.xlu1 %1774 }
 0x56f   :  { %6519 = vmatpush3.bf16.msra.mxu1 %v1771_v23  ;;  %6494 = vmatprep.mubr.msk.bf16.mxu0 %vm7696_vm1, %v11045_v48  ;;  %v1796_v0 = vsel %vm1098_vm3, %v1775_v44, 0 }
 0x570   :  { %6520 = vmatprep.subr.bf16.mxu1 %v11045_v48 }
 0x573   :  { %6521 = vmatpush3.bf16.msra.mxu1 %v1773_v12 }
 0x574   :  { %6522 = vmatprep.subr.bf16.mxu1 %v11045_v48 }
 0x576   :  { %6495 = vmatmul.mubr.msk.bf16.vlgmr.msra.gmra.mrb[76].mxu0 %vm604_vm2, %v1401_v45 }
 0x577   :  { %6545 = vmatpush3.bf16.msra.mxu0 %v1871_v30  ;;  %6523 = vmatpush3.bf16.msra.mxu1 %v1796_v0 }
 0x578   :  { %6498 = vmatprep.mubr.msk.bf16.mxu0 %vm7696_vm1, %v11045_v48  ;;  %6546 = vmatprep.subr.bf16.mxu0 %v11045_v48 }
 0x579   :  { %7110 = vmatprep.subr.bf16.mxu1 %v11045_v48 }
 0x57e   :  { %6499 = vmatmul.mubr.msk.bf16.gmra.mrb[80].mxu0 %vm604_vm2, %v1403_v35 }
 0x57f   :  { %6502 = vmatprep.mubr.msk.bf16.mxu0 %vm7696_vm1, %v11045_v48 }
 0x586   :  { %6503 = vmatmul.mubr.msk.bf16.gmra.mrb[84].mxu0 %vm604_vm2, %v1405_v52 }
 0x587   :  { %6506 = vmatprep.mubr.msk.bf16.mxu0 %vm7696_vm1, %v11045_v48 }
 0x58e   :  { %6507 = vmatmul.mubr.msk.bf16.gmra.mrb[88].mxu0 %vm604_vm2, %v1407_v43 }
 0x58f   :  { %6510 = vmatprep.mubr.msk.bf16.mxu0 %vm7696_vm1, %v11045_v48 }
 0x596   :  { %6511 = vmatmul.mubr.msk.bf16.gmra.mrb[92].mxu0 %vm604_vm2, %v1409_v6 }
 0x597   :  { %6554 = vmatprep.mubr.msk.bf16.mxu0 %vm7696_vm1, %v11045_v48 }
 0x5a5   :  { %v8642_v1 = vpop.f32.mrb[20].mxu1 }
 0x5a6   :  { %v6406_v33 = vpop.f32.mrb[21].mxu1 }
 0x5a7   :  { %v8644_v37 = vpop.f32.mrb[22].mxu1 }
 0x5a8   :  { %v6407_v38 = vpop.f32.mrb[23].mxu1 }
 0x5af   :  { %v8646_v5 = vpop.f32.mrb[24].mxu1 }
 0x5b0   :  { %v6410_v3 = vpop.f32.mrb[25].mxu1 }
 0x5b1   :  { %v8648_v9 = vpop.f32.mrb[26].mxu1 }
 0x5b2   :  { %v6411_v53 = vpop.f32.mrb[27].mxu1 }
 0x5b7   :  { %v8650_v39 = vpop.f32.mrb[28].mxu1 }
 0x5b8   :  { %v6414_v25 = vpop.f32.mrb[29].mxu1 }
 0x5b9   :  { %v8652_v4 = vpop.f32.mrb[30].mxu1 }
 0x5ba   :  { %v6415_v17 = vpop.f32.mrb[31].mxu1 }
 0x5cd   :  { %v8654_v41 = vpop.f32.mrb[56].mxu0 }
 0x5ce   :  { %v6436_v8 = vpop.f32.mrb[57].mxu0 }
 0x5cf   :  { %v8656_v28 = vpop.f32.mrb[58].mxu0 }
 0x5d0   :  { %v6437_v42 = vpop.f32.mrb[59].mxu0 }
 0x5ea   :  { %v8658_v34 = vpop.f32.mrb[32].mxu1 }
 0x5eb   :  { %v6418_v11 = vpop.f32.mrb[33].mxu1 }
 0x5ec   :  { %v8660_v55 = vpop.f32.mrb[34].mxu1 }
 0x5ed   :  { %v6419_v61 = vpop.f32.mrb[35].mxu1 }
 0x5ee   :  { %v8662_v49 = vpop.f32.mrb[60].mxu0 }
 0x5ef   :  { %v6440_v57 = vpop.f32.mrb[61].mxu0 }
 0x5f0   :  { %v8664_v26 = vpop.f32.mrb[62].mxu0 }
 0x5f1   :  { %v6441_v45 = vpop.f32.mrb[63].mxu0 }
 0x5f2   :  { %v8666_v51 = vpop.f32.mrb[36].mxu1 }
 0x5f3   :  { %v6422_v35 = vpop.f32.mrb[37].mxu1 }
 0x5f4   :  { %v1171_v52 = vpop.f32.mrb[38].mxu1 }
 0x5f5   :  { %v6423_v43 = vpop.f32.mrb[39].mxu1 }
 0x601   :  { %v1362_v29 = vpop.f32.mrb[40].mxu1 }
 0x602   :  { %v1522_v31 = vmul.f32 0.25, %v1362_v29  ;;  %v6466_v6 = vpop.f32.mrb[41].mxu1 }
 0x603   :  { %v1365_v13 = vpop.f32.mrb[42].mxu1 }
 0x604   :  { %v1523_v63 = vmul.f32 0.25, %v1365_v13  ;;  %v6467_v40 = vpop.f32.mrb[43].mxu1  ;;  %v8669_v10 = vadd.f32 %v1522_v31, %v8295_v16 }
 0x606   :  { %v1558_v50 = vsel %vm860_vm5, %v8669_v10, -inf  ;;  %v8674_v23 = vadd.f32 %v1523_v63, %v8295_v16 }
 0x607   :  { %1559 = vmax.xlane.f32.xlu0 %v1558_v50 }
 0x608   :  { %v8676_v12 = vpop.f32.mrb[64].mxu0  ;;  %v1561_v44 = vsel %vm860_vm5, %v8674_v23, -inf }
 0x609   :  { %v6444_v30 = vpop.f32.mrb[65].mxu0  ;;  %1562 = vmax.xlane.f32.xlu1 %v1561_v44  ;;  %v1370_v0 = vpop.f32.mrb[44].mxu1 }
 0x60a   :  { %v1524_v33 = vmul.f32 0.25, %v1370_v0  ;;  %v8680_v38 = vpop.f32.mrb[66].mxu0  ;;  %v6470_v3 = vpop.f32.mrb[45].mxu1 }
 0x60b   :  { %v6445_v53 = vpop.f32.mrb[67].mxu0  ;;  %v1373_v25 = vpop.f32.mrb[46].mxu1 }
 0x60c   :  { %v8683_v17 = vadd.f32 %v1524_v33, %v8295_v16  ;;  %v1525_v8 = vmul.f32 0.25, %v1373_v25  ;;  %v6471_v42 = vpop.f32.mrb[47].mxu1 }
 0x60e   :  { %v8686_v11 = vadd.f32 %v1525_v8, %v8295_v16  ;;  %v1564_v61 = vsel %vm860_vm5, %v8683_v17, -inf }
 0x60f   :  { %1565 = vmax.xlane.f32.xlu0 %v1564_v61 }
 0x610   :  { %v8690_v57 = vpop.f32.mrb[68].mxu0  ;;  %v1567_v31 = vsel %vm860_vm5, %v8686_v11, -inf }
 0x611   :  { %v6448_v45 = vpop.f32.mrb[69].mxu0  ;;  %v1378_v35 = vpop.f32.mrb[48].mxu1 }
 0x612   :  { %v1526_v52 = vmul.f32 0.25, %v1378_v35  ;;  %v8692_v43 = vpop.f32.mrb[70].mxu0  ;;  %v6474_v29 = vpop.f32.mrb[49].mxu1 }
 0x613   :  { %v6449_v6 = vpop.f32.mrb[71].mxu0  ;;  %1568 = vmax.xlane.f32.xlu0 %v1567_v31  ;;  %v1381_v13 = vpop.f32.mrb[50].mxu1 }
 0x614   :  { %v8697_v63 = vadd.f32 %v1526_v52, %v8295_v16  ;;  %v1527_v40 = vmul.f32 0.25, %v1381_v13  ;;  %v6475_v50 = vpop.f32.mrb[51].mxu1 }
 0x616   :  { %v8700_v44 = vadd.f32 %v1527_v40, %v8295_v16  ;;  %v1570_v30 = vsel %vm860_vm5, %v8697_v63, -inf }
 0x617   :  { %1571 = vmax.xlane.f32.xlu1 %v1570_v30 }
 0x618   :  { %v1573_v0 = vsel %vm860_vm5, %v8700_v44, -inf }
 0x619   :  { %1574 = vmax.xlane.f32.xlu0 %v1573_v0  ;;  %v1386_v33 = vpop.f32.mrb[52].mxu1 }
 0x61a   :  { %v1528_v3 = vmul.f32 0.25, %v1386_v33  ;;  %v6478_v53 = vpop.f32.mrb[53].mxu1 }
 0x61b   :  { %v1389_v25 = vpop.f32.mrb[54].mxu1 }
 0x61c   :  { %v8707_v8 = vadd.f32 %v1528_v3, %v8295_v16  ;;  %v1529_v42 = vmul.f32 0.25, %v1389_v25  ;;  %v6479_v61 = vpop.f32.mrb[55].mxu1 }
 0x61e   :  { %v8710_v45 = vadd.f32 %v1529_v42, %v8295_v16  ;;  %v1576_v35 = vsel %vm860_vm5, %v8707_v8, -inf }
 0x61f   :  { %1577 = vmax.xlane.f32.xlu1 %v1576_v35 }
 0x620   :  { %v1579_v52 = vsel %vm860_vm5, %v8710_v45, -inf }
 0x621   :  { %1580 = vmax.xlane.f32.xlu0 %v1579_v52 }
 0x636   :  { %v1394_v29 = vpop.f32.mrb[56].mxu1 }
 0x637   :  { %v1530_v31 = vmul.f32 0.25, %v1394_v29  ;;  %v6482_v6 = vpop.f32.mrb[57].mxu1 }
 0x638   :  { %v1397_v13 = vpop.f32.mrb[58].mxu1 }
 0x639   :  { %v8717_v40 = vadd.f32 %v1530_v31, %v8295_v16  ;;  %v6483_v50 = vpop.f32.mrb[59].mxu1 }
 0x63b   :  { %v1582_v30 = vsel %vm860_vm5, %v8717_v40, -inf }
 0x63c   :  { %1583 = vmax.xlane.f32.xlu1 %v1582_v30 }
 0x641   :  { %v8721_v0 = vpop.f32.mrb[72].mxu0 }
 0x642   :  { %v6452_v33 = vpop.f32.mrb[73].mxu0 }
 0x643   :  { %v1275_v3 = vpop.f32.mrb[74].mxu0 }
 0x644   :  { %v6453_v53 = vpop.f32.mrb[75].mxu0 }
 0x649   :  { %v1484_v25 = vpop.f32.mrb[76].mxu0 }
 0x64a   :  { %v1531_v42 = vmul.f32 0.25, %v1484_v25  ;;  %v6496_v61 = vpop.f32.mrb[77].mxu0 }
 0x64b   :  { %v1487_v35 = vpop.f32.mrb[78].mxu0 }
 0x64c   :  { %v8724_v52 = vadd.f32 %v1531_v42, %v8295_v16  ;;  %v1532_v29 = vmul.f32 0.25, %v1487_v35  ;;  %v6497_v31 = vpop.f32.mrb[79].mxu0 }
 0x64e   :  { %v8727_v6 = vadd.f32 %v1532_v29, %v8295_v16  ;;  %v1585_v13 = vsel %vm860_vm5, %v8724_v52, -inf }
 0x64f   :  { %1586 = vmax.xlane.f32.xlu0 %v1585_v13 }
 0x650   :  { %v1588_v50 = vsel %vm860_vm5, %v8727_v6, -inf }
 0x651   :  { %1589 = vmax.xlane.f32.xlu1 %v1588_v50  ;;  %v1492_v30 = vpop.f32.mrb[80].mxu0 }
 0x652   :  { %v1533_v33 = vmul.f32 0.25, %v1492_v30  ;;  %v6500_v3 = vpop.f32.mrb[81].mxu0 }
 0x653   :  { %v1495_v53 = vpop.f32.mrb[82].mxu0 }
 0x654   :  { %v8734_v25 = vadd.f32 %v1533_v33, %v8295_v16  ;;  %v1534_v42 = vmul.f32 0.25, %v1495_v53  ;;  %v6501_v61 = vpop.f32.mrb[83].mxu0 }
 0x656   :  { %v8737_v35 = vadd.f32 %v1534_v42, %v8295_v16  ;;  %v1591_v29 = vsel %vm860_vm5, %v8734_v25, -inf }
 0x657   :  { %1592 = vmax.xlane.f32.xlu0 %v1591_v29 }
 0x658   :  { %v1594_v31 = vsel %vm860_vm5, %v8737_v35, -inf }
 0x659   :  { %1595 = vmax.xlane.f32.xlu1 %v1594_v31  ;;  %v1500_v13 = vpop.f32.mrb[84].mxu0 }
 0x65a   :  { %v1535_v50 = vmul.f32 0.25, %v1500_v13  ;;  %v6504_v30 = vpop.f32.mrb[85].mxu0 }
 0x65b   :  { %v1503_v3 = vpop.f32.mrb[86].mxu0 }
 0x65c   :  { %v8744_v33 = vadd.f32 %v1535_v50, %v8295_v16  ;;  %v1536_v53 = vmul.f32 0.25, %v1503_v3  ;;  %v6505_v61 = vpop.f32.mrb[87].mxu0 }
 0x65e   :  { %v8747_v42 = vadd.f32 %v1536_v53, %v8295_v16  ;;  %v1597_v27 = vsel %vm860_vm5, %v8744_v33, -inf }
 0x65f   :  { %1598 = vmax.xlane.f32.xlu0 %v1597_v27 }
 0x660   :  { %v1600_v29 = vsel %vm860_vm5, %v8747_v42, -inf }
 0x661   :  { %1601 = vmax.xlane.f32.xlu1 %v1600_v29  ;;  %v1508_v31 = vpop.f32.mrb[88].mxu0 }
 0x662   :  { %v6508_v13 = vpop.f32.mrb[89].mxu0  ;;  %v1537_v29 = vmul.f32 0.25, %v1508_v31 }
 0x663   :  { %v1511_v30 = vpop.f32.mrb[90].mxu0 }
 0x664   :  { %v1538_v22 = vmul.f32 0.25, %v1511_v30  ;;  %v6509_v18 = vpop.f32.mrb[91].mxu0 }
 0x665   :  { %v8763_v18 = vadd.f32 %v1537_v29, %v8295_v16 }
 0x666   :  { %v8754_v50 = vadd.f32 %v1538_v22, %v8295_v16 }
 0x667   :  { %v1603_v30 = vsel %vm860_vm5, %v8763_v18, -inf }
 0x668   :  { %v1606_v3 = vsel %vm860_vm5, %v8754_v50, -inf }
 0x669   :  { %1607 = vmax.xlane.f32.xlu1 %v1606_v3  ;;  %v1516_v53 = vpop.f32.mrb[92].mxu0 }
 0x66a   :  { %v6512_v61 = vpop.f32.mrb[93].mxu0  ;;  %v1539_v22 = vmul.f32 0.25, %v1516_v53 }
 0x66b   :  { %v1519_v7 = vpop.f32.mrb[94].mxu0 }
 0x66c   :  { %v6513_v27 = vpop.f32.mrb[95].mxu0  ;;  %v8766_v13 = vadd.f32 %v1539_v22, %v8295_v16 }
 0x675   :  { %1872 = vrot.lane.b32.xlu0 %v8176_v56, %s7701_s27 }
 0x67a   :  { %1874 = vrot.lane.b32.xlu1 %v8182_v14, %s7701_s27  ;;  %v1609_v14 = vsel %vm860_vm5, %v8766_v13, -inf }
 0x694   :  { %1604 = vmax.xlane.f32.xlu0 %v1603_v30  ;;  %v1560_v7 = vpop.xlane.xlu0 %1559 }
 0x695   :  { %v1612_v3 = vsub.f32 %v8669_v10, %v1560_v7 }
 0x696   :  { %v1563_v61 = vpop.xlane.xlu1 %1562 }
 0x697   :  { %v1630_v56 = vmul.f32 1.442695, %v1612_v3  ;;  %v1613_v27 = vsub.f32 %v8674_v23, %v1563_v61 }
 0x698   :  { %1610 = vmax.xlane.f32.xlu0 %v1609_v14 }
 0x699   :  { %7343 = vpow2.f32 %v1630_v56  ;;  %v1632_v31 = vmul.f32 1.442695, %v1613_v27 }
 0x69b   :  { %7345 = vpow2.f32 %v1632_v31 }
 0x69c   :  { %v1566_v53 = vpop.xlane.xlu0 %1565 }
 0x69d   :  { %v1614_v29 = vsub.f32 %v8683_v17, %v1566_v53 }
 0x69f   :  { %v1634_v22 = vmul.f32 1.442695, %v1614_v29 }
 0x6a0   :  { %v1569_v16 = vpop.xlane.xlu0 %1568 }
 0x6a1   :  { %7347 = vpow2.f32 %v1634_v22  ;;  %v1615_v30 = vsub.f32 %v8686_v11, %v1569_v16 }
 0x6a3   :  { %v8776_v10 = vpop.eup %7343  ;;  %v1636_v7 = vmul.f32 1.442695, %v1615_v30 }
 0x6a4   :  { %v1572_v3 = vpop.xlane.xlu1 %1571  ;;  %v1666_v23 = vsel %vm860_vm5, %v8776_v10, 0.0 }
 0x6a5   :  { %v8780_v61 = vpop.eup %7345  ;;  %7349 = vpow2.f32 %v1636_v7  ;;  %v1616_v56 = vsub.f32 %v8697_v63, %v1572_v3  ;;  %1667 = vadd.xlane.f32.xlu1 %v1666_v23 }
 0x6a6   :  { %v1575_v27 = vpop.xlane.xlu0 %1574  ;;  %v1669_v17 = vsel %vm860_vm5, %v8780_v61, 0.0 }
 0x6a7   :  { %v1638_v14 = vmul.f32 1.442695, %v1616_v56  ;;  %v1617_v16 = vsub.f32 %v8700_v44, %v1575_v27  ;;  %1670 = vadd.xlane.f32.xlu0 %v1669_v17 }
 0x6a9   :  { %7351 = vpow2.f32 %v1638_v14  ;;  %v1640_v11 = vmul.f32 1.442695, %v1617_v16 }
 0x6ab   :  { %v8786_v31 = vpop.eup %7347  ;;  %7353 = vpow2.f32 %v1640_v11 }
 0x6ac   :  { %v1578_v53 = vpop.xlane.xlu1 %1577  ;;  %v1672_v29 = vsel %vm860_vm5, %v8786_v31, 0.0 }
 0x6ad   :  { %v1618_v63 = vsub.f32 %v8707_v8, %v1578_v53  ;;  %1673 = vadd.xlane.f32.xlu1 %v1672_v29 }
 0x6ae   :  { %v1581_v22 = vpop.xlane.xlu0 %1580 }
 0x6af   :  { %v8791_v30 = vpop.eup %7349  ;;  %v1642_v7 = vmul.f32 1.442695, %v1618_v63  ;;  %v1619_v3 = vsub.f32 %v8710_v45, %v1581_v22 }
 0x6b0   :  { %v1675_v44 = vsel %vm860_vm5, %v8791_v30, 0.0 }
 0x6b1   :  { %7355 = vpow2.f32 %v1642_v7  ;;  %v1644_v23 = vmul.f32 1.442695, %v1619_v3  ;;  %1676 = vadd.xlane.f32.xlu0 %v1675_v44 }
 0x6b3   :  { %v8796_v56 = vpop.eup %7351  ;;  %7357 = vpow2.f32 %v1644_v23 }
 0x6b4   :  { %v1678_v27 = vsel %vm860_vm5, %v8796_v56, 0.0 }
 0x6b5   :  { %v8800_v8 = vpop.eup %7353  ;;  %1679 = vadd.xlane.f32.xlu1 %v1678_v27 }
 0x6b6   :  { %v1681_v17 = vsel %vm860_vm5, %v8800_v8, 0.0 }
 0x6b7   :  { %1682 = vadd.xlane.f32.xlu0 %v1681_v17 }
 0x6bb   :  { %v8804_v45 = vpop.eup %7355 }
 0x6bc   :  { %v1684_v14 = vsel %vm860_vm5, %v8804_v45, 0.0 }
 0x6bd   :  { %v8808_v16 = vpop.eup %7357  ;;  %1685 = vadd.xlane.f32.xlu1 %v1684_v14 }
 0x6be   :  { %v1687_v11 = vsel %vm860_vm5, %v8808_v16, 0.0 }
 0x6bf   :  { %1688 = vadd.xlane.f32.xlu0 %v1687_v11 }
 0x6c9   :  { %v1584_v53 = vpop.xlane.xlu1 %1583 }
 0x6ca   :  { %v1620_v29 = vsub.f32 %v8717_v40, %v1584_v53 }
 0x6cc   :  { %v1646_v63 = vmul.f32 1.442695, %v1620_v29 }
 0x6ce   :  { %7359 = vpow2.f32 %v1646_v63 }
 0x6d8   :  { %v8813_v22 = vpop.eup %7359 }
 0x6d9   :  { %v1690_v7 = vsel %vm860_vm5, %v8813_v22, 0.0 }
 0x6da   :  { %1691 = vadd.xlane.f32.xlu0 %v1690_v7 }
 0x6dc   :  { %v1587_v3 = vpop.xlane.xlu0 %1586 }
 0x6dd   :  { %v1621_v44 = vsub.f32 %v8724_v52, %v1587_v3 }
 0x6de   :  { %v1590_v23 = vpop.xlane.xlu1 %1589 }
 0x6df   :  { %v1648_v27 = vmul.f32 1.442695, %v1621_v44  ;;  %v1622_v17 = vsub.f32 %v8727_v6, %v1590_v23 }
 0x6e1   :  { %7361 = vpow2.f32 %v1648_v27  ;;  %v1650_v14 = vmul.f32 1.442695, %v1622_v17 }
 0x6e3   :  { %7363 = vpow2.f32 %v1650_v14 }
 0x6e4   :  { %v1593_v11 = vpop.xlane.xlu0 %1592 }
 0x6e5   :  { %v1623_v40 = vsub.f32 %v8734_v25, %v1593_v11 }
 0x6e6   :  { %v1596_v53 = vpop.xlane.xlu1 %1595 }
 0x6e7   :  { %v1652_v29 = vmul.f32 1.442695, %v1623_v40  ;;  %v1624_v63 = vsub.f32 %v8737_v35, %v1596_v53 }
 0x6e9   :  { %7365 = vpow2.f32 %v1652_v29  ;;  %v1654_v2 = vmul.f32 1.442695, %v1624_v63 }
 0x6eb   :  { %v8821_v7 = vpop.eup %7361  ;;  %7367 = vpow2.f32 %v1654_v2 }
 0x6ec   :  { %v1599_v52 = vpop.xlane.xlu0 %1598  ;;  %v1693_v3 = vsel %vm860_vm5, %v8821_v7, 0.0 }
 0x6ed   :  { %v8825_v6 = vpop.eup %7363  ;;  %v1625_v44 = vsub.f32 %v8744_v33, %v1599_v52  ;;  %1694 = vadd.xlane.f32.xlu0 %v1693_v3 }
 0x6ee   :  { %v1602_v23 = vpop.xlane.xlu1 %1601  ;;  %v1696_v35 = vsel %vm860_vm5, %v8825_v6, 0.0 }
 0x6ef   :  { %v1656_v25 = vmul.f32 1.442695, %v1625_v44  ;;  %v1626_v27 = vsub.f32 %v8747_v42, %v1602_v23 }
 0x6f0   :  { %v1873_v17 = vpop.permute.xlu0 %1872 }
 0x6f1   :  { %7369 = vpow2.f32 %v1656_v25  ;;  %v1658_v14 = vmul.f32 1.442695, %v1626_v27  ;;  %1697 = vadd.xlane.f32.xlu0 %v1696_v35  ;;  %6547 = vmatpush3.bf16.msra.mxu0 %v1873_v17 }
 0x6f2   :  { %6548 = vmatprep.subr.bf16.mxu0 %v11045_v48 }
 0x6f3   :  { %v8832_v2 = vpop.eup %7365  ;;  %7371 = vpow2.f32 %v1658_v14 }
 0x6f4   :  { %v1699_v33 = vsel %vm860_vm5, %v8832_v2, 0.0 }
 0x6f5   :  { %v8836_v11 = vpop.eup %7367  ;;  %1700 = vadd.xlane.f32.xlu0 %v1699_v33 }
 0x6f6   :  { %v1608_v42 = vpop.xlane.xlu1 %1607  ;;  %v1702_v40 = vsel %vm860_vm5, %v8836_v11, 0.0 }
 0x6f7   :  { %1703 = vadd.xlane.f32.xlu1 %v1702_v40  ;;  %v1628_v44 = vsub.f32 %v8754_v50, %v1608_v42 }
 0x6f9   :  { %v1662_v23 = vmul.f32 1.442695, %v1628_v44 }
 0x6fa   :  { %v1875_v53 = vpop.permute.xlu1 %1874 }
 0x6fb   :  { %v8840_v29 = vpop.eup %7369  ;;  %6549 = vmatpush3.bf16.msra.mxu0 %v1875_v53  ;;  %7373 = vpow2.f32 %v1662_v23 }
 0x6fc   :  { %v1705_v63 = vsel %vm860_vm5, %v8840_v29, 0.0  ;;  %6550 = vmatprep.subr.bf16.mxu0 %v11045_v48 }
 0x6fd   :  { %v8845_v52 = vpop.eup %7371  ;;  %1706 = vadd.xlane.f32.xlu0 %v1705_v63 }
 0x6fe   :  { %v1708_v3 = vsel %vm860_vm5, %v8845_v52, 0.0 }
 0x6ff   :  { %1709 = vadd.xlane.f32.xlu1 %v1708_v3 }
 0x705   :  { %v8853_v35 = vpop.eup %7373 }
 0x710   :  { %1876 = vrot.lane.b32.xlu1 %v8188_v15, %s7701_s27  ;;  %v1714_v15 = vsel %vm860_vm5, %v8853_v35, 0.0 }
 0x721   :  { %v1605_v25 = vpop.xlane.xlu0 %1604 }
 0x722   :  { %v1627_v27 = vsub.f32 %v8763_v18, %v1605_v25 }
 0x724   :  { %v1660_v17 = vmul.f32 1.442695, %v1627_v27 }
 0x725   :  { %v1611_v33 = vpop.xlane.xlu0 %1610 }
 0x726   :  { %7375 = vpow2.f32 %v1660_v17 }
 0x730   :  { %v8855_v14 = vpop.eup %7375 }
 0x731   :  { %v1711_v40 = vsel %vm860_vm5, %v8855_v14, 0.0 }
 0x732   :  { %v1668_v53 = vpop.xlane.xlu1 %1667  ;;  %1712 = vadd.xlane.f32.xlu0 %v1711_v40 }
 0x733   :  { %7377 = vrcp.f32 %v1668_v53 }
 0x734   :  { %1715 = vadd.xlane.f32.xlu1 %v1714_v15  ;;  %v1671_v50 = vpop.xlane.xlu0 %1670 }
 0x735   :  { %7379 = vrcp.f32 %v1671_v50 }
 0x73a   :  { %v1674_v18 = vpop.xlane.xlu1 %1673 }
 0x73b   :  { %7381 = vrcp.f32 %v1674_v18 }
 0x73d   :  { %v7378_v42 = vpop.eup %7377 }
 0x73e   :  { %v1677_v63 = vpop.xlane.xlu0 %1676  ;;  %v1738_v44 = vmul.f32 %v7378_v42, %v8776_v10 }
 0x73f   :  { %v7380_v3 = vpop.eup %7379  ;;  %7383 = vrcp.f32 %v1677_v63 }
 0x740   :  { %v1739_v23 = vmul.f32 %v7380_v3, %v8780_v61 }
 0x742   :  { %v1756_v25 = vpack.c.bf16 %v1739_v23, %v1738_v44  ;;  %v1680_v27 = vpop.xlane.xlu1 %1679 }
 0x743   :  { %7385 = vrcp.f32 %v1680_v27 }
 0x744   :  { %6525 = vmatmul.mubr.msk.bf16.vlgmr.msra.gmra.mrb[60].mxu1 %vm860_vm5, %v1756_v25  ;;  %v1683_v17 = vpop.xlane.xlu0 %1682 }
 0x745   :  { %7387 = vrcp.f32 %v1683_v17  ;;  %6528 = vmatprep.mubr.msk.bf16.mxu1 %vm7696_vm1, %v11045_v48  ;;  %v7382_v40 = vpop.eup %7381 }
 0x746   :  { %v1740_v10 = vmul.f32 %v7382_v40, %v8786_v31 }
 0x748   :  { %1878 = vrot.lane.b32.xlu0 %v8191_v47, %s7701_s27  ;;  %v1629_v47 = vsub.f32 %v8766_v13, %v1611_v33 }
 0x749   :  { %v7384_v53 = vpop.eup %7383 }
 0x74a   :  { %v1686_v15 = vpop.xlane.xlu1 %1685  ;;  %v1741_v61 = vmul.f32 %v7384_v53, %v8791_v30  ;;  %v1664_v23 = vmul.f32 1.442695, %v1629_v47 }
 0x74b   :  { %7389 = vrcp.f32 %v1686_v15 }
 0x74c   :  { %v1689_v50 = vpop.xlane.xlu0 %1688  ;;  %v1757_v18 = vpack.c.bf16 %v1741_v61, %v1740_v10 }
 0x74d   :  { %7391 = vrcp.f32 %v1689_v50  ;;  %v7386_v42 = vpop.eup %7385 }
 0x74e   :  { %6529 = vmatmul.mubr.msk.bf16.gmra.mrb[64].mxu1 %vm860_vm5, %v1757_v18  ;;  %v1742_v44 = vmul.f32 %v7386_v42, %v8796_v56  ;;  %7393 = vpow2.f32 %v1664_v23 }
 0x74f   :  { %v7388_v63 = vpop.eup %7387  ;;  %6532 = vmatprep.mubr.msk.bf16.mxu1 %vm7696_vm1, %v11045_v48 }
 0x750   :  { %v1743_v3 = vmul.f32 %v7388_v63, %v8800_v8 }
 0x752   :  { %v1758_v31 = vpack.c.bf16 %v1743_v3, %v1742_v44 }
 0x755   :  { %v7390_v30 = vpop.eup %7389 }
 0x756   :  { %6533 = vmatmul.mubr.msk.bf16.gmra.mrb[68].mxu1 %vm860_vm5, %v1758_v31  ;;  %v1744_v17 = vmul.f32 %v7390_v30, %v8804_v45 }
 0x757   :  { %v7392_v25 = vpop.eup %7391  ;;  %6536 = vmatprep.mubr.msk.bf16.mxu1 %vm7696_vm1, %v11045_v48 }
 0x758   :  { %v1745_v27 = vmul.f32 %v7392_v25, %v8808_v16  ;;  %v8884_v13 = vpop.eup %7393 }
 0x759   :  { %v1717_v56 = vsel %vm860_vm5, %v8884_v13, 0.0 }
 0x75a   :  { %v1759_v40 = vpack.c.bf16 %v1745_v27, %v1744_v17 }
 0x75e   :  { %6537 = vmatmul.mubr.msk.bf16.gmra.mrb[72].mxu1 %vm860_vm5, %v1759_v40  ;;  %v7215_v40 = vld [vmem:[%s10997_s5] sm:$0xff]  }
 0x75f   :  { %6540 = vmatprep.mubr.msk.bf16.mxu1 %vm7696_vm1, %v11045_v48  ;;  %7112 = vmatpush3.bf16.msra.mxu1 %v7215_v40 }
 0x760   :  { %7111 = vmatprep.subr.bf16.mxu1 %v11045_v48 }
 0x767   :  { %1718 = vadd.xlane.f32.xlu0 %v1717_v56  ;;  %v1692_v8 = vpop.xlane.xlu0 %1691 }
 0x768   :  { %7395 = vrcp.f32 %v1692_v8 }
 0x772   :  { %v7396_v33 = vpop.eup %7395 }
 0x773   :  { %v1746_v16 = vmul.f32 %v7396_v33, %v8813_v22 }
 0x775   :  { %v1760_v53 = vpack.c.bf16 %v1746_v16, %v1746_v16 }
 0x777   :  { %6541 = vmatmul.mubr.msk.bf16.gmra.mrb[76].mxu1 %vm860_vm5, %v1760_v53 }
 0x778   :  { %6582 = vmatprep.mubr.msk.bf16.mxu1 %vm7696_vm1, %v11045_v48 }
 0x77a   :  { %v1695_v61 = vpop.xlane.xlu0 %1694 }
 0x77e   :  { %v1698_v50 = vpop.xlane.xlu0 %1697 }
 0x77f   :  { %7397 = vrcp.f32 %v1698_v50 }
 0x780   :  { %7399 = vrcp.f32 %v1695_v61 }
 0x782   :  { %v1701_v18 = vpop.xlane.xlu0 %1700 }
 0x784   :  { %v1704_v45 = vpop.xlane.xlu1 %1703 }
 0x785   :  { %7401 = vrcp.f32 %v1704_v45 }
 0x786   :  { %7403 = vrcp.f32 %v1701_v18 }
 0x789   :  { %v7398_v22 = vpop.eup %7397 }
 0x78a   :  { %v1707_v42 = vpop.xlane.xlu0 %1706  ;;  %v7400_v3 = vpop.eup %7399  ;;  %v1748_v47 = vmul.f32 %v7398_v22, %v8825_v6 }
 0x78b   :  { %v1747_v31 = vmul.f32 %v7400_v3, %v8821_v7 }
 0x78c   :  { %v1710_v15 = vpop.xlane.xlu1 %1709 }
 0x78d   :  { %7405 = vrcp.f32 %v1710_v15  ;;  %v1761_v30 = vpack.c.bf16 %v1748_v47, %v1747_v31 }
 0x78e   :  { %7407 = vrcp.f32 %v1707_v42 }
 0x78f   :  { %v7402_v25 = vpop.eup %7401 }
 0x790   :  { %v1877_v10 = vpop.permute.xlu1 %1876  ;;  %v7404_v27 = vpop.eup %7403  ;;  %v1750_v6 = vmul.f32 %v7402_v25, %v8836_v11 }
 0x791   :  { %6551 = vmatpush3.bf16.msra.mxu0 %v1877_v10  ;;  %v1749_v7 = vmul.f32 %v7404_v27, %v8832_v2 }
 0x792   :  { %6552 = vmatprep.subr.bf16.mxu0 %v11045_v48 }
 0x793   :  { %v1762_v56 = vpack.c.bf16 %v1750_v6, %v1749_v7 }
 0x797   :  { %v7406_v8 = vpop.eup %7405 }
 0x798   :  { %v7408_v33 = vpop.eup %7407  ;;  %v1752_v2 = vmul.f32 %v7406_v8, %v8845_v52 }
 0x799   :  { %v1751_v11 = vmul.f32 %v7408_v33, %v8840_v29 }
 0x79b   :  { %v1763_v16 = vpack.c.bf16 %v1752_v2, %v1751_v11 }
 0x7bf   :  { %v1713_v63 = vpop.xlane.xlu0 %1712 }
 0x7c1   :  { %v1716_v17 = vpop.xlane.xlu1 %1715 }
 0x7c2   :  { %7409 = vrcp.f32 %v1716_v17 }
 0x7c3   :  { %v1879_v44 = vpop.permute.xlu0 %1878  ;;  %7411 = vrcp.f32 %v1713_v63 }
 0x7c4   :  { %v1900_v23 = vsel %vm1098_vm3, %v1879_v44, 0 }
 0x7c5   :  { %6553 = vmatpush3.bf16.msra.mxu0 %v1900_v23 }
 0x7c6   :  { %6574 = vmatprep.subr.bf16.mxu0 %v11045_v48 }
 0x7c8   :  { %6555 = vmatmul.mubr.msk.bf16.vlgmr.msra.gmra.mrb[96].mxu0 %vm860_vm5, %v1761_v30 }
 0x7c9   :  { %6558 = vmatprep.mubr.msk.bf16.mxu0 %vm7696_vm1, %v11045_v48  ;;  %6575 = vmatpush3.bf16.msra.mxu0 %v7215_v40 }
 0x7ca   :  { %6576 = vmatprep.subr.bf16.mxu0 %v11045_v48 }
 0x7cc   :  { %v7410_v53 = vpop.eup %7409 }
 0x7cd   :  { %v7412_v45 = vpop.eup %7411  ;;  %v1754_v15 = vmul.f32 %v7410_v53, %v8853_v35  ;;  %v7216_v35 = vld [vmem:[%s10997_s5 + $0x8] sm:$0xff]  }
 0x7ce   :  { %v1753_v10 = vmul.f32 %v7412_v45, %v8855_v14  ;;  %6577 = vmatpush3.bf16.msra.mxu0 %v7216_v35  ;;  %7113 = vmatpush3.bf16.msra.mxu1 %v7216_v35 }
 0x7cf   :  { %6614 = vmatprep.subr.bf16.mxu0 %v11045_v48  ;;  %6654 = vmatprep.subr.bf16.mxu1 %v11045_v48 }
 0x7d0   :  { %6559 = vmatmul.mubr.msk.bf16.gmra.mrb[100].mxu0 %vm860_vm5, %v1762_v56  ;;  %v1764_v61 = vpack.c.bf16 %v1754_v15, %v1753_v10 }
 0x7d1   :  { %6562 = vmatprep.mubr.msk.bf16.mxu0 %vm7696_vm1, %v11045_v48 }
 0x7d8   :  { %6563 = vmatmul.mubr.msk.bf16.gmra.mrb[104].mxu0 %vm860_vm5, %v1763_v16 }
 0x7d9   :  { %6566 = vmatprep.mubr.msk.bf16.mxu0 %vm7696_vm1, %v11045_v48 }
 0x7e0   :  { %6567 = vmatmul.mubr.msk.bf16.gmra.mrb[108].mxu0 %vm860_vm5, %v1764_v61 }
 0x7e1   :  { %6570 = vmatprep.mubr.msk.bf16.mxu0 %vm7696_vm1, %v11045_v48 }
 0x7f4   :  { %v1719_v52 = vpop.xlane.xlu0 %1718 }
 0x7f5   :  { %7413 = vrcp.f32 %v1719_v52 }
 0x7ff   :  { %v7414_v29 = vpop.eup %7413 }
 0x800   :  { %v1755_v50 = vmul.f32 %v7414_v29, %v8884_v13 }
 0x802   :  { %v1765_v18 = vpack.c.bf16 %v1755_v50, %v1755_v50 }
 0x804   :  { %6571 = vmatmul.mubr.msk.bf16.gmra.mrb[112].mxu0 %vm860_vm5, %v1765_v18 }
 0x805   :  { %6578 = vmatprep.mubr.msk.bf16.mxu0 %vm7696_vm1, %v11045_v48 }
 0x817   :  { %v1832_v14 = vpop.f32.mrb[60].mxu1 }
 0x818   :  { %v6526_v42 = vpop.f32.mrb[61].mxu1 }
 0x819   :  { %v1835_v22 = vpop.f32.mrb[62].mxu1 }
 0x81a   :  { %v7123_v13 = vpack.i.bf16 %v1835_v22, %v1832_v14  ;;  %v6527_v63 = vpop.f32.mrb[63].mxu1 }
 0x81c   :  { %7124 = vrot.lane.b32.xlu1 %v7123_v13, %s7702_s15 }
 0x821   :  { %v1840_v3 = vpop.f32.mrb[64].mxu1 }
 0x822   :  { %v6530_v47 = vpop.f32.mrb[65].mxu1 }
 0x823   :  { %v1843_v44 = vpop.f32.mrb[66].mxu1 }
 0x824   :  { %v7128_v31 = vpack.i.bf16 %v1843_v44, %v1840_v3  ;;  %v6531_v23 = vpop.f32.mrb[67].mxu1 }
 0x826   :  { %7129 = vrot.lane.b32.xlu1 %v7128_v31, %s7702_s15 }
 0x829   :  { %v1848_v30 = vpop.f32.mrb[68].mxu1 }
 0x82a   :  { %v6534_v25 = vpop.f32.mrb[69].mxu1 }
 0x82b   :  { %v1851_v27 = vpop.f32.mrb[70].mxu1 }
 0x82c   :  { %v7133_v17 = vpack.i.bf16 %v1851_v27, %v1848_v30  ;;  %v6535_v6 = vpop.f32.mrb[71].mxu1 }
 0x82e   :  { %7134 = vrot.lane.b32.xlu0 %v7133_v17, %s7702_s15 }
 0x831   :  { %v1856_v7 = vpop.f32.mrb[72].mxu1 }
 0x832   :  { %v6538_v40 = vpop.f32.mrb[73].mxu1 }
 0x833   :  { %v1859_v56 = vpop.f32.mrb[74].mxu1 }
 0x834   :  { %v7138_v8 = vpack.i.bf16 %v1859_v56, %v1856_v7  ;;  %v6539_v33 = vpop.f32.mrb[75].mxu1 }
 0x836   :  { %7139 = vrot.lane.b32.xlu1 %v7138_v8, %s7702_s15 }
 0x84a   :  { %v1864_v2 = vpop.f32.mrb[76].mxu1 }
 0x84b   :  { %v6542_v11 = vpop.f32.mrb[77].mxu1 }
 0x84c   :  { %v1867_v16 = vpop.f32.mrb[78].mxu1 }
 0x84d   :  { %v6543_v53 = vpop.f32.mrb[79].mxu1 }
 0x88e   :  { %v7125_v45 = vpop.permute.xlu1 %7124 }
 0x88f   :  { %v7127_v15 = vunpack.i.h.bf16 %v7125_v45  ;;  %v7126_v10 = vunpack.i.l.bf16 %v7125_v45 }
 0x891   :  { %v2047_v61 = vsel %vm604_vm2, %v8644_v37, %v7127_v15  ;;  %v2046_v52 = vsel %vm604_vm2, %v8642_v1, %v7126_v10 }
 0x892   :  { %v2064_v29 = vpack.c.bf16 %v2047_v61, %v2046_v52 }
 0x894   :  { %6579 = vmatmul.mubr.msk.bf16.vlgmr.msra.gmra.mrb[116].mxu0 %vm135_vm0, %v2064_v29 }
 0x895   :  { %6618 = vmatprep.mubr.msk.bf16.mxu0 %vm7696_vm1, %v11045_v48 }
 0x898   :  { %v7130_v50 = vpop.permute.xlu1 %7129 }
 0x899   :  { %v7132_v18 = vunpack.i.h.bf16 %v7130_v50  ;;  %v7131_v35 = vunpack.i.l.bf16 %v7130_v50 }
 0x89b   :  { %v2049_v14 = vsel %vm604_vm2, %v8648_v9, %v7132_v18  ;;  %v2048_v42 = vsel %vm604_vm2, %v8646_v5, %v7131_v35  ;;  %v1936_v22 = vpop.f32.mrb[96].mxu0 }
 0x89c   :  { %v2065_v37 = vpack.c.bf16 %v2049_v14, %v2048_v42  ;;  %v7143_v13 = vpack.i.bf16 %v1936_v22, %v1864_v2  ;;  %v6556_v63 = vpop.f32.mrb[97].mxu0 }
 0x89d   :  { %v1939_v1 = vpop.f32.mrb[98].mxu0 }
 0x89e   :  { %6583 = vmatmul.mubr.msk.bf16.vlgmr.msra.gmra.mrb[80].mxu1 %vm135_vm0, %v2065_v37  ;;  %7144 = vrot.lane.b32.xlu1 %v7143_v13, %s7702_s15  ;;  %v6557_v3 = vpop.f32.mrb[99].mxu0 }
 0x89f   :  { %6586 = vmatprep.mubr.msk.bf16.mxu1 %vm7696_vm1, %v11045_v48 }
 0x8a0   :  { %v7135_v47 = vpop.permute.xlu0 %7134 }
 0x8a1   :  { %v7137_v44 = vunpack.i.h.bf16 %v7135_v47  ;;  %v7136_v31 = vunpack.i.l.bf16 %v7135_v47 }
 0x8a3   :  { %v2051_v9 = vsel %vm604_vm2, %v8652_v4, %v7137_v44  ;;  %v2050_v5 = vsel %vm604_vm2, %v8650_v39, %v7136_v31  ;;  %v1944_v23 = vpop.f32.mrb[100].mxu0 }
 0x8a4   :  { %v7148_v30 = vpack.i.bf16 %v1944_v23, %v1939_v1  ;;  %v6560_v25 = vpop.f32.mrb[101].mxu0  ;;  %v2066_v27 = vpack.c.bf16 %v2051_v9, %v2050_v5 }
 0x8a5   :  { %v1947_v17 = vpop.f32.mrb[102].mxu0 }
 0x8a6   :  { %7149 = vrot.lane.b32.xlu1 %v7148_v30, %s7702_s15  ;;  %v6561_v6 = vpop.f32.mrb[103].mxu0  ;;  %6587 = vmatmul.mubr.msk.bf16.gmra.mrb[84].mxu1 %vm135_vm0, %v2066_v27 }
 0x8a7   :  { %6590 = vmatprep.mubr.msk.bf16.mxu1 %vm7696_vm1, %v11045_v48 }
 0x8a8   :  { %v7140_v7 = vpop.permute.xlu1 %7139 }
 0x8a9   :  { %v7142_v40 = vunpack.i.h.bf16 %v7140_v7  ;;  %v7141_v56 = vunpack.i.l.bf16 %v7140_v7 }
 0x8ab   :  { %v2053_v4 = vsel %vm604_vm2, %v8660_v55, %v7142_v40  ;;  %v2052_v39 = vsel %vm604_vm2, %v8658_v34, %v7141_v56  ;;  %v1952_v8 = vpop.f32.mrb[104].mxu0 }
 0x8ac   :  { %v7153_v33 = vpack.i.bf16 %v1952_v8, %v1947_v17  ;;  %v6564_v2 = vpop.f32.mrb[105].mxu0  ;;  %v2067_v11 = vpack.c.bf16 %v2053_v4, %v2052_v39 }
 0x8ad   :  { %v1955_v16 = vpop.f32.mrb[106].mxu0 }
 0x8ae   :  { %7154 = vrot.lane.b32.xlu1 %v7153_v33, %s7702_s15  ;;  %v6565_v53 = vpop.f32.mrb[107].mxu0  ;;  %6591 = vmatmul.mubr.msk.bf16.gmra.mrb[88].mxu1 %vm135_vm0, %v2067_v11 }
 0x8af   :  { %6594 = vmatprep.mubr.msk.bf16.mxu1 %vm7696_vm1, %v11045_v48 }
 0x8b3   :  { %v1960_v45 = vpop.f32.mrb[108].mxu0 }
 0x8b4   :  { %v7158_v15 = vpack.i.bf16 %v1960_v45, %v1955_v16  ;;  %v6568_v10 = vpop.f32.mrb[109].mxu0 }
 0x8b5   :  { %v1963_v55 = vpop.f32.mrb[110].mxu0 }
 0x8b6   :  { %7159 = vrot.lane.b32.xlu1 %v7158_v15, %s7702_s15  ;;  %v6569_v34 = vpop.f32.mrb[111].mxu0 }
 0x8d7   :  { %v1968_v61 = vpop.f32.mrb[112].mxu0 }
 0x8d8   :  { %v7163_v52 = vpack.i.bf16 %v1968_v61, %v1963_v55  ;;  %v6572_v29 = vpop.f32.mrb[113].mxu0 }
 0x8d9   :  { %v1971_v50 = vpop.f32.mrb[114].mxu0 }
 0x8da   :  { %7164 = vrot.lane.b32.xlu0 %v7163_v52, %s7702_s15  ;;  %v6573_v18 = vpop.f32.mrb[115].mxu0 }
 0x910   :  { %v7145_v35 = vpop.permute.xlu1 %7144 }
 0x911   :  { %v7147_v14 = vunpack.i.h.bf16 %v7145_v35  ;;  %v7146_v42 = vunpack.i.l.bf16 %v7145_v35 }
 0x913   :  { %v2055_v22 = vsel %vm604_vm2, %v8654_v41, %v7147_v14  ;;  %v2054_v37 = vsel %vm604_vm2, %v8666_v51, %v7146_v42 }
 0x914   :  { %v2068_v13 = vpack.c.bf16 %v2055_v22, %v2054_v37 }
 0x916   :  { %6595 = vmatmul.mubr.msk.bf16.gmra.mrb[92].mxu1 %vm135_vm0, %v2068_v13 }
 0x917   :  { %6598 = vmatprep.mubr.msk.bf16.mxu1 %vm7696_vm1, %v11045_v48 }
 0x918   :  { %v7150_v63 = vpop.permute.xlu1 %7149 }
 0x919   :  { %v7152_v1 = vunpack.i.h.bf16 %v7150_v63  ;;  %v7151_v3 = vunpack.i.l.bf16 %v7150_v63 }
 0x91b   :  { %v2057_v47 = vsel %vm604_vm2, %v8662_v49, %v7152_v1  ;;  %v2056_v44 = vsel %vm604_vm2, %v8656_v28, %v7151_v3 }
 0x91c   :  { %v2069_v31 = vpack.c.bf16 %v2057_v47, %v2056_v44 }
 0x91e   :  { %6599 = vmatmul.mubr.msk.bf16.gmra.mrb[96].mxu1 %vm135_vm0, %v2069_v31 }
 0x91f   :  { %6602 = vmatprep.mubr.msk.bf16.mxu1 %vm7696_vm1, %v11045_v48 }
 0x920   :  { %v7155_v41 = vpop.permute.xlu1 %7154 }
 0x921   :  { %v7157_v51 = vunpack.i.h.bf16 %v7155_v41  ;;  %v7156_v9 = vunpack.i.l.bf16 %v7155_v41 }
 0x923   :  { %v2059_v5 = vsel %vm604_vm2, %v8676_v12, %v7157_v51  ;;  %v2058_v23 = vsel %vm604_vm2, %v8664_v26, %v7156_v9 }
 0x924   :  { %v2070_v30 = vpack.c.bf16 %v2059_v5, %v2058_v23 }
 0x926   :  { %6603 = vmatmul.mubr.msk.bf16.gmra.mrb[100].mxu1 %vm135_vm0, %v2070_v30 }
 0x927   :  { %6606 = vmatprep.mubr.msk.bf16.mxu1 %vm7696_vm1, %v11045_v48 }
 0x928   :  { %v7160_v28 = vpop.permute.xlu1 %7159 }
 0x929   :  { %v7162_v49 = vunpack.i.h.bf16 %v7160_v28  ;;  %v7161_v25 = vunpack.i.l.bf16 %v7160_v28 }
 0x92b   :  { %v2061_v27 = vsel %vm604_vm2, %v8690_v57, %v7162_v49  ;;  %v2060_v17 = vsel %vm604_vm2, %v8680_v38, %v7161_v25  ;;  %v9004_v38 = vld [vmem:[%s10998_s6] ss:$0 sm:$0xff] }
 0x92c   :  { %v2071_v6 = vpack.c.bf16 %v2061_v27, %v2060_v17 }
 0x92e   :  { %6607 = vmatmul.mubr.msk.bf16.gmra.mrb[104].mxu1 %vm135_vm0, %v2071_v6 }
 0x92f   :  { %6610 = vmatprep.mubr.msk.bf16.mxu1 %vm7696_vm1, %v11045_v48 }
 0x94c   :  { %v7165_v26 = vpop.permute.xlu0 %7164 }
 0x94d   :  { %v7167_v12 = vunpack.i.h.bf16 %v7165_v26  ;;  %v7166_v7 = vunpack.i.l.bf16 %v7165_v26 }
 0x94f   :  { %v2063_v40 = vsel %vm604_vm2, %v8721_v0, %v7167_v12  ;;  %v2062_v56 = vsel %vm604_vm2, %v8692_v43, %v7166_v7 }
 0x950   :  { %v2072_v4 = vpack.c.bf16 %v2063_v40, %v2062_v56 }
 0x952   :  { %6611 = vmatmul.mubr.msk.bf16.gmra.mrb[108].mxu1 %vm135_vm0, %v2072_v4 }
 0x953   :  { %6662 = vmatprep.mubr.msk.bf16.mxu1 %vm7696_vm1, %v11045_v48 }
 0x967   :  { %v2157_v57 = vpop.f32.mrb[116].mxu0 }
 0x968   :  { %v2158_v39 = vadd.f32 %v9004_v38, %v2157_v57  ;;  %v6580_v8 = vpop.f32.mrb[117].mxu0 }
 0x969   :  { %v2160_v33 = vpop.f32.mrb[118].mxu0 }
 0x96a   :  { %v9008_v0 = vadd.f32 %v2158_v39, %v7806_v19  ;;  %v2161_v43 = vadd.f32 %v9004_v38, %v2160_v33  ;;  %v6581_v2 = vpop.f32.mrb[119].mxu0  ;;  %v11046_v33 = vld [vmem:[#allocation5_spill] sm:$0xff] }
 0x96c   :  { %v9012_v11 = vadd.f32 %v2161_v43, %v7810_v21  ;;  %v2246_v16 = vsel %vm135_vm0, %v9008_v0, 0.0 }
 0x96d   :  { %2247 = vadd.xlane.f32.xlu1 %v2246_v16  ;;  %v11047_v16 = vld [vmem:[#allocation6_spill] sm:$0xff] }
 0x96e   :  { %v2249_v53 = vsel %vm135_vm0, %v9012_v11, 0.0 }
 0x96f   :  { %2250 = vadd.xlane.f32.xlu0 %v2249_v53 }
 0x971   :  { %v2165_v45 = vpop.f32.mrb[80].mxu1 }
 0x972   :  { %v2166_v15 = vadd.f32 %v9004_v38, %v2165_v45  ;;  %v6584_v10 = vpop.f32.mrb[81].mxu1 }
 0x973   :  { %v2168_v19 = vpop.f32.mrb[82].mxu1 }
 0x974   :  { %v9020_v55 = vadd.f32 %v2166_v15, %v7808_v20  ;;  %v2169_v34 = vadd.f32 %v9004_v38, %v2168_v19  ;;  %v6585_v21 = vpop.f32.mrb[83].mxu1 }
 0x976   :  { %v9024_v61 = vadd.f32 %v2169_v34, %v7817_v24  ;;  %v2252_v52 = vsel %vm135_vm0, %v9020_v55, 0.0 }
 0x977   :  { %2253 = vadd.xlane.f32.xlu0 %v2252_v52  ;;  %v11048_v52 = vld [vmem:[#allocation7_spill] sm:$0xff] }
 0x978   :  { %v2255_v29 = vsel %vm135_vm0, %v9024_v61, 0.0 }
 0x979   :  { %2256 = vadd.xlane.f32.xlu1 %v2255_v29  ;;  %v2173_v50 = vpop.f32.mrb[84].mxu1 }
 0x97a   :  { %v2174_v18 = vadd.f32 %v9004_v38, %v2173_v50  ;;  %v6588_v35 = vpop.f32.mrb[85].mxu1 }
 0x97b   :  { %v2176_v20 = vpop.f32.mrb[86].mxu1  ;;  %v11049_v35 = vld [vmem:[#allocation8_spill] sm:$0xff] }
 0x97c   :  { %v9032_v14 = vadd.f32 %v2174_v18, %v7829_v32  ;;  %v2177_v42 = vadd.f32 %v9004_v38, %v2176_v20  ;;  %v6589_v24 = vpop.f32.mrb[87].mxu1 }
 0x97e   :  { %v9036_v22 = vadd.f32 %v2177_v42, %v7842_v36  ;;  %v2258_v37 = vsel %vm135_vm0, %v9032_v14, 0.0 }
 0x97f   :  { %2259 = vadd.xlane.f32.xlu0 %v2258_v37 }
 0x980   :  { %v2261_v13 = vsel %vm135_vm0, %v9036_v22, 0.0 }
 0x981   :  { %2262 = vadd.xlane.f32.xlu1 %v2261_v13  ;;  %v2181_v63 = vpop.f32.mrb[88].mxu1 }
 0x982   :  { %v2182_v1 = vadd.f32 %v9004_v38, %v2181_v63  ;;  %v6592_v3 = vpop.f32.mrb[89].mxu1 }
 0x983   :  { %v2184_v32 = vpop.f32.mrb[90].mxu1 }
 0x984   :  { %v9044_v47 = vadd.f32 %v2182_v1, %v7854_v46  ;;  %v2185_v44 = vadd.f32 %v9004_v38, %v2184_v32  ;;  %v6593_v36 = vpop.f32.mrb[91].mxu1 }
 0x986   :  { %v9048_v31 = vadd.f32 %v2185_v44, %v7862_v54  ;;  %v2264_v41 = vsel %vm135_vm0, %v9044_v47, 0.0 }
 0x987   :  { %2265 = vadd.xlane.f32.xlu0 %v2264_v41 }
 0x988   :  { %v2267_v51 = vsel %vm135_vm0, %v9048_v31, 0.0 }
 0x989   :  { %2268 = vadd.xlane.f32.xlu1 %v2267_v51 }
 0x9e9   :  { %v2189_v9 = vpop.f32.mrb[92].mxu1 }
 0x9ea   :  { %v2190_v5 = vadd.f32 %v9004_v38, %v2189_v9  ;;  %v6596_v23 = vpop.f32.mrb[93].mxu1 }
 0x9eb   :  { %v2192_v46 = vpop.f32.mrb[94].mxu1 }
 0x9ec   :  { %v9056_v30 = vadd.f32 %v2190_v5, %v7867_v58  ;;  %v2193_v28 = vadd.f32 %v9004_v38, %v2192_v46  ;;  %v6597_v54 = vpop.f32.mrb[95].mxu1 }
 0x9ed   :  { %v11050_v54 = vld [vmem:[#allocation9_spill] sm:$0xff] }
 0x9ee   :  { %v9060_v49 = vadd.f32 %v2193_v28, %v7869_v59  ;;  %v2270_v25 = vsel %vm135_vm0, %v9056_v30, 0.0 }
 0x9ef   :  { %2271 = vadd.xlane.f32.xlu0 %v2270_v25 }
 0x9f0   :  { %v2273_v27 = vsel %vm135_vm0, %v9060_v49, 0.0 }
 0x9f1   :  { %2274 = vadd.xlane.f32.xlu1 %v2273_v27  ;;  %v2197_v17 = vpop.f32.mrb[96].mxu1 }
 0x9f2   :  { %v2198_v6 = vadd.f32 %v9004_v38, %v2197_v17  ;;  %v6600_v26 = vpop.f32.mrb[97].mxu1 }
 0x9f3   :  { %v2200_v58 = vpop.f32.mrb[98].mxu1 }
 0x9f4   :  { %v9068_v12 = vadd.f32 %v2198_v6, %v7871_v60  ;;  %v2201_v7 = vadd.f32 %v9004_v38, %v2200_v58  ;;  %v6601_v59 = vpop.f32.mrb[99].mxu1 }
 0x9f5   :  { %v11051_v59 = vld [vmem:[#allocation10_spill] sm:$0xff] }
 0x9f6   :  { %v9072_v40 = vadd.f32 %v2201_v7, %v7873_v62  ;;  %v2276_v56 = vsel %vm135_vm0, %v9068_v12, 0.0 }
 0x9f7   :  { %2277 = vadd.xlane.f32.xlu0 %v2276_v56 }
 0x9f8   :  { %v2279_v4 = vsel %vm135_vm0, %v9072_v40, 0.0 }
 0x9f9   :  { %2280 = vadd.xlane.f32.xlu1 %v2279_v4  ;;  %v2205_v57 = vpop.f32.mrb[100].mxu1 }
 0x9fa   :  { %v2206_v39 = vadd.f32 %v9004_v38, %v2205_v57  ;;  %v6604_v8 = vpop.f32.mrb[101].mxu1  ;;  %v2248_v37 = vpop.xlane.xlu1 %2247 }
 0x9fb   :  { %v2208_v60 = vpop.f32.mrb[102].mxu1  ;;  %v2300_v63 = vmul.f32 0.03125, %v2248_v37 }
 0x9fc   :  { %v9080_v43 = vadd.f32 %v2206_v39, %v11046_v33  ;;  %v2209_v2 = vadd.f32 %v9004_v38, %v2208_v60  ;;  %v6605_v62 = vpop.f32.mrb[103].mxu1  ;;  %v2251_v13 = vpop.xlane.xlu0 %2250 }
 0x9fd   :  { %v2301_v3 = vmul.f32 0.03125, %v2251_v13  ;;  %v9103_v32 = vsub.f32 %v9008_v0, %v2300_v63 }
 0x9fe   :  { %v9084_v53 = vadd.f32 %v2209_v2, %v11047_v16  ;;  %v2282_v45 = vsel %vm135_vm0, %v9080_v43, 0.0 }
 0x9ff   :  { %2283 = vadd.xlane.f32.xlu0 %v2282_v45  ;;  %v9107_v46 = vsub.f32 %v9012_v11, %v2301_v3  ;;  %v2336_v26 = vmul.f32 %v9103_v32, %v9103_v32 }
 0xa00   :  { %v2285_v15 = vsel %vm135_vm0, %v9084_v53, 0.0 }
 0xa01   :  { %2286 = vadd.xlane.f32.xlu1 %v2285_v15  ;;  %v2213_v10 = vpop.f32.mrb[104].mxu1  ;;  %v2337_v60 = vmul.f32 %v9107_v46, %v9107_v46  ;;  %v2354_v16 = vsel %vm135_vm0, %v2336_v26, 0.0 }
 0xa02   :  { %v2214_v19 = vadd.f32 %v9004_v38, %v2213_v10  ;;  %v6608_v34 = vpop.f32.mrb[105].mxu1 }
 0xa03   :  { %v2216_v21 = vpop.f32.mrb[106].mxu1 }
 0xa04   :  { %v9092_v29 = vadd.f32 %v2214_v19, %v11048_v52  ;;  %v2217_v50 = vadd.f32 %v9004_v38, %v2216_v21  ;;  %v6609_v18 = vpop.f32.mrb[107].mxu1  ;;  %v2254_v1 = vpop.xlane.xlu0 %2253  ;;  %v2357_v19 = vsel %vm135_vm0, %v2337_v60, 0.0 }
 0xa05   :  { %v2302_v41 = vmul.f32 0.03125, %v2254_v1 }
 0xa06   :  { %v9096_v20 = vadd.f32 %v2217_v50, %v11049_v35  ;;  %v2288_v42 = vsel %vm135_vm0, %v9092_v29, 0.0  ;;  %v2257_v44 = vpop.xlane.xlu1 %2256 }
 0xa07   :  { %2289 = vadd.xlane.f32.xlu0 %v2288_v42  ;;  %v2303_v28 = vmul.f32 0.03125, %v2257_v44  ;;  %v9116_v58 = vsub.f32 %v9020_v55, %v2302_v41  ;;  %v7217_v44 = vld [vmem:[%s10999_s7] sm:$0xff]  }
 0xa08   :  { %v2291_v24 = vsel %vm135_vm0, %v9096_v20, 0.0  ;;  %6615 = vmatpush3.bf16.msra.mxu0 %v7217_v44 }
 0xa09   :  { %2292 = vadd.xlane.f32.xlu1 %v2291_v24  ;;  %v9124_v39 = vsub.f32 %v9024_v61, %v2303_v28  ;;  %v2338_v45 = vmul.f32 %v9116_v58, %v9116_v58  ;;  %6616 = vmatprep.subr.bf16.mxu0 %v11045_v48 }
 0xa0b   :  { %v2339_v34 = vmul.f32 %v9124_v39, %v9124_v39  ;;  %v2360_v52 = vsel %vm135_vm0, %v2338_v45, 0.0 }
 0xa0c   :  { %v2260_v5 = vpop.xlane.xlu0 %2259 }
 0xa0d   :  { %v2304_v7 = vmul.f32 0.03125, %v2260_v5  ;;  %v2363_v35 = vsel %vm135_vm0, %v2339_v34, 0.0 }
 0xa0e   :  { %v2263_v6 = vpop.xlane.xlu1 %2262 }
 0xa0f   :  { %v9131_v2 = vsub.f32 %v9032_v14, %v2304_v7 }
 0xa11   :  { %v2340_v50 = vmul.f32 %v9131_v2, %v9131_v2 }
 0xa13   :  { %v2366_v24 = vsel %vm135_vm0, %v2340_v50, 0.0 }
 0xa14   :  { %v2266_v57 = vpop.xlane.xlu0 %2265 }
 0xa15   :  { %v2306_v62 = vmul.f32 0.03125, %v2266_v57 }
 0xa16   :  { %v2269_v33 = vpop.xlane.xlu1 %2268 }
 0xa17   :  { %v2307_v10 = vmul.f32 0.03125, %v2269_v33  ;;  %v9143_v21 = vsub.f32 %v9044_v47, %v2306_v62 }
 0xa19   :  { %v9149_v18 = vsub.f32 %v9048_v31, %v2307_v10  ;;  %v2342_v37 = vmul.f32 %v9143_v21, %v9143_v21 }
 0xa1b   :  { %v2343_v63 = vmul.f32 %v9149_v18, %v9149_v18  ;;  %v2372_v1 = vsel %vm135_vm0, %v2342_v37, 0.0 }
 0xa1d   :  { %v2375_v3 = vsel %vm135_vm0, %v2343_v63, 0.0 }
 0xa25   :  { %v2221_v36 = vpop.f32.mrb[108].mxu1 }
 0xa26   :  { %v2222_v51 = vadd.f32 %v9004_v38, %v2221_v36  ;;  %v6612_v9 = vpop.f32.mrb[109].mxu1  ;;  %v7218_v36 = vld [vmem:[%s10999_s7 + $0x8] sm:$0xff]  }
 0xa27   :  { %v2224_v23 = vpop.f32.mrb[110].mxu1  ;;  %6617 = vmatpush3.bf16.msra.mxu0 %v7218_v36 }
 0xa28   :  { %v9110_v25 = vadd.f32 %v2222_v51, %v11050_v54  ;;  %v2225_v27 = vadd.f32 %v9004_v38, %v2224_v23  ;;  %v6613_v17 = vpop.f32.mrb[111].mxu1  ;;  %v2305_v38 = vmul.f32 0.03125, %v2263_v6  ;;  %6698 = vmatprep.subr.bf16.mxu0 %v11045_v48 }
 0xa2a   :  { %v9119_v56 = vadd.f32 %v2225_v27, %v11051_v59  ;;  %v2294_v4 = vsel %vm135_vm0, %v9110_v25, 0.0  ;;  %v9137_v15 = vsub.f32 %v9036_v22, %v2305_v38 }
 0xa2b   :  { %2295 = vadd.xlane.f32.xlu0 %v2294_v4 }
 0xa2c   :  { %v2297_v8 = vsel %vm135_vm0, %v9119_v56, 0.0  ;;  %v2341_v42 = vmul.f32 %v9137_v15, %v9137_v15 }
 0xa2d   :  { %2298 = vadd.xlane.f32.xlu1 %v2297_v8 }
 0xa2e   :  { %v2369_v13 = vsel %vm135_vm0, %v2341_v42, 0.0 }
 0xa2f   :  { %2355 = vadd.xlane.f32.xlu0 %v2354_v16 }
 0xa31   :  { %2358 = vadd.xlane.f32.xlu1 %v2357_v19 }
 0xa33   :  { %2361 = vadd.xlane.f32.xlu0 %v2360_v52 }
 0xa35   :  { %2364 = vadd.xlane.f32.xlu1 %v2363_v35 }
 0xa37   :  { %2367 = vadd.xlane.f32.xlu0 %v2366_v24 }
 0xa39   :  { %2370 = vadd.xlane.f32.xlu1 %v2369_v13 }
 0xa3b   :  { %2373 = vadd.xlane.f32.xlu0 %v2372_v1 }
 0xa3d   :  { %2376 = vadd.xlane.f32.xlu1 %v2375_v3 }
 0xa7c   :  { %v2272_v41 = vpop.xlane.xlu0 %2271 }
 0xa7d   :  { %v2308_v51 = vmul.f32 0.03125, %v2272_v41 }
 0xa7e   :  { %v2275_v9 = vpop.xlane.xlu1 %2274 }
 0xa7f   :  { %v9171_v5 = vsub.f32 %v9056_v30, %v2308_v51  ;;  %v2309_v23 = vmul.f32 0.03125, %v2275_v9 }
 0xa81   :  { %v9174_v28 = vsub.f32 %v9060_v49, %v2309_v23  ;;  %v2344_v54 = vmul.f32 %v9171_v5, %v9171_v5 }
 0xa83   :  { %v2378_v27 = vsel %vm135_vm0, %v2344_v54, 0.0  ;;  %v2345_v17 = vmul.f32 %v9174_v28, %v9174_v28 }
 0xa84   :  { %v2278_v6 = vpop.xlane.xlu0 %2277  ;;  %2379 = vadd.xlane.f32.xlu0 %v2378_v27 }
 0xa85   :  { %v2310_v26 = vmul.f32 0.03125, %v2278_v6  ;;  %v2381_v7 = vsel %vm135_vm0, %v2345_v17, 0.0 }
 0xa86   :  { %v2281_v59 = vpop.xlane.xlu1 %2280  ;;  %2382 = vadd.xlane.f32.xlu1 %v2381_v7 }
 0xa87   :  { %v9183_v4 = vsub.f32 %v9068_v12, %v2310_v26  ;;  %v2311_v57 = vmul.f32 0.03125, %v2281_v59 }
 0xa89   :  { %v9186_v38 = vsub.f32 %v9072_v40, %v2311_v57  ;;  %v2346_v8 = vmul.f32 %v9183_v4, %v9183_v4 }
 0xa8b   :  { %v2384_v60 = vsel %vm135_vm0, %v2346_v8, 0.0  ;;  %v2347_v33 = vmul.f32 %v9186_v38, %v9186_v38 }
 0xa8c   :  { %v2284_v62 = vpop.xlane.xlu0 %2283  ;;  %2385 = vadd.xlane.f32.xlu0 %v2384_v60 }
 0xa8d   :  { %v2312_v16 = vmul.f32 0.03125, %v2284_v62  ;;  %v2387_v45 = vsel %vm135_vm0, %v2347_v33, 0.0 }
 0xa8e   :  { %v2287_v10 = vpop.xlane.xlu1 %2286  ;;  %2388 = vadd.xlane.f32.xlu1 %v2387_v45 }
 0xa8f   :  { %v9195_v19 = vsub.f32 %v9080_v43, %v2312_v16  ;;  %v2313_v34 = vmul.f32 0.03125, %v2287_v10 }
 0xa91   :  { %v9198_v52 = vsub.f32 %v9084_v53, %v2313_v34  ;;  %v2348_v50 = vmul.f32 %v9195_v19, %v9195_v19 }
 0xa93   :  { %v2390_v35 = vsel %vm135_vm0, %v2348_v50, 0.0  ;;  %v2349_v42 = vmul.f32 %v9198_v52, %v9198_v52 }
 0xa94   :  { %v2290_v24 = vpop.xlane.xlu0 %2289  ;;  %2391 = vadd.xlane.f32.xlu0 %v2390_v35 }
 0xa95   :  { %v2314_v37 = vmul.f32 0.03125, %v2290_v24  ;;  %v2393_v13 = vsel %vm135_vm0, %v2349_v42, 0.0 }
 0xa96   :  { %v2293_v63 = vpop.xlane.xlu1 %2292  ;;  %2394 = vadd.xlane.f32.xlu1 %v2393_v13 }
 0xa97   :  { %v9207_v1 = vsub.f32 %v9092_v29, %v2314_v37  ;;  %v2315_v3 = vmul.f32 0.03125, %v2293_v63 }
 0xa99   :  { %v9210_v44 = vsub.f32 %v9096_v20, %v2315_v3  ;;  %v2350_v36 = vmul.f32 %v9207_v1, %v9207_v1  ;;  %v11052_v3 = vld [vmem:[#allocation11_spill] sm:$0xff] }
 0xa9b   :  { %v2396_v41 = vsel %vm135_vm0, %v2350_v36, 0.0  ;;  %v2351_v51 = vmul.f32 %v9210_v44, %v9210_v44  ;;  %v11025_v36 = vsub.s32 2, %v11052_v3 }
 0xa9c   :  { %2397 = vadd.xlane.f32.xlu0 %v2396_v41 }
 0xa9d   :  { %v2399_v9 = vsel %vm135_vm0, %v2351_v51, 0.0 }
 0xa9e   :  { %2400 = vadd.xlane.f32.xlu1 %v2399_v9 }
 0xab8   :  { %v2296_v23 = vpop.xlane.xlu0 %2295 }
 0xab9   :  { %v2316_v54 = vmul.f32 0.03125, %v2296_v23 }
 0xaba   :  { %v2299_v27 = vpop.xlane.xlu1 %2298 }
 0xabb   :  { %v9219_v17 = vsub.f32 %v9110_v25, %v2316_v54  ;;  %v2317_v6 = vmul.f32 0.03125, %v2299_v27  ;;  %v7669_v54 = vld [vmem:[%s10994_s2] sm:$0xf] }
 0xabc   :  { %v2356_v26 = vpop.xlane.xlu0 %2355  ;;  %v9236_v27 = vrot.slane %v7669_v54, %v11025_v36 }
 0xabd   :  { %v9222_v7 = vsub.f32 %v9119_v56, %v2317_v6  ;;  %v2408_v59 = vmul.f32 0.03125, %v2356_v26  ;;  %v2352_v57 = vmul.f32 %v9219_v17, %v9219_v17 }
 0xabe   :  { %v2359_v8 = vpop.xlane.xlu1 %2358 }
 0xabf   :  { %v2426_v60 = vadd.f32 1e-05, %v2408_v59  ;;  %v2409_v33 = vmul.f32 0.03125, %v2359_v8  ;;  %v2402_v62 = vsel %vm135_vm0, %v2352_v57, 0.0  ;;  %v2353_v16 = vmul.f32 %v9222_v7, %v9222_v7 }
 0xac0   :  { %2403 = vadd.xlane.f32.xlu0 %v2402_v62  ;;  %v2362_v45 = vpop.xlane.xlu0 %2361  ;;  %v11024_v59 = vsub.s32 3, %v11052_v3 }
 0xac1   :  { %7415 = vrsqrt.f32 %v2426_v60  ;;  %v2427_v10 = vadd.f32 1e-05, %v2409_v33  ;;  %v2410_v34 = vmul.f32 0.03125, %v2362_v45  ;;  %v2405_v50 = vsel %vm135_vm0, %v2353_v16, 0.0 }
 0xac2   :  { %2406 = vadd.xlane.f32.xlu1 %v2405_v50  ;;  %v2365_v35 = vpop.xlane.xlu1 %2364 }
 0xac3   :  { %7417 = vrsqrt.f32 %v2427_v10  ;;  %v2428_v42 = vadd.f32 1e-05, %v2410_v34  ;;  %v2411_v24 = vmul.f32 0.03125, %v2365_v35  ;;  %v9244_v10 = vrot.slane %v7669_v54, %v11024_v59 }
 0xac4   :  { %v2368_v37 = vpop.xlane.xlu0 %2367 }
 0xac5   :  { %7419 = vrsqrt.f32 %v2428_v42  ;;  %v2429_v13 = vadd.f32 1e-05, %v2411_v24  ;;  %v2412_v63 = vmul.f32 0.03125, %v2368_v37 }
 0xac6   :  { %v2371_v41 = vpop.xlane.xlu1 %2370 }
 0xac7   :  { %7421 = vrsqrt.f32 %v2429_v13  ;;  %v2413_v51 = vmul.f32 0.03125, %v2371_v41  ;;  %v2430_v9 = vadd.f32 1e-05, %v2412_v63 }
 0xac8   :  { %v2374_v6 = vpop.xlane.xlu0 %2373 }
 0xac9   :  { %v2431_v23 = vadd.f32 1e-05, %v2413_v51  ;;  %v2414_v62 = vmul.f32 0.03125, %v2374_v6 }
 0xaca   :  { %v2377_v26 = vpop.xlane.xlu1 %2376 }
 0xacb   :  { %v7416_v57 = vpop.eup %7415  ;;  %7423 = vrsqrt.f32 %v2431_v23  ;;  %v2415_v8 = vmul.f32 0.03125, %v2377_v26  ;;  %v2432_v24 = vadd.f32 1e-05, %v2414_v62 }
 0xacc   :  { %v2462_v60 = vmul.f32 %v7416_v57, %v9103_v32  ;;  %7425 = vrsqrt.f32 %v2430_v9 }
 0xacd   :  { %v7418_v33 = vpop.eup %7417  ;;  %v2433_v50 = vadd.f32 1e-05, %v2415_v8 }
 0xace   :  { %v2484_v16 = vmul.f32 %v9236_v27, %v2462_v60  ;;  %v2463_v45 = vmul.f32 %v7418_v33, %v9107_v46 }
 0xacf   :  { %v7420_v34 = vpop.eup %7419  ;;  %7427 = vrsqrt.f32 %v2433_v50 }
 0xad0   :  { %v2485_v35 = vmul.f32 %v9236_v27, %v2463_v45  ;;  %v2506_v37 = vadd.f32 %v9244_v10, %v2484_v16  ;;  %v2464_v13 = vmul.f32 %v7420_v34, %v9116_v58  ;;  %7429 = vrsqrt.f32 %v2432_v24 }
 0xad1   :  { %v7422_v42 = vpop.eup %7421 }
 0xad2   :  { %v2507_v32 = vadd.f32 %v9244_v10, %v2485_v35  ;;  %v2465_v63 = vmul.f32 %v7422_v42, %v9124_v39  ;;  %v2486_v9 = vmul.f32 %v9236_v27, %v2464_v13  ;;  %v7219_v35 = vld [vmem:[%s11001_s9] sm:$0xff]  }
 0xad3   :  { %6655 = vmatpush3.bf16.msra.mxu1 %v7219_v35 }
 0xad4   :  { %v2524_v46 = vpack.c.bf16 %v2507_v32, %v2506_v37  ;;  %v2487_v41 = vmul.f32 %v9236_v27, %v2465_v63  ;;  %v2508_v39 = vadd.f32 %v9244_v10, %v2486_v9  ;;  %6656 = vmatprep.subr.bf16.mxu1 %v11045_v48 }
 0xad5   :  { %v7424_v51 = vpop.eup %7423 }
 0xad6   :  { %6619 = vmatmul.mubr.msk.bf16.vlgmr.msra.gmra.mrb[120].mxu0 %vm135_vm0, %v2524_v46  ;;  %v7426_v23 = vpop.eup %7425  ;;  %v2509_v54 = vadd.f32 %v9244_v10, %v2487_v41  ;;  %v2467_v58 = vmul.f32 %v7424_v51, %v9137_v15 }
 0xad7   :  { %6622 = vmatprep.mubr.msk.bf16.mxu0 %vm7696_vm1, %v11045_v48  ;;  %v2466_v6 = vmul.f32 %v7426_v23, %v9131_v2 }
 0xad8   :  { %v2525_v26 = vpack.c.bf16 %v2509_v54, %v2508_v39  ;;  %v2489_v57 = vmul.f32 %v9236_v27, %v2467_v58 }
 0xad9   :  { %v7428_v8 = vpop.eup %7427  ;;  %v2488_v60 = vmul.f32 %v9236_v27, %v2466_v6 }
 0xada   :  { %v7430_v33 = vpop.eup %7429  ;;  %v2511_v62 = vadd.f32 %v9244_v10, %v2489_v57  ;;  %v2469_v15 = vmul.f32 %v7428_v8, %v9149_v18 }
 0xadb   :  { %v2510_v16 = vadd.f32 %v9244_v10, %v2488_v60  ;;  %v2468_v2 = vmul.f32 %v7430_v33, %v9143_v21  ;;  %v7220_v21 = vld [vmem:[%s11001_s9 + $0x8] sm:$0xff]  }
 0xadc   :  { %v2491_v34 = vmul.f32 %v9236_v27, %v2469_v15  ;;  %6657 = vmatpush3.bf16.msra.mxu1 %v7220_v21 }
 0xadd   :  { %v2526_v45 = vpack.c.bf16 %v2511_v62, %v2510_v16  ;;  %v2490_v50 = vmul.f32 %v9236_v27, %v2468_v2  ;;  %6658 = vmatprep.subr.bf16.mxu1 %v11045_v48 }
 0xade   :  { %6623 = vmatmul.mubr.msk.bf16.gmra.mrb[124].mxu0 %vm135_vm0, %v2525_v26  ;;  %v2513_v18 = vadd.f32 %v9244_v10, %v2491_v34 }
 0xadf   :  { %6626 = vmatprep.mubr.msk.bf16.mxu0 %vm7696_vm1, %v11045_v48  ;;  %v2512_v42 = vadd.f32 %v9244_v10, %v2490_v50 }
 0xae1   :  { %v2527_v24 = vpack.c.bf16 %v2513_v18, %v2512_v42 }
 0xae6   :  { %6627 = vmatmul.mubr.msk.bf16.gmra.mrb[128].mxu0 %vm135_vm0, %v2526_v45 }
 0xae7   :  { %6630 = vmatprep.mubr.msk.bf16.mxu0 %vm7696_vm1, %v11045_v48 }
 0xaee   :  { %6631 = vmatmul.mubr.msk.bf16.gmra.mrb[132].mxu0 %vm135_vm0, %v2527_v24 }
 0xaef   :  { %6634 = vmatprep.mubr.msk.bf16.mxu0 %vm7696_vm1, %v11045_v48 }
 0xb11   :  { %v2380_v37 = vpop.xlane.xlu0 %2379 }
 0xb12   :  { %v2416_v32 = vmul.f32 0.03125, %v2380_v37 }
 0xb13   :  { %v2383_v13 = vpop.xlane.xlu1 %2382 }
 0xb14   :  { %v2434_v63 = vadd.f32 1e-05, %v2416_v32  ;;  %v2417_v46 = vmul.f32 0.03125, %v2383_v13 }
 0xb16   :  { %7431 = vrsqrt.f32 %v2434_v63  ;;  %v2435_v41 = vadd.f32 1e-05, %v2417_v46  ;;  %v7221_v63 = vld [vmem:[%s11001_s9 + $0x10] sm:$0xff]  }
 0xb17   :  { %6659 = vmatpush3.bf16.msra.mxu1 %v7221_v63 }
 0xb18   :  { %7433 = vrsqrt.f32 %v2435_v41  ;;  %6660 = vmatprep.subr.bf16.mxu1 %v11045_v48 }
 0xb19   :  { %v2386_v51 = vpop.xlane.xlu0 %2385 }
 0xb1a   :  { %v2418_v9 = vmul.f32 0.03125, %v2386_v51 }
 0xb1b   :  { %v2389_v23 = vpop.xlane.xlu1 %2388 }
 0xb1c   :  { %v2436_v54 = vadd.f32 1e-05, %v2418_v9  ;;  %v2419_v58 = vmul.f32 0.03125, %v2389_v23  ;;  %v7222_v23 = vld [vmem:[%s11001_s9 + $0x18] sm:$0xff]  }
 0xb1d   :  { %6661 = vmatpush3.bf16.msra.mxu1 %v7222_v23 }
 0xb1e   :  { %7435 = vrsqrt.f32 %v2436_v54  ;;  %v2437_v39 = vadd.f32 1e-05, %v2419_v58  ;;  %6738 = vmatprep.subr.bf16.mxu1 %v11045_v48 }
 0xb20   :  { %v7432_v6 = vpop.eup %7431  ;;  %7437 = vrsqrt.f32 %v2437_v39 }
 0xb21   :  { %v2392_v26 = vpop.xlane.xlu0 %2391  ;;  %v2470_v57 = vmul.f32 %v7432_v6, %v9171_v5 }
 0xb22   :  { %v7434_v8 = vpop.eup %7433  ;;  %v2420_v60 = vmul.f32 0.03125, %v2392_v26 }
 0xb23   :  { %v2395_v33 = vpop.xlane.xlu1 %2394  ;;  %v2471_v62 = vmul.f32 %v7434_v8, %v9174_v28  ;;  %v2492_v15 = vmul.f32 %v9236_v27, %v2470_v57 }
 0xb24   :  { %v2438_v16 = vadd.f32 1e-05, %v2420_v60  ;;  %v2421_v2 = vmul.f32 0.03125, %v2395_v33 }
 0xb25   :  { %v2493_v45 = vmul.f32 %v9236_v27, %v2471_v62  ;;  %v2514_v50 = vadd.f32 %v9244_v10, %v2492_v15 }
 0xb26   :  { %7439 = vrsqrt.f32 %v2438_v16  ;;  %v2439_v34 = vadd.f32 1e-05, %v2421_v2 }
 0xb27   :  { %v2515_v35 = vadd.f32 %v9244_v10, %v2493_v45 }
 0xb28   :  { %v7436_v18 = vpop.eup %7435  ;;  %7441 = vrsqrt.f32 %v2439_v34 }
 0xb29   :  { %v2398_v5 = vpop.xlane.xlu0 %2397  ;;  %v2528_v21 = vpack.c.bf16 %v2515_v35, %v2514_v50  ;;  %v2472_v42 = vmul.f32 %v7436_v18, %v9183_v4 }
 0xb2a   :  { %v7438_v24 = vpop.eup %7437  ;;  %v2422_v28 = vmul.f32 0.03125, %v2398_v5 }
 0xb2b   :  { %6635 = vmatmul.mubr.msk.bf16.gmra.mrb[136].mxu0 %vm135_vm0, %v2528_v21  ;;  %v2401_v37 = vpop.xlane.xlu1 %2400  ;;  %v2473_v32 = vmul.f32 %v7438_v24, %v9186_v38  ;;  %v2494_v13 = vmul.f32 %v9236_v27, %v2472_v42 }
 0xb2c   :  { %v2440_v46 = vadd.f32 1e-05, %v2422_v28  ;;  %v2423_v41 = vmul.f32 0.03125, %v2401_v37  ;;  %6638 = vmatprep.mubr.msk.bf16.mxu0 %vm7696_vm1, %v11045_v48 }
 0xb2d   :  { %v2495_v4 = vmul.f32 %v9236_v27, %v2473_v32  ;;  %v2516_v38 = vadd.f32 %v9244_v10, %v2494_v13 }
 0xb2e   :  { %7443 = vrsqrt.f32 %v2440_v46  ;;  %v2441_v51 = vadd.f32 1e-05, %v2423_v41 }
 0xb2f   :  { %v2517_v9 = vadd.f32 %v9244_v10, %v2495_v4 }
 0xb30   :  { %v7440_v54 = vpop.eup %7439  ;;  %7445 = vrsqrt.f32 %v2441_v51 }
 0xb31   :  { %v2529_v58 = vpack.c.bf16 %v2517_v9, %v2516_v38  ;;  %v2474_v39 = vmul.f32 %v7440_v54, %v9195_v19 }
 0xb32   :  { %v7442_v6 = vpop.eup %7441 }
 0xb33   :  { %6639 = vmatmul.mubr.msk.bf16.gmra.mrb[140].mxu0 %vm135_vm0, %v2529_v58  ;;  %v2475_v26 = vmul.f32 %v7442_v6, %v9198_v52  ;;  %v2496_v57 = vmul.f32 %v9236_v27, %v2474_v39 }
 0xb34   :  { %6642 = vmatprep.mubr.msk.bf16.mxu0 %vm7696_vm1, %v11045_v48 }
 0xb35   :  { %v2497_v8 = vmul.f32 %v9236_v27, %v2475_v26  ;;  %v2518_v60 = vadd.f32 %v9244_v10, %v2496_v57 }
 0xb37   :  { %v2519_v33 = vadd.f32 %v9244_v10, %v2497_v8 }
 0xb38   :  { %v7444_v19 = vpop.eup %7443 }
 0xb39   :  { %v2530_v62 = vpack.c.bf16 %v2519_v33, %v2518_v60  ;;  %v2476_v15 = vmul.f32 %v7444_v19, %v9207_v1 }
 0xb3a   :  { %v7446_v16 = vpop.eup %7445 }
 0xb3b   :  { %6643 = vmatmul.mubr.msk.bf16.gmra.mrb[144].mxu0 %vm135_vm0, %v2530_v62  ;;  %v2477_v52 = vmul.f32 %v7446_v16, %v9210_v44  ;;  %v2498_v2 = vmul.f32 %v9236_v27, %v2476_v15 }
 0xb3c   :  { %6646 = vmatprep.mubr.msk.bf16.mxu0 %vm7696_vm1, %v11045_v48 }
 0xb3d   :  { %v2499_v45 = vmul.f32 %v9236_v27, %v2477_v52  ;;  %v2520_v34 = vadd.f32 %v9244_v10, %v2498_v2 }
 0xb3f   :  { %v2521_v50 = vadd.f32 %v9244_v10, %v2499_v45 }
 0xb41   :  { %v2531_v35 = vpack.c.bf16 %v2521_v50, %v2520_v34 }
 0xb43   :  { %6647 = vmatmul.mubr.msk.bf16.gmra.mrb[148].mxu0 %vm135_vm0, %v2531_v35 }
 0xb44   :  { %6650 = vmatprep.mubr.msk.bf16.mxu0 %vm7696_vm1, %v11045_v48 }
 0xb4d   :  { %v2404_v1 = vpop.xlane.xlu0 %2403 }
 0xb4e   :  { %v2424_v18 = vmul.f32 0.03125, %v2404_v1 }
 0xb4f   :  { %v2407_v44 = vpop.xlane.xlu1 %2406 }
 0xb50   :  { %v2442_v5 = vadd.f32 1e-05, %v2424_v18  ;;  %v2425_v21 = vmul.f32 0.03125, %v2407_v44 }
 0xb52   :  { %7447 = vrsqrt.f32 %v2442_v5  ;;  %v2443_v42 = vadd.f32 1e-05, %v2425_v21 }
 0xb54   :  { %7449 = vrsqrt.f32 %v2443_v42 }
 0xb5c   :  { %v7448_v24 = vpop.eup %7447 }
 0xb5d   :  { %v2478_v28 = vmul.f32 %v7448_v24, %v9219_v17  ;;  %v9343_v17 = vld [vmem:[%s11000_s8] ss:$0 sm:$0xff] }
 0xb5e   :  { %v7450_v37 = vpop.eup %7449 }
 0xb5f   :  { %v2479_v32 = vmul.f32 %v7450_v37, %v9222_v7  ;;  %v2500_v13 = vmul.f32 %v9236_v27, %v2478_v28 }
 0xb61   :  { %v2501_v63 = vmul.f32 %v9236_v27, %v2479_v32  ;;  %v2522_v46 = vadd.f32 %v9244_v10, %v2500_v13 }
 0xb63   :  { %v2523_v41 = vadd.f32 %v9244_v10, %v2501_v63 }
 0xb65   :  { %v2532_v4 = vpack.c.bf16 %v2523_v41, %v2522_v46 }
 0xb67   :  { %6651 = vmatmul.mubr.msk.bf16.gmra.mrb[152].mxu0 %vm135_vm0, %v2532_v4 }
 0xb68   :  { %6702 = vmatprep.mubr.msk.bf16.mxu0 %vm7696_vm1, %v11045_v48 }
 0xba9   :  { %v2617_v7 = vpop.f32.mrb[120].mxu0 }
 0xbaa   :  { %v2618_v51 = vadd.f32 %v9343_v17, %v2617_v7  ;;  %v6620_v38 = vpop.f32.mrb[121].mxu0 }
 0xbab   :  { %v2620_v27 = vpop.f32.mrb[122].mxu0 }
 0xbac   :  { %v2621_v9 = vadd.f32 %v9343_v17, %v2620_v27  ;;  %v6621_v23 = vpop.f32.mrb[123].mxu0  ;;  %v2688_v10 = vmax.f32 %v2618_v51, 0.0 }
 0xbae   :  { %v2689_v54 = vmax.f32 %v2621_v9, 0.0 }
 0xbb0   :  { %v2706_v58 = vpack.c.bf16 %v2689_v54, %v2688_v10 }
 0xbb1   :  { %v2625_v39 = vpop.f32.mrb[124].mxu0 }
 0xbb2   :  { %v2626_v6 = vadd.f32 %v9343_v17, %v2625_v39  ;;  %v6624_v26 = vpop.f32.mrb[125].mxu0  ;;  %6663 = vmatmul.mubr.msk.bf16.vlgmr.msra.gmra.mrb[112].mxu1 %vm2754_vm6, %v2706_v58 }
 0xbb3   :  { %v2628_v57 = vpop.f32.mrb[126].mxu0  ;;  %6666 = vmatprep.mubr.msk.bf16.mxu1 %vm7696_vm1, %v11045_v48 }
 0xbb4   :  { %v2629_v8 = vadd.f32 %v9343_v17, %v2628_v57  ;;  %v6625_v60 = vpop.f32.mrb[127].mxu0  ;;  %v2690_v33 = vmax.f32 %v2626_v6, 0.0 }
 0xbb6   :  { %v2691_v19 = vmax.f32 %v2629_v8, 0.0 }
 0xbb8   :  { %v2707_v62 = vpack.c.bf16 %v2691_v19, %v2690_v33 }
 0xbb9   :  { %v2633_v15 = vpop.f32.mrb[128].mxu0 }
 0xbba   :  { %v2634_v16 = vadd.f32 %v9343_v17, %v2633_v15  ;;  %v6628_v52 = vpop.f32.mrb[129].mxu0  ;;  %6667 = vmatmul.mubr.msk.bf16.gmra.mrb[116].mxu1 %vm2754_vm6, %v2707_v62 }
 0xbbb   :  { %v2636_v2 = vpop.f32.mrb[130].mxu0  ;;  %6670 = vmatprep.mubr.msk.bf16.mxu1 %vm7696_vm1, %v11045_v48 }
 0xbbc   :  { %v2637_v45 = vadd.f32 %v9343_v17, %v2636_v2  ;;  %v6629_v34 = vpop.f32.mrb[131].mxu0  ;;  %v2692_v50 = vmax.f32 %v2634_v16, 0.0 }
 0xbbe   :  { %v2693_v35 = vmax.f32 %v2637_v45, 0.0 }
 0xbc0   :  { %v2708_v1 = vpack.c.bf16 %v2693_v35, %v2692_v50 }
 0xbc1   :  { %v2641_v18 = vpop.f32.mrb[132].mxu0 }
 0xbc2   :  { %v2642_v44 = vadd.f32 %v9343_v17, %v2641_v18  ;;  %v6632_v5 = vpop.f32.mrb[133].mxu0  ;;  %6671 = vmatmul.mubr.msk.bf16.gmra.mrb[120].mxu1 %vm2754_vm6, %v2708_v1 }
 0xbc3   :  { %v2644_v21 = vpop.f32.mrb[134].mxu0  ;;  %6674 = vmatprep.mubr.msk.bf16.mxu1 %vm7696_vm1, %v11045_v48 }
 0xbc4   :  { %v2645_v42 = vadd.f32 %v9343_v17, %v2644_v21  ;;  %v6633_v24 = vpop.f32.mrb[135].mxu0  ;;  %v2694_v28 = vmax.f32 %v2642_v44, 0.0 }
 0xbc6   :  { %v2695_v37 = vmax.f32 %v2645_v42, 0.0 }
 0xbc8   :  { %v2709_v32 = vpack.c.bf16 %v2695_v37, %v2694_v28 }
 0xbca   :  { %6675 = vmatmul.mubr.msk.bf16.gmra.mrb[124].mxu1 %vm2754_vm6, %v2709_v32 }
 0xbcb   :  { %6678 = vmatprep.mubr.msk.bf16.mxu1 %vm7696_vm1, %v11045_v48 }
 0xbfe   :  { %v2649_v13 = vpop.f32.mrb[136].mxu0 }
 0xbff   :  { %v2650_v63 = vadd.f32 %v9343_v17, %v2649_v13  ;;  %v6636_v46 = vpop.f32.mrb[137].mxu0 }
 0xc00   :  { %v2652_v41 = vpop.f32.mrb[138].mxu0 }
 0xc01   :  { %v2653_v4 = vadd.f32 %v9343_v17, %v2652_v41  ;;  %v6637_v7 = vpop.f32.mrb[139].mxu0  ;;  %v2696_v51 = vmax.f32 %v2650_v63, 0.0 }
 0xc03   :  { %v2697_v38 = vmax.f32 %v2653_v4, 0.0  ;;  %v9393_v4 = vld [vmem:[%s11002_s10] ss:$0 sm:$0xff] }
 0xc05   :  { %v2710_v27 = vpack.c.bf16 %v2697_v38, %v2696_v51 }
 0xc06   :  { %v2657_v9 = vpop.f32.mrb[140].mxu0 }
 0xc07   :  { %v2658_v23 = vadd.f32 %v9343_v17, %v2657_v9  ;;  %v6640_v10 = vpop.f32.mrb[141].mxu0  ;;  %6679 = vmatmul.mubr.msk.bf16.gmra.mrb[128].mxu1 %vm2754_vm6, %v2710_v27 }
 0xc08   :  { %v2660_v54 = vpop.f32.mrb[142].mxu0  ;;  %6682 = vmatprep.mubr.msk.bf16.mxu1 %vm7696_vm1, %v11045_v48 }
 0xc09   :  { %v2661_v58 = vadd.f32 %v9343_v17, %v2660_v54  ;;  %v6641_v39 = vpop.f32.mrb[143].mxu0  ;;  %v2698_v6 = vmax.f32 %v2658_v23, 0.0 }
 0xc0b   :  { %v2699_v26 = vmax.f32 %v2661_v58, 0.0 }
 0xc0d   :  { %v2711_v57 = vpack.c.bf16 %v2699_v26, %v2698_v6 }
 0xc0e   :  { %v2665_v8 = vpop.f32.mrb[144].mxu0 }
 0xc0f   :  { %v2666_v60 = vadd.f32 %v9343_v17, %v2665_v8  ;;  %v6644_v33 = vpop.f32.mrb[145].mxu0  ;;  %6683 = vmatmul.mubr.msk.bf16.gmra.mrb[132].mxu1 %vm2754_vm6, %v2711_v57 }
 0xc10   :  { %v2668_v19 = vpop.f32.mrb[146].mxu0  ;;  %6686 = vmatprep.mubr.msk.bf16.mxu1 %vm7696_vm1, %v11045_v48 }
 0xc11   :  { %v2669_v62 = vadd.f32 %v9343_v17, %v2668_v19  ;;  %v6645_v15 = vpop.f32.mrb[147].mxu0  ;;  %v2700_v16 = vmax.f32 %v2666_v60, 0.0 }
 0xc13   :  { %v2701_v52 = vmax.f32 %v2669_v62, 0.0 }
 0xc15   :  { %v2712_v2 = vpack.c.bf16 %v2701_v52, %v2700_v16 }
 0xc16   :  { %v2673_v45 = vpop.f32.mrb[148].mxu0 }
 0xc17   :  { %v2674_v34 = vadd.f32 %v9343_v17, %v2673_v45  ;;  %v6648_v50 = vpop.f32.mrb[149].mxu0  ;;  %6687 = vmatmul.mubr.msk.bf16.gmra.mrb[136].mxu1 %vm2754_vm6, %v2712_v2 }
 0xc18   :  { %v2676_v35 = vpop.f32.mrb[150].mxu0  ;;  %6690 = vmatprep.mubr.msk.bf16.mxu1 %vm7696_vm1, %v11045_v48 }
 0xc19   :  { %v2677_v1 = vadd.f32 %v9343_v17, %v2676_v35  ;;  %v6649_v18 = vpop.f32.mrb[151].mxu0  ;;  %v2702_v44 = vmax.f32 %v2674_v34, 0.0 }
 0xc1b   :  { %v2703_v5 = vmax.f32 %v2677_v1, 0.0 }
 0xc1d   :  { %v2713_v21 = vpack.c.bf16 %v2703_v5, %v2702_v44 }
 0xc1f   :  { %6691 = vmatmul.mubr.msk.bf16.gmra.mrb[140].mxu1 %vm2754_vm6, %v2713_v21 }
 0xc20   :  { %6694 = vmatprep.mubr.msk.bf16.mxu1 %vm7696_vm1, %v11045_v48 }
 0xc3a   :  { %v2681_v42 = vpop.f32.mrb[152].mxu0 }
 0xc3b   :  { %v2682_v24 = vadd.f32 %v9343_v17, %v2681_v42  ;;  %v6652_v28 = vpop.f32.mrb[153].mxu0 }
 0xc3c   :  { %v2684_v37 = vpop.f32.mrb[154].mxu0 }
 0xc3d   :  { %v2685_v32 = vadd.f32 %v9343_v17, %v2684_v37  ;;  %v6653_v13 = vpop.f32.mrb[155].mxu0  ;;  %v2704_v63 = vmax.f32 %v2682_v24, 0.0 }
 0xc3f   :  { %v2705_v46 = vmax.f32 %v2685_v32, 0.0 }
 0xc41   :  { %v2714_v41 = vpack.c.bf16 %v2705_v46, %v2704_v63 }
 0xc43   :  { %6695 = vmatmul.mubr.msk.bf16.gmra.mrb[144].mxu1 %vm2754_vm6, %v2714_v41 }
 0xc44   :  { %6748 = vmatprep.mubr.msk.bf16.mxu1 %vm7696_vm1, %v11045_v48 }
 0xc85   :  { %v2816_v7 = vpop.f32.mrb[112].mxu1 }
 0xc86   :  { %v2817_v51 = vadd.f32 %v9393_v4, %v2816_v7  ;;  %v6664_v38 = vpop.f32.mrb[113].mxu1 }
 0xc87   :  { %v2819_v27 = vpop.f32.mrb[114].mxu1 }
 0xc88   :  { %v9397_v17 = vadd.f32 %v2817_v51, %v9008_v0  ;;  %v2820_v9 = vadd.f32 %v9393_v4, %v2819_v27  ;;  %v6665_v23 = vpop.f32.mrb[115].mxu1 }
 0xc8a   :  { %v9401_v10 = vadd.f32 %v2820_v9, %v9012_v11  ;;  %v2907_v54 = vsel %vm135_vm0, %v9397_v17, 0.0 }
 0xc8b   :  { %2908 = vadd.xlane.f32.xlu0 %v2907_v54 }
 0xc8c   :  { %v2910_v58 = vsel %vm135_vm0, %v9401_v10, 0.0 }
 0xc8d   :  { %2911 = vadd.xlane.f32.xlu1 %v2910_v58  ;;  %v2824_v39 = vpop.f32.mrb[116].mxu1 }
 0xc8e   :  { %v2825_v6 = vadd.f32 %v9393_v4, %v2824_v39  ;;  %v6668_v26 = vpop.f32.mrb[117].mxu1 }
 0xc8f   :  { %v2827_v0 = vpop.f32.mrb[118].mxu1 }
 0xc90   :  { %v9409_v57 = vadd.f32 %v2825_v6, %v9020_v55  ;;  %v2828_v8 = vadd.f32 %v9393_v4, %v2827_v0  ;;  %v6669_v11 = vpop.f32.mrb[119].mxu1 }
 0xc92   :  { %v9413_v60 = vadd.f32 %v2828_v8, %v9024_v61  ;;  %v2913_v33 = vsel %vm135_vm0, %v9409_v57, 0.0 }
 0xc93   :  { %2914 = vadd.xlane.f32.xlu0 %v2913_v33 }
 0xc94   :  { %v2916_v19 = vsel %vm135_vm0, %v9413_v60, 0.0 }
 0xc95   :  { %2917 = vadd.xlane.f32.xlu1 %v2916_v19  ;;  %v2832_v62 = vpop.f32.mrb[120].mxu1 }
 0xc96   :  { %v2833_v15 = vadd.f32 %v9393_v4, %v2832_v62  ;;  %v6672_v16 = vpop.f32.mrb[121].mxu1 }
 0xc97   :  { %v2835_v55 = vpop.f32.mrb[122].mxu1 }
 0xc98   :  { %v9421_v52 = vadd.f32 %v2833_v15, %v9032_v14  ;;  %v2836_v2 = vadd.f32 %v9393_v4, %v2835_v55  ;;  %v6673_v61 = vpop.f32.mrb[123].mxu1 }
 0xc9a   :  { %v9425_v45 = vadd.f32 %v2836_v2, %v9036_v22  ;;  %v2919_v34 = vsel %vm135_vm0, %v9421_v52, 0.0 }
 0xc9b   :  { %2920 = vadd.xlane.f32.xlu0 %v2919_v34 }
 0xc9c   :  { %v2922_v50 = vsel %vm135_vm0, %v9425_v45, 0.0 }
 0xc9d   :  { %2923 = vadd.xlane.f32.xlu1 %v2922_v50  ;;  %v2840_v35 = vpop.f32.mrb[124].mxu1 }
 0xc9e   :  { %v2841_v1 = vadd.f32 %v9393_v4, %v2840_v35  ;;  %v6676_v18 = vpop.f32.mrb[125].mxu1 }
 0xc9f   :  { %v2843_v14 = vpop.f32.mrb[126].mxu1 }
 0xca0   :  { %v9433_v44 = vadd.f32 %v2841_v1, %v9044_v47  ;;  %v2844_v5 = vadd.f32 %v9393_v4, %v2843_v14  ;;  %v6677_v22 = vpop.f32.mrb[127].mxu1 }
 0xca2   :  { %v9437_v21 = vadd.f32 %v2844_v5, %v9048_v31  ;;  %v2925_v42 = vsel %vm135_vm0, %v9433_v44, 0.0 }
 0xca3   :  { %2926 = vadd.xlane.f32.xlu0 %v2925_v42 }
 0xca4   :  { %v2928_v24 = vsel %vm135_vm0, %v9437_v21, 0.0 }
 0xca5   :  { %2929 = vadd.xlane.f32.xlu1 %v2928_v24 }
 0xcda   :  { %v2848_v28 = vpop.f32.mrb[128].mxu1 }
 0xcdb   :  { %v2849_v37 = vadd.f32 %v9393_v4, %v2848_v28  ;;  %v6680_v32 = vpop.f32.mrb[129].mxu1 }
 0xcdc   :  { %v2851_v47 = vpop.f32.mrb[130].mxu1 }
 0xcdd   :  { %v9445_v13 = vadd.f32 %v2849_v37, %v9056_v30  ;;  %v2852_v63 = vadd.f32 %v9393_v4, %v2851_v47  ;;  %v6681_v31 = vpop.f32.mrb[131].mxu1 }
 0xcdf   :  { %v9449_v46 = vadd.f32 %v2852_v63, %v9060_v49  ;;  %v2931_v41 = vsel %vm135_vm0, %v9445_v13, 0.0 }
 0xce0   :  { %2932 = vadd.xlane.f32.xlu0 %v2931_v41 }
 0xce1   :  { %v2934_v7 = vsel %vm135_vm0, %v9449_v46, 0.0 }
 0xce2   :  { %2935 = vadd.xlane.f32.xlu1 %v2934_v7  ;;  %v2856_v51 = vpop.f32.mrb[132].mxu1 }
 0xce3   :  { %v2857_v38 = vadd.f32 %v9393_v4, %v2856_v51  ;;  %v6684_v27 = vpop.f32.mrb[133].mxu1 }
 0xce4   :  { %v2859_v30 = vpop.f32.mrb[134].mxu1 }
 0xce5   :  { %v9457_v9 = vadd.f32 %v2857_v38, %v9068_v12  ;;  %v2860_v23 = vadd.f32 %v9393_v4, %v2859_v30  ;;  %v6685_v49 = vpop.f32.mrb[135].mxu1 }
 0xce7   :  { %11053 = vst [vmem:[#allocation5_spill] sm:$0xff] %v9457_v9  ;;  %v9461_v54 = vadd.f32 %v2860_v23, %v9072_v40  ;;  %v2937_v58 = vsel %vm135_vm0, %v9457_v9, 0.0 }
 0xce8   :  { %2938 = vadd.xlane.f32.xlu0 %v2937_v58 }
 0xce9   :  { %11054 = vst [vmem:[#allocation6_spill] sm:$0xff] %v9461_v54  ;;  %v2940_v39 = vsel %vm135_vm0, %v9461_v54, 0.0 }
 0xcea   :  { %2941 = vadd.xlane.f32.xlu1 %v2940_v39  ;;  %v2864_v6 = vpop.f32.mrb[136].mxu1 }
 0xceb   :  { %v2865_v26 = vadd.f32 %v9393_v4, %v2864_v6  ;;  %v6688_v0 = vpop.f32.mrb[137].mxu1 }
 0xcec   :  { %v2867_v12 = vpop.f32.mrb[138].mxu1 }
 0xced   :  { %v9469_v8 = vadd.f32 %v2865_v26, %v9080_v43  ;;  %v2868_v11 = vadd.f32 %v9393_v4, %v2867_v12  ;;  %v6689_v40 = vpop.f32.mrb[139].mxu1 }
 0xcef   :  { %11055 = vst [vmem:[#allocation7_spill] sm:$0xff] %v9469_v8  ;;  %v9473_v33 = vadd.f32 %v2868_v11, %v9084_v53  ;;  %v2943_v19 = vsel %vm135_vm0, %v9469_v8, 0.0 }
 0xcf0   :  { %2944 = vadd.xlane.f32.xlu0 %v2943_v19 }
 0xcf1   :  { %11056 = vst [vmem:[#allocation8_spill] sm:$0xff] %v9473_v33  ;;  %v2946_v62 = vsel %vm135_vm0, %v9473_v33, 0.0 }
 0xcf2   :  { %2947 = vadd.xlane.f32.xlu1 %v2946_v62  ;;  %v2872_v15 = vpop.f32.mrb[140].mxu1 }
 0xcf3   :  { %v2873_v16 = vadd.f32 %v9393_v4, %v2872_v15  ;;  %v6692_v55 = vpop.f32.mrb[141].mxu1 }
 0xcf4   :  { %v2875_v43 = vpop.f32.mrb[142].mxu1 }
 0xcf5   :  { %v9481_v2 = vadd.f32 %v2873_v16, %v9092_v29  ;;  %v2876_v61 = vadd.f32 %v9393_v4, %v2875_v43  ;;  %v6693_v53 = vpop.f32.mrb[143].mxu1 }
 0xcf7   :  { %11057 = vst [vmem:[#allocation9_spill] sm:$0xff] %v9481_v2  ;;  %v9485_v34 = vadd.f32 %v2876_v61, %v9096_v20  ;;  %v2949_v50 = vsel %vm135_vm0, %v9481_v2, 0.0 }
 0xcf8   :  { %2950 = vadd.xlane.f32.xlu0 %v2949_v50 }
 0xcf9   :  { %11058 = vst [vmem:[#allocation10_spill] sm:$0xff] %v9485_v34  ;;  %v2952_v35 = vsel %vm135_vm0, %v9485_v34, 0.0 }
 0xcfa   :  { %2953 = vadd.xlane.f32.xlu1 %v2952_v35 }
 0xd16   :  { %v2880_v1 = vpop.f32.mrb[144].mxu1 }
 0xd17   :  { %v2881_v18 = vadd.f32 %v9393_v4, %v2880_v1  ;;  %v6696_v14 = vpop.f32.mrb[145].mxu1 }
 0xd18   :  { %v2909_v29 = vpop.xlane.xlu0 %2908  ;;  %v2883_v5 = vpop.f32.mrb[146].mxu1 }
 0xd19   :  { %v9493_v22 = vadd.f32 %v2881_v18, %v9110_v25  ;;  %v2961_v42 = vmul.f32 0.03125, %v2909_v29  ;;  %v2884_v20 = vadd.f32 %v9393_v4, %v2883_v5  ;;  %v6697_v24 = vpop.f32.mrb[147].mxu1 }
 0xd1a   :  { %v2912_v28 = vpop.xlane.xlu1 %2911  ;;  %v7224_v24 = vld [vmem:[%s10995_s3 + $0x18] sm:$0xff]  }
 0xd1b   :  { %11059 = vst [vmem:[#allocation11_spill] sm:$0xff] %v9493_v22  ;;  %v9497_v37 = vsub.f32 %v9397_v17, %v2961_v42  ;;  %v9500_v32 = vadd.f32 %v2884_v20, %v9119_v56  ;;  %v2962_v47 = vmul.f32 0.03125, %v2912_v28  ;;  %v2955_v63 = vsel %vm135_vm0, %v9493_v22, 0.0  ;;  %v7223_v20 = vld [vmem:[%s10995_s3 + $0x10] sm:$0xff]  }
 0xd1c   :  { %2956 = vadd.xlane.f32.xlu0 %v2955_v63  ;;  %6699 = vmatpush3.bf16.msra.mxu0 %v7223_v20 }
 0xd1d   :  { %11060 = vst [vmem:[#allocation15_spill] sm:$0xff] %v9500_v32  ;;  %v9505_v31 = vsub.f32 %v9401_v10, %v2962_v47  ;;  %v2958_v25 = vsel %vm135_vm0, %v9500_v32, 0.0  ;;  %v2997_v4 = vmul.f32 %v9497_v37, %v9497_v37  ;;  %6700 = vmatprep.subr.bf16.mxu0 %v11045_v48 }
 0xd1e   :  { %2959 = vadd.xlane.f32.xlu1 %v2958_v25 }
 0xd1f   :  { %v3015_v41 = vsel %vm135_vm0, %v2997_v4, 0.0  ;;  %v2998_v56 = vmul.f32 %v9505_v31, %v9505_v31 }
 0xd20   :  { %v2915_v7 = vpop.xlane.xlu0 %2914  ;;  %3016 = vadd.xlane.f32.xlu0 %v3015_v41  ;;  %6701 = vmatpush3.bf16.msra.mxu0 %v7224_v24 }
 0xd21   :  { %v2963_v51 = vmul.f32 0.03125, %v2915_v7  ;;  %v3018_v38 = vsel %vm135_vm0, %v2998_v56, 0.0  ;;  %6768 = vmatprep.subr.bf16.mxu0 %v11045_v48 }
 0xd22   :  { %v2918_v27 = vpop.xlane.xlu1 %2917  ;;  %3019 = vadd.xlane.f32.xlu1 %v3018_v38 }
 0xd23   :  { %v9516_v30 = vsub.f32 %v9409_v57, %v2963_v51  ;;  %v2964_v23 = vmul.f32 0.03125, %v2918_v27 }
 0xd25   :  { %v9519_v49 = vsub.f32 %v9413_v60, %v2964_v23  ;;  %v2999_v58 = vmul.f32 %v9516_v30, %v9516_v30 }
 0xd27   :  { %v3021_v39 = vsel %vm135_vm0, %v2999_v58, 0.0  ;;  %v3000_v6 = vmul.f32 %v9519_v49, %v9519_v49 }
 0xd28   :  { %v2921_v26 = vpop.xlane.xlu0 %2920  ;;  %3022 = vadd.xlane.f32.xlu0 %v3021_v39 }
 0xd29   :  { %v2965_v0 = vmul.f32 0.03125, %v2921_v26  ;;  %v3024_v12 = vsel %vm135_vm0, %v3000_v6, 0.0 }
 0xd2a   :  { %v2924_v11 = vpop.xlane.xlu1 %2923  ;;  %3025 = vadd.xlane.f32.xlu1 %v3024_v12 }
 0xd2b   :  { %v9528_v40 = vsub.f32 %v9421_v52, %v2965_v0  ;;  %v2966_v19 = vmul.f32 0.03125, %v2924_v11 }
 0xd2d   :  { %v9531_v62 = vsub.f32 %v9425_v45, %v2966_v19  ;;  %v3001_v15 = vmul.f32 %v9528_v40, %v9528_v40 }
 0xd2f   :  { %v3027_v16 = vsel %vm135_vm0, %v3001_v15, 0.0  ;;  %v3002_v55 = vmul.f32 %v9531_v62, %v9531_v62 }
 0xd30   :  { %v2927_v43 = vpop.xlane.xlu0 %2926  ;;  %3028 = vadd.xlane.f32.xlu0 %v3027_v16 }
 0xd31   :  { %v2967_v61 = vmul.f32 0.03125, %v2927_v43  ;;  %v3030_v53 = vsel %vm135_vm0, %v3002_v55, 0.0 }
 0xd32   :  { %v2930_v50 = vpop.xlane.xlu1 %2929  ;;  %3031 = vadd.xlane.f32.xlu1 %v3030_v53 }
 0xd33   :  { %v9540_v35 = vsub.f32 %v9433_v44, %v2967_v61  ;;  %v2968_v1 = vmul.f32 0.03125, %v2930_v50 }
 0xd35   :  { %v9543_v18 = vsub.f32 %v9437_v21, %v2968_v1  ;;  %v3003_v14 = vmul.f32 %v9540_v35, %v9540_v35 }
 0xd37   :  { %v3033_v29 = vsel %vm135_vm0, %v3003_v14, 0.0  ;;  %v3004_v5 = vmul.f32 %v9543_v18, %v9543_v18 }
 0xd38   :  { %3034 = vadd.xlane.f32.xlu0 %v3033_v29 }
 0xd39   :  { %v3036_v42 = vsel %vm135_vm0, %v3004_v5, 0.0 }
 0xd3a   :  { %3037 = vadd.xlane.f32.xlu1 %v3036_v42 }
 0xd6d   :  { %v2933_v28 = vpop.xlane.xlu0 %2932 }
 0xd6e   :  { %v2969_v47 = vmul.f32 0.03125, %v2933_v28 }
 0xd6f   :  { %v2936_v63 = vpop.xlane.xlu1 %2935 }
 0xd70   :  { %v9560_v25 = vsub.f32 %v9445_v13, %v2969_v47  ;;  %v2970_v4 = vmul.f32 0.03125, %v2936_v63 }
 0xd72   :  { %v9563_v41 = vsub.f32 %v9449_v46, %v2970_v4  ;;  %v3005_v56 = vmul.f32 %v9560_v25, %v9560_v25 }
 0xd74   :  { %v3039_v7 = vsel %vm135_vm0, %v3005_v56, 0.0  ;;  %v3006_v51 = vmul.f32 %v9563_v41, %v9563_v41 }
 0xd75   :  { %v2939_v38 = vpop.xlane.xlu0 %2938  ;;  %3040 = vadd.xlane.f32.xlu0 %v3039_v7 }
 0xd76   :  { %v2971_v27 = vmul.f32 0.03125, %v2939_v38  ;;  %v3042_v23 = vsel %vm135_vm0, %v3006_v51, 0.0 }
 0xd77   :  { %v2942_v58 = vpop.xlane.xlu1 %2941  ;;  %3043 = vadd.xlane.f32.xlu1 %v3042_v23 }
 0xd78   :  { %v9572_v39 = vsub.f32 %v9457_v9, %v2971_v27  ;;  %v2972_v6 = vmul.f32 0.03125, %v2942_v58 }
 0xd7a   :  { %v9575_v26 = vsub.f32 %v9461_v54, %v2972_v6  ;;  %v3007_v0 = vmul.f32 %v9572_v39, %v9572_v39 }
 0xd7c   :  { %v3045_v12 = vsel %vm135_vm0, %v3007_v0, 0.0  ;;  %v3008_v11 = vmul.f32 %v9575_v26, %v9575_v26 }
 0xd7d   :  { %v2945_v19 = vpop.xlane.xlu0 %2944  ;;  %3046 = vadd.xlane.f32.xlu0 %v3045_v12 }
 0xd7e   :  { %v2973_v15 = vmul.f32 0.03125, %v2945_v19  ;;  %v3048_v16 = vsel %vm135_vm0, %v3008_v11, 0.0 }
 0xd7f   :  { %v2948_v55 = vpop.xlane.xlu1 %2947  ;;  %3049 = vadd.xlane.f32.xlu1 %v3048_v16 }
 0xd80   :  { %v9584_v43 = vsub.f32 %v9469_v8, %v2973_v15  ;;  %v2974_v61 = vmul.f32 0.03125, %v2948_v55 }
 0xd82   :  { %v9587_v53 = vsub.f32 %v9473_v33, %v2974_v61  ;;  %v3009_v50 = vmul.f32 %v9584_v43, %v9584_v43 }
 0xd84   :  { %v3051_v1 = vsel %vm135_vm0, %v3009_v50, 0.0  ;;  %v3010_v14 = vmul.f32 %v9587_v53, %v9587_v53 }
 0xd85   :  { %v2951_v29 = vpop.xlane.xlu0 %2950  ;;  %3052 = vadd.xlane.f32.xlu0 %v3051_v1 }
 0xd86   :  { %v2975_v5 = vmul.f32 0.03125, %v2951_v29  ;;  %v3054_v42 = vsel %vm135_vm0, %v3010_v14, 0.0 }
 0xd87   :  { %v2954_v20 = vpop.xlane.xlu1 %2953  ;;  %3055 = vadd.xlane.f32.xlu1 %v3054_v42  ;;  %v5876_v42 = vld [vmem:[%s10994_s2 + $0x4] sm:$0xf] }
 0xd88   :  { %v9596_v24 = vsub.f32 %v9481_v2, %v2975_v5  ;;  %v2976_v28 = vmul.f32 0.03125, %v2954_v20 }
 0xd8a   :  { %v9599_v47 = vsub.f32 %v9485_v34, %v2976_v28  ;;  %v3011_v63 = vmul.f32 %v9596_v24, %v9596_v24 }
 0xd8c   :  { %v3057_v4 = vsel %vm135_vm0, %v3011_v63, 0.0  ;;  %v3012_v56 = vmul.f32 %v9599_v47, %v9599_v47 }
 0xd8d   :  { %3058 = vadd.xlane.f32.xlu0 %v3057_v4  ;;  %v11061_v4 = vld [vmem:[#allocation12_spill] sm:$0xff] }
 0xd8e   :  { %v3060_v7 = vsel %vm135_vm0, %v3012_v56, 0.0  ;;  %v9623_v56 = vrot.slane %v5876_v42, %v11061_v4 }
 0xd8f   :  { %3061 = vadd.xlane.f32.xlu1 %v3060_v7 }
 0xda9   :  { %v2957_v51 = vpop.xlane.xlu0 %2956 }
 0xdaa   :  { %v2977_v38 = vmul.f32 0.03125, %v2957_v51 }
 0xdab   :  { %v2960_v27 = vpop.xlane.xlu1 %2959 }
 0xdac   :  { %v9608_v23 = vsub.f32 %v9493_v22, %v2977_v38  ;;  %v2978_v58 = vmul.f32 0.03125, %v2960_v27 }
 0xdad   :  { %v3017_v6 = vpop.xlane.xlu0 %3016 }
 0xdae   :  { %v9611_v0 = vsub.f32 %v9500_v32, %v2978_v58  ;;  %v3069_v12 = vmul.f32 0.03125, %v3017_v6  ;;  %v3013_v11 = vmul.f32 %v9608_v23, %v9608_v23  ;;  %v11062_v6 = vld [vmem:[#allocation13_spill] sm:$0xff] }
 0xdaf   :  { %v3020_v19 = vpop.xlane.xlu1 %3019 }
 0xdb0   :  { %v3087_v15 = vadd.f32 1e-05, %v3069_v12  ;;  %v3070_v16 = vmul.f32 0.03125, %v3020_v19  ;;  %v3063_v55 = vsel %vm135_vm0, %v3013_v11, 0.0  ;;  %v3014_v61 = vmul.f32 %v9611_v0, %v9611_v0 }
 0xdb1   :  { %3064 = vadd.xlane.f32.xlu0 %v3063_v55  ;;  %v9627_v12 = vrot.slane %v5876_v42, %v11062_v6 }
 0xdb2   :  { %7451 = vrsqrt.f32 %v3087_v15  ;;  %v3088_v50 = vadd.f32 1e-05, %v3070_v16  ;;  %v3066_v1 = vsel %vm135_vm0, %v3014_v61, 0.0 }
 0xdb3   :  { %3067 = vadd.xlane.f32.xlu1 %v3066_v1 }
 0xdb4   :  { %7453 = vrsqrt.f32 %v3088_v50 }
 0xdb5   :  { %v3023_v14 = vpop.xlane.xlu0 %3022 }
 0xdb6   :  { %v3071_v29 = vmul.f32 0.03125, %v3023_v14 }
 0xdb7   :  { %v3026_v5 = vpop.xlane.xlu1 %3025 }
 0xdb8   :  { %v3089_v20 = vadd.f32 1e-05, %v3071_v29  ;;  %v3072_v28 = vmul.f32 0.03125, %v3026_v5 }
 0xdba   :  { %7455 = vrsqrt.f32 %v3089_v20  ;;  %v3090_v63 = vadd.f32 1e-05, %v3072_v28 }
 0xdbc   :  { %v7452_v7 = vpop.eup %7451  ;;  %7457 = vrsqrt.f32 %v3090_v63 }
 0xdbd   :  { %v3123_v51 = vmul.f32 %v7452_v7, %v9497_v37  ;;  %v3029_v38 = vpop.xlane.xlu0 %3028 }
 0xdbe   :  { %v7454_v27 = vpop.eup %7453  ;;  %v3073_v58 = vmul.f32 0.03125, %v3029_v38 }
 0xdbf   :  { %v3145_v11 = vmul.f32 %v9623_v56, %v3123_v51  ;;  %v3124_v19 = vmul.f32 %v7454_v27, %v9505_v31  ;;  %v3032_v15 = vpop.xlane.xlu1 %3031 }
 0xdc0   :  { %v3091_v16 = vadd.f32 1e-05, %v3073_v58  ;;  %v3074_v55 = vmul.f32 0.03125, %v3032_v15 }
 0xdc1   :  { %v3146_v61 = vmul.f32 %v9623_v56, %v3124_v19  ;;  %v3167_v1 = vadd.f32 %v9627_v12, %v3145_v11 }
 0xdc2   :  { %7459 = vrsqrt.f32 %v3091_v16  ;;  %v3092_v50 = vadd.f32 1e-05, %v3074_v55 }
 0xdc3   :  { %v3168_v37 = vadd.f32 %v9627_v12, %v3146_v61 }
 0xdc4   :  { %v7456_v14 = vpop.eup %7455  ;;  %7461 = vrsqrt.f32 %v3092_v50 }
 0xdc5   :  { %v3035_v29 = vpop.xlane.xlu0 %3034  ;;  %v3185_v5 = vpack.c.bf16 %v3168_v37, %v3167_v1  ;;  %v3125_v42 = vmul.f32 %v7456_v14, %v9516_v30 }
 0xdc6   :  { %v7458_v20 = vpop.eup %7457  ;;  %v3075_v28 = vmul.f32 0.03125, %v3035_v29 }
 0xdc7   :  { %6703 = vmatmul.mubr.msk.bf16.vlgmr.msra.gmra.mrb[156].mxu0 %vm135_vm0, %v3185_v5  ;;  %v3038_v31 = vpop.xlane.xlu1 %3037  ;;  %v3126_v63 = vmul.f32 %v7458_v20, %v9519_v49  ;;  %v3147_v7 = vmul.f32 %v9623_v56, %v3125_v42 }
 0xdc8   :  { %v3093_v51 = vadd.f32 1e-05, %v3075_v28  ;;  %v3076_v38 = vmul.f32 0.03125, %v3038_v31  ;;  %6706 = vmatprep.mubr.msk.bf16.mxu0 %vm7696_vm1, %v11045_v48 }
 0xdc9   :  { %v3148_v27 = vmul.f32 %v9623_v56, %v3126_v63  ;;  %v3169_v30 = vadd.f32 %v9627_v12, %v3147_v7 }
 0xdca   :  { %7463 = vrsqrt.f32 %v3093_v51  ;;  %v3094_v58 = vadd.f32 1e-05, %v3076_v38 }
 0xdcb   :  { %v3170_v11 = vadd.f32 %v9627_v12, %v3148_v27 }
 0xdcc   :  { %v7460_v19 = vpop.eup %7459  ;;  %7465 = vrsqrt.f32 %v3094_v58 }
 0xdcd   :  { %v3186_v15 = vpack.c.bf16 %v3170_v11, %v3169_v30  ;;  %v3127_v49 = vmul.f32 %v7460_v19, %v9528_v40 }
 0xdce   :  { %v7462_v16 = vpop.eup %7461 }
 0xdcf   :  { %6707 = vmatmul.mubr.msk.bf16.gmra.mrb[160].mxu0 %vm135_vm0, %v3186_v15  ;;  %v3128_v55 = vmul.f32 %v7462_v16, %v9531_v62  ;;  %v3149_v61 = vmul.f32 %v9623_v56, %v3127_v49 }
 0xdd0   :  { %6710 = vmatprep.mubr.msk.bf16.mxu0 %vm7696_vm1, %v11045_v48 }
 0xdd1   :  { %v3150_v50 = vmul.f32 %v9623_v56, %v3128_v55  ;;  %v3171_v1 = vadd.f32 %v9627_v12, %v3149_v61 }
 0xdd3   :  { %v3172_v37 = vadd.f32 %v9627_v12, %v3150_v50 }
 0xdd4   :  { %v7464_v14 = vpop.eup %7463 }
 0xdd5   :  { %v3187_v29 = vpack.c.bf16 %v3172_v37, %v3171_v1  ;;  %v3129_v40 = vmul.f32 %v7464_v14, %v9540_v35 }
 0xdd6   :  { %v7466_v5 = vpop.eup %7465 }
 0xdd7   :  { %6711 = vmatmul.mubr.msk.bf16.gmra.mrb[164].mxu0 %vm135_vm0, %v3187_v29  ;;  %v3130_v62 = vmul.f32 %v7466_v5, %v9543_v18  ;;  %v3151_v42 = vmul.f32 %v9623_v56, %v3129_v40 }
 0xdd8   :  { %6714 = vmatprep.mubr.msk.bf16.mxu0 %vm7696_vm1, %v11045_v48 }
 0xdd9   :  { %v3152_v20 = vmul.f32 %v9623_v56, %v3130_v62  ;;  %v3173_v28 = vadd.f32 %v9627_v12, %v3151_v42 }
 0xddb   :  { %v3174_v31 = vadd.f32 %v9627_v12, %v3152_v20 }
 0xddd   :  { %v3188_v63 = vpack.c.bf16 %v3174_v31, %v3173_v28 }
 0xddf   :  { %6715 = vmatmul.mubr.msk.bf16.gmra.mrb[168].mxu0 %vm135_vm0, %v3188_v63 }
 0xde0   :  { %6718 = vmatprep.mubr.msk.bf16.mxu0 %vm7696_vm1, %v11045_v48 }
 0xe02   :  { %v3041_v35 = vpop.xlane.xlu0 %3040 }
 0xe03   :  { %v3077_v7 = vmul.f32 0.03125, %v3041_v35 }
 0xe04   :  { %v3044_v18 = vpop.xlane.xlu1 %3043 }
 0xe05   :  { %v3095_v51 = vadd.f32 1e-05, %v3077_v7  ;;  %v3078_v38 = vmul.f32 0.03125, %v3044_v18 }
 0xe07   :  { %7467 = vrsqrt.f32 %v3095_v51  ;;  %v3096_v27 = vadd.f32 1e-05, %v3078_v38 }
 0xe09   :  { %7469 = vrsqrt.f32 %v3096_v27 }
 0xe0a   :  { %v3047_v58 = vpop.xlane.xlu0 %3046 }
 0xe0b   :  { %v3079_v30 = vmul.f32 0.03125, %v3047_v58 }
 0xe0c   :  { %v3050_v11 = vpop.xlane.xlu1 %3049 }
 0xe0d   :  { %v3097_v19 = vadd.f32 1e-05, %v3079_v30  ;;  %v3080_v15 = vmul.f32 0.03125, %v3050_v11 }
 0xe0f   :  { %7471 = vrsqrt.f32 %v3097_v19  ;;  %v3098_v49 = vadd.f32 1e-05, %v3080_v15 }
 0xe11   :  { %v7468_v16 = vpop.eup %7467  ;;  %7473 = vrsqrt.f32 %v3098_v49 }
 0xe12   :  { %v3053_v55 = vpop.xlane.xlu0 %3052  ;;  %v3131_v61 = vmul.f32 %v7468_v16, %v9560_v25 }
 0xe13   :  { %v7470_v50 = vpop.eup %7469  ;;  %v3081_v1 = vmul.f32 0.03125, %v3053_v55 }
 0xe14   :  { %v3056_v37 = vpop.xlane.xlu1 %3055  ;;  %v3132_v14 = vmul.f32 %v7470_v50, %v9563_v41  ;;  %v3153_v29 = vmul.f32 %v9623_v56, %v3131_v61 }
 0xe15   :  { %v3099_v40 = vadd.f32 1e-05, %v3081_v1  ;;  %v3082_v5 = vmul.f32 0.03125, %v3056_v37 }
 0xe16   :  { %v3154_v62 = vmul.f32 %v9623_v56, %v3132_v14  ;;  %v3175_v20 = vadd.f32 %v9627_v12, %v3153_v29 }
 0xe17   :  { %7475 = vrsqrt.f32 %v3099_v40  ;;  %v3100_v42 = vadd.f32 1e-05, %v3082_v5 }
 0xe18   :  { %v3176_v28 = vadd.f32 %v9627_v12, %v3154_v62 }
 0xe19   :  { %v7472_v31 = vpop.eup %7471  ;;  %7477 = vrsqrt.f32 %v3100_v42 }
 0xe1a   :  { %v3059_v25 = vpop.xlane.xlu0 %3058  ;;  %v3189_v63 = vpack.c.bf16 %v3176_v28, %v3175_v20  ;;  %v3133_v35 = vmul.f32 %v7472_v31, %v9572_v39 }
 0xe1b   :  { %v7474_v7 = vpop.eup %7473  ;;  %v3083_v41 = vmul.f32 0.03125, %v3059_v25 }
 0xe1c   :  { %6719 = vmatmul.mubr.msk.bf16.gmra.mrb[172].mxu0 %vm135_vm0, %v3189_v63  ;;  %v3062_v18 = vpop.xlane.xlu1 %3061  ;;  %v3134_v51 = vmul.f32 %v7474_v7, %v9575_v26  ;;  %v3155_v38 = vmul.f32 %v9623_v56, %v3133_v35 }
 0xe1d   :  { %v3101_v27 = vadd.f32 1e-05, %v3083_v41  ;;  %v3084_v58 = vmul.f32 0.03125, %v3062_v18  ;;  %6722 = vmatprep.mubr.msk.bf16.mxu0 %vm7696_vm1, %v11045_v48 }
 0xe1e   :  { %v3156_v30 = vmul.f32 %v9623_v56, %v3134_v51  ;;  %v3177_v39 = vadd.f32 %v9627_v12, %v3155_v38 }
 0xe1f   :  { %7479 = vrsqrt.f32 %v3101_v27  ;;  %v3102_v11 = vadd.f32 1e-05, %v3084_v58 }
 0xe20   :  { %v3178_v19 = vadd.f32 %v9627_v12, %v3156_v30 }
 0xe21   :  { %v7476_v15 = vpop.eup %7475  ;;  %7481 = vrsqrt.f32 %v3102_v11 }
 0xe22   :  { %v3190_v49 = vpack.c.bf16 %v3178_v19, %v3177_v39  ;;  %v3135_v26 = vmul.f32 %v7476_v15, %v9584_v43 }
 0xe23   :  { %v7478_v16 = vpop.eup %7477 }
 0xe24   :  { %6723 = vmatmul.mubr.msk.bf16.gmra.mrb[176].mxu0 %vm135_vm0, %v3190_v49  ;;  %v3136_v55 = vmul.f32 %v7478_v16, %v9587_v53  ;;  %v3157_v61 = vmul.f32 %v9623_v56, %v3135_v26 }
 0xe25   :  { %6726 = vmatprep.mubr.msk.bf16.mxu0 %vm7696_vm1, %v11045_v48 }
 0xe26   :  { %v3158_v50 = vmul.f32 %v9623_v56, %v3136_v55  ;;  %v3179_v1 = vadd.f32 %v9627_v12, %v3157_v61 }
 0xe28   :  { %v3180_v37 = vadd.f32 %v9627_v12, %v3158_v50 }
 0xe29   :  { %v7480_v14 = vpop.eup %7479 }
 0xe2a   :  { %v3191_v29 = vpack.c.bf16 %v3180_v37, %v3179_v1  ;;  %v3137_v43 = vmul.f32 %v7480_v14, %v9596_v24 }
 0xe2b   :  { %v7482_v40 = vpop.eup %7481 }
 0xe2c   :  { %6727 = vmatmul.mubr.msk.bf16.gmra.mrb[180].mxu0 %vm135_vm0, %v3191_v29  ;;  %v3138_v53 = vmul.f32 %v7482_v40, %v9599_v47  ;;  %v3159_v5 = vmul.f32 %v9623_v56, %v3137_v43 }
 0xe2d   :  { %6730 = vmatprep.mubr.msk.bf16.mxu0 %vm7696_vm1, %v11045_v48 }
 0xe2e   :  { %v3160_v62 = vmul.f32 %v9623_v56, %v3138_v53  ;;  %v3181_v42 = vadd.f32 %v9627_v12, %v3159_v5 }
 0xe30   :  { %v3182_v20 = vadd.f32 %v9627_v12, %v3160_v62 }
 0xe32   :  { %v3192_v28 = vpack.c.bf16 %v3182_v20, %v3181_v42 }
 0xe34   :  { %6731 = vmatmul.mubr.msk.bf16.gmra.mrb[184].mxu0 %vm135_vm0, %v3192_v28 }
 0xe35   :  { %6734 = vmatprep.mubr.msk.bf16.mxu0 %vm7696_vm1, %v11045_v48 }
 0xe3e   :  { %v3065_v24 = vpop.xlane.xlu0 %3064 }
 0xe3f   :  { %v3085_v31 = vmul.f32 0.03125, %v3065_v24 }
 0xe40   :  { %v3068_v47 = vpop.xlane.xlu1 %3067 }
 0xe41   :  { %v3103_v25 = vadd.f32 1e-05, %v3085_v31  ;;  %v3086_v63 = vmul.f32 0.03125, %v3068_v47 }
 0xe43   :  { %7483 = vrsqrt.f32 %v3103_v25  ;;  %v3104_v35 = vadd.f32 1e-05, %v3086_v63 }
 0xe45   :  { %7485 = vrsqrt.f32 %v3104_v35 }
 0xe4d   :  { %v7484_v7 = vpop.eup %7483 }
 0xe4e   :  { %v3139_v41 = vmul.f32 %v7484_v7, %v9608_v23  ;;  %v9712_v23 = vld [vmem:[%s10996_s4 + $0x1] ss:$0 sm:$0xff] }
 0xe4f   :  { %v7486_v18 = vpop.eup %7485 }
 0xe50   :  { %v3140_v51 = vmul.f32 %v7486_v18, %v9611_v0  ;;  %v3161_v38 = vmul.f32 %v9623_v56, %v3139_v41 }
 0xe52   :  { %v3162_v27 = vmul.f32 %v9623_v56, %v3140_v51  ;;  %v3183_v58 = vadd.f32 %v9627_v12, %v3161_v38 }
 0xe54   :  { %v3184_v30 = vadd.f32 %v9627_v12, %v3162_v27 }
 0xe56   :  { %v3193_v11 = vpack.c.bf16 %v3184_v30, %v3183_v58 }
 0xe58   :  { %6735 = vmatmul.mubr.msk.bf16.gmra.mrb[188].mxu0 %vm135_vm0, %v3193_v11 }
 0xe59   :  { %6778 = vmatprep.mubr.msk.bf16.mxu0 %vm7696_vm1, %v11045_v48 }
 0xe9a   :  { %v3280_v0 = vpop.f32.mrb[156].mxu0 }
 0xe9b   :  { %v6704_v39 = vpop.f32.mrb[157].mxu0  ;;  %v3281_v56 = vadd.f32 %v9712_v23, %v3280_v0 }
 0xe9c   :  { %v3283_v19 = vpop.f32.mrb[158].mxu0 }
 0xe9d   :  { %v3284_v15 = vadd.f32 %v9712_v23, %v3283_v19  ;;  %v6705_v49 = vpop.f32.mrb[159].mxu0 }
 0xe9f   :  { %v9716_v12 = vpack.c.bf16 %v3284_v15, %v3281_v56 }
 0xea1   :  { %3366 = vrot.lane.b32.xlu0 %v9716_v12, %s7697_s23 }
 0xea2   :  { %v3288_v26 = vpop.f32.mrb[160].mxu0 }
 0xea3   :  { %v6708_v16 = vpop.f32.mrb[161].mxu0  ;;  %v3289_v61 = vadd.f32 %v9712_v23, %v3288_v26 }
 0xea4   :  { %v3291_v55 = vpop.f32.mrb[162].mxu0 }
 0xea5   :  { %v3292_v50 = vadd.f32 %v9712_v23, %v3291_v55  ;;  %v6709_v1 = vpop.f32.mrb[163].mxu0 }
 0xea7   :  { %v9722_v37 = vpack.c.bf16 %v3292_v50, %v3289_v61 }
 0xea9   :  { %3368 = vrot.lane.b32.xlu1 %v9722_v37, %s7697_s23 }
 0xeaa   :  { %v3296_v14 = vpop.f32.mrb[164].mxu0 }
 0xeab   :  { %v6712_v29 = vpop.f32.mrb[165].mxu0  ;;  %v3297_v40 = vadd.f32 %v9712_v23, %v3296_v14 }
 0xeac   :  { %v3299_v43 = vpop.f32.mrb[166].mxu0 }
 0xead   :  { %v3300_v53 = vadd.f32 %v9712_v23, %v3299_v43  ;;  %v6713_v5 = vpop.f32.mrb[167].mxu0 }
 0xeaf   :  { %v9728_v62 = vpack.c.bf16 %v3300_v53, %v3297_v40 }
 0xeb1   :  { %3370 = vrot.lane.b32.xlu1 %v9728_v62, %s7697_s23 }
 0xeb2   :  { %v3304_v42 = vpop.f32.mrb[168].mxu0 }
 0xeb3   :  { %v6716_v20 = vpop.f32.mrb[169].mxu0  ;;  %v3305_v24 = vadd.f32 %v9712_v23, %v3304_v42 }
 0xeb4   :  { %v3307_v28 = vpop.f32.mrb[170].mxu0 }
 0xeb5   :  { %v3308_v31 = vadd.f32 %v9712_v23, %v3307_v28  ;;  %v6717_v47 = vpop.f32.mrb[171].mxu0 }
 0xeb7   :  { %v9734_v25 = vpack.c.bf16 %v3308_v31, %v3305_v24 }
 0xeb9   :  { %3372 = vrot.lane.b32.xlu0 %v9734_v25, %s7697_s23 }
 0xeef   :  { %v3312_v63 = vpop.f32.mrb[172].mxu0 }
 0xef0   :  { %v3313_v35 = vadd.f32 %v9712_v23, %v3312_v63  ;;  %v6720_v7 = vpop.f32.mrb[173].mxu0 }
 0xef1   :  { %v3315_v41 = vpop.f32.mrb[174].mxu0 }
 0xef2   :  { %v9739_v18 = vpack.c.bf16 %v3313_v35, %v3313_v35  ;;  %v6721_v51 = vpop.f32.mrb[175].mxu0  ;;  %v3316_v27 = vadd.f32 %v9712_v23, %v3315_v41 }
 0xef4   :  { %3374 = vrot.lane.b32.xlu1 %v9739_v18, %s7697_s23 }
 0xef7   :  { %v3320_v38 = vpop.f32.mrb[176].mxu0 }
 0xef8   :  { %v3321_v58 = vadd.f32 %v9712_v23, %v3320_v38  ;;  %v6724_v30 = vpop.f32.mrb[177].mxu0 }
 0xef9   :  { %v3323_v11 = vpop.f32.mrb[178].mxu0 }
 0xefa   :  { %v9745_v0 = vpack.c.bf16 %v3321_v58, %v3316_v27  ;;  %v6725_v39 = vpop.f32.mrb[179].mxu0  ;;  %v3324_v56 = vadd.f32 %v9712_v23, %v3323_v11 }
 0xefc   :  { %3483 = vrot.lane.b32.xlu0 %v9745_v0, %s7697_s23 }
 0xeff   :  { %v3328_v19 = vpop.f32.mrb[180].mxu0 }
 0xf00   :  { %v3329_v15 = vadd.f32 %v9712_v23, %v3328_v19  ;;  %v6728_v49 = vpop.f32.mrb[181].mxu0 }
 0xf01   :  { %v3331_v26 = vpop.f32.mrb[182].mxu0 }
 0xf02   :  { %v9751_v16 = vpack.c.bf16 %v3329_v15, %v3324_v56  ;;  %v6729_v55 = vpop.f32.mrb[183].mxu0  ;;  %v3332_v50 = vadd.f32 %v9712_v23, %v3331_v26 }
 0xf04   :  { %3485 = vrot.lane.b32.xlu1 %v9751_v16, %s7697_s23 }
 0xf07   :  { %v3336_v61 = vpop.f32.mrb[184].mxu0 }
 0xf08   :  { %v3337_v1 = vadd.f32 %v9712_v23, %v3336_v61  ;;  %v6732_v14 = vpop.f32.mrb[185].mxu0 }
 0xf09   :  { %v3339_v29 = vpop.f32.mrb[186].mxu0 }
 0xf0a   :  { %v9757_v43 = vpack.c.bf16 %v3337_v1, %v3332_v50  ;;  %v6733_v40 = vpop.f32.mrb[187].mxu0  ;;  %v3340_v63 = vadd.f32 %v9712_v23, %v3339_v29 }
 0xf0c   :  { %3487 = vrot.lane.b32.xlu0 %v9757_v43, %s7697_s23 }
 0xf13   :  { %v3367_v53 = vpop.permute.xlu0 %3366 }
 0xf14   :  { %v3392_v5 = vsel %vm604_vm2, %v3367_v53, 0 }
 0xf15   :  { %6739 = vmatpush3.bf16.xpose.msra.mxu1 %v3392_v5 }
 0xf16   :  { %6740 = vmatprep.subr.bf16.mxu1 %v11045_v48 }
 0xf1b   :  { %v3369_v42 = vpop.permute.xlu1 %3368 }
 0xf1c   :  { %v3395_v20 = vsel %vm604_vm2, %v3369_v42, 0 }
 0xf1d   :  { %6741 = vmatpush3.bf16.xpose.msra.mxu1 %v3395_v20 }
 0xf1e   :  { %6742 = vmatprep.subr.bf16.mxu1 %v11045_v48 }
 0xf23   :  { %v3371_v28 = vpop.permute.xlu1 %3370 }
 0xf24   :  { %v3398_v24 = vsel %vm604_vm2, %v3371_v28, 0 }
 0xf25   :  { %6743 = vmatpush3.bf16.xpose.msra.mxu1 %v3398_v24 }
 0xf26   :  { %6744 = vmatprep.subr.bf16.mxu1 %v11045_v48 }
 0xf2b   :  { %v3373_v31 = vpop.permute.xlu0 %3372  ;;  %v3344_v47 = vpop.f32.mrb[188].mxu0 }
 0xf2c   :  { %v3401_v35 = vsel %vm604_vm2, %v3373_v31, 0  ;;  %v3345_v7 = vadd.f32 %v9712_v23, %v3344_v47  ;;  %v6736_v41 = vpop.f32.mrb[189].mxu0 }
 0xf2d   :  { %v3347_v51 = vpop.f32.mrb[190].mxu0  ;;  %6745 = vmatpush3.bf16.xpose.msra.mxu1 %v3401_v35 }
 0xf2e   :  { %v9770_v38 = vpack.c.bf16 %v3345_v7, %v3340_v63  ;;  %v3348_v27 = vadd.f32 %v9712_v23, %v3347_v51  ;;  %v6737_v58 = vpop.f32.mrb[191].mxu0  ;;  %6746 = vmatprep.subr.bf16.mxu1 %v11045_v48  ;;  %v11063_v51 = vld [vmem:[#allocation14_spill] sm:$0xff] }
 0xf30   :  { %v9774_v30 = vpack.c.bf16 %v3348_v27, %v3348_v27  ;;  %3489 = vrot.lane.b32.xlu1 %v9770_v38, %s7697_s23 }
 0xf32   :  { %3491 = vrot.lane.b32.xlu0 %v9774_v30, %s7697_s23 }
 0xf34   :  { %3841 = vrot.lane.b32.xlu1 %v9722_v37, %s7698_s24 }
 0xf36   :  { %3839 = vrot.lane.b32.xlu0 %v9716_v12, %s7698_s24 }
 0xf38   :  { %3847 = vrot.lane.b32.xlu1 %v9739_v18, %s7698_s24 }
 0xf3a   :  { %3843 = vrot.lane.b32.xlu0 %v9728_v62, %s7698_s24 }
 0xf3c   :  { %4059 = vrot.lane.b32.xlu1 %v9722_v37, %s7699_s25 }
 0xf3e   :  { %3845 = vrot.lane.b32.xlu0 %v9734_v25, %s7698_s24 }
 0xf40   :  { %4061 = vrot.lane.b32.xlu1 %v9728_v62, %s7699_s25 }
 0xf42   :  { %4057 = vrot.lane.b32.xlu0 %v9716_v12, %s7699_s25 }
 0xf44   :  { %4063 = vrot.lane.b32.xlu1 %v9734_v25, %s7699_s25 }
 0xf46   :  { %3943 = vrot.lane.b32.xlu0 %v9745_v0, %s7698_s24 }
 0xf4a   :  { %3945 = vrot.lane.b32.xlu0 %v9751_v16, %s7698_s24 }
 0xf4e   :  { %3947 = vrot.lane.b32.xlu0 %v9757_v43, %s7698_s24 }
 0xf52   :  { %3949 = vrot.lane.b32.xlu0 %v9770_v38, %s7698_s24 }
 0xf66   :  { %v3375_v23 = vpop.permute.xlu1 %3374 }
 0xf67   :  { %v3404_v11 = vsel %vm604_vm2, %v3375_v23, 0 }
 0xf68   :  { %6747 = vmatpush3.bf16.xpose.msra.mxu1 %v3404_v11 }
 0xf69   :  { %6798 = vmatprep.subr.bf16.mxu1 %v11045_v48 }
 0xf6e   :  { %v3484_v39 = vpop.permute.xlu0 %3483 }
 0xf6f   :  { %v3509_v19 = vsel %vm604_vm2, %v3484_v39, 0  ;;  %6749 = vmatmul.mubr.msk.bf16.vlgmr.msra.gmra.mrb[148].mxu1 %vm604_vm2, %v9716_v12 }
 0xf70   :  { %6769 = vmatpush3.bf16.xpose.msra.mxu0 %v3509_v19  ;;  %6752 = vmatprep.mubr.msk.bf16.mxu1 %vm7696_vm1, %v11045_v48 }
 0xf71   :  { %6770 = vmatprep.subr.bf16.mxu0 %v11045_v48 }
 0xf76   :  { %v3486_v56 = vpop.permute.xlu1 %3485 }
 0xf77   :  { %v3512_v15 = vsel %vm604_vm2, %v3486_v56, 0  ;;  %6753 = vmatmul.mubr.msk.bf16.gmra.mrb[152].mxu1 %vm604_vm2, %v9722_v37 }
 0xf78   :  { %6771 = vmatpush3.bf16.xpose.msra.mxu0 %v3512_v15  ;;  %6756 = vmatprep.mubr.msk.bf16.mxu1 %vm7696_vm1, %v11045_v48 }
 0xf79   :  { %6772 = vmatprep.subr.bf16.mxu0 %v11045_v48 }
 0xf7e   :  { %v3488_v49 = vpop.permute.xlu0 %3487 }
 0xf7f   :  { %v3515_v26 = vsel %vm604_vm2, %v3488_v49, 0  ;;  %6757 = vmatmul.mubr.msk.bf16.gmra.mrb[156].mxu1 %vm604_vm2, %v9728_v62 }
 0xf80   :  { %6773 = vmatpush3.bf16.xpose.msra.mxu0 %v3515_v26  ;;  %6760 = vmatprep.mubr.msk.bf16.mxu1 %vm7696_vm1, %v11045_v48 }
 0xf81   :  { %6774 = vmatprep.subr.bf16.mxu0 %v11045_v48 }
 0xf87   :  { %6761 = vmatmul.mubr.msk.bf16.gmra.mrb[160].mxu1 %vm604_vm2, %v9734_v25 }
 0xf88   :  { %6764 = vmatprep.mubr.msk.bf16.mxu1 %vm7696_vm1, %v11045_v48 }
 0xf8f   :  { %6765 = vmatmul.mubr.msk.bf16.gmra.mrb[164].mxu1 %vm604_vm2, %v9739_v18 }
 0xf90   :  { %6808 = vmatprep.mubr.msk.bf16.mxu1 %vm7696_vm1, %v11045_v48 }
 0xfa2   :  { %v3490_v55 = vpop.permute.xlu1 %3489 }
 0xfa3   :  { %v3518_v61 = vsel %vm604_vm2, %v3490_v55, 0 }
 0xfa4   :  { %v3492_v50 = vpop.permute.xlu0 %3491  ;;  %6775 = vmatpush3.bf16.xpose.msra.mxu0 %v3518_v61 }
 0xfa5   :  { %6776 = vmatprep.subr.bf16.mxu0 %v11045_v48  ;;  %v3521_v14 = vsel %vm604_vm2, %v3492_v50, 0 }
 0xfa6   :  { %v3842_v29 = vpop.permute.xlu1 %3841 }
 0xfa8   :  { %v3840_v1 = vpop.permute.xlu0 %3839 }
 0xfa9   :  { %6799 = vmatpush3.bf16.msra.mxu1 %v3840_v1 }
 0xfaa   :  { %6800 = vmatprep.subr.bf16.mxu1 %v11045_v48  ;;  %v3848_v42 = vpop.permute.xlu1 %3847 }
 0xfab   :  { %v3869_v20 = vsel %vm1098_vm3, %v3848_v42, 0 }
 0xfac   :  { %v3844_v40 = vpop.permute.xlu0 %3843  ;;  %6777 = vmatpush3.bf16.xpose.msra.mxu0 %v3521_v14 }
 0xfad   :  { %6801 = vmatpush3.bf16.msra.mxu1 %v3842_v29  ;;  %6828 = vmatprep.subr.bf16.mxu0 %v11045_v48 }
 0xfae   :  { %6802 = vmatprep.subr.bf16.mxu1 %v11045_v48 }
 0xfb0   :  { %v3846_v53 = vpop.permute.xlu0 %3845 }
 0xfb1   :  { %6803 = vmatpush3.bf16.msra.mxu1 %v3844_v40 }
 0xfb2   :  { %6804 = vmatprep.subr.bf16.mxu1 %v11045_v48 }
 0xfb3   :  { %6779 = vmatmul.mubr.msk.bf16.vlgmr.msra.gmra.mrb[192].mxu0 %vm604_vm2, %v9745_v0 }
 0xfb4   :  { %v9843_v5 = vpop.permute.xlu0 %4057  ;;  %6782 = vmatprep.mubr.msk.bf16.mxu0 %vm7696_vm1, %v11045_v48 }
 0xfb5   :  { %6805 = vmatpush3.bf16.msra.mxu1 %v3846_v53 }
 0xfb6   :  { %6806 = vmatprep.subr.bf16.mxu1 %v11045_v48 }
 0xfb8   :  { %v3944_v28 = vpop.permute.xlu0 %3943 }
 0xfb9   :  { %6807 = vmatpush3.bf16.msra.mxu1 %v3869_v20  ;;  %6829 = vmatpush3.bf16.msra.mxu0 %v3944_v28 }
 0xfba   :  { %6830 = vmatprep.subr.bf16.mxu0 %v11045_v48  ;;  %6858 = vmatprep.subr.bf16.mxu1 %v11045_v48 }
 0xfbb   :  { %6783 = vmatmul.mubr.msk.bf16.gmra.mrb[196].mxu0 %vm604_vm2, %v9751_v16 }
 0xfbc   :  { %v3946_v24 = vpop.permute.xlu0 %3945  ;;  %6786 = vmatprep.mubr.msk.bf16.mxu0 %vm7696_vm1, %v11045_v48 }
 0xfbd   :  { %6831 = vmatpush3.bf16.msra.mxu0 %v3946_v24 }
 0xfbe   :  { %6832 = vmatprep.subr.bf16.mxu0 %v11045_v48 }
 0xfc0   :  { %v3948_v31 = vpop.permute.xlu0 %3947 }
 0xfc1   :  { %6833 = vmatpush3.bf16.msra.mxu0 %v3948_v31 }
 0xfc2   :  { %6834 = vmatprep.subr.bf16.mxu0 %v11045_v48 }
 0xfc3   :  { %6787 = vmatmul.mubr.msk.bf16.gmra.mrb[200].mxu0 %vm604_vm2, %v9757_v43 }
 0xfc4   :  { %v3950_v47 = vpop.permute.xlu0 %3949  ;;  %6790 = vmatprep.mubr.msk.bf16.mxu0 %vm7696_vm1, %v11045_v48 }
 0xfc5   :  { %6835 = vmatpush3.bf16.msra.mxu0 %v3950_v47 }
 0xfc6   :  { %6836 = vmatprep.subr.bf16.mxu0 %v11045_v48 }
 0xfcb   :  { %6791 = vmatmul.mubr.msk.bf16.gmra.mrb[204].mxu0 %vm604_vm2, %v9770_v38 }
 0xfcc   :  { %6794 = vmatprep.mubr.msk.bf16.mxu0 %vm7696_vm1, %v11045_v48 }
 0xfd3   :  { %6795 = vmatmul.mubr.msk.bf16.gmra.mrb[208].mxu0 %vm604_vm2, %v9774_v30 }
 0xfd4   :  { %6838 = vmatprep.mubr.msk.bf16.mxu0 %vm7696_vm1, %v11045_v48 }
0x1042   :  { %v3440_v63 = vpop.f32.mrb[148].mxu1 }
0x1043   :  { %v3595_v35 = vmul.f32 0.25, %v3440_v63  ;;  %v6750_v7 = vpop.f32.mrb[149].mxu1 }
0x1044   :  { %v3443_v41 = vpop.f32.mrb[150].mxu1 }
0x1045   :  { %v9871_v27 = vadd.f32 %v3595_v35, %v11063_v51  ;;  %v3596_v58 = vmul.f32 0.25, %v3443_v41  ;;  %v6751_v23 = vpop.f32.mrb[151].mxu1 }
0x1047   :  { %v9874_v11 = vadd.f32 %v3596_v58, %v11063_v51  ;;  %v3631_v39 = vsel %vm860_vm5, %v9871_v27, -inf }
0x1048   :  { %3632 = vmax.xlane.f32.xlu1 %v3631_v39 }
0x1049   :  { %v3634_v19 = vsel %vm860_vm5, %v9874_v11, -inf }
0x104a   :  { %3635 = vmax.xlane.f32.xlu0 %v3634_v19  ;;  %v3448_v56 = vpop.f32.mrb[152].mxu1 }
0x104b   :  { %v3597_v15 = vmul.f32 0.25, %v3448_v56  ;;  %v6754_v49 = vpop.f32.mrb[153].mxu1 }
0x104c   :  { %v3451_v26 = vpop.f32.mrb[154].mxu1 }
0x104d   :  { %v9881_v55 = vadd.f32 %v3597_v15, %v11063_v51  ;;  %v3598_v61 = vmul.f32 0.25, %v3451_v26  ;;  %v6755_v50 = vpop.f32.mrb[155].mxu1 }
0x104f   :  { %v9884_v1 = vadd.f32 %v3598_v61, %v11063_v51  ;;  %v3637_v14 = vsel %vm860_vm5, %v9881_v55, -inf }
0x1050   :  { %3638 = vmax.xlane.f32.xlu0 %v3637_v14 }
0x1051   :  { %v3640_v29 = vsel %vm860_vm5, %v9884_v1, -inf }
0x1052   :  { %3641 = vmax.xlane.f32.xlu1 %v3640_v29  ;;  %v3456_v40 = vpop.f32.mrb[156].mxu1 }
0x1053   :  { %v3599_v53 = vmul.f32 0.25, %v3456_v40  ;;  %v6758_v42 = vpop.f32.mrb[157].mxu1 }
0x1054   :  { %v3459_v20 = vpop.f32.mrb[158].mxu1 }
0x1055   :  { %v9891_v28 = vadd.f32 %v3599_v53, %v11063_v51  ;;  %v3600_v24 = vmul.f32 0.25, %v3459_v20  ;;  %v6759_v31 = vpop.f32.mrb[159].mxu1 }
0x1057   :  { %v9894_v47 = vadd.f32 %v3600_v24, %v11063_v51  ;;  %v3643_v63 = vsel %vm860_vm5, %v9891_v28, -inf }
0x1058   :  { %3644 = vmax.xlane.f32.xlu0 %v3643_v63 }
0x1059   :  { %v3646_v35 = vsel %vm860_vm5, %v9894_v47, -inf }
0x105a   :  { %3647 = vmax.xlane.f32.xlu1 %v3646_v35  ;;  %v3464_v7 = vpop.f32.mrb[160].mxu1 }
0x105b   :  { %v3601_v41 = vmul.f32 0.25, %v3464_v7  ;;  %v6762_v58 = vpop.f32.mrb[161].mxu1 }
0x105c   :  { %v3467_v23 = vpop.f32.mrb[162].mxu1 }
0x105d   :  { %v9901_v39 = vadd.f32 %v3601_v41, %v11063_v51  ;;  %v3602_v19 = vmul.f32 0.25, %v3467_v23  ;;  %v6763_v56 = vpop.f32.mrb[163].mxu1 }
0x105f   :  { %v9904_v15 = vadd.f32 %v3602_v19, %v11063_v51  ;;  %v3649_v49 = vsel %vm860_vm5, %v9901_v39, -inf }
0x1060   :  { %3650 = vmax.xlane.f32.xlu0 %v3649_v49 }
0x1061   :  { %v3652_v26 = vsel %vm860_vm5, %v9904_v15, -inf }
0x1062   :  { %3653 = vmax.xlane.f32.xlu1 %v3652_v26  ;;  %v3472_v61 = vpop.f32.mrb[164].mxu1 }
0x1063   :  { %v3603_v50 = vmul.f32 0.25, %v3472_v61  ;;  %v6766_v14 = vpop.f32.mrb[165].mxu1 }
0x1064   :  { %v3475_v29 = vpop.f32.mrb[166].mxu1 }
0x1065   :  { %v9911_v40 = vadd.f32 %v3603_v50, %v11063_v51  ;;  %v6767_v53 = vpop.f32.mrb[167].mxu1 }
0x1067   :  { %v3655_v42 = vsel %vm860_vm5, %v9911_v40, -inf }
0x1068   :  { %3656 = vmax.xlane.f32.xlu0 %v3655_v42 }
0x1086   :  { %v3557_v20 = vpop.f32.mrb[192].mxu0 }
0x1087   :  { %v3604_v24 = vmul.f32 0.25, %v3557_v20  ;;  %v6780_v31 = vpop.f32.mrb[193].mxu0 }
0x1088   :  { %v3560_v63 = vpop.f32.mrb[194].mxu0 }
0x1089   :  { %v9916_v35 = vadd.f32 %v3604_v24, %v11063_v51  ;;  %v3605_v7 = vmul.f32 0.25, %v3560_v63  ;;  %v6781_v41 = vpop.f32.mrb[195].mxu0 }
0x108b   :  { %v9919_v58 = vadd.f32 %v3605_v7, %v11063_v51  ;;  %v3658_v23 = vsel %vm860_vm5, %v9916_v35, -inf }
0x108c   :  { %3659 = vmax.xlane.f32.xlu1 %v3658_v23 }
0x108d   :  { %v3661_v19 = vsel %vm860_vm5, %v9919_v58, -inf }
0x108e   :  { %v3565_v56 = vpop.f32.mrb[196].mxu0  ;;  %3662 = vmax.xlane.f32.xlu0 %v3661_v19 }
0x108f   :  { %v3606_v49 = vmul.f32 0.25, %v3565_v56  ;;  %v6784_v26 = vpop.f32.mrb[197].mxu0 }
0x1090   :  { %v3568_v61 = vpop.f32.mrb[198].mxu0 }
0x1091   :  { %v9926_v50 = vadd.f32 %v3606_v49, %v11063_v51  ;;  %v3607_v14 = vmul.f32 0.25, %v3568_v61  ;;  %v6785_v29 = vpop.f32.mrb[199].mxu0 }
0x1093   :  { %v9929_v53 = vadd.f32 %v3607_v14, %v11063_v51  ;;  %v3664_v42 = vsel %vm860_vm5, %v9926_v50, -inf }
0x1094   :  { %3665 = vmax.xlane.f32.xlu1 %v3664_v42 }
0x1095   :  { %v3667_v20 = vsel %vm860_vm5, %v9929_v53, -inf }
0x1096   :  { %v3573_v24 = vpop.f32.mrb[200].mxu0  ;;  %3668 = vmax.xlane.f32.xlu0 %v3667_v20 }
0x1097   :  { %v3608_v31 = vmul.f32 0.25, %v3573_v24  ;;  %v6788_v63 = vpop.f32.mrb[201].mxu0 }
0x1098   :  { %v3576_v7 = vpop.f32.mrb[202].mxu0 }
0x1099   :  { %v9936_v41 = vadd.f32 %v3608_v31, %v11063_v51  ;;  %v3609_v23 = vmul.f32 0.25, %v3576_v7  ;;  %v6789_v19 = vpop.f32.mrb[203].mxu0 }
0x109b   :  { %v9939_v56 = vadd.f32 %v3609_v23, %v11063_v51  ;;  %v3670_v49 = vsel %vm860_vm5, %v9936_v41, -inf }
0x109c   :  { %3671 = vmax.xlane.f32.xlu1 %v3670_v49 }
0x109d   :  { %v3673_v26 = vsel %vm860_vm5, %v9939_v56, -inf }
0x109e   :  { %v3581_v61 = vpop.f32.mrb[204].mxu0  ;;  %3674 = vmax.xlane.f32.xlu0 %v3673_v26 }
0x109f   :  { %v3610_v14 = vmul.f32 0.25, %v3581_v61  ;;  %v6792_v29 = vpop.f32.mrb[205].mxu0 }
0x10a0   :  { %v3584_v42 = vpop.f32.mrb[206].mxu0 }
0x10a1   :  { %v9946_v20 = vadd.f32 %v3610_v14, %v11063_v51  ;;  %v3611_v24 = vmul.f32 0.25, %v3584_v42  ;;  %v6793_v31 = vpop.f32.mrb[207].mxu0 }
0x10a3   :  { %v9949_v63 = vadd.f32 %v3611_v24, %v11063_v51  ;;  %v3676_v7 = vsel %vm860_vm5, %v9946_v20, -inf  ;;  %v9962_v24 = vpop.permute.xlu1 %4059 }
0x10a4   :  { %3677 = vmax.xlane.f32.xlu1 %v3676_v7 }
0x10a5   :  { %v3679_v23 = vsel %vm860_vm5, %v9949_v63, -inf }
0x10a6   :  { %v3589_v19 = vpop.f32.mrb[208].mxu0  ;;  %3680 = vmax.xlane.f32.xlu0 %v3679_v23 }
0x10a7   :  { %v3612_v49 = vmul.f32 0.25, %v3589_v19  ;;  %v6796_v26 = vpop.f32.mrb[209].mxu0  ;;  %v9964_v31 = vpop.permute.xlu1 %4061 }
0x10a8   :  { %v3592_v61 = vpop.f32.mrb[210].mxu0 }
0x10a9   :  { %v9956_v14 = vadd.f32 %v3612_v49, %v11063_v51  ;;  %v6797_v29 = vpop.f32.mrb[211].mxu0 }
0x10ab   :  { %v3682_v42 = vsel %vm860_vm5, %v9956_v14, -inf  ;;  %v9966_v7 = vpop.permute.xlu1 %4063 }
0x10ac   :  { %3683 = vmax.xlane.f32.xlu1 %v3682_v42 }
0x10bc   :  { %3951 = vrot.lane.b32.xlu0 %v9774_v30, %s7698_s24 }
0x10d5   :  { %v3633_v23 = vpop.xlane.xlu1 %3632 }
0x10d6   :  { %v3685_v19 = vsub.f32 %v9871_v27, %v3633_v23 }
0x10d7   :  { %v3636_v26 = vpop.xlane.xlu0 %3635 }
0x10d8   :  { %v3703_v49 = vmul.f32 1.442695, %v3685_v19  ;;  %v3686_v61 = vsub.f32 %v9874_v11, %v3636_v26 }
0x10da   :  { %7487 = vpow2.f32 %v3703_v49  ;;  %v3705_v29 = vmul.f32 1.442695, %v3686_v61 }
0x10dc   :  { %7489 = vpow2.f32 %v3705_v29 }
0x10dd   :  { %v3639_v42 = vpop.xlane.xlu0 %3638 }
0x10de   :  { %v3687_v59 = vsub.f32 %v9881_v55, %v3639_v42 }
0x10df   :  { %v3642_v36 = vpop.xlane.xlu1 %3641 }
0x10e0   :  { %v3707_v6 = vmul.f32 1.442695, %v3687_v59  ;;  %v3688_v4 = vsub.f32 %v9884_v1, %v3642_v36 }
0x10e2   :  { %7491 = vpow2.f32 %v3707_v6  ;;  %v3709_v32 = vmul.f32 1.442695, %v3688_v4 }
0x10e4   :  { %v9972_v22 = vpop.eup %7487  ;;  %7493 = vpow2.f32 %v3709_v32 }
0x10e5   :  { %v3645_v27 = vpop.xlane.xlu0 %3644  ;;  %v3739_v23 = vsel %vm860_vm5, %v9972_v22, 0.0 }
0x10e6   :  { %v9976_v11 = vpop.eup %7489  ;;  %v3689_v19 = vsub.f32 %v9891_v28, %v3645_v27  ;;  %3740 = vadd.xlane.f32.xlu0 %v3739_v23 }
0x10e7   :  { %v3648_v26 = vpop.xlane.xlu1 %3647  ;;  %v3742_v59 = vsel %vm860_vm5, %v9976_v11, 0.0 }
0x10e8   :  { %v3711_v55 = vmul.f32 1.442695, %v3689_v19  ;;  %v3690_v36 = vsub.f32 %v9894_v47, %v3648_v26  ;;  %3743 = vadd.xlane.f32.xlu1 %v3742_v59 }
0x10ea   :  { %7495 = vpow2.f32 %v3711_v55  ;;  %v3713_v4 = vmul.f32 1.442695, %v3690_v36 }
0x10ec   :  { %v9982_v32 = vpop.eup %7491  ;;  %7497 = vpow2.f32 %v3713_v4 }
0x10ed   :  { %v3651_v6 = vpop.xlane.xlu0 %3650  ;;  %v3745_v1 = vsel %vm860_vm5, %v9982_v32, 0.0 }
0x10ee   :  { %v9986_v49 = vpop.eup %7493  ;;  %v3691_v28 = vsub.f32 %v9901_v39, %v3651_v6  ;;  %3746 = vadd.xlane.f32.xlu1 %v3745_v1 }
0x10ef   :  { %v3654_v61 = vpop.xlane.xlu1 %3653  ;;  %v3748_v47 = vsel %vm860_vm5, %v9986_v49, 0.0 }
0x10f0   :  { %v3715_v29 = vmul.f32 1.442695, %v3691_v28  ;;  %v3692_v42 = vsub.f32 %v9904_v15, %v3654_v61 }
0x10f2   :  { %7499 = vpow2.f32 %v3715_v29  ;;  %v3717_v27 = vmul.f32 1.442695, %v3692_v42  ;;  %3749 = vadd.xlane.f32.xlu1 %v3748_v47 }
0x10f4   :  { %v9992_v23 = vpop.eup %7495  ;;  %7501 = vpow2.f32 %v3717_v27 }
0x10f5   :  { %v3657_v19 = vpop.xlane.xlu0 %3656  ;;  %v3751_v26 = vsel %vm860_vm5, %v9992_v23, 0.0 }
0x10f6   :  { %v9996_v59 = vpop.eup %7497  ;;  %v3693_v39 = vsub.f32 %v9911_v40, %v3657_v19  ;;  %3752 = vadd.xlane.f32.xlu0 %v3751_v26 }
0x10f7   :  { %v3754_v15 = vsel %vm860_vm5, %v9996_v59, 0.0 }
0x10f8   :  { %v3719_v55 = vmul.f32 1.442695, %v3693_v39  ;;  %3755 = vadd.xlane.f32.xlu1 %v3754_v15 }
0x10fa   :  { %7503 = vpow2.f32 %v3719_v55 }
0x10fc   :  { %v10001_v36 = vpop.eup %7499 }
0x10fd   :  { %v3757_v4 = vsel %vm860_vm5, %v10001_v36, 0.0 }
0x10fe   :  { %v10005_v6 = vpop.eup %7501  ;;  %3758 = vadd.xlane.f32.xlu0 %v3757_v4 }
0x10ff   :  { %v3760_v1 = vsel %vm860_vm5, %v10005_v6, 0.0 }
0x1100   :  { %3761 = vadd.xlane.f32.xlu1 %v3760_v1 }
0x1104   :  { %v10009_v40 = vpop.eup %7503 }
0x1105   :  { %v3763_v28 = vsel %vm860_vm5, %v10009_v40, 0.0 }
0x1106   :  { %3764 = vadd.xlane.f32.xlu1 %v3763_v28 }
0x1119   :  { %v3660_v61 = vpop.xlane.xlu1 %3659 }
0x111a   :  { %v3694_v29 = vsub.f32 %v9916_v35, %v3660_v61 }
0x111b   :  { %v3663_v42 = vpop.xlane.xlu0 %3662 }
0x111c   :  { %v3721_v47 = vmul.f32 1.442695, %v3694_v29  ;;  %v3695_v27 = vsub.f32 %v9919_v58, %v3663_v42 }
0x111e   :  { %7505 = vpow2.f32 %v3721_v47  ;;  %v3723_v19 = vmul.f32 1.442695, %v3695_v27 }
0x1120   :  { %7507 = vpow2.f32 %v3723_v19 }
0x1121   :  { %v3666_v26 = vpop.xlane.xlu1 %3665 }
0x1122   :  { %v3696_v39 = vsub.f32 %v9926_v50, %v3666_v26 }
0x1123   :  { %v3669_v15 = vpop.xlane.xlu0 %3668 }
0x1124   :  { %v3725_v55 = vmul.f32 1.442695, %v3696_v39  ;;  %v3697_v4 = vsub.f32 %v9929_v53, %v3669_v15 }
0x1126   :  { %7509 = vpow2.f32 %v3725_v55  ;;  %v3727_v1 = vmul.f32 1.442695, %v3697_v4 }
0x1128   :  { %v10017_v28 = vpop.eup %7505  ;;  %7511 = vpow2.f32 %v3727_v1 }
0x1129   :  { %v3672_v35 = vpop.xlane.xlu1 %3671  ;;  %v3766_v61 = vsel %vm860_vm5, %v10017_v28, 0.0 }
0x112a   :  { %v10021_v58 = vpop.eup %7507  ;;  %v3698_v29 = vsub.f32 %v9936_v41, %v3672_v35  ;;  %3767 = vadd.xlane.f32.xlu1 %v3766_v61 }
0x112b   :  { %v3675_v42 = vpop.xlane.xlu0 %3674  ;;  %v3769_v53 = vsel %vm860_vm5, %v10021_v58, 0.0 }
0x112c   :  { %v3729_v50 = vmul.f32 1.442695, %v3698_v29  ;;  %v3699_v47 = vsub.f32 %v9939_v56, %v3675_v42 }
0x112e   :  { %7513 = vpow2.f32 %v3729_v50  ;;  %v3731_v27 = vmul.f32 1.442695, %v3699_v47  ;;  %3770 = vadd.xlane.f32.xlu1 %v3769_v53 }
0x1130   :  { %v10027_v19 = vpop.eup %7509  ;;  %7515 = vpow2.f32 %v3731_v27 }
0x1131   :  { %v3678_v26 = vpop.xlane.xlu1 %3677  ;;  %v3772_v39 = vsel %vm860_vm5, %v10027_v19, 0.0 }
0x1132   :  { %v10031_v15 = vpop.eup %7511  ;;  %v3700_v41 = vsub.f32 %v9946_v20, %v3678_v26  ;;  %3773 = vadd.xlane.f32.xlu0 %v3772_v39 }
0x1133   :  { %v3681_v55 = vpop.xlane.xlu0 %3680  ;;  %v3775_v56 = vsel %vm860_vm5, %v10031_v15, 0.0 }
0x1134   :  { %v3733_v4 = vmul.f32 1.442695, %v3700_v41  ;;  %3776 = vadd.xlane.f32.xlu1 %v3775_v56  ;;  %v3701_v53 = vsub.f32 %v9949_v63, %v3681_v55 }
0x1136   :  { %7517 = vpow2.f32 %v3733_v4  ;;  %v3735_v26 = vmul.f32 1.442695, %v3701_v53 }
0x1137   :  { %v3952_v1 = vpop.permute.xlu0 %3951 }
0x1138   :  { %v10036_v35 = vpop.eup %7513  ;;  %v3973_v61 = vsel %vm1098_vm3, %v3952_v1, 0  ;;  %7519 = vpow2.f32 %v3735_v26 }
0x1139   :  { %6837 = vmatpush3.bf16.msra.mxu0 %v3973_v61  ;;  %v3778_v29 = vsel %vm860_vm5, %v10036_v35, 0.0  ;;  %v3684_v27 = vpop.xlane.xlu1 %3683 }
0x113a   :  { %v10041_v42 = vpop.eup %7515  ;;  %3779 = vadd.xlane.f32.xlu0 %v3778_v29  ;;  %6888 = vmatprep.subr.bf16.mxu0 %v11045_v48  ;;  %v3702_v39 = vsub.f32 %v9956_v14, %v3684_v27 }
0x113b   :  { %v3781_v20 = vsel %vm860_vm5, %v10041_v42, 0.0 }
0x113c   :  { %3782 = vadd.xlane.f32.xlu1 %v3781_v20  ;;  %v3737_v41 = vmul.f32 1.442695, %v3702_v39 }
0x113e   :  { %7521 = vpow2.f32 %v3737_v41  ;;  %v4083_v41 = vsel %vm604_vm2, %v9843_v5, 0 }
0x1140   :  { %v10046_v50 = vpop.eup %7517 }
0x1141   :  { %v3784_v47 = vsel %vm860_vm5, %v10046_v50, 0.0 }
0x1142   :  { %3785 = vadd.xlane.f32.xlu0 %v3784_v47  ;;  %v10056_v56 = vpop.eup %7519 }
0x1143   :  { %v3787_v4 = vsel %vm860_vm5, %v10056_v56, 0.0 }
0x1148   :  { %v10060_v1 = vpop.eup %7521 }
0x1149   :  { %v3790_v63 = vsel %vm860_vm5, %v10060_v1, 0.0 }
0x114d   :  { %4179 = vrot.lane.b32.xlu1 %v9745_v0, %s7699_s25 }
0x1158   :  { %4065 = vrot.lane.b32.xlu0 %v9739_v18, %s7699_s25 }
0x1171   :  { %3788 = vadd.xlane.f32.xlu1 %v3787_v4 }
0x1173   :  { %v3741_v61 = vpop.xlane.xlu0 %3740 }
0x1174   :  { %7523 = vrcp.f32 %v3741_v61 }
0x1175   :  { %v3744_v29 = vpop.xlane.xlu1 %3743 }
0x1176   :  { %7525 = vrcp.f32 %v3744_v29 }
0x1177   :  { %3791 = vadd.xlane.f32.xlu0 %v3790_v63  ;;  %v4086_v63 = vsel %vm604_vm2, %v9962_v24, 0 }
0x117b   :  { %v3747_v14 = vpop.xlane.xlu1 %3746 }
0x117c   :  { %7527 = vrcp.f32 %v3747_v14 }
0x117e   :  { %v7524_v55 = vpop.eup %7523 }
0x117f   :  { %v3750_v20 = vpop.xlane.xlu1 %3749  ;;  %v3811_v53 = vmul.f32 %v7524_v55, %v9972_v22 }
0x1180   :  { %v7526_v47 = vpop.eup %7525  ;;  %7529 = vrcp.f32 %v3750_v20 }
0x1181   :  { %v3812_v27 = vmul.f32 %v7526_v47, %v9976_v11 }
0x1182   :  { %4047 = vrot.lane.b32.xlu1 %v9716_v12, %s7700_s26 }
0x1183   :  { %v3829_v26 = vpack.c.bf16 %v3812_v27, %v3811_v53  ;;  %v3753_v39 = vpop.xlane.xlu0 %3752  ;;  %v4089_v53 = vsel %vm604_vm2, %v9964_v31, 0 }
0x1184   :  { %7531 = vrcp.f32 %v3753_v39 }
0x1185   :  { %v3756_v4 = vpop.xlane.xlu1 %3755  ;;  %6809 = vmatmul.mubr.msk.bf16.vlgmr.msra.gmra.mrb[168].mxu1 %vm860_vm5, %v3829_v26 }
0x1186   :  { %7533 = vrcp.f32 %v3756_v4  ;;  %6859 = vmatpush3.bf16.xpose.msra.mxu1 %v4083_v41  ;;  %4181 = vrot.lane.b32.xlu1 %v9751_v16, %s7699_s25  ;;  %v7528_v22 = vpop.eup %7527 }
0x1187   :  { %6860 = vmatprep.subr.bf16.mxu1 %v11045_v48  ;;  %6812 = vmatprep.mubr.msk.bf16.mxu1 %vm7696_vm1, %v11045_v48  ;;  %v3813_v61 = vmul.f32 %v7528_v22, %v9982_v32 }
0x118a   :  { %v7530_v11 = vpop.eup %7529  ;;  %4049 = vrot.lane.b32.xlu1 %v9722_v37, %s7700_s26 }
0x118b   :  { %v3759_v5 = vpop.xlane.xlu0 %3758  ;;  %v3814_v29 = vmul.f32 %v7530_v11, %v9986_v49 }
0x118c   :  { %7535 = vrcp.f32 %v3759_v5 }
0x118d   :  { %v3762_v14 = vpop.xlane.xlu1 %3761  ;;  %4169 = vrot.lane.b32.xlu0 %v9745_v0, %s7700_s26  ;;  %v3830_v55 = vpack.c.bf16 %v3814_v29, %v3813_v61 }
0x118e   :  { %7537 = vrcp.f32 %v3762_v14  ;;  %6861 = vmatpush3.bf16.xpose.msra.mxu1 %v4086_v63  ;;  %4183 = vrot.lane.b32.xlu1 %v9757_v43, %s7699_s25  ;;  %v7532_v20 = vpop.eup %7531 }
0x118f   :  { %6813 = vmatmul.mubr.msk.bf16.gmra.mrb[172].mxu1 %vm860_vm5, %v3830_v55  ;;  %6862 = vmatprep.subr.bf16.mxu1 %v11045_v48  ;;  %v3815_v47 = vmul.f32 %v7532_v20, %v9992_v23  ;;  %v4092_v23 = vsel %vm604_vm2, %v9966_v7, 0 }
0x1190   :  { %v7534_v32 = vpop.eup %7533  ;;  %6816 = vmatprep.mubr.msk.bf16.mxu1 %vm7696_vm1, %v11045_v48 }
0x1191   :  { %4535 = vrot.lane.b32.xlu0 %v9716_v12, %s7701_s27  ;;  %v3816_v24 = vmul.f32 %v7534_v32, %v9996_v59 }
0x1192   :  { %4051 = vrot.lane.b32.xlu1 %v9728_v62, %s7700_s26 }
0x1193   :  { %v3765_v49 = vpop.xlane.xlu1 %3764  ;;  %v3831_v27 = vpack.c.bf16 %v3816_v24, %v3815_v47 }
0x1194   :  { %7539 = vrcp.f32 %v3765_v49 }
0x1195   :  { %4539 = vrot.lane.b32.xlu0 %v9728_v62, %s7701_s27 }
0x1196   :  { %6863 = vmatpush3.bf16.xpose.msra.mxu1 %v4089_v53  ;;  %4185 = vrot.lane.b32.xlu1 %v9770_v38, %s7699_s25  ;;  %v7536_v12 = vpop.eup %7535 }
0x1197   :  { %6817 = vmatmul.mubr.msk.bf16.gmra.mrb[176].mxu1 %vm860_vm5, %v3831_v27  ;;  %6864 = vmatprep.subr.bf16.mxu1 %v11045_v48  ;;  %v3817_v62 = vmul.f32 %v7536_v12, %v10001_v36 }
0x1198   :  { %v7538_v59 = vpop.eup %7537  ;;  %6820 = vmatprep.mubr.msk.bf16.mxu1 %vm7696_vm1, %v11045_v48 }
0x1199   :  { %4543 = vrot.lane.b32.xlu0 %v9739_v18, %s7701_s27  ;;  %v3818_v31 = vmul.f32 %v7538_v59, %v10005_v6 }
0x119a   :  { %4053 = vrot.lane.b32.xlu1 %v9734_v25, %s7700_s26 }
0x119b   :  { %v3832_v26 = vpack.c.bf16 %v3818_v31, %v3817_v62 }
0x119e   :  { %v7540_v39 = vpop.eup %7539  ;;  %6865 = vmatpush3.bf16.xpose.msra.mxu1 %v4092_v23  ;;  %4187 = vrot.lane.b32.xlu1 %v9774_v30, %s7699_s25  ;;  %s7703_s25 = smov [#allocation2]  }
0x119f   :  { %6821 = vmatmul.mubr.msk.bf16.gmra.mrb[180].mxu1 %vm860_vm5, %v3832_v26  ;;  %6866 = vmatprep.subr.bf16.mxu1 %v11045_v48  ;;  %v3819_v6 = vmul.f32 %v7540_v39, %v10009_v40 }
0x11a0   :  { %6824 = vmatprep.mubr.msk.bf16.mxu1 %vm7696_vm1, %v11045_v48 }
0x11a1   :  { %v3833_v36 = vpack.c.bf16 %v3819_v6, %v3819_v6 }
0x11a2   :  { %4055 = vrot.lane.b32.xlu1 %v9739_v18, %s7700_s26 }
0x11a6   :  { %4537 = vrot.lane.b32.xlu1 %v9722_v37, %s7701_s27 }
0x11a7   :  { %6825 = vmatmul.mubr.msk.bf16.gmra.mrb[184].mxu1 %vm860_vm5, %v3833_v36 }
0x11a8   :  { %6868 = vmatprep.mubr.msk.bf16.mxu1 %vm7696_vm1, %v11045_v48 }
0x11aa   :  { %4541 = vrot.lane.b32.xlu1 %v9734_v25, %s7701_s27 }
0x11ae   :  { %4171 = vrot.lane.b32.xlu1 %v9751_v16, %s7700_s26 }
0x11b2   :  { %4173 = vrot.lane.b32.xlu1 %v9757_v43, %s7700_s26 }
0x11b7   :  { %v3768_v7 = vpop.xlane.xlu1 %3767 }
0x11b8   :  { %7541 = vrcp.f32 %v3768_v7 }
0x11bb   :  { %v3771_v18 = vpop.xlane.xlu1 %3770 }
0x11bc   :  { %7543 = vrcp.f32 %v3771_v18 }
0x11bf   :  { %v3774_v40 = vpop.xlane.xlu0 %3773 }
0x11c0   :  { %7545 = vrcp.f32 %v3774_v40 }
0x11c1   :  { %v3777_v37 = vpop.xlane.xlu1 %3776 }
0x11c2   :  { %7547 = vrcp.f32 %v3777_v37  ;;  %v7542_v41 = vpop.eup %7541 }
0x11c3   :  { %v3820_v22 = vmul.f32 %v7542_v41, %v10017_v28 }
0x11c6   :  { %v7544_v4 = vpop.eup %7543 }
0x11c7   :  { %v3821_v25 = vmul.f32 %v7544_v4, %v10021_v58  ;;  %v3780_v11 = vpop.xlane.xlu0 %3779 }
0x11c8   :  { %7549 = vrcp.f32 %v3780_v11 }
0x11c9   :  { %v3834_v5 = vpack.c.bf16 %v3821_v25, %v3820_v22  ;;  %v3783_v61 = vpop.xlane.xlu1 %3782 }
0x11ca   :  { %7551 = vrcp.f32 %v3783_v61  ;;  %v7546_v29 = vpop.eup %7545 }
0x11cb   :  { %6839 = vmatmul.mubr.msk.bf16.vlgmr.msra.gmra.mrb[212].mxu0 %vm860_vm5, %v3834_v5  ;;  %v3822_v58 = vmul.f32 %v7546_v29, %v10027_v19 }
0x11cc   :  { %v7548_v63 = vpop.eup %7547  ;;  %6842 = vmatprep.mubr.msk.bf16.mxu0 %vm7696_vm1, %v11045_v48 }
0x11cd   :  { %v4180_v14 = vpop.permute.xlu1 %4179  ;;  %v3823_v55 = vmul.f32 %v7548_v63, %v10031_v15 }
0x11ce   :  { %v4205_v20 = vsel %vm604_vm2, %v4180_v14, 0 }
0x11cf   :  { %6889 = vmatpush3.bf16.xpose.msra.mxu0 %v4205_v20  ;;  %v3786_v28 = vpop.xlane.xlu0 %3785  ;;  %v3835_v32 = vpack.c.bf16 %v3823_v55, %v3822_v58 }
0x11d0   :  { %6890 = vmatprep.subr.bf16.mxu0 %v11045_v48  ;;  %7553 = vrcp.f32 %v3786_v28 }
0x11d2   :  { %v7550_v24 = vpop.eup %7549 }
0x11d3   :  { %6843 = vmatmul.mubr.msk.bf16.gmra.mrb[216].mxu0 %vm860_vm5, %v3835_v32  ;;  %v4066_v49 = vpop.permute.xlu0 %4065  ;;  %v3824_v19 = vmul.f32 %v7550_v24, %v10036_v35 }
0x11d4   :  { %v7552_v47 = vpop.eup %7551  ;;  %v4095_v53 = vsel %vm604_vm2, %v4066_v49, 0  ;;  %6846 = vmatprep.mubr.msk.bf16.mxu0 %vm7696_vm1, %v11045_v48 }
0x11d5   :  { %6867 = vmatpush3.bf16.xpose.msra.mxu1 %v4095_v53  ;;  %v3825_v15 = vmul.f32 %v7552_v47, %v10041_v42 }
0x11d6   :  { %6918 = vmatprep.subr.bf16.mxu1 %v11045_v48 }
0x11d7   :  { %v3836_v27 = vpack.c.bf16 %v3825_v15, %v3824_v19 }
0x11da   :  { %v7554_v62 = vpop.eup %7553 }
0x11db   :  { %6847 = vmatmul.mubr.msk.bf16.gmra.mrb[220].mxu0 %vm860_vm5, %v3836_v27  ;;  %v3826_v6 = vmul.f32 %v7554_v62, %v10046_v50 }
0x11dc   :  { %6850 = vmatprep.mubr.msk.bf16.mxu0 %vm7696_vm1, %v11045_v48 }
0x11fe   :  { %v3789_v12 = vpop.xlane.xlu1 %3788 }
0x11ff   :  { %7555 = vrcp.f32 %v3789_v12 }
0x1202   :  { %v4048_v59 = vpop.permute.xlu1 %4047 }
0x1203   :  { %6869 = vmatmul.mubr.msk.bf16.vlgmr.msra.gmra.mrb[188].mxu1 %vm604_vm2, %v4048_v59 }
0x1204   :  { %v3792_v31 = vpop.xlane.xlu0 %3791  ;;  %6872 = vmatprep.mubr.msk.bf16.mxu1 %vm7696_vm1, %v11045_v48 }
0x1205   :  { %7557 = vrcp.f32 %v3792_v31 }
0x1206   :  { %v4182_v42 = vpop.permute.xlu1 %4181 }
0x1207   :  { %v4208_v35 = vsel %vm604_vm2, %v4182_v42, 0 }
0x1208   :  { %6891 = vmatpush3.bf16.xpose.msra.mxu0 %v4208_v35  ;;  %v4170_v23 = vpop.permute.xlu0 %4169 }
0x1209   :  { %v7556_v26 = vpop.eup %7555  ;;  %6892 = vmatprep.subr.bf16.mxu0 %v11045_v48 }
0x120a   :  { %v4050_v39 = vpop.permute.xlu1 %4049  ;;  %v3827_v36 = vmul.f32 %v7556_v26, %v10056_v56 }
0x120b   :  { %6873 = vmatmul.mubr.msk.bf16.gmra.mrb[192].mxu1 %vm604_vm2, %v4050_v39 }
0x120c   :  { %v4536_v7 = vpop.permute.xlu0 %4535  ;;  %v3837_v18 = vpack.c.bf16 %v3827_v36, %v3826_v6  ;;  %6876 = vmatprep.mubr.msk.bf16.mxu1 %vm7696_vm1, %v11045_v48 }
0x120d   :  { %6919 = vmatpush3.bf16.msra.mxu1 %v4536_v7 }
0x120e   :  { %v4184_v40 = vpop.permute.xlu1 %4183  ;;  %6851 = vmatmul.mubr.msk.bf16.gmra.mrb[224].mxu0 %vm860_vm5, %v3837_v18  ;;  %6920 = vmatprep.subr.bf16.mxu1 %v11045_v48 }
0x120f   :  { %v7558_v37 = vpop.eup %7557  ;;  %v4211_v41 = vsel %vm604_vm2, %v4184_v40, 0  ;;  %6854 = vmatprep.mubr.msk.bf16.mxu0 %vm7696_vm1, %v11045_v48 }
0x1210   :  { %6893 = vmatpush3.bf16.xpose.msra.mxu0 %v4211_v41  ;;  %v3828_v50 = vmul.f32 %v7558_v37, %v10060_v1  ;;  %v4540_v63 = vpop.permute.xlu0 %4539 }
0x1211   :  { %6894 = vmatprep.subr.bf16.mxu0 %v11045_v48 }
0x1212   :  { %v4052_v56 = vpop.permute.xlu1 %4051  ;;  %v3838_v4 = vpack.c.bf16 %v3828_v50, %v3828_v50 }
0x1213   :  { %6877 = vmatmul.mubr.msk.bf16.gmra.mrb[196].mxu1 %vm604_vm2, %v4052_v56 }
0x1214   :  { %6880 = vmatprep.mubr.msk.bf16.mxu1 %vm7696_vm1, %v11045_v48  ;;  %v4544_v20 = vpop.permute.xlu0 %4543 }
0x1215   :  { %v4565_v28 = vsel %vm1098_vm3, %v4544_v20, 0 }
0x1216   :  { %v4186_v22 = vpop.permute.xlu1 %4185  ;;  %6855 = vmatmul.mubr.msk.bf16.gmra.mrb[228].mxu0 %vm860_vm5, %v3838_v4 }
0x1217   :  { %v4214_v25 = vsel %vm604_vm2, %v4186_v22, 0  ;;  %6898 = vmatprep.mubr.msk.bf16.mxu0 %vm7696_vm1, %v11045_v48 }
0x1218   :  { %6895 = vmatpush3.bf16.xpose.msra.mxu0 %v4214_v25 }
0x1219   :  { %6896 = vmatprep.subr.bf16.mxu0 %v11045_v48 }
0x121a   :  { %v4054_v1 = vpop.permute.xlu1 %4053 }
0x121b   :  { %6881 = vmatmul.mubr.msk.bf16.gmra.mrb[200].mxu1 %vm604_vm2, %v4054_v1 }
0x121c   :  { %6884 = vmatprep.mubr.msk.bf16.mxu1 %vm7696_vm1, %v11045_v48 }
0x121e   :  { %v4188_v11 = vpop.permute.xlu1 %4187 }
0x121f   :  { %v4217_v5 = vsel %vm604_vm2, %v4188_v11, 0 }
0x1220   :  { %6897 = vmatpush3.bf16.xpose.msra.mxu0 %v4217_v5 }
0x1221   :  { %6948 = vmatprep.subr.bf16.mxu0 %v11045_v48 }
0x1222   :  { %v4056_v61 = vpop.permute.xlu1 %4055 }
0x1223   :  { %6885 = vmatmul.mubr.msk.bf16.gmra.mrb[204].mxu1 %vm604_vm2, %v4056_v61 }
0x1224   :  { %6928 = vmatprep.mubr.msk.bf16.mxu1 %vm7696_vm1, %v11045_v48 }
0x1226   :  { %v4538_v29 = vpop.permute.xlu1 %4537 }
0x1227   :  { %6899 = vmatmul.mubr.msk.bf16.vlgmr.msra.gmra.mrb[232].mxu0 %vm604_vm2, %v4170_v23  ;;  %6921 = vmatpush3.bf16.msra.mxu1 %v4538_v29 }
0x1228   :  { %6922 = vmatprep.subr.bf16.mxu1 %v11045_v48  ;;  %6902 = vmatprep.mubr.msk.bf16.mxu0 %vm7696_vm1, %v11045_v48 }
0x122a   :  { %v4542_v14 = vpop.permute.xlu1 %4541 }
0x122b   :  { %6923 = vmatpush3.bf16.msra.mxu1 %v4540_v63 }
0x122c   :  { %6924 = vmatprep.subr.bf16.mxu1 %v11045_v48 }
0x122e   :  { %v4172_v55 = vpop.permute.xlu1 %4171 }
0x122f   :  { %6903 = vmatmul.mubr.msk.bf16.gmra.mrb[236].mxu0 %vm604_vm2, %v4172_v55  ;;  %6925 = vmatpush3.bf16.msra.mxu1 %v4542_v14 }
0x1230   :  { %6926 = vmatprep.subr.bf16.mxu1 %v11045_v48  ;;  %6906 = vmatprep.mubr.msk.bf16.mxu0 %vm7696_vm1, %v11045_v48 }
0x1232   :  { %v4174_v58 = vpop.permute.xlu1 %4173 }
0x1233   :  { %6927 = vmatpush3.bf16.msra.mxu1 %v4565_v28 }
0x1234   :  { %6978 = vmatprep.subr.bf16.mxu1 %v11045_v48 }
0x1237   :  { %6907 = vmatmul.mubr.msk.bf16.gmra.mrb[240].mxu0 %vm604_vm2, %v4174_v58 }
0x1238   :  { %6910 = vmatprep.mubr.msk.bf16.mxu0 %vm7696_vm1, %v11045_v48 }
0x1258   :  { %v10200_v32 = vpop.f32.mrb[168].mxu1 }
0x1259   :  { %v6810_v24 = vpop.f32.mrb[169].mxu1 }
0x125a   :  { %v10202_v49 = vpop.f32.mrb[170].mxu1 }
0x125b   :  { %v6811_v47 = vpop.f32.mrb[171].mxu1 }
0x1262   :  { %v10204_v53 = vpop.f32.mrb[172].mxu1 }
0x1263   :  { %v6814_v15 = vpop.f32.mrb[173].mxu1 }
0x1264   :  { %v10206_v19 = vpop.f32.mrb[174].mxu1 }
0x1265   :  { %v6815_v27 = vpop.f32.mrb[175].mxu1 }
0x126a   :  { %v10208_v12 = vpop.f32.mrb[176].mxu1 }
0x126b   :  { %v6818_v59 = vpop.f32.mrb[177].mxu1 }
0x126c   :  { %v10210_v31 = vpop.f32.mrb[178].mxu1 }
0x126d   :  { %v6819_v42 = vpop.f32.mrb[179].mxu1 }
0x1272   :  { %v10212_v62 = vpop.f32.mrb[180].mxu1 }
0x1273   :  { %v6822_v35 = vpop.f32.mrb[181].mxu1 }
0x1274   :  { %v10214_v23 = vpop.f32.mrb[182].mxu1 }
0x1275   :  { %v6823_v26 = vpop.f32.mrb[183].mxu1 }
0x127a   :  { %v10216_v39 = vpop.f32.mrb[184].mxu1 }
0x127b   :  { %v6826_v6 = vpop.f32.mrb[185].mxu1 }
0x127c   :  { %v3940_v36 = vpop.f32.mrb[186].mxu1 }
0x127d   :  { %v6827_v7 = vpop.f32.mrb[187].mxu1 }
0x129e   :  { %v10218_v18 = vpop.f32.mrb[212].mxu0 }
0x129f   :  { %v6840_v40 = vpop.f32.mrb[213].mxu0 }
0x12a0   :  { %v10220_v37 = vpop.f32.mrb[214].mxu0 }
0x12a1   :  { %v6841_v41 = vpop.f32.mrb[215].mxu0 }
0x12a6   :  { %v10222_v50 = vpop.f32.mrb[216].mxu0 }
0x12a7   :  { %v6844_v56 = vpop.f32.mrb[217].mxu0 }
0x12a8   :  { %v10224_v4 = vpop.f32.mrb[218].mxu0 }
0x12a9   :  { %v6845_v22 = vpop.f32.mrb[219].mxu0 }
0x12ae   :  { %v10226_v25 = vpop.f32.mrb[220].mxu0 }
0x12af   :  { %v6848_v1 = vpop.f32.mrb[221].mxu0 }
0x12b0   :  { %v10228_v11 = vpop.f32.mrb[222].mxu0 }
0x12b1   :  { %11064 = vst [vmem:[#allocation14_spill] sm:$0xff] %v10228_v11  ;;  %v6849_v5 = vpop.f32.mrb[223].mxu0 }
0x12d6   :  { %v4131_v61 = vpop.f32.mrb[188].mxu1 }
0x12d7   :  { %v4291_v29 = vmul.f32 0.25, %v4131_v61  ;;  %v6870_v63 = vpop.f32.mrb[189].mxu1 }
0x12d8   :  { %v4134_v14 = vpop.f32.mrb[190].mxu1 }
0x12d9   :  { %v10231_v55 = vadd.f32 %v4291_v29, %v11063_v51  ;;  %v4292_v20 = vmul.f32 0.25, %v4134_v14  ;;  %v6871_v28 = vpop.f32.mrb[191].mxu1 }
0x12db   :  { %v10234_v58 = vadd.f32 %v4292_v20, %v11063_v51  ;;  %v4327_v24 = vsel %vm860_vm5, %v10231_v55, -inf }
0x12dc   :  { %4328 = vmax.xlane.f32.xlu1 %v4327_v24 }
0x12dd   :  { %v4330_v47 = vsel %vm860_vm5, %v10234_v58, -inf }
0x12de   :  { %4331 = vmax.xlane.f32.xlu0 %v4330_v47  ;;  %v4139_v15 = vpop.f32.mrb[192].mxu1 }
0x12df   :  { %v4293_v27 = vmul.f32 0.25, %v4139_v15  ;;  %v6874_v59 = vpop.f32.mrb[193].mxu1 }
0x12e0   :  { %v4142_v42 = vpop.f32.mrb[194].mxu1 }
0x12e1   :  { %v10241_v35 = vadd.f32 %v4293_v27, %v11063_v51  ;;  %v4294_v26 = vmul.f32 0.25, %v4142_v42  ;;  %v10243_v6 = vpop.f32.mrb[224].mxu0  ;;  %v6875_v36 = vpop.f32.mrb[195].mxu1 }
0x12e2   :  { %11065 = vst [vmem:[#allocation16_spill] sm:$0xff] %v10243_v6  ;;  %v6852_v7 = vpop.f32.mrb[225].mxu0 }
0x12e3   :  { %v10246_v40 = vadd.f32 %v4294_v26, %v11063_v51  ;;  %v10248_v41 = vpop.f32.mrb[226].mxu0  ;;  %v4333_v56 = vsel %vm860_vm5, %v10241_v35, -inf }
0x12e4   :  { %v6853_v22 = vpop.f32.mrb[227].mxu0  ;;  %4334 = vmax.xlane.f32.xlu1 %v4333_v56 }
0x12e5   :  { %v4336_v29 = vsel %vm860_vm5, %v10246_v40, -inf }
0x12e6   :  { %v4147_v1 = vpop.f32.mrb[196].mxu1 }
0x12e7   :  { %v4295_v5 = vmul.f32 0.25, %v4147_v1  ;;  %v6878_v61 = vpop.f32.mrb[197].mxu1 }
0x12e8   :  { %4337 = vmax.xlane.f32.xlu1 %v4336_v29  ;;  %v4150_v63 = vpop.f32.mrb[198].mxu1 }
0x12e9   :  { %v10255_v14 = vadd.f32 %v4295_v5, %v11063_v51  ;;  %v4296_v20 = vmul.f32 0.25, %v4150_v63  ;;  %v10257_v28 = vpop.f32.mrb[228].mxu0  ;;  %v6879_v24 = vpop.f32.mrb[199].mxu1 }
0x12ea   :  { %v6856_v47 = vpop.f32.mrb[229].mxu0 }
0x12eb   :  { %v10260_v15 = vadd.f32 %v4296_v20, %v11063_v51  ;;  %v4044_v27 = vpop.f32.mrb[230].mxu0  ;;  %v4339_v59 = vsel %vm860_vm5, %v10255_v14, -inf }
0x12ec   :  { %v6857_v42 = vpop.f32.mrb[231].mxu0  ;;  %4340 = vmax.xlane.f32.xlu1 %v4339_v59 }
0x12ed   :  { %v4342_v26 = vsel %vm860_vm5, %v10260_v15, -inf }
0x12ee   :  { %4343 = vmax.xlane.f32.xlu0 %v4342_v26  ;;  %v4155_v36 = vpop.f32.mrb[200].mxu1 }
0x12ef   :  { %v4297_v7 = vmul.f32 0.25, %v4155_v36  ;;  %v6882_v56 = vpop.f32.mrb[201].mxu1 }
0x12f0   :  { %v4158_v22 = vpop.f32.mrb[202].mxu1 }
0x12f1   :  { %v10267_v1 = vadd.f32 %v4297_v7, %v11063_v51  ;;  %v4298_v5 = vmul.f32 0.25, %v4158_v22  ;;  %v6883_v61 = vpop.f32.mrb[203].mxu1 }
0x12f3   :  { %v10270_v29 = vadd.f32 %v4298_v5, %v11063_v51  ;;  %v4345_v63 = vsel %vm860_vm5, %v10267_v1, -inf }
0x12f4   :  { %4346 = vmax.xlane.f32.xlu1 %v4345_v63 }
0x12f5   :  { %v4348_v20 = vsel %vm860_vm5, %v10270_v29, -inf }
0x12f6   :  { %4349 = vmax.xlane.f32.xlu0 %v4348_v20  ;;  %v4163_v24 = vpop.f32.mrb[204].mxu1 }
0x12f7   :  { %v4299_v47 = vmul.f32 0.25, %v4163_v24  ;;  %v6886_v27 = vpop.f32.mrb[205].mxu1 }
0x12f8   :  { %v4166_v59 = vpop.f32.mrb[206].mxu1 }
0x12f9   :  { %v10277_v42 = vadd.f32 %v4299_v47, %v11063_v51  ;;  %v6887_v26 = vpop.f32.mrb[207].mxu1 }
0x12fa   :  { %v4253_v36 = vpop.f32.mrb[232].mxu0 }
0x12fb   :  { %v4300_v7 = vmul.f32 0.25, %v4253_v36  ;;  %v6900_v56 = vpop.f32.mrb[233].mxu0  ;;  %v4351_v22 = vsel %vm860_vm5, %v10277_v42, -inf }
0x12fc   :  { %v4256_v5 = vpop.f32.mrb[234].mxu0  ;;  %4352 = vmax.xlane.f32.xlu1 %v4351_v22 }
0x12fd   :  { %v10282_v61 = vadd.f32 %v4300_v7, %v11063_v51  ;;  %v6901_v63 = vpop.f32.mrb[235].mxu0  ;;  %v4301_v7 = vmul.f32 0.25, %v4256_v5 }
0x12ff   :  { %v4354_v20 = vsel %vm860_vm5, %v10282_v61, -inf  ;;  %v10299_v63 = vadd.f32 %v4301_v7, %v11063_v51 }
0x1300   :  { %4355 = vmax.xlane.f32.xlu0 %v4354_v20 }
0x1301   :  { %v4357_v20 = vsel %vm860_vm5, %v10299_v63, -inf }
0x1302   :  { %v10286_v24 = vpop.f32.mrb[236].mxu0 }
0x1303   :  { %v6904_v47 = vpop.f32.mrb[237].mxu0 }
0x1304   :  { %v10288_v27 = vpop.f32.mrb[238].mxu0 }
0x1305   :  { %v6905_v59 = vpop.f32.mrb[239].mxu0 }
0x130a   :  { %v10290_v26 = vpop.f32.mrb[240].mxu0 }
0x130b   :  { %v6908_v36 = vpop.f32.mrb[241].mxu0 }
0x130c   :  { %v10292_v56 = vpop.f32.mrb[242].mxu0 }
0x130d   :  { %v6909_v22 = vpop.f32.mrb[243].mxu0  ;;  %4175 = vrot.lane.b32.xlu1 %v9770_v38, %s7700_s26 }
0x1316   :  { %4639 = vrot.lane.b32.xlu0 %v9745_v0, %s7701_s27 }
0x1331   :  { %4358 = vmax.xlane.f32.xlu1 %v4357_v20 }
0x1342   :  { %4641 = vrot.lane.b32.xlu1 %v9751_v16, %s7701_s27 }
0x1369   :  { %v4329_v47 = vpop.xlane.xlu1 %4328 }
0x136a   :  { %v4381_v59 = vsub.f32 %v10231_v55, %v4329_v47 }
0x136b   :  { %v4332_v36 = vpop.xlane.xlu0 %4331 }
0x136c   :  { %v4399_v22 = vmul.f32 1.442695, %v4381_v59  ;;  %v4382_v34 = vsub.f32 %v10234_v58, %v4332_v36 }
0x136e   :  { %7559 = vpow2.f32 %v4399_v22  ;;  %v4401_v0 = vmul.f32 1.442695, %v4382_v34 }
0x1370   :  { %7561 = vpow2.f32 %v4401_v0 }
0x1371   :  { %v4335_v5 = vpop.xlane.xlu1 %4334 }
0x1372   :  { %v4383_v7 = vsub.f32 %v10241_v35, %v4335_v5 }
0x1374   :  { %v4403_v2 = vmul.f32 1.442695, %v4383_v7 }
0x1375   :  { %v4338_v55 = vpop.xlane.xlu1 %4337 }
0x1376   :  { %7563 = vpow2.f32 %v4403_v2 }
0x1378   :  { %v10308_v33 = vpop.eup %7559 }
0x1379   :  { %v4435_v16 = vsel %vm860_vm5, %v10308_v33, 0.0  ;;  %v4341_v47 = vpop.xlane.xlu1 %4340 }
0x137a   :  { %v10312_v20 = vpop.eup %7561  ;;  %4436 = vadd.xlane.f32.xlu0 %v4435_v16  ;;  %v4384_v16 = vsub.f32 %v10246_v40, %v4338_v55 }
0x137b   :  { %v4438_v58 = vsel %vm860_vm5, %v10312_v20, 0.0  ;;  %v4344_v2 = vpop.xlane.xlu0 %4343 }
0x137c   :  { %4439 = vadd.xlane.f32.xlu1 %v4438_v58  ;;  %v4405_v58 = vmul.f32 1.442695, %v4384_v16 }
0x137e   :  { %7565 = vpow2.f32 %v4405_v58 }
0x1380   :  { %v10316_v34 = vpop.eup %7563 }
0x1381   :  { %v4441_v35 = vsel %vm860_vm5, %v10316_v34, 0.0  ;;  %v4347_v59 = vpop.xlane.xlu1 %4346 }
0x1382   :  { %4442 = vadd.xlane.f32.xlu0 %v4441_v35  ;;  %v4385_v35 = vsub.f32 %v10255_v14, %v4341_v47 }
0x1383   :  { %v4350_v36 = vpop.xlane.xlu0 %4349 }
0x1384   :  { %v4407_v8 = vmul.f32 1.442695, %v4385_v35  ;;  %v4388_v9 = vsub.f32 %v10270_v29, %v4350_v36 }
0x1386   :  { %7567 = vpow2.f32 %v4407_v8  ;;  %v4413_v6 = vmul.f32 1.442695, %v4388_v9 }
0x1388   :  { %v10335_v14 = vpop.eup %7565 }
0x1389   :  { %v4353_v22 = vpop.xlane.xlu1 %4352 }
0x138a   :  { %v4389_v11 = vsub.f32 %v10277_v42, %v4353_v22 }
0x138c   :  { %v4415_v55 = vmul.f32 1.442695, %v4389_v11 }
0x138d   :  { %v4356_v0 = vpop.xlane.xlu0 %4355  ;;  %4643 = vrot.lane.b32.xlu1 %v9757_v43, %s7701_s27  ;;  %v4176_v5 = vpop.permute.xlu1 %4175  ;;  %v4386_v43 = vsub.f32 %v10260_v15, %v4344_v2 }
0x138e   :  { %6911 = vmatmul.mubr.msk.bf16.gmra.mrb[244].mxu0 %vm604_vm2, %v4176_v5  ;;  %v4387_v5 = vsub.f32 %v10267_v1, %v4347_v59  ;;  %v4390_v40 = vsub.f32 %v10282_v61, %v4356_v0  ;;  %v4444_v1 = vsel %vm860_vm5, %v10335_v14, 0.0 }
0x138f   :  { %6914 = vmatprep.mubr.msk.bf16.mxu0 %vm7696_vm1, %v11045_v48  ;;  %v4409_v54 = vmul.f32 1.442695, %v4386_v43 }
0x1390   :  { %v4417_v15 = vmul.f32 1.442695, %v4390_v40  ;;  %v10339_v47 = vpop.eup %7567 }
0x1391   :  { %v4640_v7 = vpop.permute.xlu0 %4639  ;;  %7569 = vpow2.f32 %v4409_v54  ;;  %v4447_v9 = vsel %vm860_vm5, %v10339_v47, 0.0 }
0x1392   :  { %6949 = vmatpush3.bf16.msra.mxu0 %v4640_v7  ;;  %v4411_v7 = vmul.f32 1.442695, %v4387_v5 }
0x1393   :  { %6950 = vmatprep.subr.bf16.mxu0 %v11045_v48 }
0x1394   :  { %7571 = vpow2.f32 %v4411_v7 }
0x1395   :  { %7573 = vpow2.f32 %v4413_v6 }
0x1396   :  { %7575 = vpow2.f32 %v4415_v55 }
0x1397   :  { %7577 = vpow2.f32 %v4417_v15 }
0x1398   :  { %4177 = vrot.lane.b32.xlu0 %v9774_v30, %s7700_s26 }
0x139b   :  { %v10341_v8 = vpop.eup %7569 }
0x139c   :  { %v4450_v11 = vsel %vm860_vm5, %v10341_v8, 0.0 }
0x139e   :  { %v10345_v54 = vpop.eup %7571 }
0x139f   :  { %v10349_v6 = vpop.eup %7573  ;;  %v4453_v29 = vsel %vm860_vm5, %v10345_v54, 0.0 }
0x13a0   :  { %v10353_v42 = vpop.eup %7575  ;;  %v4456_v61 = vsel %vm860_vm5, %v10349_v6, 0.0 }
0x13a1   :  { %v10357_v2 = vpop.eup %7577  ;;  %v4459_v59 = vsel %vm860_vm5, %v10353_v42, 0.0 }
0x13a2   :  { %v4462_v22 = vsel %vm860_vm5, %v10357_v2, 0.0 }
0x13b1   :  { %4445 = vadd.xlane.f32.xlu1 %v4444_v1 }
0x13b5   :  { %4448 = vadd.xlane.f32.xlu1 %v4447_v9 }
0x13b7   :  { %4451 = vadd.xlane.f32.xlu0 %v4450_v11 }
0x13b9   :  { %4454 = vadd.xlane.f32.xlu1 %v4453_v29 }
0x13bb   :  { %4457 = vadd.xlane.f32.xlu0 %v4456_v61 }
0x13bd   :  { %4460 = vadd.xlane.f32.xlu1 %v4459_v59 }
0x13be   :  { %v4359_v36 = vpop.xlane.xlu1 %4358 }
0x13bf   :  { %v4391_v0 = vsub.f32 %v10299_v63, %v4359_v36  ;;  %4463 = vadd.xlane.f32.xlu0 %v4462_v22 }
0x13c1   :  { %v4419_v16 = vmul.f32 1.442695, %v4391_v0 }
0x13c2   :  { %v4642_v58 = vpop.permute.xlu1 %4641 }
0x13c3   :  { %7579 = vpow2.f32 %v4419_v16  ;;  %6951 = vmatpush3.bf16.msra.mxu0 %v4642_v58 }
0x13c4   :  { %6952 = vmatprep.subr.bf16.mxu0 %v11045_v48 }
0x13cd   :  { %v10365_v35 = vpop.eup %7579 }
0x13ce   :  { %4645 = vrot.lane.b32.xlu1 %v9770_v38, %s7701_s27  ;;  %v4465_v43 = vsel %vm860_vm5, %v10365_v35, 0.0 }
0x13cf   :  { %4466 = vadd.xlane.f32.xlu0 %v4465_v43 }
0x13e5   :  { %4647 = vrot.lane.b32.xlu0 %v9774_v30, %s7701_s27 }
0x1407   :  { %v4437_v63 = vpop.xlane.xlu0 %4436 }
0x1408   :  { %7581 = vrcp.f32 %v4437_v63 }
0x1409   :  { %v4440_v5 = vpop.xlane.xlu1 %4439 }
0x140a   :  { %7583 = vrcp.f32 %v4440_v5 }
0x140d   :  { %v4644_v7 = vpop.permute.xlu1 %4643 }
0x140e   :  { %6953 = vmatpush3.bf16.msra.mxu0 %v4644_v7 }
0x140f   :  { %v4443_v40 = vpop.xlane.xlu0 %4442  ;;  %6954 = vmatprep.subr.bf16.mxu0 %v11045_v48 }
0x1410   :  { %7585 = vrcp.f32 %v4443_v40 }
0x1412   :  { %v7582_v55 = vpop.eup %7581 }
0x1413   :  { %v4178_v15 = vpop.permute.xlu0 %4177  ;;  %v4507_v38 = vmul.f32 %v7582_v55, %v10308_v33 }
0x1414   :  { %v7584_v1 = vpop.eup %7583  ;;  %6915 = vmatmul.mubr.msk.bf16.gmra.mrb[248].mxu0 %vm604_vm2, %v4178_v15 }
0x1415   :  { %v4508_v9 = vmul.f32 %v7584_v1, %v10312_v20  ;;  %6958 = vmatprep.mubr.msk.bf16.mxu0 %vm7696_vm1, %v11045_v48 }
0x1417   :  { %v4525_v30 = vpack.c.bf16 %v4508_v9, %v4507_v38 }
0x1419   :  { %6929 = vmatmul.mubr.msk.bf16.vlgmr.msra.gmra.mrb[208].mxu1 %vm860_vm5, %v4525_v30 }
0x141a   :  { %6932 = vmatprep.mubr.msk.bf16.mxu1 %vm7696_vm1, %v11045_v48  ;;  %v7586_v33 = vpop.eup %7585 }
0x141b   :  { %v4509_v0 = vmul.f32 %v7586_v33, %v10316_v34 }
0x143e   :  { %v4446_v11 = vpop.xlane.xlu1 %4445 }
0x143f   :  { %7587 = vrcp.f32 %v4446_v11 }
0x1442   :  { %v4449_v29 = vpop.xlane.xlu1 %4448 }
0x1443   :  { %7589 = vrcp.f32 %v4449_v29 }
0x1444   :  { %v4452_v61 = vpop.xlane.xlu0 %4451 }
0x1445   :  { %7591 = vrcp.f32 %v4452_v61 }
0x1446   :  { %v4455_v59 = vpop.xlane.xlu1 %4454 }
0x1448   :  { %v4458_v36 = vpop.xlane.xlu0 %4457 }
0x1449   :  { %v7588_v20 = vpop.eup %7587  ;;  %7593 = vrcp.f32 %v4458_v36 }
0x144a   :  { %v4461_v22 = vpop.xlane.xlu1 %4460  ;;  %v4510_v16 = vmul.f32 %v7588_v20, %v10335_v14  ;;  %7595 = vrcp.f32 %v4455_v59 }
0x144b   :  { %7597 = vrcp.f32 %v4461_v22 }
0x144c   :  { %v4526_v58 = vpack.c.bf16 %v4510_v16, %v4509_v0  ;;  %v4464_v15 = vpop.xlane.xlu0 %4463  ;;  %v7225_v16 = vld [vmem:[%s10997_s5 + $0x10] sm:$0xff]  }
0x144d   :  { %v7590_v43 = vpop.eup %7589  ;;  %7599 = vrcp.f32 %v4464_v15  ;;  %6979 = vmatpush3.bf16.msra.mxu1 %v7225_v16 }
0x144e   :  { %6933 = vmatmul.mubr.msk.bf16.gmra.mrb[212].mxu1 %vm860_vm5, %v4526_v58  ;;  %v4646_v63 = vpop.permute.xlu1 %4645  ;;  %v4511_v34 = vmul.f32 %v7590_v43, %v10339_v47  ;;  %6980 = vmatprep.subr.bf16.mxu1 %v11045_v48  ;;  %v7226_v58 = vld [vmem:[%s10997_s5 + $0x18] sm:$0xff]   ;;  %s5778_s5 = sshll.u32 %s7703_s25, 4  ;;  %s5779_s5 = int_to_ptr.vmem [resolvable:$true] %s5778_s5 }
0x144f   :  { %v7592_v5 = vpop.eup %7591  ;;  %6955 = vmatpush3.bf16.msra.mxu0 %v4646_v63  ;;  %6936 = vmatprep.mubr.msk.bf16.mxu1 %vm7696_vm1, %v11045_v48  ;;  %s7671_s26 = scalar_lea.vmem %s5779_s5, 32  ;;  %p7676_p1 = scmp.lt.s32.totalorder %s5779_s5, %s5779_s5 }
0x1450   :  { %v4512_v7 = vmul.f32 %v7592_v5, %v10341_v8  ;;  %6956 = vmatprep.subr.bf16.mxu0 %v11045_v48  ;;  %p7672_p0 = scmp.ne.s32.totalorder %s5779_s5, %s7671_s26  ;;  %p7677_p2 = scmp.lt.s32.totalorder %s7671_s26, %s7671_s26 }
0x1451   :  { %6981 = vmatpush3.bf16.msra.mxu1 %v7226_v58 }
0x1452   :  { %v4527_v14 = vpack.c.bf16 %v4512_v7, %v4511_v34  ;;  %7058 = vmatprep.subr.bf16.mxu1 %v11045_v48  ;;  %p7678_p3 = por %p7677_p2, %p7676_p1 }
0x1453   :  { %v7594_v40 = vpop.eup %7593 }
0x1454   :  { %v7596_v55 = vpop.eup %7595  ;;  %v4514_v1 = vmul.f32 %v7594_v40, %v10349_v6  ;;  %p7679_p4 = pnand %p7678_p3, %p7672_p0 }
0x1455   :  { %v4513_v38 = vmul.f32 %v7596_v55, %v10345_v54  ;;  %v7598_v30 = vpop.eup %7597 }
0x1456   :  { %6937 = vmatmul.mubr.msk.bf16.gmra.mrb[216].mxu1 %vm860_vm5, %v4527_v14  ;;  %v4515_v11 = vmul.f32 %v7598_v30, %v10353_v42 }
0x1457   :  { %6940 = vmatprep.mubr.msk.bf16.mxu1 %vm7696_vm1, %v11045_v48  ;;  %v4528_v9 = vpack.c.bf16 %v4514_v1, %v4513_v38  ;;  %v7600_v36 = vpop.eup %7599 }
0x1458   :  { %v4529_v33 = vpack.c.bf16 %v4515_v11, %v4515_v11  ;;  %v4516_v42 = vmul.f32 %v7600_v36, %v10357_v2 }
0x145c   :  { %v4467_v8 = vpop.xlane.xlu0 %4466 }
0x145d   :  { %7601 = vrcp.f32 %v4467_v8 }
0x145e   :  { %6941 = vmatmul.mubr.msk.bf16.gmra.mrb[220].mxu1 %vm860_vm5, %v4528_v9 }
0x145f   :  { %6944 = vmatprep.mubr.msk.bf16.mxu1 %vm7696_vm1, %v11045_v48 }
0x1460   :  { %v4648_v47 = vpop.permute.xlu0 %4647 }
0x1461   :  { %v4669_v29 = vsel %vm1098_vm3, %v4648_v47, 0  ;;  %v10400_v61 = vpop.f32.mrb[244].mxu0 }
0x1462   :  { %v6912_v6 = vpop.f32.mrb[245].mxu0  ;;  %6957 = vmatpush3.bf16.msra.mxu0 %v4669_v29 }
0x1463   :  { %v10402_v54 = vpop.f32.mrb[246].mxu0  ;;  %7018 = vmatprep.subr.bf16.mxu0 %v11045_v48 }
0x1464   :  { %v6913_v59 = vpop.f32.mrb[247].mxu0 }
0x1466   :  { %6945 = vmatmul.mubr.msk.bf16.gmra.mrb[224].mxu1 %vm860_vm5, %v4529_v33 }
0x1467   :  { %v7602_v20 = vpop.eup %7601  ;;  %6982 = vmatprep.mubr.msk.bf16.mxu1 %vm7696_vm1, %v11045_v48 }
0x1468   :  { %v4517_v22 = vmul.f32 %v7602_v20, %v10365_v35 }
0x146a   :  { %v4530_v0 = vpack.c.bf16 %v4517_v22, %v4516_v42 }
0x146c   :  { %6959 = vmatmul.mubr.msk.bf16.vlgmr.msra.gmra.mrb[252].mxu0 %vm860_vm5, %v4530_v0 }
0x146d   :  { %6962 = vmatprep.mubr.msk.bf16.mxu0 %vm7696_vm1, %v11045_v48 }
0x14e7   :  { %v4285_v2 = vpop.f32.mrb[248].mxu0 }
0x14e8   :  { %v6916_v43 = vpop.f32.mrb[249].mxu0 }
0x14e9   :  { %v4288_v35 = vpop.f32.mrb[250].mxu0 }
0x14ea   :  { %v6917_v63 = vpop.f32.mrb[251].mxu0 }
0x14ec   :  { %v4601_v5 = vpop.f32.mrb[208].mxu1 }
0x14ed   :  { %v6930_v7 = vpop.f32.mrb[209].mxu1 }
0x14ee   :  { %v4604_v34 = vpop.f32.mrb[210].mxu1  ;;  %v4302_v7 = vmul.f32 0.25, %v10286_v24 }
0x14ef   :  { %v7168_v14 = vpack.i.bf16 %v4604_v34, %v4601_v5  ;;  %v6931_v40 = vpop.f32.mrb[211].mxu1  ;;  %v4303_v34 = vmul.f32 0.25, %v10288_v27 }
0x14f0   :  { %v4304_v40 = vmul.f32 0.25, %v10290_v26 }
0x14f1   :  { %7169 = vrot.lane.b32.xlu1 %v7168_v14, %s7702_s15  ;;  %v4320_v14 = vadd.f32 %v4302_v7, %v11063_v51 }
0x1521   :  { %v4609_v55 = vpop.f32.mrb[212].mxu1 }
0x1522   :  { %v6934_v15 = vpop.f32.mrb[213].mxu1 }
0x1523   :  { %v4612_v1 = vpop.f32.mrb[214].mxu1  ;;  %v10435_v15 = vadd.f32 %v4304_v40, %v11063_v51 }
0x1524   :  { %v7173_v38 = vpack.i.bf16 %v4612_v1, %v4609_v55  ;;  %v6935_v8 = vpop.f32.mrb[215].mxu1  ;;  %v10432_v55 = vadd.f32 %v4303_v34, %v11063_v51  ;;  %v4305_v1 = vmul.f32 0.25, %v10292_v56  ;;  %v4307_v56 = vmul.f32 0.25, %v10402_v54 }
0x1525   :  { %v4306_v8 = vmul.f32 0.25, %v10400_v61  ;;  %v4366_v26 = vsel %vm860_vm5, %v10435_v15, -inf }
0x1526   :  { %7174 = vrot.lane.b32.xlu0 %v7173_v38, %s7702_s15  ;;  %v4360_v38 = vsel %vm860_vm5, %v4320_v14, -inf  ;;  %v4363_v24 = vsel %vm860_vm5, %v10432_v55, -inf  ;;  %v10442_v27 = vadd.f32 %v4305_v1, %v11063_v51 }
0x1529   :  { %v4617_v9 = vpop.f32.mrb[216].mxu1 }
0x152a   :  { %v6938_v30 = vpop.f32.mrb[217].mxu1 }
0x152b   :  { %v4620_v47 = vpop.f32.mrb[218].mxu1  ;;  %v4369_v30 = vsel %vm860_vm5, %v10442_v27, -inf }
0x152c   :  { %v7178_v11 = vpack.i.bf16 %v4620_v47, %v4617_v9  ;;  %v6939_v29 = vpop.f32.mrb[219].mxu1  ;;  %v10448_v9 = vadd.f32 %v4306_v8, %v11063_v51  ;;  %v10454_v47 = vadd.f32 %v4307_v56, %v11063_v51 }
0x152e   :  { %7179 = vrot.lane.b32.xlu1 %v7178_v11, %s7702_s15  ;;  %v4308_v11 = vmul.f32 0.25, %v4285_v2  ;;  %v4372_v61 = vsel %vm860_vm5, %v10448_v9, -inf }
0x1530   :  { %v10459_v29 = vadd.f32 %v4308_v11, %v11063_v51 }
0x1531   :  { %v4625_v6 = vpop.f32.mrb[220].mxu1 }
0x1532   :  { %v6942_v59 = vpop.f32.mrb[221].mxu1 }
0x1533   :  { %v4628_v33 = vpop.f32.mrb[222].mxu1 }
0x1534   :  { %v7183_v36 = vpack.i.bf16 %v4628_v33, %v4625_v6  ;;  %v6943_v20 = vpop.f32.mrb[223].mxu1  ;;  %v4375_v6 = vsel %vm860_vm5, %v10454_v47, -inf }
0x1536   :  { %7184 = vrot.lane.b32.xlu0 %v7183_v36, %s7702_s15  ;;  %v4378_v36 = vsel %vm860_vm5, %v10459_v29, -inf }
0x1539   :  { %v4633_v42 = vpop.f32.mrb[224].mxu1 }
0x153a   :  { %v6946_v22 = vpop.f32.mrb[225].mxu1 }
0x153b   :  { %v4636_v0 = vpop.f32.mrb[226].mxu1 }
0x153c   :  { %v6947_v16 = vpop.f32.mrb[227].mxu1 }
0x153f   :  { %v4705_v58 = vpop.f32.mrb[252].mxu0 }
0x1540   :  { %v7188_v43 = vpack.i.bf16 %v4705_v58, %v4633_v42  ;;  %v6960_v35 = vpop.f32.mrb[253].mxu0 }
0x1541   :  { %v10425_v63 = vpop.f32.mrb[254].mxu0 }
0x1542   :  { %v6961_v5 = vpop.f32.mrb[255].mxu0 }
0x1552   :  { %4361 = vmax.xlane.f32.xlu1 %v4360_v38 }
0x1555   :  { %4364 = vmax.xlane.f32.xlu0 %v4363_v24 }
0x1556   :  { %4367 = vmax.xlane.f32.xlu1 %v4366_v26 }
0x155a   :  { %4370 = vmax.xlane.f32.xlu1 %v4369_v30 }
0x155e   :  { %4373 = vmax.xlane.f32.xlu1 %v4372_v61 }
0x1562   :  { %4376 = vmax.xlane.f32.xlu1 %v4375_v6 }
0x1563   :  { %v7170_v54 = vpop.permute.xlu1 %7169 }
0x1564   :  { %v7172_v59 = vunpack.i.h.bf16 %v7170_v54  ;;  %v7171_v33 = vunpack.i.l.bf16 %v7170_v54 }
0x1566   :  { %v4816_v2 = vsel %vm604_vm2, %v10202_v49, %v7172_v59  ;;  %v4815_v20 = vsel %vm604_vm2, %v10200_v32, %v7171_v33  ;;  %4379 = vmax.xlane.f32.xlu1 %v4378_v36 }
0x1567   :  { %v4833_v42 = vpack.c.bf16 %v4816_v2, %v4815_v20 }
0x1569   :  { %6983 = vmatmul.mubr.msk.bf16.vlgmr.msra.gmra.mrb[228].mxu1 %vm135_vm0, %v4833_v42 }
0x156a   :  { %6986 = vmatprep.mubr.msk.bf16.mxu1 %vm7696_vm1, %v11045_v48 }
0x156b   :  { %7189 = vrot.lane.b32.xlu0 %v7188_v43, %s7702_s15 }
0x1598   :  { %v7175_v51 = vpop.permute.xlu0 %7174 }
0x1599   :  { %v7177_v22 = vunpack.i.h.bf16 %v7175_v51  ;;  %v7176_v0 = vunpack.i.l.bf16 %v7175_v51 }
0x159b   :  { %v4818_v16 = vsel %vm604_vm2, %v10206_v19, %v7177_v22  ;;  %v4817_v49 = vsel %vm604_vm2, %v10204_v53, %v7176_v0 }
0x159c   :  { %v4834_v58 = vpack.c.bf16 %v4818_v16, %v4817_v49 }
0x159e   :  { %6987 = vmatmul.mubr.msk.bf16.gmra.mrb[232].mxu1 %vm135_vm0, %v4834_v58 }
0x159f   :  { %6990 = vmatprep.mubr.msk.bf16.mxu1 %vm7696_vm1, %v11045_v48 }
0x15a0   :  { %v7180_v32 = vpop.permute.xlu1 %7179 }
0x15a1   :  { %v7182_v35 = vunpack.i.h.bf16 %v7180_v32  ;;  %v7181_v5 = vunpack.i.l.bf16 %v7180_v32 }
0x15a3   :  { %v4820_v43 = vsel %vm604_vm2, %v10210_v31, %v7182_v35  ;;  %v4819_v7 = vsel %vm604_vm2, %v10208_v12, %v7181_v5 }
0x15a4   :  { %v4835_v34 = vpack.c.bf16 %v4820_v43, %v4819_v7 }
0x15a6   :  { %6991 = vmatmul.mubr.msk.bf16.gmra.mrb[236].mxu1 %vm135_vm0, %v4835_v34 }
0x15a7   :  { %6994 = vmatprep.mubr.msk.bf16.mxu1 %vm7696_vm1, %v11045_v48 }
0x15a8   :  { %v7185_v53 = vpop.permute.xlu0 %7184 }
0x15a9   :  { %v7187_v19 = vunpack.i.h.bf16 %v7185_v53  ;;  %v7186_v40 = vunpack.i.l.bf16 %v7185_v53 }
0x15ab   :  { %v4822_v1 = vsel %vm604_vm2, %v10214_v23, %v7187_v19  ;;  %v4821_v38 = vsel %vm604_vm2, %v10212_v62, %v7186_v40  ;;  %v10538_v40 = vld [vmem:[%s10998_s6 + $0x1] ss:$0 sm:$0xff] }
0x15ac   :  { %v4836_v24 = vpack.c.bf16 %v4822_v1, %v4821_v38 }
0x15ae   :  { %6995 = vmatmul.mubr.msk.bf16.gmra.mrb[240].mxu1 %vm135_vm0, %v4836_v24 }
0x15af   :  { %6998 = vmatprep.mubr.msk.bf16.mxu1 %vm7696_vm1, %v11045_v48 }
0x15df   :  { %v4362_v12 = vpop.xlane.xlu1 %4361 }
0x15e0   :  { %v4392_v31 = vsub.f32 %v4320_v14, %v4362_v12 }
0x15e2   :  { %v4421_v8 = vmul.f32 1.442695, %v4392_v31  ;;  %v4365_v26 = vpop.xlane.xlu0 %4364 }
0x15e3   :  { %v4393_v56 = vsub.f32 %v10432_v55, %v4365_v26  ;;  %v4368_v30 = vpop.xlane.xlu1 %4367 }
0x15e4   :  { %7603 = vpow2.f32 %v4421_v8  ;;  %v4394_v11 = vsub.f32 %v10435_v15, %v4368_v30 }
0x15e5   :  { %v4423_v23 = vmul.f32 1.442695, %v4393_v56 }
0x15e6   :  { %v4425_v61 = vmul.f32 1.442695, %v4394_v11  ;;  %v7190_v6 = vpop.permute.xlu0 %7189 }
0x15e7   :  { %7605 = vpow2.f32 %v4423_v23  ;;  %v7192_v62 = vunpack.i.h.bf16 %v7190_v6  ;;  %v7191_v54 = vunpack.i.l.bf16 %v7190_v6  ;;  %v4371_v59 = vpop.xlane.xlu1 %4370 }
0x15e8   :  { %v4395_v33 = vsub.f32 %v10442_v27, %v4371_v59  ;;  %7607 = vpow2.f32 %v4425_v61 }
0x15e9   :  { %v4824_v14 = vsel %vm604_vm2, %v10218_v18, %v7192_v62  ;;  %v4823_v55 = vsel %vm604_vm2, %v10216_v39, %v7191_v54 }
0x15ea   :  { %v4837_v36 = vpack.c.bf16 %v4824_v14, %v4823_v55  ;;  %v4427_v2 = vmul.f32 1.442695, %v4395_v33 }
0x15eb   :  { %v4374_v20 = vpop.xlane.xlu1 %4373 }
0x15ec   :  { %v4396_v15 = vsub.f32 %v10448_v9, %v4374_v20  ;;  %6999 = vmatmul.mubr.msk.bf16.gmra.mrb[244].mxu1 %vm135_vm0, %v4837_v36  ;;  %7609 = vpow2.f32 %v4427_v2 }
0x15ed   :  { %7002 = vmatprep.mubr.msk.bf16.mxu1 %vm7696_vm1, %v11045_v48 }
0x15ee   :  { %v10505_v42 = vpop.eup %7603  ;;  %v4429_v27 = vmul.f32 1.442695, %v4396_v15 }
0x15ef   :  { %v4377_v51 = vpop.xlane.xlu1 %4376  ;;  %v4468_v18 = vsel %vm860_vm5, %v10505_v42, 0.0 }
0x15f0   :  { %v4397_v39 = vsub.f32 %v10454_v47, %v4377_v51  ;;  %4469 = vadd.xlane.f32.xlu0 %v4468_v18  ;;  %7611 = vpow2.f32 %v4429_v27 }
0x15f1   :  { %v10510_v22 = vpop.eup %7605 }
0x15f2   :  { %v4431_v9 = vmul.f32 1.442695, %v4397_v39  ;;  %v4471_v0 = vsel %vm860_vm5, %v10510_v22, 0.0  ;;  %v10514_v16 = vpop.eup %7607 }
0x15f3   :  { %v4380_v49 = vpop.xlane.xlu1 %4379  ;;  %4472 = vadd.xlane.f32.xlu1 %v4471_v0  ;;  %v4474_v35 = vsel %vm860_vm5, %v10514_v16, 0.0 }
0x15f4   :  { %v4398_v58 = vsub.f32 %v10459_v29, %v4380_v49  ;;  %7613 = vpow2.f32 %v4431_v9 }
0x15f6   :  { %v4433_v32 = vmul.f32 1.442695, %v4398_v58  ;;  %v10519_v47 = vpop.eup %7609 }
0x15f7   :  { %4475 = vadd.xlane.f32.xlu1 %v4474_v35  ;;  %v4477_v5 = vsel %vm860_vm5, %v10519_v47, 0.0 }
0x15f8   :  { %7615 = vpow2.f32 %v4433_v32 }
0x15fa   :  { %v10523_v43 = vpop.eup %7611 }
0x15fb   :  { %4478 = vadd.xlane.f32.xlu1 %v4477_v5  ;;  %v4480_v7 = vsel %vm860_vm5, %v10523_v43, 0.0 }
0x15fe   :  { %v10527_v34 = vpop.eup %7613 }
0x15ff   :  { %4481 = vadd.xlane.f32.xlu1 %v4480_v7  ;;  %v4483_v29 = vsel %vm860_vm5, %v10527_v34, 0.0 }
0x1602   :  { %v10531_v53 = vpop.eup %7615 }
0x1603   :  { %4484 = vadd.xlane.f32.xlu1 %v4483_v29  ;;  %v4486_v19 = vsel %vm860_vm5, %v10531_v53, 0.0 }
0x1607   :  { %4487 = vadd.xlane.f32.xlu1 %v4486_v19 }
0x163c   :  { %v4928_v1 = vpop.f32.mrb[228].mxu1 }
0x163d   :  { %v4929_v38 = vadd.f32 %v10538_v40, %v4928_v1  ;;  %v6984_v24 = vpop.f32.mrb[229].mxu1 }
0x163e   :  { %v4931_v12 = vpop.f32.mrb[230].mxu1 }
0x163f   :  { %v10542_v31 = vadd.f32 %v4929_v38, %v9397_v17  ;;  %v4932_v8 = vadd.f32 %v10538_v40, %v4931_v12  ;;  %v6985_v26 = vpop.f32.mrb[231].mxu1 }
0x1641   :  { %v10546_v56 = vadd.f32 %v4932_v8, %v9401_v10  ;;  %v5017_v30 = vsel %vm135_vm0, %v10542_v31, 0.0 }
0x1642   :  { %5018 = vadd.xlane.f32.xlu1 %v5017_v30 }
0x1643   :  { %v5020_v11 = vsel %vm135_vm0, %v10546_v56, 0.0 }
0x1646   :  { %5021 = vadd.xlane.f32.xlu1 %v5020_v11 }
0x1671   :  { %v4936_v23 = vpop.f32.mrb[232].mxu1 }
0x1672   :  { %v4937_v61 = vadd.f32 %v10538_v40, %v4936_v23  ;;  %v6988_v6 = vpop.f32.mrb[233].mxu1 }
0x1673   :  { %v4939_v17 = vpop.f32.mrb[234].mxu1 }
0x1674   :  { %v10554_v62 = vadd.f32 %v4937_v61, %v9409_v57  ;;  %v4940_v54 = vadd.f32 %v10538_v40, %v4939_v17  ;;  %v6989_v10 = vpop.f32.mrb[235].mxu1 }
0x1676   :  { %v10558_v59 = vadd.f32 %v4940_v54, %v9413_v60  ;;  %v5023_v33 = vsel %vm135_vm0, %v10554_v62, 0.0 }
0x1677   :  { %5024 = vadd.xlane.f32.xlu0 %v5023_v33 }
0x1678   :  { %v5026_v14 = vsel %vm135_vm0, %v10558_v59, 0.0 }
0x1679   :  { %5027 = vadd.xlane.f32.xlu1 %v5026_v14  ;;  %v4944_v55 = vpop.f32.mrb[236].mxu1 }
0x167a   :  { %v4945_v36 = vadd.f32 %v10538_v40, %v4944_v55  ;;  %v6992_v2 = vpop.f32.mrb[237].mxu1 }
0x167b   :  { %v4947_v57 = vpop.f32.mrb[238].mxu1 }
0x167c   :  { %v10566_v20 = vadd.f32 %v4945_v36, %v9421_v52  ;;  %v4948_v15 = vadd.f32 %v10538_v40, %v4947_v57  ;;  %v6993_v60 = vpop.f32.mrb[239].mxu1 }
0x167d   :  { %v4470_v27 = vpop.xlane.xlu0 %4469 }
0x167e   :  { %v10570_v51 = vadd.f32 %v4948_v15, %v9425_v45  ;;  %v5029_v18 = vsel %vm135_vm0, %v10566_v20, 0.0  ;;  %7617 = vrcp.f32 %v4470_v27 }
0x167f   :  { %5030 = vadd.xlane.f32.xlu0 %v5029_v18 }
0x1680   :  { %v4473_v39 = vpop.xlane.xlu1 %4472  ;;  %v5032_v9 = vsel %vm135_vm0, %v10570_v51, 0.0 }
0x1681   :  { %7619 = vrcp.f32 %v4473_v39  ;;  %5033 = vadd.xlane.f32.xlu1 %v5032_v9  ;;  %v4952_v52 = vpop.f32.mrb[240].mxu1 }
0x1682   :  { %v4953_v0 = vadd.f32 %v10538_v40, %v4952_v52  ;;  %v6996_v49 = vpop.f32.mrb[241].mxu1 }
0x1683   :  { %v4955_v58 = vpop.f32.mrb[242].mxu1 }
0x1684   :  { %v10578_v32 = vadd.f32 %v4953_v0, %v9433_v44  ;;  %v4956_v45 = vadd.f32 %v10538_v40, %v4955_v58  ;;  %v4476_v35 = vpop.xlane.xlu1 %4475  ;;  %v6997_v5 = vpop.f32.mrb[243].mxu1 }
0x1685   :  { %7621 = vrcp.f32 %v4476_v35  ;;  %v7227_v35 = vld [vmem:[%s10999_s7 + $0x10] sm:$0xff]  }
0x1686   :  { %v10582_v7 = vadd.f32 %v4956_v45, %v9437_v21  ;;  %v5035_v29 = vsel %vm135_vm0, %v10578_v32, 0.0  ;;  %7019 = vmatpush3.bf16.msra.mxu0 %v7227_v35 }
0x1687   :  { %5036 = vadd.xlane.f32.xlu0 %v5035_v29  ;;  %7020 = vmatprep.subr.bf16.mxu0 %v11045_v48 }
0x1688   :  { %v4479_v19 = vpop.xlane.xlu1 %4478  ;;  %v5038_v1 = vsel %vm135_vm0, %v10582_v7, 0.0  ;;  %v7618_v38 = vpop.eup %7617 }
0x1689   :  { %7623 = vrcp.f32 %v4479_v19  ;;  %5039 = vadd.xlane.f32.xlu1 %v5038_v1  ;;  %v4518_v24 = vmul.f32 %v7618_v38, %v10505_v42 }
0x168b   :  { %v7620_v44 = vpop.eup %7619 }
0x168c   :  { %v4519_v12 = vmul.f32 %v7620_v44, %v10510_v22  ;;  %v4482_v8 = vpop.xlane.xlu1 %4481 }
0x168d   :  { %7625 = vrcp.f32 %v4482_v8 }
0x168e   :  { %v4531_v21 = vpack.c.bf16 %v4519_v12, %v4518_v24 }
0x168f   :  { %v7622_v30 = vpop.eup %7621 }
0x1690   :  { %v4485_v26 = vpop.xlane.xlu1 %4484  ;;  %6963 = vmatmul.mubr.msk.bf16.gmra.mrb[0].mxu0 %vm860_vm5, %v4531_v21  ;;  %v4520_v23 = vmul.f32 %v7622_v30, %v10514_v16 }
0x1691   :  { %7627 = vrcp.f32 %v4485_v26  ;;  %6966 = vmatprep.mubr.msk.bf16.mxu0 %vm7696_vm1, %v11045_v48 }
0x1693   :  { %v7624_v11 = vpop.eup %7623 }
0x1694   :  { %v4521_v61 = vmul.f32 %v7624_v11, %v10519_v47  ;;  %v4488_v6 = vpop.xlane.xlu1 %4487 }
0x1695   :  { %7629 = vrcp.f32 %v4488_v6 }
0x1696   :  { %v4532_v42 = vpack.c.bf16 %v4521_v61, %v4520_v23 }
0x1697   :  { %v7626_v22 = vpop.eup %7625 }
0x1698   :  { %6967 = vmatmul.mubr.msk.bf16.gmra.mrb[4].mxu0 %vm860_vm5, %v4532_v42  ;;  %v4522_v54 = vmul.f32 %v7626_v22, %v10523_v43 }
0x1699   :  { %6970 = vmatprep.mubr.msk.bf16.mxu0 %vm7696_vm1, %v11045_v48 }
0x169b   :  { %v7628_v17 = vpop.eup %7627 }
0x169c   :  { %v4523_v10 = vmul.f32 %v7628_v17, %v10527_v34 }
0x169e   :  { %v4533_v33 = vpack.c.bf16 %v4523_v10, %v4522_v54 }
0x169f   :  { %v7630_v14 = vpop.eup %7629 }
0x16a0   :  { %6971 = vmatmul.mubr.msk.bf16.gmra.mrb[8].mxu0 %vm860_vm5, %v4533_v33  ;;  %v4524_v16 = vmul.f32 %v7630_v14, %v10531_v53 }
0x16a1   :  { %6974 = vmatprep.mubr.msk.bf16.mxu0 %vm7696_vm1, %v11045_v48 }
0x16a2   :  { %v4534_v47 = vpack.c.bf16 %v4524_v16, %v4524_v16 }
0x16a8   :  { %6975 = vmatmul.mubr.msk.bf16.gmra.mrb[12].mxu0 %vm860_vm5, %v4534_v47 }
0x16a9   :  { %7022 = vmatprep.mubr.msk.bf16.mxu0 %vm7696_vm1, %v11045_v48 }
0x16bf   :  { %v4960_v55 = vpop.f32.mrb[244].mxu1 }
0x16c0   :  { %v4961_v43 = vadd.f32 %v10538_v40, %v4960_v55  ;;  %v7000_v36 = vpop.f32.mrb[245].mxu1 }
0x16c1   :  { %v4963_v34 = vpop.f32.mrb[246].mxu1 }
0x16c2   :  { %v10609_v2 = vadd.f32 %v4961_v43, %v9445_v13  ;;  %v4964_v57 = vadd.f32 %v10538_v40, %v4963_v34  ;;  %v7001_v15 = vpop.f32.mrb[247].mxu1 }
0x16c4   :  { %v10613_v60 = vadd.f32 %v4964_v57, %v9449_v46  ;;  %v5041_v53 = vsel %vm135_vm0, %v10609_v2, 0.0 }
0x16c5   :  { %5042 = vadd.xlane.f32.xlu0 %v5041_v53 }
0x16c6   :  { %v5044_v27 = vsel %vm135_vm0, %v10613_v60, 0.0 }
0x16c7   :  { %5045 = vadd.xlane.f32.xlu1 %v5044_v27 }
0x16cf   :  { %v5019_v18 = vpop.xlane.xlu1 %5018 }
0x16d0   :  { %v5071_v39 = vmul.f32 0.03125, %v5019_v18 }
0x16d2   :  { %v10620_v9 = vsub.f32 %v10542_v31, %v5071_v39 }
0x16d3   :  { %v5022_v13 = vpop.xlane.xlu1 %5021 }
0x16d4   :  { %v5072_v52 = vmul.f32 0.03125, %v5022_v13  ;;  %v5107_v0 = vmul.f32 %v10620_v9, %v10620_v9 }
0x16d6   :  { %v10625_v46 = vsub.f32 %v10546_v56, %v5072_v52  ;;  %v5125_v49 = vsel %vm135_vm0, %v5107_v0, 0.0  ;;  %v7228_v56 = vld [vmem:[%s10999_s7 + $0x18] sm:$0xff]  }
0x16d7   :  { %5126 = vadd.xlane.f32.xlu0 %v5125_v49  ;;  %7021 = vmatpush3.bf16.msra.mxu0 %v7228_v56 }
0x16d8   :  { %v5108_v58 = vmul.f32 %v10625_v46, %v10625_v46  ;;  %7102 = vmatprep.subr.bf16.mxu0 %v11045_v48 }
0x16da   :  { %v5128_v45 = vsel %vm135_vm0, %v5108_v58, 0.0 }
0x16db   :  { %5129 = vadd.xlane.f32.xlu1 %v5128_v45 }
0x1704   :  { %v5025_v5 = vpop.xlane.xlu0 %5024 }
0x1705   :  { %v5073_v29 = vmul.f32 0.03125, %v5025_v5 }
0x1706   :  { %v5028_v19 = vpop.xlane.xlu1 %5027 }
0x1707   :  { %v10640_v1 = vsub.f32 %v10554_v62, %v5073_v29  ;;  %v5074_v38 = vmul.f32 0.03125, %v5028_v19 }
0x1709   :  { %v10643_v44 = vsub.f32 %v10558_v59, %v5074_v38  ;;  %v5109_v24 = vmul.f32 %v10640_v1, %v10640_v1 }
0x170b   :  { %v5131_v12 = vsel %vm135_vm0, %v5109_v24, 0.0  ;;  %v5110_v8 = vmul.f32 %v10643_v44, %v10643_v44 }
0x170c   :  { %v5031_v21 = vpop.xlane.xlu0 %5030  ;;  %5132 = vadd.xlane.f32.xlu0 %v5131_v12 }
0x170d   :  { %v5075_v26 = vmul.f32 0.03125, %v5031_v21  ;;  %v5134_v30 = vsel %vm135_vm0, %v5110_v8, 0.0  ;;  %v7670_v21 = vld [vmem:[%s10994_s2 + $0x4] sm:$0xf] }
0x170e   :  { %v5034_v11 = vpop.xlane.xlu1 %5033  ;;  %5135 = vadd.xlane.f32.xlu1 %v5134_v30 }
0x170f   :  { %v10652_v62 = vsub.f32 %v10566_v20, %v5075_v26  ;;  %v5076_v59 = vmul.f32 0.03125, %v5034_v11  ;;  %v11066_v26 = vsub.s32 2, %v11052_v3 }
0x1711   :  { %v10655_v23 = vsub.f32 %v10570_v51, %v5076_v59  ;;  %v5111_v61 = vmul.f32 %v10652_v62, %v10652_v62  ;;  %v10695_v30 = vrot.slane %v7670_v21, %v11066_v26 }
0x1713   :  { %v5137_v6 = vsel %vm135_vm0, %v5111_v61, 0.0  ;;  %v5112_v42 = vmul.f32 %v10655_v23, %v10655_v23 }
0x1714   :  { %v5037_v22 = vpop.xlane.xlu0 %5036  ;;  %5138 = vadd.xlane.f32.xlu0 %v5137_v6 }
0x1715   :  { %v5077_v17 = vmul.f32 0.03125, %v5037_v22  ;;  %v5140_v54 = vsel %vm135_vm0, %v5112_v42, 0.0 }
0x1716   :  { %v5040_v10 = vpop.xlane.xlu1 %5039  ;;  %5141 = vadd.xlane.f32.xlu1 %v5140_v54 }
0x1717   :  { %v10664_v20 = vsub.f32 %v10578_v32, %v5077_v17  ;;  %v5078_v51 = vmul.f32 0.03125, %v5040_v10  ;;  %v11067_v17 = vsub.s32 3, %v11052_v3  ;;  %v7229_v3 = vld [vmem:[%s11001_s9 + $0x20] sm:$0xff]  }
0x1718   :  { %7059 = vmatpush3.bf16.msra.mxu1 %v7229_v3 }
0x1719   :  { %v10667_v33 = vsub.f32 %v10582_v7, %v5078_v51  ;;  %v5113_v14 = vmul.f32 %v10664_v20, %v10664_v20  ;;  %v10701_v54 = vrot.slane %v7670_v21, %v11067_v17  ;;  %7060 = vmatprep.subr.bf16.mxu1 %v11045_v48 }
0x171b   :  { %v5143_v16 = vsel %vm135_vm0, %v5113_v14, 0.0  ;;  %v5114_v47 = vmul.f32 %v10667_v33, %v10667_v33 }
0x171c   :  { %5144 = vadd.xlane.f32.xlu0 %v5143_v16 }
0x171d   :  { %v5146_v55 = vsel %vm135_vm0, %v5114_v47, 0.0 }
0x171e   :  { %5147 = vadd.xlane.f32.xlu1 %v5146_v55 }
0x1752   :  { %v5043_v43 = vpop.xlane.xlu0 %5042 }
0x1753   :  { %v5079_v36 = vmul.f32 0.03125, %v5043_v43 }
0x1754   :  { %v5046_v32 = vpop.xlane.xlu1 %5045 }
0x1755   :  { %v10676_v34 = vsub.f32 %v10609_v2, %v5079_v36  ;;  %v5080_v7 = vmul.f32 0.03125, %v5046_v32 }
0x1757   :  { %v10679_v57 = vsub.f32 %v10613_v60, %v5080_v7  ;;  %v5115_v15 = vmul.f32 %v10676_v34, %v10676_v34 }
0x1759   :  { %v5149_v53 = vsel %vm135_vm0, %v5115_v15, 0.0  ;;  %v5116_v27 = vmul.f32 %v10679_v57, %v10679_v57 }
0x175a   :  { %5150 = vadd.xlane.f32.xlu0 %v5149_v53 }
0x175b   :  { %v5152_v18 = vsel %vm135_vm0, %v5116_v27, 0.0 }
0x175c   :  { %5153 = vadd.xlane.f32.xlu1 %v5152_v18 }
0x1763   :  { %v4713_v39 = vpop.f32.mrb[0].mxu0 }
0x1764   :  { %v7193_v2 = vpack.i.bf16 %v4713_v39, %v10425_v63  ;;  %v6964_v13 = vpop.f32.mrb[1].mxu0  ;;  %v5127_v52 = vpop.xlane.xlu0 %5126 }
0x1765   :  { %v5179_v0 = vmul.f32 0.03125, %v5127_v52  ;;  %v4716_v49 = vpop.f32.mrb[2].mxu0 }
0x1766   :  { %v6965_v58 = vpop.f32.mrb[3].mxu0 }
0x1767   :  { %v5197_v45 = vadd.f32 1e-05, %v5179_v0 }
0x1768   :  { %v5130_v35 = vpop.xlane.xlu1 %5129 }
0x1769   :  { %7631 = vrsqrt.f32 %v5197_v45  ;;  %v5180_v56 = vmul.f32 0.03125, %v5130_v35 }
0x176b   :  { %v5198_v5 = vadd.f32 1e-05, %v5180_v56  ;;  %v4721_v29 = vpop.f32.mrb[4].mxu0 }
0x176c   :  { %v7198_v19 = vpack.i.bf16 %v4721_v29, %v4716_v49  ;;  %v6968_v38 = vpop.f32.mrb[5].mxu0 }
0x176d   :  { %7633 = vrsqrt.f32 %v5198_v5  ;;  %v4724_v24 = vpop.f32.mrb[6].mxu0 }
0x176e   :  { %v6969_v12 = vpop.f32.mrb[7].mxu0  ;;  %7199 = vrot.lane.b32.xlu1 %v7198_v19, %s7702_s15 }
0x1770   :  { %7194 = vrot.lane.b32.xlu0 %v7193_v2, %s7702_s15 }
0x1773   :  { %v7632_v63 = vpop.eup %7631  ;;  %v4729_v8 = vpop.f32.mrb[8].mxu0 }
0x1774   :  { %v5233_v11 = vmul.f32 %v7632_v63, %v10620_v9  ;;  %v7203_v59 = vpack.i.bf16 %v4729_v8, %v4724_v24  ;;  %v6972_v61 = vpop.f32.mrb[9].mxu0 }
0x1775   :  { %v4732_v6 = vpop.f32.mrb[10].mxu0 }
0x1776   :  { %v6973_v42 = vpop.f32.mrb[11].mxu0  ;;  %7204 = vrot.lane.b32.xlu1 %v7203_v59, %s7702_s15  ;;  %v5255_v10 = vmul.f32 %v10695_v30, %v5233_v11 }
0x1777   :  { %v7634_v22 = vpop.eup %7633 }
0x1778   :  { %v5234_v51 = vmul.f32 %v7634_v22, %v10625_v46  ;;  %v5277_v9 = vadd.f32 %v10701_v54, %v5255_v10  ;;  %v7230_v46 = vld [vmem:[%s11001_s9 + $0x28] sm:$0xff]  }
0x1779   :  { %7061 = vmatpush3.bf16.msra.mxu1 %v7230_v46 }
0x177a   :  { %v5256_v14 = vmul.f32 %v10695_v30, %v5234_v51  ;;  %7062 = vmatprep.subr.bf16.mxu1 %v11045_v48 }
0x177b   :  { %v4737_v16 = vpop.f32.mrb[12].mxu0 }
0x177c   :  { %v5278_v47 = vadd.f32 %v10701_v54, %v5256_v14  ;;  %v7208_v55 = vpack.i.bf16 %v4737_v16, %v4732_v6  ;;  %v6976_v43 = vpop.f32.mrb[13].mxu0 }
0x177d   :  { %v4740_v36 = vpop.f32.mrb[14].mxu0 }
0x177e   :  { %v5295_v32 = vpack.c.bf16 %v5278_v47, %v5277_v9  ;;  %v6977_v7 = vpop.f32.mrb[15].mxu0  ;;  %7209 = vrot.lane.b32.xlu0 %v7208_v55, %s7702_s15 }
0x1780   :  { %7023 = vmatmul.mubr.msk.bf16.vlgmr.msra.gmra.mrb[16].mxu0 %vm135_vm0, %v5295_v32 }
0x1781   :  { %7026 = vmatprep.mubr.msk.bf16.mxu0 %vm7696_vm1, %v11045_v48 }
0x1799   :  { %v5133_v15 = vpop.xlane.xlu0 %5132 }
0x179a   :  { %v5181_v53 = vmul.f32 0.03125, %v5133_v15 }
0x179b   :  { %v5136_v27 = vpop.xlane.xlu1 %5135 }
0x179c   :  { %v5199_v18 = vadd.f32 1e-05, %v5181_v53  ;;  %v5182_v39 = vmul.f32 0.03125, %v5136_v27 }
0x179e   :  { %7635 = vrsqrt.f32 %v5199_v18  ;;  %v5200_v2 = vadd.f32 1e-05, %v5182_v39 }
0x17a0   :  { %7637 = vrsqrt.f32 %v5200_v2 }
0x17a1   :  { %v5139_v13 = vpop.xlane.xlu0 %5138 }
0x17a2   :  { %v5183_v52 = vmul.f32 0.03125, %v5139_v13 }
0x17a3   :  { %v5142_v0 = vpop.xlane.xlu1 %5141 }
0x17a4   :  { %v5201_v49 = vadd.f32 1e-05, %v5183_v52  ;;  %v5184_v58 = vmul.f32 0.03125, %v5142_v0 }
0x17a6   :  { %7639 = vrsqrt.f32 %v5201_v49  ;;  %v5202_v45 = vadd.f32 1e-05, %v5184_v58 }
0x17a8   :  { %v7636_v35 = vpop.eup %7635  ;;  %7641 = vrsqrt.f32 %v5202_v45 }
0x17a9   :  { %v5235_v56 = vmul.f32 %v7636_v35, %v10640_v1  ;;  %v5145_v5 = vpop.xlane.xlu0 %5144 }
0x17aa   :  { %v7638_v29 = vpop.eup %7637  ;;  %v5185_v19 = vmul.f32 0.03125, %v5145_v5 }
0x17ab   :  { %v5257_v38 = vmul.f32 %v10695_v30, %v5235_v56  ;;  %v5236_v24 = vmul.f32 %v7638_v29, %v10643_v44  ;;  %v5148_v12 = vpop.xlane.xlu1 %5147 }
0x17ac   :  { %v5203_v63 = vadd.f32 1e-05, %v5185_v19  ;;  %v5186_v8 = vmul.f32 0.03125, %v5148_v12 }
0x17ad   :  { %v5258_v21 = vmul.f32 %v10695_v30, %v5236_v24  ;;  %v5279_v11 = vadd.f32 %v10701_v54, %v5257_v38 }
0x17ae   :  { %7643 = vrsqrt.f32 %v5203_v63  ;;  %v5204_v26 = vadd.f32 1e-05, %v5186_v8  ;;  %v11068_v8 = vld [vmem:[#allocation16_spill] sm:$0xff] }
0x17af   :  { %v5280_v59 = vadd.f32 %v10701_v54, %v5258_v21  ;;  %v11069_v21 = vld [vmem:[#allocation14_spill] sm:$0xff] }
0x17b0   :  { %v7640_v61 = vpop.eup %7639  ;;  %7645 = vrsqrt.f32 %v5204_v26 }
0x17b1   :  { %v5296_v1 = vpack.c.bf16 %v5280_v59, %v5279_v11  ;;  %v5237_v6 = vmul.f32 %v7640_v61, %v10652_v62 }
0x17b2   :  { %v7642_v42 = vpop.eup %7641 }
0x17b3   :  { %v5259_v22 = vmul.f32 %v10695_v30, %v5237_v6  ;;  %v5238_v44 = vmul.f32 %v7642_v42, %v10655_v23  ;;  %7027 = vmatmul.mubr.msk.bf16.gmra.mrb[20].mxu0 %vm135_vm0, %v5296_v1 }
0x17b4   :  { %7030 = vmatprep.mubr.msk.bf16.mxu0 %vm7696_vm1, %v11045_v48 }
0x17b5   :  { %v5260_v17 = vmul.f32 %v10695_v30, %v5238_v44  ;;  %v5281_v10 = vadd.f32 %v10701_v54, %v5259_v22 }
0x17b7   :  { %v5282_v51 = vadd.f32 %v10701_v54, %v5260_v17 }
0x17b8   :  { %v7644_v14 = vpop.eup %7643 }
0x17b9   :  { %v5297_v16 = vpack.c.bf16 %v5282_v51, %v5281_v10  ;;  %v5239_v62 = vmul.f32 %v7644_v14, %v10664_v20  ;;  %v7231_v20 = vld [vmem:[%s11001_s9 + $0x30] sm:$0xff]  }
0x17ba   :  { %v7646_v9 = vpop.eup %7645  ;;  %7063 = vmatpush3.bf16.msra.mxu1 %v7231_v20 }
0x17bb   :  { %v5261_v47 = vmul.f32 %v10695_v30, %v5239_v62  ;;  %v5240_v23 = vmul.f32 %v7646_v9, %v10667_v33  ;;  %7031 = vmatmul.mubr.msk.bf16.gmra.mrb[24].mxu0 %vm135_vm0, %v5297_v16  ;;  %7064 = vmatprep.subr.bf16.mxu1 %v11045_v48  ;;  %v7232_v33 = vld [vmem:[%s11001_s9 + $0x38] sm:$0xff]  }
0x17bc   :  { %7034 = vmatprep.mubr.msk.bf16.mxu0 %vm7696_vm1, %v11045_v48 }
0x17bd   :  { %v5262_v55 = vmul.f32 %v10695_v30, %v5240_v23  ;;  %v5283_v43 = vadd.f32 %v10701_v54, %v5261_v47 }
0x17be   :  { %7065 = vmatpush3.bf16.msra.mxu1 %v7232_v33 }
0x17bf   :  { %v5284_v36 = vadd.f32 %v10701_v54, %v5262_v55 }
0x17c1   :  { %v5298_v32 = vpack.c.bf16 %v5284_v36, %v5283_v43 }
0x17c3   :  { %7035 = vmatmul.mubr.msk.bf16.gmra.mrb[28].mxu0 %vm135_vm0, %v5298_v32 }
0x17c4   :  { %7038 = vmatprep.mubr.msk.bf16.mxu0 %vm7696_vm1, %v11045_v48 }
0x17e7   :  { %v5151_v7 = vpop.xlane.xlu0 %5150 }
0x17e8   :  { %v5187_v3 = vmul.f32 0.03125, %v5151_v7 }
0x17e9   :  { %v5154_v46 = vpop.xlane.xlu1 %5153 }
0x17ea   :  { %v5205_v15 = vadd.f32 1e-05, %v5187_v3  ;;  %v5188_v53 = vmul.f32 0.03125, %v5154_v46 }
0x17eb   :  { %v7195_v27 = vpop.permute.xlu0 %7194 }
0x17ec   :  { %7647 = vrsqrt.f32 %v5205_v15  ;;  %v5206_v18 = vadd.f32 1e-05, %v5188_v53  ;;  %v7197_v39 = vunpack.i.h.bf16 %v7195_v27  ;;  %v7196_v2 = vunpack.i.l.bf16 %v7195_v27 }
0x17ed   :  { %v7200_v13 = vpop.permute.xlu1 %7199 }
0x17ee   :  { %7649 = vrsqrt.f32 %v5206_v18  ;;  %v4826_v52 = vsel %vm604_vm2, %v10222_v50, %v7197_v39  ;;  %v4825_v0 = vsel %vm604_vm2, %v10220_v37, %v7196_v2  ;;  %v7202_v49 = vunpack.i.h.bf16 %v7200_v13 }
0x17ef   :  { %v4838_v58 = vpack.c.bf16 %v4826_v52, %v4825_v0  ;;  %v7201_v45 = vunpack.i.l.bf16 %v7200_v13 }
0x17f0   :  { %v4828_v35 = vsel %vm604_vm2, %v10226_v25, %v7202_v49  ;;  %v7210_v56 = vpop.permute.xlu0 %7209 }
0x17f1   :  { %v4827_v5 = vsel %vm604_vm2, %v10224_v4, %v7201_v45  ;;  %v7212_v29 = vunpack.i.h.bf16 %v7210_v56  ;;  %v7211_v19 = vunpack.i.l.bf16 %v7210_v56  ;;  %7003 = vmatmul.mubr.msk.bf16.gmra.mrb[248].mxu1 %vm135_vm0, %v4838_v58  ;;  %v7205_v38 = vpop.permute.xlu1 %7204 }
0x17f2   :  { %v4839_v24 = vpack.c.bf16 %v4828_v35, %v4827_v5  ;;  %v7207_v50 = vunpack.i.h.bf16 %v7205_v38  ;;  %v7206_v12 = vunpack.i.l.bf16 %v7205_v38  ;;  %7006 = vmatprep.mubr.msk.bf16.mxu1 %vm7696_vm1, %v11045_v48 }
0x17f3   :  { %v4832_v37 = vsel %vm604_vm2, %v10257_v28, %v7212_v29  ;;  %v4831_v25 = vsel %vm604_vm2, %v10248_v41, %v7211_v19 }
0x17f4   :  { %v4841_v63 = vpack.c.bf16 %v4832_v37, %v4831_v25  ;;  %v4830_v4 = vsel %vm604_vm2, %v11068_v8, %v7207_v50  ;;  %v4829_v26 = vsel %vm604_vm2, %v11069_v21, %v7206_v12  ;;  %v11070_v37 = vld [vmem:[#allocation5_spill] sm:$0xff] }
0x17f5   :  { %v4840_v11 = vpack.c.bf16 %v4830_v4, %v4829_v26  ;;  %v11071_v4 = vld [vmem:[#allocation6_spill] sm:$0xff] }
0x17f6   :  { %v7648_v59 = vpop.eup %7647 }
0x17f7   :  { %v5241_v61 = vmul.f32 %v7648_v59, %v10676_v34  ;;  %v10794_v34 = vld [vmem:[%s11000_s8 + $0x1] ss:$0 sm:$0xff] }
0x17f8   :  { %v7650_v1 = vpop.eup %7649 }
0x17f9   :  { %v5263_v6 = vmul.f32 %v10695_v30, %v5241_v61  ;;  %v5242_v42 = vmul.f32 %v7650_v1, %v10679_v57  ;;  %7007 = vmatmul.mubr.msk.bf16.gmra.mrb[252].mxu1 %vm135_vm0, %v4839_v24 }
0x17fa   :  { %7010 = vmatprep.mubr.msk.bf16.mxu1 %vm7696_vm1, %v11045_v48 }
0x17fb   :  { %v5264_v41 = vmul.f32 %v10695_v30, %v5242_v42  ;;  %v5285_v28 = vadd.f32 %v10701_v54, %v5263_v6  ;;  %v11072_v42 = vld [vmem:[#allocation7_spill] sm:$0xff] }
0x17fd   :  { %v5286_v22 = vadd.f32 %v10701_v54, %v5264_v41 }
0x17ff   :  { %v5299_v44 = vpack.c.bf16 %v5286_v22, %v5285_v28 }
0x1801   :  { %7011 = vmatmul.mubr.msk.bf16.gmra.mrb[0].mxu1 %vm135_vm0, %v4840_v11  ;;  %7039 = vmatmul.mubr.msk.bf16.gmra.mrb[32].mxu0 %vm135_vm0, %v5299_v44  ;;  %v11073_v44 = vld [vmem:[#allocation8_spill] sm:$0xff] }
0x1802   :  { %7014 = vmatprep.mubr.msk.bf16.mxu1 %vm7696_vm1, %v11045_v48  ;;  %7042 = vmatprep.mubr.msk.bf16.mxu0 %vm7696_vm1, %v11045_v48 }
0x1809   :  { %7015 = vmatmul.mubr.msk.bf16.gmra.mrb[4].mxu1 %vm135_vm0, %v4841_v63 }
0x180a   :  { %7066 = vmatprep.mubr.msk.bf16.mxu1 %vm7696_vm1, %v11045_v48 }
0x1853   :  { %v5390_v57 = vpop.f32.mrb[16].mxu0 }
0x1854   :  { %v5391_v17 = vadd.f32 %v10794_v34, %v5390_v57  ;;  %v7024_v10 = vpop.f32.mrb[17].mxu0 }
0x1855   :  { %v5393_v51 = vpop.f32.mrb[18].mxu0 }
0x1856   :  { %v5394_v14 = vadd.f32 %v10794_v34, %v5393_v51  ;;  %v7025_v16 = vpop.f32.mrb[19].mxu0  ;;  %v5461_v62 = vmax.f32 %v5391_v17, 0.0 }
0x1858   :  { %v5462_v9 = vmax.f32 %v5394_v14, 0.0 }
0x185a   :  { %v5479_v47 = vpack.c.bf16 %v5462_v9, %v5461_v62 }
0x185c   :  { %7067 = vmatmul.mubr.msk.bf16.vlgmr.msra.gmra.mrb[8].mxu1 %vm2754_vm6, %v5479_v47 }
0x185d   :  { %7070 = vmatprep.mubr.msk.bf16.mxu1 %vm7696_vm1, %v11045_v48 }
0x1886   :  { %v5398_v23 = vpop.f32.mrb[20].mxu0 }
0x1887   :  { %v5399_v55 = vadd.f32 %v10794_v34, %v5398_v23  ;;  %v7028_v43 = vpop.f32.mrb[21].mxu0 }
0x1888   :  { %v5401_v36 = vpop.f32.mrb[22].mxu0  ;;  %v11074_v43 = vld [vmem:[#allocation9_spill] sm:$0xff] }
0x1889   :  { %v5402_v32 = vadd.f32 %v10794_v34, %v5401_v36  ;;  %v7029_v20 = vpop.f32.mrb[23].mxu0  ;;  %v5463_v33 = vmax.f32 %v5399_v55, 0.0 }
0x188b   :  { %v5464_v7 = vmax.f32 %v5402_v32, 0.0 }
0x188d   :  { %v5480_v3 = vpack.c.bf16 %v5464_v7, %v5463_v33 }
0x188e   :  { %v5406_v46 = vpop.f32.mrb[24].mxu0 }
0x188f   :  { %v5407_v15 = vadd.f32 %v10794_v34, %v5406_v46  ;;  %v7032_v53 = vpop.f32.mrb[25].mxu0  ;;  %7071 = vmatmul.mubr.msk.bf16.gmra.mrb[12].mxu1 %vm2754_vm6, %v5480_v3  ;;  %v11075_v46 = vld [vmem:[#allocation10_spill] sm:$0xff] }
0x1890   :  { %v5409_v27 = vpop.f32.mrb[26].mxu0  ;;  %7074 = vmatprep.mubr.msk.bf16.mxu1 %vm7696_vm1, %v11045_v48 }
0x1891   :  { %v5410_v18 = vadd.f32 %v10794_v34, %v5409_v27  ;;  %v7033_v39 = vpop.f32.mrb[27].mxu0  ;;  %v5465_v2 = vmax.f32 %v5407_v15, 0.0 }
0x1893   :  { %v5466_v13 = vmax.f32 %v5410_v18, 0.0 }
0x1895   :  { %v5481_v52 = vpack.c.bf16 %v5466_v13, %v5465_v2 }
0x1896   :  { %v5414_v0 = vpop.f32.mrb[28].mxu0 }
0x1897   :  { %v5415_v49 = vadd.f32 %v10794_v34, %v5414_v0  ;;  %v7036_v58 = vpop.f32.mrb[29].mxu0  ;;  %7075 = vmatmul.mubr.msk.bf16.gmra.mrb[16].mxu1 %vm2754_vm6, %v5481_v52 }
0x1898   :  { %v5417_v45 = vpop.f32.mrb[30].mxu0  ;;  %7078 = vmatprep.mubr.msk.bf16.mxu1 %vm7696_vm1, %v11045_v48 }
0x1899   :  { %v5418_v35 = vadd.f32 %v10794_v34, %v5417_v45  ;;  %v7037_v56 = vpop.f32.mrb[31].mxu0  ;;  %v5467_v5 = vmax.f32 %v5415_v49, 0.0  ;;  %v11076_v49 = vld [vmem:[#allocation11_spill] sm:$0xff] }
0x189a   :  { %v11077_v56 = vld [vmem:[#allocation15_spill] sm:$0xff] }
0x189b   :  { %v5468_v29 = vmax.f32 %v5418_v35, 0.0 }
0x189d   :  { %v5482_v19 = vpack.c.bf16 %v5468_v29, %v5467_v5 }
0x189f   :  { %7079 = vmatmul.mubr.msk.bf16.gmra.mrb[20].mxu1 %vm2754_vm6, %v5482_v19 }
0x18a0   :  { %7082 = vmatprep.mubr.msk.bf16.mxu1 %vm7696_vm1, %v11045_v48 }
0x18c4   :  { %v4968_v38 = vpop.f32.mrb[248].mxu1 }
0x18c5   :  { %v4969_v24 = vadd.f32 %v10538_v40, %v4968_v38  ;;  %v7004_v50 = vpop.f32.mrb[249].mxu1 }
0x18c6   :  { %v4971_v12 = vpop.f32.mrb[250].mxu1 }
0x18c7   :  { %v5009_v25 = vadd.f32 %v4969_v24, %v11070_v37  ;;  %v4972_v63 = vadd.f32 %v10538_v40, %v4971_v12  ;;  %v7005_v8 = vpop.f32.mrb[251].mxu1 }
0x18c9   :  { %v5010_v21 = vadd.f32 %v4972_v63, %v11071_v4  ;;  %v5047_v26 = vsel %vm135_vm0, %v5009_v25, 0.0 }
0x18ca   :  { %5048 = vadd.xlane.f32.xlu1 %v5047_v26 }
0x18cb   :  { %v5050_v11 = vsel %vm135_vm0, %v5010_v21, 0.0 }
0x18cc   :  { %5051 = vadd.xlane.f32.xlu0 %v5050_v11  ;;  %v4976_v59 = vpop.f32.mrb[252].mxu1 }
0x18cd   :  { %v4977_v61 = vadd.f32 %v10538_v40, %v4976_v59  ;;  %v7008_v1 = vpop.f32.mrb[253].mxu1 }
0x18ce   :  { %v4979_v6 = vpop.f32.mrb[254].mxu1 }
0x18cf   :  { %v5011_v41 = vadd.f32 %v4977_v61, %v11072_v42  ;;  %v4980_v28 = vadd.f32 %v10538_v40, %v4979_v6  ;;  %v7009_v22 = vpop.f32.mrb[255].mxu1 }
0x18d1   :  { %v10826_v57 = vadd.f32 %v4980_v28, %v11073_v44  ;;  %v5053_v17 = vsel %vm135_vm0, %v5011_v41, 0.0 }
0x18d2   :  { %5054 = vadd.xlane.f32.xlu0 %v5053_v17 }
0x18d3   :  { %v5056_v10 = vsel %vm135_vm0, %v10826_v57, 0.0 }
0x18d4   :  { %v5422_v51 = vpop.f32.mrb[32].mxu0  ;;  %5057 = vadd.xlane.f32.xlu1 %v5056_v10  ;;  %v4984_v14 = vpop.f32.mrb[0].mxu1 }
0x18d5   :  { %v5423_v16 = vadd.f32 %v10794_v34, %v5422_v51  ;;  %v4985_v62 = vadd.f32 %v10538_v40, %v4984_v14  ;;  %v7012_v9 = vpop.f32.mrb[1].mxu1  ;;  %v7040_v47 = vpop.f32.mrb[33].mxu0 }
0x18d6   :  { %v4987_v23 = vpop.f32.mrb[2].mxu1  ;;  %v5425_v55 = vpop.f32.mrb[34].mxu0 }
0x18d7   :  { %v5013_v36 = vadd.f32 %v4985_v62, %v11074_v43  ;;  %v4988_v32 = vadd.f32 %v10538_v40, %v4987_v23  ;;  %v5426_v20 = vadd.f32 %v10794_v34, %v5425_v55  ;;  %v7013_v33 = vpop.f32.mrb[3].mxu1  ;;  %v7041_v7 = vpop.f32.mrb[35].mxu0  ;;  %v5469_v3 = vmax.f32 %v5423_v16, 0.0 }
0x18d9   :  { %v5014_v15 = vadd.f32 %v4988_v32, %v11075_v46  ;;  %v5470_v53 = vmax.f32 %v5426_v20, 0.0  ;;  %v5059_v27 = vsel %vm135_vm0, %v5013_v36, 0.0 }
0x18da   :  { %5060 = vadd.xlane.f32.xlu0 %v5059_v27 }
0x18db   :  { %v5483_v18 = vpack.c.bf16 %v5470_v53, %v5469_v3  ;;  %v5062_v39 = vsel %vm135_vm0, %v5014_v15, 0.0 }
0x18dc   :  { %5063 = vadd.xlane.f32.xlu1 %v5062_v39  ;;  %v4992_v2 = vpop.f32.mrb[4].mxu1 }
0x18dd   :  { %v4993_v13 = vadd.f32 %v10538_v40, %v4992_v2  ;;  %v7016_v52 = vpop.f32.mrb[5].mxu1  ;;  %7083 = vmatmul.mubr.msk.bf16.gmra.mrb[24].mxu1 %vm2754_vm6, %v5483_v18 }
0x18de   :  { %v4995_v0 = vpop.f32.mrb[6].mxu1  ;;  %7086 = vmatprep.mubr.msk.bf16.mxu1 %vm7696_vm1, %v11045_v48 }
0x18df   :  { %v5015_v58 = vadd.f32 %v4993_v13, %v11076_v49  ;;  %v4996_v45 = vadd.f32 %v10538_v40, %v4995_v0  ;;  %v7017_v35 = vpop.f32.mrb[7].mxu1 }
0x18e1   :  { %v5016_v5 = vadd.f32 %v4996_v45, %v11077_v56  ;;  %v5065_v29 = vsel %vm135_vm0, %v5015_v58, 0.0 }
0x18e2   :  { %5066 = vadd.xlane.f32.xlu0 %v5065_v29 }
0x18e3   :  { %v5068_v19 = vsel %vm135_vm0, %v5016_v5, 0.0 }
0x18e4   :  { %5069 = vadd.xlane.f32.xlu1 %v5068_v19 }
0x192f   :  { %v10848_v38 = vpop.f32.mrb[8].mxu1 }
0x1930   :  { %v7068_v24 = vpop.f32.mrb[9].mxu1 }
0x1931   :  { %v5593_v50 = vpop.f32.mrb[10].mxu1 }
0x1932   :  { %v7069_v12 = vpop.f32.mrb[11].mxu1 }
0x1957   :  { %v5049_v37 = vpop.xlane.xlu1 %5048 }
0x1958   :  { %v5081_v63 = vmul.f32 0.03125, %v5049_v37 }
0x1959   :  { %v5052_v8 = vpop.xlane.xlu0 %5051 }
0x195a   :  { %v10850_v4 = vsub.f32 %v5009_v25, %v5081_v63  ;;  %v5082_v40 = vmul.f32 0.03125, %v5052_v8 }
0x195c   :  { %v10852_v26 = vsub.f32 %v5010_v21, %v5082_v40  ;;  %v5117_v11 = vmul.f32 %v10850_v4, %v10850_v4 }
0x195e   :  { %v5155_v59 = vsel %vm135_vm0, %v5117_v11, 0.0  ;;  %v5118_v61 = vmul.f32 %v10852_v26, %v10852_v26 }
0x195f   :  { %v5055_v1 = vpop.xlane.xlu0 %5054  ;;  %5156 = vadd.xlane.f32.xlu0 %v5155_v59 }
0x1960   :  { %v5083_v6 = vmul.f32 0.03125, %v5055_v1  ;;  %v5158_v42 = vsel %vm135_vm0, %v5118_v61, 0.0 }
0x1961   :  { %v5058_v28 = vpop.xlane.xlu1 %5057  ;;  %5159 = vadd.xlane.f32.xlu1 %v5158_v42 }
0x1962   :  { %v10860_v25 = vsub.f32 %v5011_v41, %v5083_v6  ;;  %v5084_v22 = vmul.f32 0.03125, %v5058_v28  ;;  %v5597_v21 = vpop.f32.mrb[12].mxu1 }
0x1963   :  { %v7072_v44 = vpop.f32.mrb[13].mxu1 }
0x1964   :  { %v10863_v17 = vsub.f32 %v10826_v57, %v5084_v22  ;;  %v5599_v10 = vpop.f32.mrb[14].mxu1  ;;  %v5119_v51 = vmul.f32 %v10860_v25, %v10860_v25 }
0x1965   :  { %v7073_v14 = vpop.f32.mrb[15].mxu1 }
0x1966   :  { %v5161_v16 = vsel %vm135_vm0, %v5119_v51, 0.0  ;;  %v5120_v62 = vmul.f32 %v10863_v17, %v10863_v17 }
0x1967   :  { %v5061_v9 = vpop.xlane.xlu0 %5060  ;;  %5162 = vadd.xlane.f32.xlu0 %v5161_v16 }
0x1968   :  { %v5085_v41 = vmul.f32 0.03125, %v5061_v9  ;;  %v5164_v47 = vsel %vm135_vm0, %v5120_v62, 0.0 }
0x1969   :  { %v5064_v23 = vpop.xlane.xlu1 %5063  ;;  %5165 = vadd.xlane.f32.xlu1 %v5164_v47 }
0x196a   :  { %v10871_v55 = vsub.f32 %v5013_v36, %v5085_v41  ;;  %v5086_v57 = vmul.f32 0.03125, %v5064_v23  ;;  %v5603_v43 = vpop.f32.mrb[16].mxu1 }
0x196b   :  { %v7076_v32 = vpop.f32.mrb[17].mxu1 }
0x196c   :  { %v10873_v20 = vsub.f32 %v5014_v15, %v5086_v57  ;;  %v5605_v33 = vpop.f32.mrb[18].mxu1  ;;  %v5121_v7 = vmul.f32 %v10871_v55, %v10871_v55 }
0x196d   :  { %v7077_v3 = vpop.f32.mrb[19].mxu1 }
0x196e   :  { %v5167_v46 = vsel %vm135_vm0, %v5121_v7, 0.0  ;;  %v5122_v53 = vmul.f32 %v10873_v20, %v10873_v20 }
0x196f   :  { %5168 = vadd.xlane.f32.xlu0 %v5167_v46  ;;  %v5067_v27 = vpop.xlane.xlu0 %5066 }
0x1970   :  { %v5087_v18 = vmul.f32 0.03125, %v5067_v27  ;;  %v5170_v36 = vsel %vm135_vm0, %v5122_v53, 0.0 }
0x1971   :  { %5171 = vadd.xlane.f32.xlu1 %v5170_v36  ;;  %v5070_v39 = vpop.xlane.xlu1 %5069 }
0x1972   :  { %v10881_v2 = vsub.f32 %v5015_v58, %v5087_v18  ;;  %v5088_v15 = vmul.f32 0.03125, %v5070_v39  ;;  %v5609_v13 = vpop.f32.mrb[20].mxu1  ;;  %v5977_v58 = vld [vmem:[%s11002_s10 + $0x1] ss:$0 sm:$0xff] }
0x1973   :  { %v7080_v52 = vpop.f32.mrb[21].mxu1  ;;  %v5591_v12 = vadd.f32 %v5977_v58, %v10848_v38 }
0x1974   :  { %v10883_v0 = vsub.f32 %v5016_v5, %v5088_v15  ;;  %v5611_v49 = vpop.f32.mrb[22].mxu1  ;;  %v5123_v45 = vmul.f32 %v10881_v2, %v10881_v2 }
0x1975   :  { %v7081_v35 = vpop.f32.mrb[23].mxu1  ;;  %v10899_v40 = vadd.f32 %v5591_v12, %v10542_v31 }
0x1976   :  { %v5173_v56 = vsel %vm135_vm0, %v5123_v45, 0.0  ;;  %v5124_v29 = vmul.f32 %v10883_v0, %v10883_v0 }
0x1977   :  { %5174 = vadd.xlane.f32.xlu0 %v5173_v56 }
0x1978   :  { %v5176_v19 = vsel %vm135_vm0, %v5124_v29, 0.0 }
0x1979   :  { %5177 = vadd.xlane.f32.xlu1 %v5176_v19 }
0x19b0   :  { %v5615_v5 = vpop.f32.mrb[24].mxu1 }
0x19b1   :  { %v7084_v24 = vpop.f32.mrb[25].mxu1 }
0x19b2   :  { %v5617_v50 = vpop.f32.mrb[26].mxu1 }
0x19b3   :  { %v5618_v37 = vadd.f32 %v5977_v58, %v5617_v50  ;;  %v7085_v63 = vpop.f32.mrb[27].mxu1 }
0x19b5   :  { %v10896_v8 = vadd.f32 %v5618_v37, %v10613_v60 }
0x19b7   :  { %v5650_v11 = vrot.slane %v10896_v8, 7 }
0x19b9   :  { %v5652_v59 = vsel %vm5651_vm7, %v5650_v11, %v10899_v40 }
0x19ba   :  { %v5655_v61 = vsel %vm5654_vm8, %v5652_v59, 0.0 }
0x19bb   :  { %5656 = vadd.xlane.f32.xlu0 %v5655_v61 }
0x19ec   :  { %v5157_v1 = vpop.xlane.xlu0 %5156 }
0x19ed   :  { %v5189_v38 = vmul.f32 0.03125, %v5157_v1 }
0x19ee   :  { %v5160_v6 = vpop.xlane.xlu1 %5159 }
0x19ef   :  { %v5207_v42 = vadd.f32 1e-05, %v5189_v38  ;;  %v5190_v28 = vmul.f32 0.03125, %v5160_v6 }
0x19f1   :  { %7651 = vrsqrt.f32 %v5207_v42  ;;  %v5208_v60 = vadd.f32 1e-05, %v5190_v28 }
0x19f3   :  { %7653 = vrsqrt.f32 %v5208_v60 }
0x19f4   :  { %v5163_v22 = vpop.xlane.xlu0 %5162 }
0x19f5   :  { %v5191_v31 = vmul.f32 0.03125, %v5163_v22 }
0x19f6   :  { %v5166_v21 = vpop.xlane.xlu1 %5165 }
0x19f7   :  { %v5209_v44 = vadd.f32 1e-05, %v5191_v31  ;;  %v5192_v10 = vmul.f32 0.03125, %v5166_v21 }
0x19f9   :  { %7655 = vrsqrt.f32 %v5209_v44  ;;  %v5210_v51 = vadd.f32 1e-05, %v5192_v10  ;;  %v7233_v10 = vld [vmem:[%s11004_s12] sm:$0xff]  }
0x19fa   :  { %7103 = vmatpush3.bf16.msra.mxu0 %v7233_v10 }
0x19fb   :  { %v7652_v14 = vpop.eup %7651  ;;  %7657 = vrsqrt.f32 %v5210_v51  ;;  %7104 = vmatprep.subr.bf16.mxu0 %v11045_v48 }
0x19fc   :  { %v5243_v16 = vmul.f32 %v7652_v14, %v10850_v4  ;;  %v5169_v62 = vpop.xlane.xlu0 %5168 }
0x19fd   :  { %v7654_v9 = vpop.eup %7653  ;;  %v5193_v41 = vmul.f32 0.03125, %v5169_v62 }
0x19fe   :  { %v5265_v47 = vmul.f32 %v10695_v30, %v5243_v16  ;;  %v5244_v23 = vmul.f32 %v7654_v9, %v10852_v26  ;;  %v5172_v57 = vpop.xlane.xlu1 %5171 }
0x19ff   :  { %v5211_v43 = vadd.f32 1e-05, %v5193_v41  ;;  %v5194_v32 = vmul.f32 0.03125, %v5172_v57 }
0x1a00   :  { %v5266_v33 = vmul.f32 %v10695_v30, %v5244_v23  ;;  %v5287_v3 = vadd.f32 %v10701_v54, %v5265_v47 }
0x1a01   :  { %7659 = vrsqrt.f32 %v5211_v43  ;;  %v5212_v7 = vadd.f32 1e-05, %v5194_v32 }
0x1a02   :  { %v5288_v46 = vadd.f32 %v10701_v54, %v5266_v33 }
0x1a03   :  { %v7656_v53 = vpop.eup %7655  ;;  %7661 = vrsqrt.f32 %v5212_v7 }
0x1a04   :  { %v5300_v4 = vpack.c.bf16 %v5288_v46, %v5287_v3  ;;  %v5245_v27 = vmul.f32 %v7656_v53, %v10860_v25  ;;  %v5175_v18 = vpop.xlane.xlu0 %5174 }
0x1a05   :  { %v7658_v36 = vpop.eup %7657  ;;  %v5195_v39 = vmul.f32 0.03125, %v5175_v18 }
0x1a06   :  { %v5267_v26 = vmul.f32 %v10695_v30, %v5245_v27  ;;  %v5246_v15 = vmul.f32 %v7658_v36, %v10863_v17  ;;  %7043 = vmatmul.mubr.msk.bf16.gmra.mrb[36].mxu0 %vm135_vm0, %v5300_v4  ;;  %v5178_v13 = vpop.xlane.xlu1 %5177 }
0x1a07   :  { %v5213_v52 = vadd.f32 1e-05, %v5195_v39  ;;  %v5196_v49 = vmul.f32 0.03125, %v5178_v13  ;;  %7046 = vmatprep.mubr.msk.bf16.mxu0 %vm7696_vm1, %v11045_v48 }
0x1a08   :  { %v5268_v45 = vmul.f32 %v10695_v30, %v5246_v15  ;;  %v5289_v25 = vadd.f32 %v10701_v54, %v5267_v26 }
0x1a09   :  { %7663 = vrsqrt.f32 %v5213_v52  ;;  %v5214_v35 = vadd.f32 1e-05, %v5196_v49 }
0x1a0a   :  { %v5290_v56 = vadd.f32 %v10701_v54, %v5268_v45  ;;  %v5647_v45 = vld [vmem:[%s11003_s11] sm:$0x3] }
0x1a0b   :  { %v7660_v29 = vpop.eup %7659  ;;  %7665 = vrsqrt.f32 %v5214_v35 }
0x1a0c   :  { %v5301_v19 = vpack.c.bf16 %v5290_v56, %v5289_v25  ;;  %v5247_v17 = vmul.f32 %v7660_v29, %v10871_v55  ;;  %v11078_v56 = vld [vmem:[#allocation12_spill] sm:$0xff] }
0x1a0d   :  { %v7662_v58 = vpop.eup %7661  ;;  %v5687_v29 = vrot.slane %v5647_v45, %v11078_v56 }
0x1a0e   :  { %v5269_v5 = vmul.f32 %v10695_v30, %v5247_v17  ;;  %v5248_v24 = vmul.f32 %v7662_v58, %v10873_v20  ;;  %7047 = vmatmul.mubr.msk.bf16.gmra.mrb[40].mxu0 %vm135_vm0, %v5301_v19 }
0x1a0f   :  { %7050 = vmatprep.mubr.msk.bf16.mxu0 %vm7696_vm1, %v11045_v48 }
0x1a10   :  { %v5270_v50 = vmul.f32 %v10695_v30, %v5248_v24  ;;  %v5291_v12 = vadd.f32 %v10701_v54, %v5269_v5  ;;  %v11079_v5 = vld [vmem:[#allocation13_spill] sm:$0xff] }
0x1a11   :  { %v5693_v24 = vrot.slane %v5647_v45, %v11079_v5 }
0x1a12   :  { %v5292_v37 = vadd.f32 %v10701_v54, %v5270_v50 }
0x1a13   :  { %v7664_v63 = vpop.eup %7663 }
0x1a14   :  { %v5302_v11 = vpack.c.bf16 %v5292_v37, %v5291_v12  ;;  %v5249_v55 = vmul.f32 %v7664_v63, %v10881_v2 }
0x1a15   :  { %v7666_v59 = vpop.eup %7665 }
0x1a16   :  { %v5271_v61 = vmul.f32 %v10695_v30, %v5249_v55  ;;  %v5250_v20 = vmul.f32 %v7666_v59, %v10883_v0  ;;  %7051 = vmatmul.mubr.msk.bf16.gmra.mrb[44].mxu0 %vm135_vm0, %v5302_v11 }
0x1a17   :  { %7054 = vmatprep.mubr.msk.bf16.mxu0 %vm7696_vm1, %v11045_v48 }
0x1a18   :  { %v5272_v1 = vmul.f32 %v10695_v30, %v5250_v20  ;;  %v5293_v38 = vadd.f32 %v10701_v54, %v5271_v61 }
0x1a1a   :  { %v5294_v6 = vadd.f32 %v10701_v54, %v5272_v1 }
0x1a1c   :  { %v5303_v42 = vpack.c.bf16 %v5294_v6, %v5293_v38 }
0x1a1e   :  { %7055 = vmatmul.mubr.msk.bf16.gmra.mrb[48].mxu0 %vm135_vm0, %v5303_v42 }
0x1a1f   :  { %7106 = vmatprep.mubr.msk.bf16.mxu0 %vm7696_vm1, %v11045_v48 }
0x1a48   :  { %v5657_v2 = vpop.xlane.xlu0 %5656 }
0x1a49   :  { %v5658_v28 = vmul.f32 0.03125, %v5657_v2 }
0x1a4b   :  { %v5660_v0 = vrot.slane %v5658_v28, 1  ;;  %v5663_v60 = vsub.f32 %v10899_v40, %v5658_v28  ;;  %v7234_v40 = vld [vmem:[%s11004_s12 + $0x8] sm:$0xff]  }
0x1a4c   :  { %7105 = vmatpush3.bf16.msra.mxu0 %v7234_v40 }
0x1a4d   :  { %v5664_v22 = vsub.f32 %v10896_v8, %v5660_v0  ;;  %v5665_v21 = vmul.f32 %v5663_v60, %v5663_v60 }
0x1a4f   :  { %v5666_v31 = vmul.f32 %v5664_v22, %v5664_v22 }
0x1a51   :  { %v5669_v30 = vrot.slane %v5666_v31, 7 }
0x1a53   :  { %v5670_v44 = vsel %vm5651_vm7, %v5669_v30, %v5665_v21 }
0x1a54   :  { %v5672_v54 = vsel %vm5654_vm8, %v5670_v44, 0.0 }
0x1a55   :  { %5673 = vadd.xlane.f32.xlu1 %v5672_v54 }
0x1ad9   :  { %v5430_v8 = vpop.f32.mrb[36].mxu0 }
0x1ada   :  { %v5431_v51 = vadd.f32 %v10794_v34, %v5430_v8  ;;  %v7044_v14 = vpop.f32.mrb[37].mxu0 }
0x1adb   :  { %v5433_v16 = vpop.f32.mrb[38].mxu0 }
0x1adc   :  { %v5434_v62 = vadd.f32 %v10794_v34, %v5433_v16  ;;  %v7045_v9 = vpop.f32.mrb[39].mxu0  ;;  %v5471_v41 = vmax.f32 %v5431_v51, 0.0 }
0x1ade   :  { %v5472_v47 = vmax.f32 %v5434_v62, 0.0 }
0x1ae0   :  { %v5484_v23 = vpack.c.bf16 %v5472_v47, %v5471_v41 }
0x1ae1   :  { %v5438_v57 = vpop.f32.mrb[40].mxu0 }
0x1ae2   :  { %v5439_v43 = vadd.f32 %v10794_v34, %v5438_v57  ;;  %v7048_v32 = vpop.f32.mrb[41].mxu0  ;;  %7087 = vmatmul.mubr.msk.bf16.gmra.mrb[28].mxu1 %vm2754_vm6, %v5484_v23  ;;  %v5674_v33 = vpop.xlane.xlu1 %5673 }
0x1ae3   :  { %v5675_v7 = vmul.f32 0.03125, %v5674_v33  ;;  %v5441_v3 = vpop.f32.mrb[42].mxu0  ;;  %7090 = vmatprep.mubr.msk.bf16.mxu1 %vm7696_vm1, %v11045_v48  ;;  %v5991_v32 = vld [vmem:[%s11005_s13] ss:$0 sm:$0xff] }
0x1ae4   :  { %v5442_v46 = vadd.f32 %v10794_v34, %v5441_v3  ;;  %v7049_v53 = vpop.f32.mrb[43].mxu0  ;;  %v5473_v27 = vmax.f32 %v5439_v43, 0.0 }
0x1ae5   :  { %v5676_v4 = vadd.f32 1e-05, %v5675_v7 }
0x1ae6   :  { %v5474_v18 = vmax.f32 %v5442_v46, 0.0 }
0x1ae7   :  { %7667 = vrsqrt.f32 %v5676_v4 }
0x1ae8   :  { %v5485_v36 = vpack.c.bf16 %v5474_v18, %v5473_v27 }
0x1ae9   :  { %v5446_v39 = vpop.f32.mrb[44].mxu0 }
0x1aea   :  { %v5447_v26 = vadd.f32 %v10794_v34, %v5446_v39  ;;  %v7052_v15 = vpop.f32.mrb[45].mxu0  ;;  %7091 = vmatmul.mubr.msk.bf16.gmra.mrb[32].mxu1 %vm2754_vm6, %v5485_v36 }
0x1aeb   :  { %v5449_v13 = vpop.f32.mrb[46].mxu0  ;;  %7094 = vmatprep.mubr.msk.bf16.mxu1 %vm7696_vm1, %v11045_v48 }
0x1aec   :  { %v5450_v52 = vadd.f32 %v10794_v34, %v5449_v13  ;;  %v7053_v49 = vpop.f32.mrb[47].mxu0  ;;  %v5475_v35 = vmax.f32 %v5447_v26, 0.0 }
0x1aee   :  { %v5476_v25 = vmax.f32 %v5450_v52, 0.0 }
0x1af0   :  { %v5486_v19 = vpack.c.bf16 %v5476_v25, %v5475_v35 }
0x1af1   :  { %v7668_v17 = vpop.eup %7667  ;;  %v5454_v58 = vpop.f32.mrb[48].mxu0 }
0x1af2   :  { %v5679_v50 = vrot.slane %v7668_v17, 1  ;;  %v5682_v12 = vmul.f32 %v7668_v17, %v5663_v60  ;;  %v5455_v37 = vadd.f32 %v10794_v34, %v5454_v58  ;;  %v7056_v63 = vpop.f32.mrb[49].mxu0  ;;  %7095 = vmatmul.mubr.msk.bf16.gmra.mrb[36].mxu1 %vm2754_vm6, %v5486_v19 }
0x1af3   :  { %v5457_v11 = vpop.f32.mrb[50].mxu0  ;;  %7098 = vmatprep.mubr.msk.bf16.mxu1 %vm7696_vm1, %v11045_v48 }
0x1af4   :  { %v5683_v55 = vmul.f32 %v5679_v50, %v5664_v22  ;;  %v5688_v59 = vmul.f32 %v5687_v29, %v5682_v12  ;;  %v5458_v61 = vadd.f32 %v10794_v34, %v5457_v11  ;;  %v7057_v20 = vpop.f32.mrb[51].mxu0  ;;  %v5477_v6 = vmax.f32 %v5455_v37, 0.0 }
0x1af6   :  { %v5689_v1 = vmul.f32 %v5687_v29, %v5683_v55  ;;  %v5694_v38 = vadd.f32 %v5693_v24, %v5688_v59  ;;  %v5478_v42 = vmax.f32 %v5458_v61, 0.0 }
0x1af8   :  { %v5695_v2 = vadd.f32 %v5693_v24, %v5689_v1  ;;  %v5487_v28 = vpack.c.bf16 %v5478_v42, %v5477_v6  ;;  %v5696_v0 = vpack.c.bf16 %v5694_v38, %v5694_v38 }
0x1afa   :  { %v5697_v60 = vpack.c.bf16 %v5695_v2, %v5695_v2  ;;  %7099 = vmatmul.mubr.msk.bf16.gmra.mrb[40].mxu1 %vm2754_vm6, %v5487_v28  ;;  %v5711_v21 = vunpack.c.l.b16 %v5696_v0 }
0x1afc   :  { %v5712_v31 = vunpack.c.l.b16 %v5697_v60 }
0x1afe   :  { %v5713_v30 = vrot.slane %v5712_v31, 7 }
0x1b00   :  { %v5714_v48 = vsel %vm5651_vm7, %v5713_v30, %v5711_v21 }
0x1b01   :  { %v5715_v22 = vpack.c.b16 %v5714_v48, %v5714_v48 }
0x1b03   :  { %7107 = vmatmul.mubr.msk.bf16.vlgmr.msra.gmra.mrb[52].mxu0 %vm135_vm0, %v5715_v22 }
0x1bb5   :  { %v5622_v34 = vpop.f32.mrb[28].mxu1 }
0x1bb6   :  { %v7088_v44 = vpop.f32.mrb[29].mxu1 }
0x1bb7   :  { %v5624_v54 = vpop.f32.mrb[30].mxu1 }
0x1bb8   :  { %v7089_v10 = vpop.f32.mrb[31].mxu1 }
0x1bbd   :  { %v5628_v40 = vpop.f32.mrb[32].mxu1 }
0x1bbe   :  { %v7092_v8 = vpop.f32.mrb[33].mxu1 }
0x1bbf   :  { %v5630_v51 = vpop.f32.mrb[34].mxu1 }
0x1bc0   :  { %v7093_v14 = vpop.f32.mrb[35].mxu1 }
0x1bc5   :  { %v5634_v16 = vpop.f32.mrb[36].mxu1 }
0x1bc6   :  { %v7096_v62 = vpop.f32.mrb[37].mxu1 }
0x1bc7   :  { %v5636_v9 = vpop.f32.mrb[38].mxu1 }
0x1bc8   :  { %v7097_v41 = vpop.f32.mrb[39].mxu1 }
0x1bcd   :  { %v5640_v47 = vpop.f32.mrb[40].mxu1 }
0x1bce   :  { %v7100_v23 = vpop.f32.mrb[41].mxu1 }
0x1bcf   :  { %v5642_v57 = vpop.f32.mrb[42].mxu1 }
0x1bd0   :  { %v7101_v43 = vpop.f32.mrb[43].mxu1 }
0x1bd6   :  { %v5765_v33 = vpop.f32.mrb[52].mxu0 }
0x1bd7   :  { %v5766_v7 = vadd.f32 %v5991_v32, %v5765_v33  ;;  %v7108_v3 = vpop.f32.mrb[53].mxu0 }
0x1bd8   :  { %v5768_v46 = vpop.f32.mrb[54].mxu0 }
0x1bd9   :  { %5771 = vst [vmem:[#allocation2] sm:$0x3] %v5766_v7  ;;  %v7109_v53 = vpop.f32.mrb[55].mxu0 }
0x1bda   :  { %7682 = shalt.err (!%p7679_p4)
}
0x1bdb   :  { %s7683_s13 = scalar_lea.hbm %s11006_s14, 32 }
0x1bdc   :  { %p7684_p5 = scmp.ne.s32.totalorder %s11006_s14, %s7683_s13  ;;  %p7687_p6 = scmp.lt.u32.totalorder %s7683_s13, %s11006_s14 }
0x1bde   :  { %p7689_p7 = pnand %p7687_p6, %p7684_p5 }
0x1be0   :  { %7692 = shalt.err (!%p7689_p7)
}
0x1be1   :  { %5781 = dma.vmem_to_hbm [thread:$0]  %s5779_s5, 32, %s11006_s14, [#allocation3]  }
0x1be2   :  { %7693 = dma.done.wait [#allocation3], 32  }
0x1be3   :  { %7694 = vsyncadd [#allocation3], 4294967264 }
0x1be4   :  { %5785 = vsyncpa [#allocation3], 1 }

</bundles_post_ra>
